<compile_context>
chip_gen: v6e
topology: v6e:2x2x1
jax: 0.10.0
libtpu: 0.0.40
codegen_flags: <defaults>
</compile_context>

<pallas_src>
import numpy as np
import jax
import jax.numpy as jnp
from jax.experimental import pallas as pl
from jax.experimental.pallas import tpu as pltpu

# ---------------- configuration (small synthetic sizes, consistent with the module) ----
D_MODEL = 32
D_FFN = 64
N_HEADS = 4
N_LEVELS = 2
N_POINTS = 2
HEAD_DIM = D_MODEL // N_HEADS
SPATIAL_SHAPES = ((8, 8), (4, 4))                      # per-level (H, W)
LEVEL_START = (0, SPATIAL_SHAPES[0][0] * SPATIAL_SHAPES[0][1])
LEN_IN = sum(h * w for h, w in SPATIAL_SHAPES)         # 80
BATCH = 2
LN_EPS = 1e-5
HLP = N_HEADS * N_LEVELS * N_POINTS                    # 16
LP = N_LEVELS * N_POINTS                               # 4


def _build_static_geometry():
    """Trace-time constants describing the flattened multi-scale value grid."""
    rows, cols, lvls = [], [], []
    for lv, (h, w) in enumerate(SPATIAL_SHAPES):
        yy, xx = np.meshgrid(np.arange(h), np.arange(w), indexing="ij")
        rows.append(yy.reshape(-1))
        cols.append(xx.reshape(-1))
        lvls.append(np.full(h * w, lv))
    r_full = np.concatenate(rows).astype(np.float32)
    c_full = np.concatenate(cols).astype(np.float32)
    lvl_id = np.concatenate(lvls)
    geom = np.stack(
        [r_full, c_full] + [(lvl_id == lv).astype(np.float32) for lv in range(N_LEVELS)],
        axis=0)                                        # (2 + L, Len_in)
    hmask = np.zeros((N_HEADS, D_MODEL), np.float32)   # per-head column selector
    for h in range(N_HEADS):
        hmask[h, h * HEAD_DIM:(h + 1) * HEAD_DIM] = 1.0
    return geom, hmask


GEOM_NP, HEADMASK_NP = _build_static_geometry()


# ======================================================================================
# Fused Pallas kernel: whole encoder layer for one batch element per grid step
# ======================================================================================
def _encoder_layer_kernel(src_ref, pos_ref, refx_ref, refy_ref, vkeep_ref,
                          geom_ref, hmask_ref,
                          wv_ref, bv_ref, woa_ref, boa_ref,
                          wo_ref, bo_ref, g1_ref, be1_ref,
                          w1_ref, b1_ref, w2_ref, b2_ref, g2_ref, be2_ref,
                          o_ref):
    src = src_ref[0]                       # (Lin, D)
    query = src + pos_ref[0]               # with_pos_embed; Lq == Lin

    # --- projections: value, and fused [off_x | off_y | attn_logits] (one MXU pass each) ---
    value = jnp.dot(src, wv_ref[...], preferred_element_type=jnp.float32) + bv_ref[...]
    value = value * vkeep_ref[0]           # padding-mask (all-ones when no mask)
    oa = jnp.dot(query, woa_ref[...], preferred_element_type=jnp.float32) + boa_ref[...]
    off_x = oa[:, 0:HLP]
    off_y = oa[:, HLP:2 * HLP]
    logits = oa[:, 2 * HLP:3 * HLP]

    # sampling locations in pixel coords (align_corners=False):
    #   px = ref_x * W_l - 0.5 + off_x   (ref term precomputed in the wrapper)
    px = refx_ref[0] + off_x               # (Lq, HLP)
    py = refy_ref[0] + off_y

    # --- softmax over n_levels*n_points, per head ---
    attn = []
    for h in range(N_HEADS):
        g = logits[:, h * LP:(h + 1) * LP]
        m = jnp.max(g, axis=-1, keepdims=True)
        e = jnp.exp(g - m)
        attn.append(e / jnp.sum(e, axis=-1, keepdims=True))

    r_full = geom_ref[0:1, :]               # (1, Lin) row-in-level of each value position
    c_full = geom_ref[1:2, :]               # (1, Lin) col-in-level

    # --- dense bilinear sampling weights (== grid_sample zero-padding) + MXU sampling ---
    lq = src.shape[0]
    attn_out = jnp.zeros((lq, D_MODEL), jnp.float32)   # lane-dense (Lq, d_model) slab
    for h in range(N_HEADS):
        wsum = jnp.zeros((lq, LEN_IN), jnp.float32)
        for lv in range(N_LEVELS):
            lvl_mask = geom_ref[2 + lv:3 + lv, :]               # (1, Lin)
            for p in range(N_POINTS):
                col = (h * N_LEVELS + lv) * N_POINTS + p
                x = px[:, col:col + 1]
                y = py[:, col:col + 1]
                a = attn[h][:, lv * N_POINTS + p:lv * N_POINTS + p + 1]
                wx = jnp.maximum(1.0 - jnp.abs(x - c_full), 0.0)   # (Lq, Lin)
                wy = jnp.maximum(1.0 - jnp.abs(y - r_full), 0.0)
                wsum = wsum + (a * lvl_mask) * (wx * wy)
        # one (Lq,Lin)@(Lin,D) matmul per head; head-masked value keeps the head columns only
        attn_out = attn_out + jnp.dot(wsum, value * hmask_ref[h:h + 1, :],
                                      preferred_element_type=jnp.float32)

    # --- output_proj + residual (dropout1 == identity) + norm1 ---
    x = jnp.dot(attn_out, wo_ref[...], preferred_element_type=jnp.float32) + bo_ref[...]
    x = src + x
    mu = jnp.mean(x, axis=-1, keepdims=True)
    var = jnp.mean(jnp.square(x - mu), axis=-1, keepdims=True)
    x = g1_ref[...] * (x - mu) * jax.lax.rsqrt(var + LN_EPS) + be1_ref[...]

    # --- FFN: linear1 -> relu -> linear2 + residual + norm2 ---
    hidden = jnp.maximum(
        jnp.dot(x, w1_ref[...], preferred_element_type=jnp.float32) + b1_ref[...], 0.0)
    y = x + jnp.dot(hidden, w2_ref[...], preferred_element_type=jnp.float32) + b2_ref[...]
    mu2 = jnp.mean(y, axis=-1, keepdims=True)
    var2 = jnp.mean(jnp.square(y - mu2), axis=-1, keepdims=True)
    o_ref[0] = g2_ref[...] * (y - mu2) * jax.lax.rsqrt(var2 + LN_EPS) + be2_ref[...]


def deformable_encoder_layer_pallas(params, src, pos, reference_points,
                                    spatial_shapes=SPATIAL_SHAPES,
                                    level_start_index=LEVEL_START,
                                    padding_mask=None):
    del level_start_index                        # static geometry baked into GEOM_NP
    B, Lin, d = src.shape
    Lq = reference_points.shape[1]

    # Fuse [offset_x | offset_y | attn_logits] projections into one matmul; reorder the
    # offset columns so all x-components then all y-components are contiguous in (h,l,p) order.
    idx_x = np.arange(HLP) * 2
    idx_y = idx_x + 1
    w_oa = jnp.concatenate([params["w_off"][:, idx_x],
                            params["w_off"][:, idx_y],
                            params["w_attn"]], axis=1)               # (D, 3*HLP)
    b_oa = jnp.concatenate([params["b_off"][:, idx_x],
                            params["b_off"][:, idx_y],
                            params["b_attn"]], axis=1)               # (1, 3*HLP)

    # Reference points -> pixel-space bases (ref * size - 0.5), expanded to (h,l,p) columns.
    wl = np.array([w for (_, w) in spatial_shapes], np.float32)
    hl = np.array([h for (h, _) in spatial_shapes], np.float32)
    lvl_of_col = np.array([(c // N_POINTS) % N_LEVELS for c in range(HLP)], np.int32)
    refx = (reference_points[..., 0] * wl[None, None, :] - 0.5)[:, :, lvl_of_col]
    refy = (reference_points[..., 1] * hl[None, None, :] - 0.5)[:, :, lvl_of_col]

    vkeep = (jnp.ones((B, Lin, 1), jnp.float32) if padding_mask is None
             else (1.0 - padding_mask.astype(jnp.float32))[..., None])

    geom = jnp.asarray(GEOM_NP)
    hmask = jnp.asarray(HEADMASK_NP)

    per_batch = lambda i: (i, 0, 0)
    shared = lambda i: (0, 0)

    return pl.pallas_call(
        _encoder_layer_kernel,
        out_shape=jax.ShapeDtypeStruct((B, Lq, d), jnp.float32),
        grid=(B,),
        in_specs=[
            pl.BlockSpec((1, Lin, d), per_batch),        # src
            pl.BlockSpec((1, Lin, d), per_batch),        # pos
            pl.BlockSpec((1, Lq, HLP), per_batch),       # refx pixel base
            pl.BlockSpec((1, Lq, HLP), per_batch),       # refy pixel base
            pl.BlockSpec((1, Lin, 1), per_batch),        # value keep-mask
            pl.BlockSpec(geom.shape, shared),            # row/col/level-mask constants
            pl.BlockSpec(hmask.shape, shared),           # per-head column masks
            pl.BlockSpec((d, d), shared),                # w_value
            pl.BlockSpec((1, d), shared),                # b_value
            pl.BlockSpec((d, 3 * HLP), shared),          # fused offsets+logits weight
            pl.BlockSpec((1, 3 * HLP), shared),
            pl.BlockSpec((d, d), shared),                # w_out
            pl.BlockSpec((1, d), shared),
            pl.BlockSpec((1, d), shared),                # ln1 gamma
            pl.BlockSpec((1, d), shared),                # ln1 beta
            pl.BlockSpec((d, D_FFN), shared),            # w1
            pl.BlockSpec((1, D_FFN), shared),
            pl.BlockSpec((D_FFN, d), shared),            # w2
            pl.BlockSpec((1, d), shared),
            pl.BlockSpec((1, d), shared),                # ln2 gamma
            pl.BlockSpec((1, d), shared),                # ln2 beta
        ],
        out_specs=pl.BlockSpec((1, Lq, d), per_batch),
        compiler_params=pltpu.CompilerParams(
            dimension_semantics=("parallel",)),          # batch axis -> 2 TCs on v7x
    )(src, pos, refx, refy, vkeep, geom, hmask,
      params["w_value"], params["b_value"], w_oa, b_oa,
      params["w_out"], params["b_out"], params["ln1_g"], params["ln1_b"],
      params["w1"], params["b1"], params["w2"], params["b2"],
      params["ln2_g"], params["ln2_b"])


# ======================================================================================
# Pure-JAX reference (gather-based grid_sample) for validation
# ======================================================================================
def _layernorm(x, g, b):
    mu = jnp.mean(x, axis=-1, keepdims=True)
    var = jnp.mean(jnp.square(x - mu), axis=-1, keepdims=True)
    return g * (x - mu) * jax.lax.rsqrt(var + LN_EPS) + b


def reference_layer(params, src, pos, reference_points, spatial_shapes):
    B, Lin, d = src.shape
    Lq = reference_points.shape[1]
    query = src + pos
    value = src @ params["w_value"] + params["b_value"]
    off = (query @ params["w_off"] + params["b_off"]).reshape(
        B, Lq, N_HEADS, N_LEVELS, N_POINTS, 2)
    aw = (query @ params["w_attn"] + params["b_attn"]).reshape(
        B, Lq, N_HEADS, N_LEVELS * N_POINTS)
    aw = jax.nn.softmax(aw, axis=-1).reshape(B, Lq, N_HEADS, N_LEVELS, N_POINTS)
    normalizer = jnp.array([[w, h] for (h, w) in spatial_shapes], jnp.float32)
    loc = reference_points[:, :, None, :, None, :] + \
        off / normalizer[None, None, None, :, None, :]
    vt = value.reshape(B, Lin, N_HEADS, HEAD_DIM).transpose(0, 2, 1, 3)   # (B,H,Lin,Dh)

    out = jnp.zeros((B, N_HEADS, Lq, HEAD_DIM), jnp.float32)
    start = 0
    for lv, (H_, W_) in enumerate(spatial_shapes):
        S = H_ * W_
        v_l = vt[:, :, start:start + S]                                   # (B,H,S,Dh)
        x = loc[:, :, :, lv, :, 0] * W_ - 0.5                             # (B,Lq,H,P)
        y = loc[:, :, :, lv, :, 1] * H_ - 0.5
        x0 = jnp.floor(x); y0 = jnp.floor(y); x1 = x0 + 1.0; y1 = y0 + 1.0

        def corner(yy, xx):
            valid = (yy >= 0) & (yy <= H_ - 1) & (xx >= 0) & (xx <= W_ - 1)
            idx = (jnp.clip(yy, 0, H_ - 1) * W_ + jnp.clip(xx, 0, W_ - 1)).astype(jnp.int32)
            idx_t = idx.transpose(0, 2, 1, 3)                             # (B,H,Lq,P)
            g = jax.vmap(jax.vmap(lambda vb, ib: vb[ib]))(v_l, idx_t)     # (B,H,Lq,P,Dh)
            return jnp.where(valid.transpose(0, 2, 1, 3)[..., None], g, 0.0)

        w00 = ((y1 - y) * (x1 - x)).transpose(0, 2, 1, 3)
        w01 = ((y1 - y) * (x - x0)).transpose(0, 2, 1, 3)
        w10 = ((y - y0) * (x1 - x)).transpose(0, 2, 1, 3)
        w11 = ((y - y0) * (x - x0)).transpose(0, 2, 1, 3)
        samp = (w00[..., None] * corner(y0, x0) + w01[..., None] * corner(y0, x1)
                + w10[..., None] * corner(y1, x0) + w11[..., None] * corner(y1, x1))
        a_l = aw[:, :, :, lv].transpose(0, 2, 1, 3)                       # (B,H,Lq,P)
        out = out + jnp.sum(a_l[..., None] * samp, axis=3)
        start += S

    attn_out = out.transpose(0, 2, 1, 3).reshape(B, Lq, d)
    src2 = attn_out @ params["w_out"] + params["b_out"]
    x1s = _layernorm(src + src2, params["ln1_g"], params["ln1_b"])
    h = jax.nn.relu(x1s @ params["w1"] + params["b1"])
    y = x1s + h @ params["w2"] + params["b2"]
    return _layernorm(y, params["ln2_g"], params["ln2_b"])


# ======================================================================================
# Deterministic parameter / input construction
# ======================================================================================
def init_params(key):
    def dense(k, fan_in, fan_out):
        kw, kb = jax.random.split(k)
        w = jax.random.normal(kw, (fan_in, fan_out), jnp.float32) / np.sqrt(fan_in)
        b = jax.random.normal(kb, (1, fan_out), jnp.float32) * 0.01
        return w, b

    keys = jax.random.split(key, 6)
    p = {}
    p["w_value"], p["b_value"] = dense(keys[0], D_MODEL, D_MODEL)
    p["w_off"], p["b_off"] = dense(keys[1], D_MODEL, N_HEADS * N_LEVELS * N_POINTS * 2)
    p["w_attn"], p["b_attn"] = dense(keys[2], D_MODEL, N_HEADS * N_LEVELS * N_POINTS)
    p["w_out"], p["b_out"] = dense(keys[3], D_MODEL, D_MODEL)
    p["w1"], p["b1"] = dense(keys[4], D_MODEL, D_FFN)
    p["w2"], p["b2"] = dense(keys[5], D_FFN, D_MODEL)
    p["ln1_g"] = jnp.ones((1, D_MODEL), jnp.float32)
    p["ln1_b"] = jnp.zeros((1, D_MODEL), jnp.float32)
    p["ln2_g"] = jnp.ones((1, D_MODEL), jnp.float32)
    p["ln2_b"] = jnp.zeros((1, D_MODEL), jnp.float32)
    return p


def make_reference_points(spatial_shapes, batch):
    refs = []
    for (h, w) in spatial_shapes:
        ys = (jnp.arange(h, dtype=jnp.float32) + 0.5) / h
        xs = (jnp.arange(w, dtype=jnp.float32) + 0.5) / w
        yy, xx = jnp.meshgrid(ys, xs, indexing="ij")
        refs.append(jnp.stack([xx.reshape(-1), yy.reshape(-1)], axis=-1))
    ref = jnp.concatenate(refs, axis=0)                  # (Len, 2), (x, y) normalized
    return jnp.broadcast_to(ref[None, :, None, :],
                            (batch, ref.shape[0], len(spatial_shapes), 2))


if __name__ == "__main__":
    key = jax.random.PRNGKey(0)
    kp, ks, kpos = jax.random.split(key, 3)
    params = init_params(kp)
    src = jax.random.normal(ks, (BATCH, LEN_IN, D_MODEL), jnp.float32)
    pos = jax.random.normal(kpos, (BATCH, LEN_IN, D_MODEL), jnp.float32)
    reference_points = make_reference_points(SPATIAL_SHAPES, BATCH)

    layer = jax.jit(lambda p, s, ps, rp: deformable_encoder_layer_pallas(p, s, ps, rp))
    out = jax.block_until_ready(layer(params, src, pos, reference_points))

    ref = jax.block_until_ready(
        reference_layer(params, src, pos, reference_points, SPATIAL_SHAPES))

    assert out.shape == (BATCH, LEN_IN, D_MODEL)
    assert bool(jnp.all(jnp.isfinite(out)))
    max_diff = float(jnp.max(jnp.abs(out - ref)))
    assert max_diff < 5e-2, f"mismatch vs reference: max diff {max_diff}"
    print("KERNEL_OK")
</pallas_src>

<mosaic_0001>
module attributes {stable_mosaic.version = 11 : i64} {
  func.func @_encoder_layer_kernel(%arg0: i32, %arg1: memref<1x80x32xf32, #tpu.memory_space<vmem>>, %arg2: memref<1x80x32xf32, #tpu.memory_space<vmem>>, %arg3: memref<1x80x16xf32, #tpu.memory_space<vmem>>, %arg4: memref<1x80x16xf32, #tpu.memory_space<vmem>>, %arg5: memref<1x80x1xf32, #tpu.memory_space<vmem>>, %arg6: memref<4x80xf32, #tpu.memory_space<vmem>>, %arg7: memref<4x32xf32, #tpu.memory_space<vmem>>, %arg8: memref<32x32xf32, #tpu.memory_space<vmem>>, %arg9: memref<1x32xf32, #tpu.memory_space<vmem>>, %arg10: memref<32x48xf32, #tpu.memory_space<vmem>>, %arg11: memref<1x48xf32, #tpu.memory_space<vmem>>, %arg12: memref<32x32xf32, #tpu.memory_space<vmem>>, %arg13: memref<1x32xf32, #tpu.memory_space<vmem>>, %arg14: memref<1x32xf32, #tpu.memory_space<vmem>>, %arg15: memref<1x32xf32, #tpu.memory_space<vmem>>, %arg16: memref<32x64xf32, #tpu.memory_space<vmem>>, %arg17: memref<1x64xf32, #tpu.memory_space<vmem>>, %arg18: memref<64x32xf32, #tpu.memory_space<vmem>>, %arg19: memref<1x32xf32, #tpu.memory_space<vmem>>, %arg20: memref<1x32xf32, #tpu.memory_space<vmem>>, %arg21: memref<1x32xf32, #tpu.memory_space<vmem>>, %arg22: memref<1x80x32xf32, #tpu.memory_space<vmem>>) attributes {dimension_semantics = [#tpu.dimension_semantics<parallel>], iteration_bounds = array<i64: 2>, scalar_prefetch = 0 : i64, scratch_operands = 0 : i64, tpu.core_type = #tpu.core_type<tc>, window_params = [{transform_indices = @transform_0, window_bounds = array<i64: 1, 80, 32>}, {transform_indices = @transform_1, window_bounds = array<i64: 1, 80, 32>}, {transform_indices = @transform_2, window_bounds = array<i64: 1, 80, 16>}, {transform_indices = @transform_3, window_bounds = array<i64: 1, 80, 16>}, {transform_indices = @transform_4, window_bounds = array<i64: 1, 80, 1>}, {pipeline_mode = #tpu.pipeline_mode<synchronous>, transform_indices = @transform_5, window_bounds = array<i64: 4, 80>}, {pipeline_mode = #tpu.pipeline_mode<synchronous>, transform_indices = @transform_6, window_bounds = array<i64: 4, 32>}, {pipeline_mode = #tpu.pipeline_mode<synchronous>, transform_indices = @transform_7, window_bounds = array<i64: 32, 32>}, {pipeline_mode = #tpu.pipeline_mode<synchronous>, transform_indices = @transform_8, window_bounds = array<i64: 1, 32>}, {pipeline_mode = #tpu.pipeline_mode<synchronous>, transform_indices = @transform_9, window_bounds = array<i64: 32, 48>}, {pipeline_mode = #tpu.pipeline_mode<synchronous>, transform_indices = @transform_10, window_bounds = array<i64: 1, 48>}, {pipeline_mode = #tpu.pipeline_mode<synchronous>, transform_indices = @transform_11, window_bounds = array<i64: 32, 32>}, {pipeline_mode = #tpu.pipeline_mode<synchronous>, transform_indices = @transform_12, window_bounds = array<i64: 1, 32>}, {pipeline_mode = #tpu.pipeline_mode<synchronous>, transform_indices = @transform_13, window_bounds = array<i64: 1, 32>}, {pipeline_mode = #tpu.pipeline_mode<synchronous>, transform_indices = @transform_14, window_bounds = array<i64: 1, 32>}, {pipeline_mode = #tpu.pipeline_mode<synchronous>, transform_indices = @transform_15, window_bounds = array<i64: 32, 64>}, {pipeline_mode = #tpu.pipeline_mode<synchronous>, transform_indices = @transform_16, window_bounds = array<i64: 1, 64>}, {pipeline_mode = #tpu.pipeline_mode<synchronous>, transform_indices = @transform_17, window_bounds = array<i64: 64, 32>}, {pipeline_mode = #tpu.pipeline_mode<synchronous>, transform_indices = @transform_18, window_bounds = array<i64: 1, 32>}, {pipeline_mode = #tpu.pipeline_mode<synchronous>, transform_indices = @transform_19, window_bounds = array<i64: 1, 32>}, {pipeline_mode = #tpu.pipeline_mode<synchronous>, transform_indices = @transform_20, window_bounds = array<i64: 1, 32>}, {transform_indices = @transform_21, window_bounds = array<i64: 1, 80, 32>}]} {
    %c0 = arith.constant 0 : index
    %c0_0 = arith.constant 0 : index
    %c0_1 = arith.constant 0 : index
    %0 = vector.load %arg1[%c0, %c0_0, %c0_1] : memref<1x80x32xf32, #tpu.memory_space<vmem>>, vector<1x80x32xf32>
    %1 = vector.shape_cast %0 : vector<1x80x32xf32> to vector<80x32xf32>
    %c0_2 = arith.constant 0 : index
    %c0_3 = arith.constant 0 : index
    %c0_4 = arith.constant 0 : index
    %2 = vector.load %arg2[%c0_2, %c0_3, %c0_4] : memref<1x80x32xf32, #tpu.memory_space<vmem>>, vector<1x80x32xf32>
    %3 = vector.shape_cast %2 : vector<1x80x32xf32> to vector<80x32xf32>
    %4 = arith.addf %1, %3 : vector<80x32xf32>
    %c0_5 = arith.constant 0 : index
    %c0_6 = arith.constant 0 : index
    %5 = vector.load %arg8[%c0_5, %c0_6] : memref<32x32xf32, #tpu.memory_space<vmem>>, vector<32x32xf32>
    %cst = arith.constant dense<0.000000e+00> : vector<80x32xf32>
    %6 = tpu.matmul %1, %5, %cst {dimension_numbers = #tpu.dot_dimension_numbers<[1], [0], [0], [1], [0, 0, 1, 1], [], []>} : vector<80x32xf32>, vector<32x32xf32>, vector<80x32xf32> -> vector<80x32xf32>
    %c0_7 = arith.constant 0 : index
    %c0_8 = arith.constant 0 : index
    %7 = vector.load %arg9[%c0_7, %c0_8] : memref<1x32xf32, #tpu.memory_space<vmem>>, vector<1x32xf32>
    %8 = vector.broadcast %7 : vector<1x32xf32> to vector<80x32xf32>
    %9 = arith.addf %6, %8 : vector<80x32xf32>
    %c0_9 = arith.constant 0 : index
    %c0_10 = arith.constant 0 : index
    %c0_11 = arith.constant 0 : index
    %10 = vector.load %arg5[%c0_9, %c0_10, %c0_11] : memref<1x80x1xf32, #tpu.memory_space<vmem>>, vector<1x80x1xf32>
    %11 = vector.shape_cast %10 : vector<1x80x1xf32> to vector<80x1xf32>
    %12 = vector.broadcast %11 : vector<80x1xf32> to vector<80x32xf32>
    %13 = arith.mulf %9, %12 : vector<80x32xf32>
    %c0_12 = arith.constant 0 : index
    %c0_13 = arith.constant 0 : index
    %14 = vector.load %arg10[%c0_12, %c0_13] : memref<32x48xf32, #tpu.memory_space<vmem>>, vector<32x48xf32>
    %cst_14 = arith.constant dense<0.000000e+00> : vector<80x48xf32>
    %15 = tpu.matmul %4, %14, %cst_14 {dimension_numbers = #tpu.dot_dimension_numbers<[1], [0], [0], [1], [0, 0, 1, 1], [], []>} : vector<80x32xf32>, vector<32x48xf32>, vector<80x48xf32> -> vector<80x48xf32>
    %c0_15 = arith.constant 0 : index
    %c0_16 = arith.constant 0 : index
    %16 = vector.load %arg11[%c0_15, %c0_16] : memref<1x48xf32, #tpu.memory_space<vmem>>, vector<1x48xf32>
    %17 = vector.broadcast %16 : vector<1x48xf32> to vector<80x48xf32>
    %18 = arith.addf %15, %17 : vector<80x48xf32>
    %19 = vector.extract_strided_slice %18 {offsets = [0, 0], sizes = [80, 16], strides = [1, 1]} : vector<80x48xf32> to vector<80x16xf32>
    %20 = vector.extract_strided_slice %18 {offsets = [0, 16], sizes = [80, 16], strides = [1, 1]} : vector<80x48xf32> to vector<80x16xf32>
    %21 = vector.extract_strided_slice %18 {offsets = [0, 32], sizes = [80, 16], strides = [1, 1]} : vector<80x48xf32> to vector<80x16xf32>
    %c0_17 = arith.constant 0 : index
    %c0_18 = arith.constant 0 : index
    %c0_19 = arith.constant 0 : index
    %22 = vector.load %arg3[%c0_17, %c0_18, %c0_19] : memref<1x80x16xf32, #tpu.memory_space<vmem>>, vector<1x80x16xf32>
    %23 = vector.shape_cast %22 : vector<1x80x16xf32> to vector<80x16xf32>
    %24 = arith.addf %23, %19 : vector<80x16xf32>
    %c0_20 = arith.constant 0 : index
    %c0_21 = arith.constant 0 : index
    %c0_22 = arith.constant 0 : index
    %25 = vector.load %arg4[%c0_20, %c0_21, %c0_22] : memref<1x80x16xf32, #tpu.memory_space<vmem>>, vector<1x80x16xf32>
    %26 = vector.shape_cast %25 : vector<1x80x16xf32> to vector<80x16xf32>
    %27 = arith.addf %26, %20 : vector<80x16xf32>
    %28 = vector.extract_strided_slice %21 {offsets = [0, 0], sizes = [80, 4], strides = [1, 1]} : vector<80x16xf32> to vector<80x4xf32>
    %cst_23 = arith.constant dense<0xFF800000> : vector<80xf32>
    %29 = vector.multi_reduction <maximumf>, %28, %cst_23 [1] : vector<80x4xf32> to vector<80xf32>
    %30 = vector.shape_cast %29 : vector<80xf32> to vector<80x1xf32>
    %31 = vector.broadcast %30 : vector<80x1xf32> to vector<80x4xf32>
    %32 = arith.subf %28, %31 : vector<80x4xf32>
    %33 = math.exp %32 : vector<80x4xf32>
    %cst_24 = arith.constant dense<0.000000e+00> : vector<80xf32>
    %34 = vector.multi_reduction <add>, %33, %cst_24 [1] : vector<80x4xf32> to vector<80xf32>
    %35 = vector.shape_cast %34 : vector<80xf32> to vector<80x1xf32>
    %36 = vector.broadcast %35 : vector<80x1xf32> to vector<80x4xf32>
    %37 = arith.divf %33, %36 : vector<80x4xf32>
    %38 = vector.extract_strided_slice %21 {offsets = [0, 4], sizes = [80, 4], strides = [1, 1]} : vector<80x16xf32> to vector<80x4xf32>
    %cst_25 = arith.constant dense<0xFF800000> : vector<80xf32>
    %39 = vector.multi_reduction <maximumf>, %38, %cst_25 [1] : vector<80x4xf32> to vector<80xf32>
    %40 = vector.shape_cast %39 : vector<80xf32> to vector<80x1xf32>
    %41 = vector.broadcast %40 : vector<80x1xf32> to vector<80x4xf32>
    %42 = arith.subf %38, %41 : vector<80x4xf32>
    %43 = math.exp %42 : vector<80x4xf32>
    %cst_26 = arith.constant dense<0.000000e+00> : vector<80xf32>
    %44 = vector.multi_reduction <add>, %43, %cst_26 [1] : vector<80x4xf32> to vector<80xf32>
    %45 = vector.shape_cast %44 : vector<80xf32> to vector<80x1xf32>
    %46 = vector.broadcast %45 : vector<80x1xf32> to vector<80x4xf32>
    %47 = arith.divf %43, %46 : vector<80x4xf32>
    %48 = vector.extract_strided_slice %21 {offsets = [0, 8], sizes = [80, 4], strides = [1, 1]} : vector<80x16xf32> to vector<80x4xf32>
    %cst_27 = arith.constant dense<0xFF800000> : vector<80xf32>
    %49 = vector.multi_reduction <maximumf>, %48, %cst_27 [1] : vector<80x4xf32> to vector<80xf32>
    %50 = vector.shape_cast %49 : vector<80xf32> to vector<80x1xf32>
    %51 = vector.broadcast %50 : vector<80x1xf32> to vector<80x4xf32>
    %52 = arith.subf %48, %51 : vector<80x4xf32>
    %53 = math.exp %52 : vector<80x4xf32>
    %cst_28 = arith.constant dense<0.000000e+00> : vector<80xf32>
    %54 = vector.multi_reduction <add>, %53, %cst_28 [1] : vector<80x4xf32> to vector<80xf32>
    %55 = vector.shape_cast %54 : vector<80xf32> to vector<80x1xf32>
    %56 = vector.broadcast %55 : vector<80x1xf32> to vector<80x4xf32>
    %57 = arith.divf %53, %56 : vector<80x4xf32>
    %58 = vector.extract_strided_slice %21 {offsets = [0, 12], sizes = [80, 4], strides = [1, 1]} : vector<80x16xf32> to vector<80x4xf32>
    %cst_29 = arith.constant dense<0xFF800000> : vector<80xf32>
    %59 = vector.multi_reduction <maximumf>, %58, %cst_29 [1] : vector<80x4xf32> to vector<80xf32>
    %60 = vector.shape_cast %59 : vector<80xf32> to vector<80x1xf32>
    %61 = vector.broadcast %60 : vector<80x1xf32> to vector<80x4xf32>
    %62 = arith.subf %58, %61 : vector<80x4xf32>
    %63 = math.exp %62 : vector<80x4xf32>
    %cst_30 = arith.constant dense<0.000000e+00> : vector<80xf32>
    %64 = vector.multi_reduction <add>, %63, %cst_30 [1] : vector<80x4xf32> to vector<80xf32>
    %65 = vector.shape_cast %64 : vector<80xf32> to vector<80x1xf32>
    %66 = vector.broadcast %65 : vector<80x1xf32> to vector<80x4xf32>
    %67 = arith.divf %63, %66 : vector<80x4xf32>
    %c0_31 = arith.constant 0 : index
    %c0_32 = arith.constant 0 : index
    %68 = vector.load %arg6[%c0_31, %c0_32] : memref<4x80xf32, #tpu.memory_space<vmem>>, vector<1x80xf32>
    %c1 = arith.constant 1 : index
    %c0_33 = arith.constant 0 : index
    %69 = vector.load %arg6[%c1, %c0_33] : memref<4x80xf32, #tpu.memory_space<vmem>>, vector<1x80xf32>
    %cst_34 = arith.constant 0.000000e+00 : f32
    %70 = vector.broadcast %cst_34 : f32 to vector<80x32xf32>
    %cst_35 = arith.constant 0.000000e+00 : f32
    %71 = vector.broadcast %cst_35 : f32 to vector<80x80xf32>
    %c2 = arith.constant 2 : index
    %c0_36 = arith.constant 0 : index
    %72 = vector.load %arg6[%c2, %c0_36] : memref<4x80xf32, #tpu.memory_space<vmem>>, vector<1x80xf32>
    %73 = vector.extract_strided_slice %24 {offsets = [0, 0], sizes = [80, 1], strides = [1, 1]} : vector<80x16xf32> to vector<80x1xf32>
    %74 = vector.extract_strided_slice %27 {offsets = [0, 0], sizes = [80, 1], strides = [1, 1]} : vector<80x16xf32> to vector<80x1xf32>
    %75 = vector.extract_strided_slice %37 {offsets = [0, 0], sizes = [80, 1], strides = [1, 1]} : vector<80x4xf32> to vector<80x1xf32>
    %76 = vector.broadcast %73 : vector<80x1xf32> to vector<80x80xf32>
    %77 = vector.broadcast %69 : vector<1x80xf32> to vector<80x80xf32>
    %78 = arith.subf %76, %77 : vector<80x80xf32>
    %79 = math.absf %78 : vector<80x80xf32>
    %cst_37 = arith.constant 1.000000e+00 : f32
    %80 = vector.broadcast %cst_37 : f32 to vector<80x80xf32>
    %81 = arith.subf %80, %79 : vector<80x80xf32>
    %cst_38 = arith.constant 0.000000e+00 : f32
    %82 = vector.broadcast %cst_38 : f32 to vector<80x80xf32>
    %83 = arith.maximumf %81, %82 : vector<80x80xf32>
    %84 = vector.broadcast %74 : vector<80x1xf32> to vector<80x80xf32>
    %85 = vector.broadcast %68 : vector<1x80xf32> to vector<80x80xf32>
    %86 = arith.subf %84, %85 : vector<80x80xf32>
    %87 = math.absf %86 : vector<80x80xf32>
    %cst_39 = arith.constant 1.000000e+00 : f32
    %88 = vector.broadcast %cst_39 : f32 to vector<80x80xf32>
    %89 = arith.subf %88, %87 : vector<80x80xf32>
    %cst_40 = arith.constant 0.000000e+00 : f32
    %90 = vector.broadcast %cst_40 : f32 to vector<80x80xf32>
    %91 = arith.maximumf %89, %90 : vector<80x80xf32>
    %92 = vector.broadcast %75 : vector<80x1xf32> to vector<80x80xf32>
    %93 = vector.broadcast %72 : vector<1x80xf32> to vector<80x80xf32>
    %94 = arith.mulf %92, %93 : vector<80x80xf32>
    %95 = arith.mulf %83, %91 : vector<80x80xf32>
    %96 = arith.mulf %94, %95 : vector<80x80xf32>
    %97 = arith.addf %71, %96 : vector<80x80xf32>
    %98 = vector.extract_strided_slice %24 {offsets = [0, 1], sizes = [80, 1], strides = [1, 1]} : vector<80x16xf32> to vector<80x1xf32>
    %99 = vector.extract_strided_slice %27 {offsets = [0, 1], sizes = [80, 1], strides = [1, 1]} : vector<80x16xf32> to vector<80x1xf32>
    %100 = vector.extract_strided_slice %37 {offsets = [0, 1], sizes = [80, 1], strides = [1, 1]} : vector<80x4xf32> to vector<80x1xf32>
    %101 = vector.broadcast %98 : vector<80x1xf32> to vector<80x80xf32>
    %102 = vector.broadcast %69 : vector<1x80xf32> to vector<80x80xf32>
    %103 = arith.subf %101, %102 : vector<80x80xf32>
    %104 = math.absf %103 : vector<80x80xf32>
    %cst_41 = arith.constant 1.000000e+00 : f32
    %105 = vector.broadcast %cst_41 : f32 to vector<80x80xf32>
    %106 = arith.subf %105, %104 : vector<80x80xf32>
    %cst_42 = arith.constant 0.000000e+00 : f32
    %107 = vector.broadcast %cst_42 : f32 to vector<80x80xf32>
    %108 = arith.maximumf %106, %107 : vector<80x80xf32>
    %109 = vector.broadcast %99 : vector<80x1xf32> to vector<80x80xf32>
    %110 = vector.broadcast %68 : vector<1x80xf32> to vector<80x80xf32>
    %111 = arith.subf %109, %110 : vector<80x80xf32>
    %112 = math.absf %111 : vector<80x80xf32>
    %cst_43 = arith.constant 1.000000e+00 : f32
    %113 = vector.broadcast %cst_43 : f32 to vector<80x80xf32>
    %114 = arith.subf %113, %112 : vector<80x80xf32>
    %cst_44 = arith.constant 0.000000e+00 : f32
    %115 = vector.broadcast %cst_44 : f32 to vector<80x80xf32>
    %116 = arith.maximumf %114, %115 : vector<80x80xf32>
    %117 = vector.broadcast %100 : vector<80x1xf32> to vector<80x80xf32>
    %118 = vector.broadcast %72 : vector<1x80xf32> to vector<80x80xf32>
    %119 = arith.mulf %117, %118 : vector<80x80xf32>
    %120 = arith.mulf %108, %116 : vector<80x80xf32>
    %121 = arith.mulf %119, %120 : vector<80x80xf32>
    %122 = arith.addf %97, %121 : vector<80x80xf32>
    %c3 = arith.constant 3 : index
    %c0_45 = arith.constant 0 : index
    %123 = vector.load %arg6[%c3, %c0_45] : memref<4x80xf32, #tpu.memory_space<vmem>>, vector<1x80xf32>
    %124 = vector.extract_strided_slice %24 {offsets = [0, 2], sizes = [80, 1], strides = [1, 1]} : vector<80x16xf32> to vector<80x1xf32>
    %125 = vector.extract_strided_slice %27 {offsets = [0, 2], sizes = [80, 1], strides = [1, 1]} : vector<80x16xf32> to vector<80x1xf32>
    %126 = vector.extract_strided_slice %37 {offsets = [0, 2], sizes = [80, 1], strides = [1, 1]} : vector<80x4xf32> to vector<80x1xf32>
    %127 = vector.broadcast %124 : vector<80x1xf32> to vector<80x80xf32>
    %128 = vector.broadcast %69 : vector<1x80xf32> to vector<80x80xf32>
    %129 = arith.subf %127, %128 : vector<80x80xf32>
    %130 = math.absf %129 : vector<80x80xf32>
    %cst_46 = arith.constant 1.000000e+00 : f32
    %131 = vector.broadcast %cst_46 : f32 to vector<80x80xf32>
    %132 = arith.subf %131, %130 : vector<80x80xf32>
    %cst_47 = arith.constant 0.000000e+00 : f32
    %133 = vector.broadcast %cst_47 : f32 to vector<80x80xf32>
    %134 = arith.maximumf %132, %133 : vector<80x80xf32>
    %135 = vector.broadcast %125 : vector<80x1xf32> to vector<80x80xf32>
    %136 = vector.broadcast %68 : vector<1x80xf32> to vector<80x80xf32>
    %137 = arith.subf %135, %136 : vector<80x80xf32>
    %138 = math.absf %137 : vector<80x80xf32>
    %cst_48 = arith.constant 1.000000e+00 : f32
    %139 = vector.broadcast %cst_48 : f32 to vector<80x80xf32>
    %140 = arith.subf %139, %138 : vector<80x80xf32>
    %cst_49 = arith.constant 0.000000e+00 : f32
    %141 = vector.broadcast %cst_49 : f32 to vector<80x80xf32>
    %142 = arith.maximumf %140, %141 : vector<80x80xf32>
    %143 = vector.broadcast %126 : vector<80x1xf32> to vector<80x80xf32>
    %144 = vector.broadcast %123 : vector<1x80xf32> to vector<80x80xf32>
    %145 = arith.mulf %143, %144 : vector<80x80xf32>
    %146 = arith.mulf %134, %142 : vector<80x80xf32>
    %147 = arith.mulf %145, %146 : vector<80x80xf32>
    %148 = arith.addf %122, %147 : vector<80x80xf32>
    %149 = vector.extract_strided_slice %24 {offsets = [0, 3], sizes = [80, 1], strides = [1, 1]} : vector<80x16xf32> to vector<80x1xf32>
    %150 = vector.extract_strided_slice %27 {offsets = [0, 3], sizes = [80, 1], strides = [1, 1]} : vector<80x16xf32> to vector<80x1xf32>
    %151 = vector.extract_strided_slice %37 {offsets = [0, 3], sizes = [80, 1], strides = [1, 1]} : vector<80x4xf32> to vector<80x1xf32>
    %152 = vector.broadcast %149 : vector<80x1xf32> to vector<80x80xf32>
    %153 = vector.broadcast %69 : vector<1x80xf32> to vector<80x80xf32>
    %154 = arith.subf %152, %153 : vector<80x80xf32>
    %155 = math.absf %154 : vector<80x80xf32>
    %cst_50 = arith.constant 1.000000e+00 : f32
    %156 = vector.broadcast %cst_50 : f32 to vector<80x80xf32>
    %157 = arith.subf %156, %155 : vector<80x80xf32>
    %cst_51 = arith.constant 0.000000e+00 : f32
    %158 = vector.broadcast %cst_51 : f32 to vector<80x80xf32>
    %159 = arith.maximumf %157, %158 : vector<80x80xf32>
    %160 = vector.broadcast %150 : vector<80x1xf32> to vector<80x80xf32>
    %161 = vector.broadcast %68 : vector<1x80xf32> to vector<80x80xf32>
    %162 = arith.subf %160, %161 : vector<80x80xf32>
    %163 = math.absf %162 : vector<80x80xf32>
    %cst_52 = arith.constant 1.000000e+00 : f32
    %164 = vector.broadcast %cst_52 : f32 to vector<80x80xf32>
    %165 = arith.subf %164, %163 : vector<80x80xf32>
    %cst_53 = arith.constant 0.000000e+00 : f32
    %166 = vector.broadcast %cst_53 : f32 to vector<80x80xf32>
    %167 = arith.maximumf %165, %166 : vector<80x80xf32>
    %168 = vector.broadcast %151 : vector<80x1xf32> to vector<80x80xf32>
    %169 = vector.broadcast %123 : vector<1x80xf32> to vector<80x80xf32>
    %170 = arith.mulf %168, %169 : vector<80x80xf32>
    %171 = arith.mulf %159, %167 : vector<80x80xf32>
    %172 = arith.mulf %170, %171 : vector<80x80xf32>
    %173 = arith.addf %148, %172 : vector<80x80xf32>
    %c0_54 = arith.constant 0 : index
    %c0_55 = arith.constant 0 : index
    %174 = vector.load %arg7[%c0_54, %c0_55] : memref<4x32xf32, #tpu.memory_space<vmem>>, vector<1x32xf32>
    %175 = vector.broadcast %174 : vector<1x32xf32> to vector<80x32xf32>
    %176 = arith.mulf %13, %175 : vector<80x32xf32>
    %cst_56 = arith.constant dense<0.000000e+00> : vector<80x32xf32>
    %177 = tpu.matmul %173, %176, %cst_56 {dimension_numbers = #tpu.dot_dimension_numbers<[1], [0], [0], [1], [0, 0, 1, 1], [], []>} : vector<80x80xf32>, vector<80x32xf32>, vector<80x32xf32> -> vector<80x32xf32>
    %178 = arith.addf %70, %177 : vector<80x32xf32>
    %cst_57 = arith.constant 0.000000e+00 : f32
    %179 = vector.broadcast %cst_57 : f32 to vector<80x80xf32>
    %c2_58 = arith.constant 2 : index
    %c0_59 = arith.constant 0 : index
    %180 = vector.load %arg6[%c2_58, %c0_59] : memref<4x80xf32, #tpu.memory_space<vmem>>, vector<1x80xf32>
    %181 = vector.extract_strided_slice %24 {offsets = [0, 4], sizes = [80, 1], strides = [1, 1]} : vector<80x16xf32> to vector<80x1xf32>
    %182 = vector.extract_strided_slice %27 {offsets = [0, 4], sizes = [80, 1], strides = [1, 1]} : vector<80x16xf32> to vector<80x1xf32>
    %183 = vector.extract_strided_slice %47 {offsets = [0, 0], sizes = [80, 1], strides = [1, 1]} : vector<80x4xf32> to vector<80x1xf32>
    %184 = vector.broadcast %181 : vector<80x1xf32> to vector<80x80xf32>
    %185 = vector.broadcast %69 : vector<1x80xf32> to vector<80x80xf32>
    %186 = arith.subf %184, %185 : vector<80x80xf32>
    %187 = math.absf %186 : vector<80x80xf32>
    %cst_60 = arith.constant 1.000000e+00 : f32
    %188 = vector.broadcast %cst_60 : f32 to vector<80x80xf32>
    %189 = arith.subf %188, %187 : vector<80x80xf32>
    %cst_61 = arith.constant 0.000000e+00 : f32
    %190 = vector.broadcast %cst_61 : f32 to vector<80x80xf32>
    %191 = arith.maximumf %189, %190 : vector<80x80xf32>
    %192 = vector.broadcast %182 : vector<80x1xf32> to vector<80x80xf32>
    %193 = vector.broadcast %68 : vector<1x80xf32> to vector<80x80xf32>
    %194 = arith.subf %192, %193 : vector<80x80xf32>
    %195 = math.absf %194 : vector<80x80xf32>
    %cst_62 = arith.constant 1.000000e+00 : f32
    %196 = vector.broadcast %cst_62 : f32 to vector<80x80xf32>
    %197 = arith.subf %196, %195 : vector<80x80xf32>
    %cst_63 = arith.constant 0.000000e+00 : f32
    %198 = vector.broadcast %cst_63 : f32 to vector<80x80xf32>
    %199 = arith.maximumf %197, %198 : vector<80x80xf32>
    %200 = vector.broadcast %183 : vector<80x1xf32> to vector<80x80xf32>
    %201 = vector.broadcast %180 : vector<1x80xf32> to vector<80x80xf32>
    %202 = arith.mulf %200, %201 : vector<80x80xf32>
    %203 = arith.mulf %191, %199 : vector<80x80xf32>
    %204 = arith.mulf %202, %203 : vector<80x80xf32>
    %205 = arith.addf %179, %204 : vector<80x80xf32>
    %206 = vector.extract_strided_slice %24 {offsets = [0, 5], sizes = [80, 1], strides = [1, 1]} : vector<80x16xf32> to vector<80x1xf32>
    %207 = vector.extract_strided_slice %27 {offsets = [0, 5], sizes = [80, 1], strides = [1, 1]} : vector<80x16xf32> to vector<80x1xf32>
    %208 = vector.extract_strided_slice %47 {offsets = [0, 1], sizes = [80, 1], strides = [1, 1]} : vector<80x4xf32> to vector<80x1xf32>
    %209 = vector.broadcast %206 : vector<80x1xf32> to vector<80x80xf32>
    %210 = vector.broadcast %69 : vector<1x80xf32> to vector<80x80xf32>
    %211 = arith.subf %209, %210 : vector<80x80xf32>
    %212 = math.absf %211 : vector<80x80xf32>
    %cst_64 = arith.constant 1.000000e+00 : f32
    %213 = vector.broadcast %cst_64 : f32 to vector<80x80xf32>
    %214 = arith.subf %213, %212 : vector<80x80xf32>
    %cst_65 = arith.constant 0.000000e+00 : f32
    %215 = vector.broadcast %cst_65 : f32 to vector<80x80xf32>
    %216 = arith.maximumf %214, %215 : vector<80x80xf32>
    %217 = vector.broadcast %207 : vector<80x1xf32> to vector<80x80xf32>
    %218 = vector.broadcast %68 : vector<1x80xf32> to vector<80x80xf32>
    %219 = arith.subf %217, %218 : vector<80x80xf32>
    %220 = math.absf %219 : vector<80x80xf32>
    %cst_66 = arith.constant 1.000000e+00 : f32
    %221 = vector.broadcast %cst_66 : f32 to vector<80x80xf32>
    %222 = arith.subf %221, %220 : vector<80x80xf32>
    %cst_67 = arith.constant 0.000000e+00 : f32
    %223 = vector.broadcast %cst_67 : f32 to vector<80x80xf32>
    %224 = arith.maximumf %222, %223 : vector<80x80xf32>
    %225 = vector.broadcast %208 : vector<80x1xf32> to vector<80x80xf32>
    %226 = vector.broadcast %180 : vector<1x80xf32> to vector<80x80xf32>
    %227 = arith.mulf %225, %226 : vector<80x80xf32>
    %228 = arith.mulf %216, %224 : vector<80x80xf32>
    %229 = arith.mulf %227, %228 : vector<80x80xf32>
    %230 = arith.addf %205, %229 : vector<80x80xf32>
    %c3_68 = arith.constant 3 : index
    %c0_69 = arith.constant 0 : index
    %231 = vector.load %arg6[%c3_68, %c0_69] : memref<4x80xf32, #tpu.memory_space<vmem>>, vector<1x80xf32>
    %232 = vector.extract_strided_slice %24 {offsets = [0, 6], sizes = [80, 1], strides = [1, 1]} : vector<80x16xf32> to vector<80x1xf32>
    %233 = vector.extract_strided_slice %27 {offsets = [0, 6], sizes = [80, 1], strides = [1, 1]} : vector<80x16xf32> to vector<80x1xf32>
    %234 = vector.extract_strided_slice %47 {offsets = [0, 2], sizes = [80, 1], strides = [1, 1]} : vector<80x4xf32> to vector<80x1xf32>
    %235 = vector.broadcast %232 : vector<80x1xf32> to vector<80x80xf32>
    %236 = vector.broadcast %69 : vector<1x80xf32> to vector<80x80xf32>
    %237 = arith.subf %235, %236 : vector<80x80xf32>
    %238 = math.absf %237 : vector<80x80xf32>
    %cst_70 = arith.constant 1.000000e+00 : f32
    %239 = vector.broadcast %cst_70 : f32 to vector<80x80xf32>
    %240 = arith.subf %239, %238 : vector<80x80xf32>
    %cst_71 = arith.constant 0.000000e+00 : f32
    %241 = vector.broadcast %cst_71 : f32 to vector<80x80xf32>
    %242 = arith.maximumf %240, %241 : vector<80x80xf32>
    %243 = vector.broadcast %233 : vector<80x1xf32> to vector<80x80xf32>
    %244 = vector.broadcast %68 : vector<1x80xf32> to vector<80x80xf32>
    %245 = arith.subf %243, %244 : vector<80x80xf32>
    %246 = math.absf %245 : vector<80x80xf32>
    %cst_72 = arith.constant 1.000000e+00 : f32
    %247 = vector.broadcast %cst_72 : f32 to vector<80x80xf32>
    %248 = arith.subf %247, %246 : vector<80x80xf32>
    %cst_73 = arith.constant 0.000000e+00 : f32
    %249 = vector.broadcast %cst_73 : f32 to vector<80x80xf32>
    %250 = arith.maximumf %248, %249 : vector<80x80xf32>
    %251 = vector.broadcast %234 : vector<80x1xf32> to vector<80x80xf32>
    %252 = vector.broadcast %231 : vector<1x80xf32> to vector<80x80xf32>
    %253 = arith.mulf %251, %252 : vector<80x80xf32>
    %254 = arith.mulf %242, %250 : vector<80x80xf32>
    %255 = arith.mulf %253, %254 : vector<80x80xf32>
    %256 = arith.addf %230, %255 : vector<80x80xf32>
    %257 = vector.extract_strided_slice %24 {offsets = [0, 7], sizes = [80, 1], strides = [1, 1]} : vector<80x16xf32> to vector<80x1xf32>
    %258 = vector.extract_strided_slice %27 {offsets = [0, 7], sizes = [80, 1], strides = [1, 1]} : vector<80x16xf32> to vector<80x1xf32>
    %259 = vector.extract_strided_slice %47 {offsets = [0, 3], sizes = [80, 1], strides = [1, 1]} : vector<80x4xf32> to vector<80x1xf32>
    %260 = vector.broadcast %257 : vector<80x1xf32> to vector<80x80xf32>
    %261 = vector.broadcast %69 : vector<1x80xf32> to vector<80x80xf32>
    %262 = arith.subf %260, %261 : vector<80x80xf32>
    %263 = math.absf %262 : vector<80x80xf32>
    %cst_74 = arith.constant 1.000000e+00 : f32
    %264 = vector.broadcast %cst_74 : f32 to vector<80x80xf32>
    %265 = arith.subf %264, %263 : vector<80x80xf32>
    %cst_75 = arith.constant 0.000000e+00 : f32
    %266 = vector.broadcast %cst_75 : f32 to vector<80x80xf32>
    %267 = arith.maximumf %265, %266 : vector<80x80xf32>
    %268 = vector.broadcast %258 : vector<80x1xf32> to vector<80x80xf32>
    %269 = vector.broadcast %68 : vector<1x80xf32> to vector<80x80xf32>
    %270 = arith.subf %268, %269 : vector<80x80xf32>
    %271 = math.absf %270 : vector<80x80xf32>
    %cst_76 = arith.constant 1.000000e+00 : f32
    %272 = vector.broadcast %cst_76 : f32 to vector<80x80xf32>
    %273 = arith.subf %272, %271 : vector<80x80xf32>
    %cst_77 = arith.constant 0.000000e+00 : f32
    %274 = vector.broadcast %cst_77 : f32 to vector<80x80xf32>
    %275 = arith.maximumf %273, %274 : vector<80x80xf32>
    %276 = vector.broadcast %259 : vector<80x1xf32> to vector<80x80xf32>
    %277 = vector.broadcast %231 : vector<1x80xf32> to vector<80x80xf32>
    %278 = arith.mulf %276, %277 : vector<80x80xf32>
    %279 = arith.mulf %267, %275 : vector<80x80xf32>
    %280 = arith.mulf %278, %279 : vector<80x80xf32>
    %281 = arith.addf %256, %280 : vector<80x80xf32>
    %c1_78 = arith.constant 1 : index
    %c0_79 = arith.constant 0 : index
    %282 = vector.load %arg7[%c1_78, %c0_79] : memref<4x32xf32, #tpu.memory_space<vmem>>, vector<1x32xf32>
    %283 = vector.broadcast %282 : vector<1x32xf32> to vector<80x32xf32>
    %284 = arith.mulf %13, %283 : vector<80x32xf32>
    %cst_80 = arith.constant dense<0.000000e+00> : vector<80x32xf32>
    %285 = tpu.matmul %281, %284, %cst_80 {dimension_numbers = #tpu.dot_dimension_numbers<[1], [0], [0], [1], [0, 0, 1, 1], [], []>} : vector<80x80xf32>, vector<80x32xf32>, vector<80x32xf32> -> vector<80x32xf32>
    %286 = arith.addf %178, %285 : vector<80x32xf32>
    %cst_81 = arith.constant 0.000000e+00 : f32
    %287 = vector.broadcast %cst_81 : f32 to vector<80x80xf32>
    %c2_82 = arith.constant 2 : index
    %c0_83 = arith.constant 0 : index
    %288 = vector.load %arg6[%c2_82, %c0_83] : memref<4x80xf32, #tpu.memory_space<vmem>>, vector<1x80xf32>
    %289 = vector.extract_strided_slice %24 {offsets = [0, 8], sizes = [80, 1], strides = [1, 1]} : vector<80x16xf32> to vector<80x1xf32>
    %290 = vector.extract_strided_slice %27 {offsets = [0, 8], sizes = [80, 1], strides = [1, 1]} : vector<80x16xf32> to vector<80x1xf32>
    %291 = vector.extract_strided_slice %57 {offsets = [0, 0], sizes = [80, 1], strides = [1, 1]} : vector<80x4xf32> to vector<80x1xf32>
    %292 = vector.broadcast %289 : vector<80x1xf32> to vector<80x80xf32>
    %293 = vector.broadcast %69 : vector<1x80xf32> to vector<80x80xf32>
    %294 = arith.subf %292, %293 : vector<80x80xf32>
    %295 = math.absf %294 : vector<80x80xf32>
    %cst_84 = arith.constant 1.000000e+00 : f32
    %296 = vector.broadcast %cst_84 : f32 to vector<80x80xf32>
    %297 = arith.subf %296, %295 : vector<80x80xf32>
    %cst_85 = arith.constant 0.000000e+00 : f32
    %298 = vector.broadcast %cst_85 : f32 to vector<80x80xf32>
    %299 = arith.maximumf %297, %298 : vector<80x80xf32>
    %300 = vector.broadcast %290 : vector<80x1xf32> to vector<80x80xf32>
    %301 = vector.broadcast %68 : vector<1x80xf32> to vector<80x80xf32>
    %302 = arith.subf %300, %301 : vector<80x80xf32>
    %303 = math.absf %302 : vector<80x80xf32>
    %cst_86 = arith.constant 1.000000e+00 : f32
    %304 = vector.broadcast %cst_86 : f32 to vector<80x80xf32>
    %305 = arith.subf %304, %303 : vector<80x80xf32>
    %cst_87 = arith.constant 0.000000e+00 : f32
    %306 = vector.broadcast %cst_87 : f32 to vector<80x80xf32>
    %307 = arith.maximumf %305, %306 : vector<80x80xf32>
    %308 = vector.broadcast %291 : vector<80x1xf32> to vector<80x80xf32>
    %309 = vector.broadcast %288 : vector<1x80xf32> to vector<80x80xf32>
    %310 = arith.mulf %308, %309 : vector<80x80xf32>
    %311 = arith.mulf %299, %307 : vector<80x80xf32>
    %312 = arith.mulf %310, %311 : vector<80x80xf32>
    %313 = arith.addf %287, %312 : vector<80x80xf32>
    %314 = vector.extract_strided_slice %24 {offsets = [0, 9], sizes = [80, 1], strides = [1, 1]} : vector<80x16xf32> to vector<80x1xf32>
    %315 = vector.extract_strided_slice %27 {offsets = [0, 9], sizes = [80, 1], strides = [1, 1]} : vector<80x16xf32> to vector<80x1xf32>
    %316 = vector.extract_strided_slice %57 {offsets = [0, 1], sizes = [80, 1], strides = [1, 1]} : vector<80x4xf32> to vector<80x1xf32>
    %317 = vector.broadcast %314 : vector<80x1xf32> to vector<80x80xf32>
    %318 = vector.broadcast %69 : vector<1x80xf32> to vector<80x80xf32>
    %319 = arith.subf %317, %318 : vector<80x80xf32>
    %320 = math.absf %319 : vector<80x80xf32>
    %cst_88 = arith.constant 1.000000e+00 : f32
    %321 = vector.broadcast %cst_88 : f32 to vector<80x80xf32>
    %322 = arith.subf %321, %320 : vector<80x80xf32>
    %cst_89 = arith.constant 0.000000e+00 : f32
    %323 = vector.broadcast %cst_89 : f32 to vector<80x80xf32>
    %324 = arith.maximumf %322, %323 : vector<80x80xf32>
    %325 = vector.broadcast %315 : vector<80x1xf32> to vector<80x80xf32>
    %326 = vector.broadcast %68 : vector<1x80xf32> to vector<80x80xf32>
    %327 = arith.subf %325, %326 : vector<80x80xf32>
    %328 = math.absf %327 : vector<80x80xf32>
    %cst_90 = arith.constant 1.000000e+00 : f32
    %329 = vector.broadcast %cst_90 : f32 to vector<80x80xf32>
    %330 = arith.subf %329, %328 : vector<80x80xf32>
    %cst_91 = arith.constant 0.000000e+00 : f32
    %331 = vector.broadcast %cst_91 : f32 to vector<80x80xf32>
    %332 = arith.maximumf %330, %331 : vector<80x80xf32>
    %333 = vector.broadcast %316 : vector<80x1xf32> to vector<80x80xf32>
    %334 = vector.broadcast %288 : vector<1x80xf32> to vector<80x80xf32>
    %335 = arith.mulf %333, %334 : vector<80x80xf32>
    %336 = arith.mulf %324, %332 : vector<80x80xf32>
    %337 = arith.mulf %335, %336 : vector<80x80xf32>
    %338 = arith.addf %313, %337 : vector<80x80xf32>
    %c3_92 = arith.constant 3 : index
    %c0_93 = arith.constant 0 : index
    %339 = vector.load %arg6[%c3_92, %c0_93] : memref<4x80xf32, #tpu.memory_space<vmem>>, vector<1x80xf32>
    %340 = vector.extract_strided_slice %24 {offsets = [0, 10], sizes = [80, 1], strides = [1, 1]} : vector<80x16xf32> to vector<80x1xf32>
    %341 = vector.extract_strided_slice %27 {offsets = [0, 10], sizes = [80, 1], strides = [1, 1]} : vector<80x16xf32> to vector<80x1xf32>
    %342 = vector.extract_strided_slice %57 {offsets = [0, 2], sizes = [80, 1], strides = [1, 1]} : vector<80x4xf32> to vector<80x1xf32>
    %343 = vector.broadcast %340 : vector<80x1xf32> to vector<80x80xf32>
    %344 = vector.broadcast %69 : vector<1x80xf32> to vector<80x80xf32>
    %345 = arith.subf %343, %344 : vector<80x80xf32>
    %346 = math.absf %345 : vector<80x80xf32>
    %cst_94 = arith.constant 1.000000e+00 : f32
    %347 = vector.broadcast %cst_94 : f32 to vector<80x80xf32>
    %348 = arith.subf %347, %346 : vector<80x80xf32>
    %cst_95 = arith.constant 0.000000e+00 : f32
    %349 = vector.broadcast %cst_95 : f32 to vector<80x80xf32>
    %350 = arith.maximumf %348, %349 : vector<80x80xf32>
    %351 = vector.broadcast %341 : vector<80x1xf32> to vector<80x80xf32>
    %352 = vector.broadcast %68 : vector<1x80xf32> to vector<80x80xf32>
    %353 = arith.subf %351, %352 : vector<80x80xf32>
    %354 = math.absf %353 : vector<80x80xf32>
    %cst_96 = arith.constant 1.000000e+00 : f32
    %355 = vector.broadcast %cst_96 : f32 to vector<80x80xf32>
    %356 = arith.subf %355, %354 : vector<80x80xf32>
    %cst_97 = arith.constant 0.000000e+00 : f32
    %357 = vector.broadcast %cst_97 : f32 to vector<80x80xf32>
    %358 = arith.maximumf %356, %357 : vector<80x80xf32>
    %359 = vector.broadcast %342 : vector<80x1xf32> to vector<80x80xf32>
    %360 = vector.broadcast %339 : vector<1x80xf32> to vector<80x80xf32>
    %361 = arith.mulf %359, %360 : vector<80x80xf32>
    %362 = arith.mulf %350, %358 : vector<80x80xf32>
    %363 = arith.mulf %361, %362 : vector<80x80xf32>
    %364 = arith.addf %338, %363 : vector<80x80xf32>
    %365 = vector.extract_strided_slice %24 {offsets = [0, 11], sizes = [80, 1], strides = [1, 1]} : vector<80x16xf32> to vector<80x1xf32>
    %366 = vector.extract_strided_slice %27 {offsets = [0, 11], sizes = [80, 1], strides = [1, 1]} : vector<80x16xf32> to vector<80x1xf32>
    %367 = vector.extract_strided_slice %57 {offsets = [0, 3], sizes = [80, 1], strides = [1, 1]} : vector<80x4xf32> to vector<80x1xf32>
    %368 = vector.broadcast %365 : vector<80x1xf32> to vector<80x80xf32>
    %369 = vector.broadcast %69 : vector<1x80xf32> to vector<80x80xf32>
    %370 = arith.subf %368, %369 : vector<80x80xf32>
    %371 = math.absf %370 : vector<80x80xf32>
    %cst_98 = arith.constant 1.000000e+00 : f32
    %372 = vector.broadcast %cst_98 : f32 to vector<80x80xf32>
    %373 = arith.subf %372, %371 : vector<80x80xf32>
    %cst_99 = arith.constant 0.000000e+00 : f32
    %374 = vector.broadcast %cst_99 : f32 to vector<80x80xf32>
    %375 = arith.maximumf %373, %374 : vector<80x80xf32>
    %376 = vector.broadcast %366 : vector<80x1xf32> to vector<80x80xf32>
    %377 = vector.broadcast %68 : vector<1x80xf32> to vector<80x80xf32>
    %378 = arith.subf %376, %377 : vector<80x80xf32>
    %379 = math.absf %378 : vector<80x80xf32>
    %cst_100 = arith.constant 1.000000e+00 : f32
    %380 = vector.broadcast %cst_100 : f32 to vector<80x80xf32>
    %381 = arith.subf %380, %379 : vector<80x80xf32>
    %cst_101 = arith.constant 0.000000e+00 : f32
    %382 = vector.broadcast %cst_101 : f32 to vector<80x80xf32>
    %383 = arith.maximumf %381, %382 : vector<80x80xf32>
    %384 = vector.broadcast %367 : vector<80x1xf32> to vector<80x80xf32>
    %385 = vector.broadcast %339 : vector<1x80xf32> to vector<80x80xf32>
    %386 = arith.mulf %384, %385 : vector<80x80xf32>
    %387 = arith.mulf %375, %383 : vector<80x80xf32>
    %388 = arith.mulf %386, %387 : vector<80x80xf32>
    %389 = arith.addf %364, %388 : vector<80x80xf32>
    %c2_102 = arith.constant 2 : index
    %c0_103 = arith.constant 0 : index
    %390 = vector.load %arg7[%c2_102, %c0_103] : memref<4x32xf32, #tpu.memory_space<vmem>>, vector<1x32xf32>
    %391 = vector.broadcast %390 : vector<1x32xf32> to vector<80x32xf32>
    %392 = arith.mulf %13, %391 : vector<80x32xf32>
    %cst_104 = arith.constant dense<0.000000e+00> : vector<80x32xf32>
    %393 = tpu.matmul %389, %392, %cst_104 {dimension_numbers = #tpu.dot_dimension_numbers<[1], [0], [0], [1], [0, 0, 1, 1], [], []>} : vector<80x80xf32>, vector<80x32xf32>, vector<80x32xf32> -> vector<80x32xf32>
    %394 = arith.addf %286, %393 : vector<80x32xf32>
    %cst_105 = arith.constant 0.000000e+00 : f32
    %395 = vector.broadcast %cst_105 : f32 to vector<80x80xf32>
    %c2_106 = arith.constant 2 : index
    %c0_107 = arith.constant 0 : index
    %396 = vector.load %arg6[%c2_106, %c0_107] : memref<4x80xf32, #tpu.memory_space<vmem>>, vector<1x80xf32>
    %397 = vector.extract_strided_slice %24 {offsets = [0, 12], sizes = [80, 1], strides = [1, 1]} : vector<80x16xf32> to vector<80x1xf32>
    %398 = vector.extract_strided_slice %27 {offsets = [0, 12], sizes = [80, 1], strides = [1, 1]} : vector<80x16xf32> to vector<80x1xf32>
    %399 = vector.extract_strided_slice %67 {offsets = [0, 0], sizes = [80, 1], strides = [1, 1]} : vector<80x4xf32> to vector<80x1xf32>
    %400 = vector.broadcast %397 : vector<80x1xf32> to vector<80x80xf32>
    %401 = vector.broadcast %69 : vector<1x80xf32> to vector<80x80xf32>
    %402 = arith.subf %400, %401 : vector<80x80xf32>
    %403 = math.absf %402 : vector<80x80xf32>
    %cst_108 = arith.constant 1.000000e+00 : f32
    %404 = vector.broadcast %cst_108 : f32 to vector<80x80xf32>
    %405 = arith.subf %404, %403 : vector<80x80xf32>
    %cst_109 = arith.constant 0.000000e+00 : f32
    %406 = vector.broadcast %cst_109 : f32 to vector<80x80xf32>
    %407 = arith.maximumf %405, %406 : vector<80x80xf32>
    %408 = vector.broadcast %398 : vector<80x1xf32> to vector<80x80xf32>
    %409 = vector.broadcast %68 : vector<1x80xf32> to vector<80x80xf32>
    %410 = arith.subf %408, %409 : vector<80x80xf32>
    %411 = math.absf %410 : vector<80x80xf32>
    %cst_110 = arith.constant 1.000000e+00 : f32
    %412 = vector.broadcast %cst_110 : f32 to vector<80x80xf32>
    %413 = arith.subf %412, %411 : vector<80x80xf32>
    %cst_111 = arith.constant 0.000000e+00 : f32
    %414 = vector.broadcast %cst_111 : f32 to vector<80x80xf32>
    %415 = arith.maximumf %413, %414 : vector<80x80xf32>
    %416 = vector.broadcast %399 : vector<80x1xf32> to vector<80x80xf32>
    %417 = vector.broadcast %396 : vector<1x80xf32> to vector<80x80xf32>
    %418 = arith.mulf %416, %417 : vector<80x80xf32>
    %419 = arith.mulf %407, %415 : vector<80x80xf32>
    %420 = arith.mulf %418, %419 : vector<80x80xf32>
    %421 = arith.addf %395, %420 : vector<80x80xf32>
    %422 = vector.extract_strided_slice %24 {offsets = [0, 13], sizes = [80, 1], strides = [1, 1]} : vector<80x16xf32> to vector<80x1xf32>
    %423 = vector.extract_strided_slice %27 {offsets = [0, 13], sizes = [80, 1], strides = [1, 1]} : vector<80x16xf32> to vector<80x1xf32>
    %424 = vector.extract_strided_slice %67 {offsets = [0, 1], sizes = [80, 1], strides = [1, 1]} : vector<80x4xf32> to vector<80x1xf32>
    %425 = vector.broadcast %422 : vector<80x1xf32> to vector<80x80xf32>
    %426 = vector.broadcast %69 : vector<1x80xf32> to vector<80x80xf32>
    %427 = arith.subf %425, %426 : vector<80x80xf32>
    %428 = math.absf %427 : vector<80x80xf32>
    %cst_112 = arith.constant 1.000000e+00 : f32
    %429 = vector.broadcast %cst_112 : f32 to vector<80x80xf32>
    %430 = arith.subf %429, %428 : vector<80x80xf32>
    %cst_113 = arith.constant 0.000000e+00 : f32
    %431 = vector.broadcast %cst_113 : f32 to vector<80x80xf32>
    %432 = arith.maximumf %430, %431 : vector<80x80xf32>
    %433 = vector.broadcast %423 : vector<80x1xf32> to vector<80x80xf32>
    %434 = vector.broadcast %68 : vector<1x80xf32> to vector<80x80xf32>
    %435 = arith.subf %433, %434 : vector<80x80xf32>
    %436 = math.absf %435 : vector<80x80xf32>
    %cst_114 = arith.constant 1.000000e+00 : f32
    %437 = vector.broadcast %cst_114 : f32 to vector<80x80xf32>
    %438 = arith.subf %437, %436 : vector<80x80xf32>
    %cst_115 = arith.constant 0.000000e+00 : f32
    %439 = vector.broadcast %cst_115 : f32 to vector<80x80xf32>
    %440 = arith.maximumf %438, %439 : vector<80x80xf32>
    %441 = vector.broadcast %424 : vector<80x1xf32> to vector<80x80xf32>
    %442 = vector.broadcast %396 : vector<1x80xf32> to vector<80x80xf32>
    %443 = arith.mulf %441, %442 : vector<80x80xf32>
    %444 = arith.mulf %432, %440 : vector<80x80xf32>
    %445 = arith.mulf %443, %444 : vector<80x80xf32>
    %446 = arith.addf %421, %445 : vector<80x80xf32>
    %c3_116 = arith.constant 3 : index
    %c0_117 = arith.constant 0 : index
    %447 = vector.load %arg6[%c3_116, %c0_117] : memref<4x80xf32, #tpu.memory_space<vmem>>, vector<1x80xf32>
    %448 = vector.extract_strided_slice %24 {offsets = [0, 14], sizes = [80, 1], strides = [1, 1]} : vector<80x16xf32> to vector<80x1xf32>
    %449 = vector.extract_strided_slice %27 {offsets = [0, 14], sizes = [80, 1], strides = [1, 1]} : vector<80x16xf32> to vector<80x1xf32>
    %450 = vector.extract_strided_slice %67 {offsets = [0, 2], sizes = [80, 1], strides = [1, 1]} : vector<80x4xf32> to vector<80x1xf32>
    %451 = vector.broadcast %448 : vector<80x1xf32> to vector<80x80xf32>
    %452 = vector.broadcast %69 : vector<1x80xf32> to vector<80x80xf32>
    %453 = arith.subf %451, %452 : vector<80x80xf32>
    %454 = math.absf %453 : vector<80x80xf32>
    %cst_118 = arith.constant 1.000000e+00 : f32
    %455 = vector.broadcast %cst_118 : f32 to vector<80x80xf32>
    %456 = arith.subf %455, %454 : vector<80x80xf32>
    %cst_119 = arith.constant 0.000000e+00 : f32
    %457 = vector.broadcast %cst_119 : f32 to vector<80x80xf32>
    %458 = arith.maximumf %456, %457 : vector<80x80xf32>
    %459 = vector.broadcast %449 : vector<80x1xf32> to vector<80x80xf32>
    %460 = vector.broadcast %68 : vector<1x80xf32> to vector<80x80xf32>
    %461 = arith.subf %459, %460 : vector<80x80xf32>
    %462 = math.absf %461 : vector<80x80xf32>
    %cst_120 = arith.constant 1.000000e+00 : f32
    %463 = vector.broadcast %cst_120 : f32 to vector<80x80xf32>
    %464 = arith.subf %463, %462 : vector<80x80xf32>
    %cst_121 = arith.constant 0.000000e+00 : f32
    %465 = vector.broadcast %cst_121 : f32 to vector<80x80xf32>
    %466 = arith.maximumf %464, %465 : vector<80x80xf32>
    %467 = vector.broadcast %450 : vector<80x1xf32> to vector<80x80xf32>
    %468 = vector.broadcast %447 : vector<1x80xf32> to vector<80x80xf32>
    %469 = arith.mulf %467, %468 : vector<80x80xf32>
    %470 = arith.mulf %458, %466 : vector<80x80xf32>
    %471 = arith.mulf %469, %470 : vector<80x80xf32>
    %472 = arith.addf %446, %471 : vector<80x80xf32>
    %473 = vector.extract_strided_slice %24 {offsets = [0, 15], sizes = [80, 1], strides = [1, 1]} : vector<80x16xf32> to vector<80x1xf32>
    %474 = vector.extract_strided_slice %27 {offsets = [0, 15], sizes = [80, 1], strides = [1, 1]} : vector<80x16xf32> to vector<80x1xf32>
    %475 = vector.extract_strided_slice %67 {offsets = [0, 3], sizes = [80, 1], strides = [1, 1]} : vector<80x4xf32> to vector<80x1xf32>
    %476 = vector.broadcast %473 : vector<80x1xf32> to vector<80x80xf32>
    %477 = vector.broadcast %69 : vector<1x80xf32> to vector<80x80xf32>
    %478 = arith.subf %476, %477 : vector<80x80xf32>
    %479 = math.absf %478 : vector<80x80xf32>
    %cst_122 = arith.constant 1.000000e+00 : f32
    %480 = vector.broadcast %cst_122 : f32 to vector<80x80xf32>
    %481 = arith.subf %480, %479 : vector<80x80xf32>
    %cst_123 = arith.constant 0.000000e+00 : f32
    %482 = vector.broadcast %cst_123 : f32 to vector<80x80xf32>
    %483 = arith.maximumf %481, %482 : vector<80x80xf32>
    %484 = vector.broadcast %474 : vector<80x1xf32> to vector<80x80xf32>
    %485 = vector.broadcast %68 : vector<1x80xf32> to vector<80x80xf32>
    %486 = arith.subf %484, %485 : vector<80x80xf32>
    %487 = math.absf %486 : vector<80x80xf32>
    %cst_124 = arith.constant 1.000000e+00 : f32
    %488 = vector.broadcast %cst_124 : f32 to vector<80x80xf32>
    %489 = arith.subf %488, %487 : vector<80x80xf32>
    %cst_125 = arith.constant 0.000000e+00 : f32
    %490 = vector.broadcast %cst_125 : f32 to vector<80x80xf32>
    %491 = arith.maximumf %489, %490 : vector<80x80xf32>
    %492 = vector.broadcast %475 : vector<80x1xf32> to vector<80x80xf32>
    %493 = vector.broadcast %447 : vector<1x80xf32> to vector<80x80xf32>
    %494 = arith.mulf %492, %493 : vector<80x80xf32>
    %495 = arith.mulf %483, %491 : vector<80x80xf32>
    %496 = arith.mulf %494, %495 : vector<80x80xf32>
    %497 = arith.addf %472, %496 : vector<80x80xf32>
    %c3_126 = arith.constant 3 : index
    %c0_127 = arith.constant 0 : index
    %498 = vector.load %arg7[%c3_126, %c0_127] : memref<4x32xf32, #tpu.memory_space<vmem>>, vector<1x32xf32>
    %499 = vector.broadcast %498 : vector<1x32xf32> to vector<80x32xf32>
    %500 = arith.mulf %13, %499 : vector<80x32xf32>
    %cst_128 = arith.constant dense<0.000000e+00> : vector<80x32xf32>
    %501 = tpu.matmul %497, %500, %cst_128 {dimension_numbers = #tpu.dot_dimension_numbers<[1], [0], [0], [1], [0, 0, 1, 1], [], []>} : vector<80x80xf32>, vector<80x32xf32>, vector<80x32xf32> -> vector<80x32xf32>
    %502 = arith.addf %394, %501 : vector<80x32xf32>
    %c0_129 = arith.constant 0 : index
    %c0_130 = arith.constant 0 : index
    %503 = vector.load %arg12[%c0_129, %c0_130] : memref<32x32xf32, #tpu.memory_space<vmem>>, vector<32x32xf32>
    %cst_131 = arith.constant dense<0.000000e+00> : vector<80x32xf32>
    %504 = tpu.matmul %502, %503, %cst_131 {dimension_numbers = #tpu.dot_dimension_numbers<[1], [0], [0], [1], [0, 0, 1, 1], [], []>} : vector<80x32xf32>, vector<32x32xf32>, vector<80x32xf32> -> vector<80x32xf32>
    %c0_132 = arith.constant 0 : index
    %c0_133 = arith.constant 0 : index
    %505 = vector.load %arg13[%c0_132, %c0_133] : memref<1x32xf32, #tpu.memory_space<vmem>>, vector<1x32xf32>
    %506 = vector.broadcast %505 : vector<1x32xf32> to vector<80x32xf32>
    %507 = arith.addf %504, %506 : vector<80x32xf32>
    %508 = arith.addf %1, %507 : vector<80x32xf32>
    %cst_134 = arith.constant dense<0.000000e+00> : vector<80xf32>
    %509 = vector.multi_reduction <add>, %508, %cst_134 [1] : vector<80x32xf32> to vector<80xf32>
    %510 = vector.shape_cast %509 : vector<80xf32> to vector<80x1xf32>
    %cst_135 = arith.constant 3.200000e+01 : f32
    %511 = vector.broadcast %cst_135 : f32 to vector<80x1xf32>
    %512 = arith.divf %510, %511 : vector<80x1xf32>
    %513 = vector.broadcast %512 : vector<80x1xf32> to vector<80x32xf32>
    %514 = arith.subf %508, %513 : vector<80x32xf32>
    %515 = arith.mulf %514, %514 : vector<80x32xf32>
    %cst_136 = arith.constant dense<0.000000e+00> : vector<80xf32>
    %516 = vector.multi_reduction <add>, %515, %cst_136 [1] : vector<80x32xf32> to vector<80xf32>
    %517 = vector.shape_cast %516 : vector<80xf32> to vector<80x1xf32>
    %cst_137 = arith.constant 3.200000e+01 : f32
    %518 = vector.broadcast %cst_137 : f32 to vector<80x1xf32>
    %519 = arith.divf %517, %518 : vector<80x1xf32>
    %c0_138 = arith.constant 0 : index
    %c0_139 = arith.constant 0 : index
    %520 = vector.load %arg14[%c0_138, %c0_139] : memref<1x32xf32, #tpu.memory_space<vmem>>, vector<1x32xf32>
    %521 = vector.broadcast %512 : vector<80x1xf32> to vector<80x32xf32>
    %522 = arith.subf %508, %521 : vector<80x32xf32>
    %523 = vector.broadcast %520 : vector<1x32xf32> to vector<80x32xf32>
    %524 = arith.mulf %523, %522 : vector<80x32xf32>
    %cst_140 = arith.constant 9.99999974E-6 : f32
    %525 = vector.broadcast %cst_140 : f32 to vector<80x1xf32>
    %526 = arith.addf %519, %525 : vector<80x1xf32>
    %527 = math.rsqrt %526 : vector<80x1xf32>
    %528 = vector.broadcast %527 : vector<80x1xf32> to vector<80x32xf32>
    %529 = arith.mulf %524, %528 : vector<80x32xf32>
    %c0_141 = arith.constant 0 : index
    %c0_142 = arith.constant 0 : index
    %530 = vector.load %arg15[%c0_141, %c0_142] : memref<1x32xf32, #tpu.memory_space<vmem>>, vector<1x32xf32>
    %531 = vector.broadcast %530 : vector<1x32xf32> to vector<80x32xf32>
    %532 = arith.addf %529, %531 : vector<80x32xf32>
    %c0_143 = arith.constant 0 : index
    %c0_144 = arith.constant 0 : index
    %533 = vector.load %arg16[%c0_143, %c0_144] : memref<32x64xf32, #tpu.memory_space<vmem>>, vector<32x64xf32>
    %cst_145 = arith.constant dense<0.000000e+00> : vector<80x64xf32>
    %534 = tpu.matmul %532, %533, %cst_145 {dimension_numbers = #tpu.dot_dimension_numbers<[1], [0], [0], [1], [0, 0, 1, 1], [], []>} : vector<80x32xf32>, vector<32x64xf32>, vector<80x64xf32> -> vector<80x64xf32>
    %c0_146 = arith.constant 0 : index
    %c0_147 = arith.constant 0 : index
    %535 = vector.load %arg17[%c0_146, %c0_147] : memref<1x64xf32, #tpu.memory_space<vmem>>, vector<1x64xf32>
    %536 = vector.broadcast %535 : vector<1x64xf32> to vector<80x64xf32>
    %537 = arith.addf %534, %536 : vector<80x64xf32>
    %cst_148 = arith.constant 0.000000e+00 : f32
    %538 = vector.broadcast %cst_148 : f32 to vector<80x64xf32>
    %539 = arith.maximumf %537, %538 : vector<80x64xf32>
    %c0_149 = arith.constant 0 : index
    %c0_150 = arith.constant 0 : index
    %540 = vector.load %arg18[%c0_149, %c0_150] : memref<64x32xf32, #tpu.memory_space<vmem>>, vector<64x32xf32>
    %cst_151 = arith.constant dense<0.000000e+00> : vector<80x32xf32>
    %541 = tpu.matmul %539, %540, %cst_151 {dimension_numbers = #tpu.dot_dimension_numbers<[1], [0], [0], [1], [0, 0, 1, 1], [], []>} : vector<80x64xf32>, vector<64x32xf32>, vector<80x32xf32> -> vector<80x32xf32>
    %542 = arith.addf %532, %541 : vector<80x32xf32>
    %c0_152 = arith.constant 0 : index
    %c0_153 = arith.constant 0 : index
    %543 = vector.load %arg19[%c0_152, %c0_153] : memref<1x32xf32, #tpu.memory_space<vmem>>, vector<1x32xf32>
    %544 = vector.broadcast %543 : vector<1x32xf32> to vector<80x32xf32>
    %545 = arith.addf %542, %544 : vector<80x32xf32>
    %cst_154 = arith.constant dense<0.000000e+00> : vector<80xf32>
    %546 = vector.multi_reduction <add>, %545, %cst_154 [1] : vector<80x32xf32> to vector<80xf32>
    %547 = vector.shape_cast %546 : vector<80xf32> to vector<80x1xf32>
    %cst_155 = arith.constant 3.200000e+01 : f32
    %548 = vector.broadcast %cst_155 : f32 to vector<80x1xf32>
    %549 = arith.divf %547, %548 : vector<80x1xf32>
    %550 = vector.broadcast %549 : vector<80x1xf32> to vector<80x32xf32>
    %551 = arith.subf %545, %550 : vector<80x32xf32>
    %552 = arith.mulf %551, %551 : vector<80x32xf32>
    %cst_156 = arith.constant dense<0.000000e+00> : vector<80xf32>
    %553 = vector.multi_reduction <add>, %552, %cst_156 [1] : vector<80x32xf32> to vector<80xf32>
    %554 = vector.shape_cast %553 : vector<80xf32> to vector<80x1xf32>
    %cst_157 = arith.constant 3.200000e+01 : f32
    %555 = vector.broadcast %cst_157 : f32 to vector<80x1xf32>
    %556 = arith.divf %554, %555 : vector<80x1xf32>
    %c0_158 = arith.constant 0 : index
    %c0_159 = arith.constant 0 : index
    %557 = vector.load %arg20[%c0_158, %c0_159] : memref<1x32xf32, #tpu.memory_space<vmem>>, vector<1x32xf32>
    %558 = vector.broadcast %549 : vector<80x1xf32> to vector<80x32xf32>
    %559 = arith.subf %545, %558 : vector<80x32xf32>
    %560 = vector.broadcast %557 : vector<1x32xf32> to vector<80x32xf32>
    %561 = arith.mulf %560, %559 : vector<80x32xf32>
    %cst_160 = arith.constant 9.99999974E-6 : f32
    %562 = vector.broadcast %cst_160 : f32 to vector<80x1xf32>
    %563 = arith.addf %556, %562 : vector<80x1xf32>
    %564 = math.rsqrt %563 : vector<80x1xf32>
    %565 = vector.broadcast %564 : vector<80x1xf32> to vector<80x32xf32>
    %566 = arith.mulf %561, %565 : vector<80x32xf32>
    %c0_161 = arith.constant 0 : index
    %c0_162 = arith.constant 0 : index
    %567 = vector.load %arg21[%c0_161, %c0_162] : memref<1x32xf32, #tpu.memory_space<vmem>>, vector<1x32xf32>
    %568 = vector.broadcast %567 : vector<1x32xf32> to vector<80x32xf32>
    %569 = arith.addf %566, %568 : vector<80x32xf32>
    %c0_163 = arith.constant 0 : index
    %c0_164 = arith.constant 0 : index
    %c0_165 = arith.constant 0 : index
    %570 = vector.load %arg22[%c0_163, %c0_164, %c0_165] : memref<1x80x32xf32, #tpu.memory_space<vmem>>, vector<1x80x32xf32>
    %571 = vector.shape_cast %570 : vector<1x80x32xf32> to vector<80x32xf32>
    %572 = vector.shape_cast %569 : vector<80x32xf32> to vector<1x80x32xf32>
    tpu.vector_store %arg22[%c0_163, %c0_164, %c0_165], %572 {strides = array<i32>} : memref<1x80x32xf32, #tpu.memory_space<vmem>>, vector<1x80x32xf32>,
    return
  }
  func.func @transform_0(%arg0: i32) -> (i32, i32, i32) {
    %c0_i32 = arith.constant 0 : i32
    %c0_i32_0 = arith.constant 0 : i32
    %c0_i32_1 = arith.constant 0 : i32
    return %arg0, %c0_i32, %c0_i32_0 : i32, i32, i32
  }
  func.func @transform_1(%arg0: i32) -> (i32, i32, i32) {
    %c0_i32 = arith.constant 0 : i32
    %c0_i32_0 = arith.constant 0 : i32
    %c0_i32_1 = arith.constant 0 : i32
    return %arg0, %c0_i32, %c0_i32_0 : i32, i32, i32
  }
  func.func @transform_2(%arg0: i32) -> (i32, i32, i32) {
    %c0_i32 = arith.constant 0 : i32
    %c0_i32_0 = arith.constant 0 : i32
    %c0_i32_1 = arith.constant 0 : i32
    return %arg0, %c0_i32, %c0_i32_0 : i32, i32, i32
  }
  func.func @transform_3(%arg0: i32) -> (i32, i32, i32) {
    %c0_i32 = arith.constant 0 : i32
    %c0_i32_0 = arith.constant 0 : i32
    %c0_i32_1 = arith.constant 0 : i32
    return %arg0, %c0_i32, %c0_i32_0 : i32, i32, i32
  }
  func.func @transform_4(%arg0: i32) -> (i32, i32, i32) {
    %c0_i32 = arith.constant 0 : i32
    %c0_i32_0 = arith.constant 0 : i32
    %c0_i32_1 = arith.constant 0 : i32
    return %arg0, %c0_i32, %c0_i32_0 : i32, i32, i32
  }
  func.func @transform_5(%arg0: i32) -> (i32, i32) {
    %c0_i32 = arith.constant 0 : i32
    %c0_i32_0 = arith.constant 0 : i32
    %c0_i32_1 = arith.constant 0 : i32
    return %c0_i32, %c0_i32_0 : i32, i32
  }
  func.func @transform_6(%arg0: i32) -> (i32, i32) {
    %c0_i32 = arith.constant 0 : i32
    %c0_i32_0 = arith.constant 0 : i32
    %c0_i32_1 = arith.constant 0 : i32
    return %c0_i32, %c0_i32_0 : i32, i32
  }
  func.func @transform_7(%arg0: i32) -> (i32, i32) {
    %c0_i32 = arith.constant 0 : i32
    %c0_i32_0 = arith.constant 0 : i32
    %c0_i32_1 = arith.constant 0 : i32
    return %c0_i32, %c0_i32_0 : i32, i32
  }
  func.func @transform_8(%arg0: i32) -> (i32, i32) {
    %c0_i32 = arith.constant 0 : i32
    %c0_i32_0 = arith.constant 0 : i32
    %c0_i32_1 = arith.constant 0 : i32
    return %c0_i32, %c0_i32_0 : i32, i32
  }
  func.func @transform_9(%arg0: i32) -> (i32, i32) {
    %c0_i32 = arith.constant 0 : i32
    %c0_i32_0 = arith.constant 0 : i32
    %c0_i32_1 = arith.constant 0 : i32
    return %c0_i32, %c0_i32_0 : i32, i32
  }
  func.func @transform_10(%arg0: i32) -> (i32, i32) {
    %c0_i32 = arith.constant 0 : i32
    %c0_i32_0 = arith.constant 0 : i32
    %c0_i32_1 = arith.constant 0 : i32
    return %c0_i32, %c0_i32_0 : i32, i32
  }
  func.func @transform_11(%arg0: i32) -> (i32, i32) {
    %c0_i32 = arith.constant 0 : i32
    %c0_i32_0 = arith.constant 0 : i32
    %c0_i32_1 = arith.constant 0 : i32
    return %c0_i32, %c0_i32_0 : i32, i32
  }
  func.func @transform_12(%arg0: i32) -> (i32, i32) {
    %c0_i32 = arith.constant 0 : i32
    %c0_i32_0 = arith.constant 0 : i32
    %c0_i32_1 = arith.constant 0 : i32
    return %c0_i32, %c0_i32_0 : i32, i32
  }
  func.func @transform_13(%arg0: i32) -> (i32, i32) {
    %c0_i32 = arith.constant 0 : i32
    %c0_i32_0 = arith.constant 0 : i32
    %c0_i32_1 = arith.constant 0 : i32
    return %c0_i32, %c0_i32_0 : i32, i32
  }
  func.func @transform_14(%arg0: i32) -> (i32, i32) {
    %c0_i32 = arith.constant 0 : i32
    %c0_i32_0 = arith.constant 0 : i32
    %c0_i32_1 = arith.constant 0 : i32
    return %c0_i32, %c0_i32_0 : i32, i32
  }
  func.func @transform_15(%arg0: i32) -> (i32, i32) {
    %c0_i32 = arith.constant 0 : i32
    %c0_i32_0 = arith.constant 0 : i32
    %c0_i32_1 = arith.constant 0 : i32
    return %c0_i32, %c0_i32_0 : i32, i32
  }
  func.func @transform_16(%arg0: i32) -> (i32, i32) {
    %c0_i32 = arith.constant 0 : i32
    %c0_i32_0 = arith.constant 0 : i32
    %c0_i32_1 = arith.constant 0 : i32
    return %c0_i32, %c0_i32_0 : i32, i32
  }
  func.func @transform_17(%arg0: i32) -> (i32, i32) {
    %c0_i32 = arith.constant 0 : i32
    %c0_i32_0 = arith.constant 0 : i32
    %c0_i32_1 = arith.constant 0 : i32
    return %c0_i32, %c0_i32_0 : i32, i32
  }
  func.func @transform_18(%arg0: i32) -> (i32, i32) {
    %c0_i32 = arith.constant 0 : i32
    %c0_i32_0 = arith.constant 0 : i32
    %c0_i32_1 = arith.constant 0 : i32
    return %c0_i32, %c0_i32_0 : i32, i32
  }
  func.func @transform_19(%arg0: i32) -> (i32, i32) {
    %c0_i32 = arith.constant 0 : i32
    %c0_i32_0 = arith.constant 0 : i32
    %c0_i32_1 = arith.constant 0 : i32
    return %c0_i32, %c0_i32_0 : i32, i32
  }
  func.func @transform_20(%arg0: i32) -> (i32, i32) {
    %c0_i32 = arith.constant 0 : i32
    %c0_i32_0 = arith.constant 0 : i32
    %c0_i32_1 = arith.constant 0 : i32
    return %c0_i32, %c0_i32_0 : i32, i32
  }
  func.func @transform_21(%arg0: i32) -> (i32, i32, i32) {
    %c0_i32 = arith.constant 0 : i32
    %c0_i32_0 = arith.constant 0 : i32
    %c0_i32_1 = arith.constant 0 : i32
    return %arg0, %c0_i32, %c0_i32_0 : i32, i32, i32
  }
}

</mosaic_0001>

<bundles_post_ra>
// kernel: _lambda_.1
= control target key start
LH: loop header
LB: loop body
LE: loop exit
PB: predicated region body
PF: predicated region fallthrough
CT: control target
= control target key end

     0   :  { %s12897_s0 = inlined_call_operand.vmem [shape: f32[2,80,32], index: 0, kind: input, shape index: {}]   ;;  %s12898_s1 = inlined_call_operand.vmem [shape: f32[2,80,32], index: 1, kind: input, shape index: {}]   ;;  %s12899_s2 = inlined_call_operand.vmem [shape: f32[2,80,16], index: 2, kind: input, shape index: {}]   ;;  %s12900_s3 = inlined_call_operand.vmem [shape: f32[2,80,16], index: 3, kind: input, shape index: {}]   ;;  %s12901_s4 = inlined_call_operand.vmem [shape: f32[2,80,1], index: 4, kind: input, shape index: {}]   ;;  %s12902_s5 = inlined_call_operand.vmem [shape: f32[4,80], index: 5, kind: input, shape index: {}]   ;;  %s12903_s6 = inlined_call_operand.vmem [shape: f32[4,32], index: 6, kind: input, shape index: {}]   ;;  %s12904_s7 = inlined_call_operand.vmem [shape: f32[32,32], index: 7, kind: input, shape index: {}]   ;;  %s12905_s8 = inlined_call_operand.vmem [shape: f32[1,32], index: 8, kind: input, shape index: {}]   ;;  %s12906_s9 = inlined_call_operand.vmem [shape: f32[32,48], index: 9, kind: input, shape index: {}]   ;;  %s12907_s10 = inlined_call_operand.vmem [shape: f32[1,48], index: 10, kind: input, shape index: {}]   ;;  %s12908_s11 = inlined_call_operand.vmem [shape: f32[32,32], index: 11, kind: input, shape index: {}]   ;;  %s12909_s12 = inlined_call_operand.vmem [shape: f32[1,32], index: 12, kind: input, shape index: {}]   ;;  %s12910_s13 = inlined_call_operand.vmem [shape: f32[1,32], index: 13, kind: input, shape index: {}]   ;;  %s12911_s14 = inlined_call_operand.vmem [shape: f32[1,32], index: 14, kind: input, shape index: {}]   ;;  %s12912_s15 = inlined_call_operand.vmem [shape: f32[32,64], index: 15, kind: input, shape index: {}]   ;;  %s12913_s16 = inlined_call_operand.vmem [shape: f32[1,64], index: 16, kind: input, shape index: {}]   ;;  %s12914_s17 = inlined_call_operand.vmem [shape: f32[64,32], index: 17, kind: input, shape index: {}]   ;;  %s12915_s18 = inlined_call_operand.vmem [shape: f32[1,32], index: 18, kind: input, shape index: {}]   ;;  %s12916_s19 = inlined_call_operand.vmem [shape: f32[1,32], index: 19, kind: input, shape index: {}]   ;;  %s12917_s20 = inlined_call_operand.vmem [shape: f32[1,32], index: 20, kind: input, shape index: {}]   ;;  %s12918_s21 = inlined_call_operand.vmem [shape: f32[2,80,32], index: 21, kind: output, shape index: {}]  }
   0x1   :  { %13135 = sst [smem:[#allocation149_spill]] %s12897_s0 }
   0x2   :  { %13136 = sst [smem:[#allocation150_spill]] %s12898_s1 }
   0x3   :  { %13137 = sst [smem:[#allocation151_spill]] %s12899_s2  ;;  %s8561_s2 = smov 0  }
   0x4   :  { %13138 = sst [smem:[#allocation152_spill]] %s12900_s3 }
   0x5   :  { %13139 = sst [smem:[#allocation153_spill]] %s12901_s4 }
   0x6   :  { %13140 = sst [smem:[#allocation154_spill]] %s12902_s5 }
   0x7 LB: > { %s7371_s25 = sadd.s32 4294967295, %s8412_s2   ;;  %p7375_p0 = scmp.ge.s32.totalorder %s8412_s2, 1  ;;  %s8412_s2 = sphi %s8561_s2, %s31_s2  }
   0x8   : > { %p627_p1 = scmp.lt.s32.totalorder %s8412_s2, 3 }
   0xa   : > { %p628_p2 = pnand %p7375_p0, %p627_p1 }
   0xc   : > { %631 = sbr.rel (%p628_p2) target bundleno = 3694 (0xe6e), region = 104 }
  0x11   : > { %v997_v0 = vld [vmem:[%s12906_s9 + $0x18] sm:$0xff]  ;;  %v996_v1 = vld [vmem:[%s12906_s9 + $0x10] sm:$0xff]  ;;  %p707_p3 = scmp.lt.s32.totalorder %s7371_s25, 1  ;;  %v8414_v4 = vmov 0   ;;  %v995_v5 = vld [vmem:[%s12906_s9 + $0x8] sm:$0xff]  ;;  %s13141_s4 = sld [smem:[#allocation149_spill]] }
  0x12   : > { %7668 = vmatprep.subr.mxu1 %v997_v0  ;;  %v770_v2 = vld [vmem:[%s12904_s7 + $0x18] sm:$0xff]  ;;  %v769_v3 = vld [vmem:[%s12904_s7 + $0x10] sm:$0xff]  ;;  %7971 = vset.pattern.permute.xlu1 %v8414_v4  ;;  %v768_v6 = vld [vmem:[%s12904_s7 + $0x8] sm:$0xff]  ;;  %s13142_s23 = sld [smem:[#allocation150_spill]]  ;;  %vm778_vm0 = vcmask 261120   ;;  %vm1382_vm1 = vcmask 326944  }
  0x13   : > { %7669 = vmatpush3.msra.mxu1 %v997_v0  ;;  %s13987_s25 = smov (!%p707_p3, %s7371_s25), 1  ;;  %7645 = vmatprep.subr.mxu0 %v770_v2  ;;  %v994_v7 = vld [vmem:[%s12906_s9] sm:$0xff]  ;;  %s13143_s26 = sld [smem:[#allocation153_spill]]  ;;  %vm1533_vm2 = vcmask 359744   ;;  %vm1684_vm3 = vcmask 392544   ;;  %vm1230_vm4 = vcmask 294144  }
  0x14   : > { %7670 = vmatprep.subr.mxu1 %v996_v1  ;;  %7646 = vmatpush3.msra.mxu0 %v770_v2  ;;  %s8590_s27 = smul.u32 80, %s13987_s25  ;;  %v767_v8 = vld [vmem:[%s12904_s7] sm:$0xff]  ;;  %s8415_s0 = smov 112   ;;  %vm1331_vm5 = vcmask 31744   ;;  %vm3845_vm6 = vcmask 654336   ;;  %vm6921_vm7 = vcmask 523264  }
  0x15   : > { %7671 = vmatpush3.msra.mxu1 %v996_v1  ;;  %7647 = vmatprep.subr.mxu0 %v769_v3  ;;  %v8666_v52 = vld [vmem:[%s12907_s10] ss:$0 sm:$0xff]  ;;  %s8416_s29 = smov 96   ;;  %s8419_s5 = smov 84  }
  0x16   : > { %7672 = vmatprep.subr.mxu1 %v995_v5  ;;  %7648 = vmatpush3.msra.mxu0 %v769_v3  ;;  %v7382_v1 = vld [vmem:[%s12905_s8] ss:$0 sm:$0xff] }
  0x17   : > { %7673 = vmatpush3.msra.mxu1 %v995_v5  ;;  %s8599_s30 = scalar_lea.vmem %s13141_s4, %s8590_s27  ;;  %7649 = vmatprep.subr.mxu0 %v768_v6  ;;  %s8418_s4 = smov 88  }
  0x18   : > { %s8605_s25 = scalar_lea.vmem %s13142_s23, %s8590_s27  ;;  %7674 = vmatprep.subr.mxu1 %v994_v7  ;;  %v737_v9 = vld [vmem:[%s8599_s30] sm:$0xff]  ;;  %v738_v11 = vld [vmem:[%s8599_s30 + $0x8] sm:$0xff]  ;;  %7650 = vmatpush3.msra.mxu0 %v768_v6  ;;  %v739_v14 = vld [vmem:[%s8599_s30 + $0x10] sm:$0xff] }
  0x19   : > { %v747_v10 = vld [vmem:[%s8605_s25] sm:$0xff]  ;;  %7675 = vmatpush3.msra.mxu1 %v994_v7  ;;  %v748_v13 = vld [vmem:[%s8605_s25 + $0x8] sm:$0xff]  ;;  %v749_v15 = vld [vmem:[%s8605_s25 + $0x10] sm:$0xff]  ;;  %7651 = vmatprep.subr.mxu0 %v767_v8  ;;  %s8623_s3 = scalar_lea.vmem %s13143_s26, %s8590_s27 }
  0x1a   : > { %v757_v12 = vadd.f32 %v747_v10, %v737_v9  ;;  %v758_v16 = vadd.f32 %v748_v13, %v738_v11  ;;  %v759_v17 = vadd.f32 %v749_v15, %v739_v14  ;;  %v740_v18 = vld [vmem:[%s8599_s30 + $0x18] sm:$0xff]  ;;  %7652 = vmatpush3.msra.mxu0 %v767_v8  ;;  %7653 = vmatprep.mubr.msk.f32.mxu0 %vm778_vm0, %v737_v9  ;;  %v751_v20 = vld [vmem:[%s8605_s25 + $0x20] sm:$0xff]  ;;  %v752_v24 = vld [vmem:[%s8605_s25 + $0x28] sm:$0xff] }
  0x1b   : > { %v750_v19 = vld [vmem:[%s8605_s25 + $0x18] sm:$0xff]  ;;  %7654 = vmatmul.mubr.msk.f32.vlgmr.msra.gmra.mxu0 %vm778_vm0, %v738_v11  ;;  %v741_v22 = vld [vmem:[%s8599_s30 + $0x20] sm:$0xff]  ;;  %7970 = vset.pattern.permute.xlu0 %v8414_v4  ;;  %v753_v25 = vld [vmem:[%s8605_s25 + $0x30] sm:$0xff] }
  0x1c   : > { %7676 = vmatprep.mubr.msk.f32.mxu1 %vm778_vm0, %v757_v12  ;;  %v760_v21 = vadd.f32 %v750_v19, %v740_v18  ;;  %7656 = vmatprep.mubr.msk.f32.mxu0 %vm778_vm0, %v739_v14  ;;  %v761_v23 = vadd.f32 %v751_v20, %v741_v22  ;;  %v926_v26 = vld [vmem:[%s8623_s3 + $0x10] sm:$0xff]  ;;  %v742_v27 = vld [vmem:[%s8599_s30 + $0x28] sm:$0xff]  ;;  %v924_v28 = vld [vmem:[%s8623_s3] sm:$0xff] }
  0x1d   : > { %7677 = vmatmul.mubr.msk.f32.vlgmr.msra.gmra.mxu1 %vm778_vm0, %v758_v16  ;;  %946 = vperm.xlu1 %7971, %v926_v26   ;;  %v762_v29 = vadd.f32 %v752_v24, %v742_v27  ;;  %v743_v30 = vld [vmem:[%s8599_s30 + $0x30] sm:$0xff]  ;;  %v927_v31 = vld [vmem:[%s8623_s3 + $0x18] sm:$0xff]  ;;  %v755_v34 = vld [vmem:[%s8605_s25 + $0x40] sm:$0xff] }
  0x1e   : > { %7679 = vmatprep.mubr.msk.f32.mxu1 %vm778_vm0, %v759_v17  ;;  %v763_v32 = vadd.f32 %v753_v25, %v743_v30  ;;  %v754_v33 = vld [vmem:[%s8605_s25 + $0x38] sm:$0xff]  ;;  %936 = vperm.xlu0 %7970, %v924_v28   ;;  %v925_v35 = vld [vmem:[%s8623_s3 + $0x8] sm:$0xff]  ;;  %v745_v38 = vld [vmem:[%s8599_s30 + $0x40] sm:$0xff] }
  0x1f   : > { %7657 = vmatmul.mubr.msk.f32.gmra.mxu0 %vm778_vm0, %v740_v18  ;;  %v744_v36 = vld [vmem:[%s8599_s30 + $0x38] sm:$0xff]  ;;  %v929_v39 = vld [vmem:[%s8623_s3 + $0x28] sm:$0xff]  ;;  %v765_v40 = vadd.f32 %v755_v34, %v745_v38  ;;  %v928_v42 = vld [vmem:[%s8623_s3 + $0x20] sm:$0xff] }
  0x20   : > { %7659 = vmatprep.mubr.msk.f32.mxu0 %vm778_vm0, %v741_v22  ;;  %v764_v37 = vadd.f32 %v754_v33, %v744_v36  ;;  %v756_v41 = vld [vmem:[%s8605_s25 + $0x48] sm:$0xff]  ;;  %v931_v45 = vld [vmem:[%s8623_s3 + $0x38] sm:$0xff]  ;;  %v930_v46 = vld [vmem:[%s8623_s3 + $0x30] sm:$0xff]  ;;  %s13186_s25 = sld [smem:[#allocation151_spill]] }
  0x21   : > { %7680 = vmatmul.mubr.msk.f32.gmra.mxu1 %vm778_vm0, %v760_v21  ;;  %951 = vperm.xlu1 %7971, %v927_v31   ;;  %v746_v43 = vld [vmem:[%s8599_s30 + $0x48] sm:$0xff]  ;;  %v932_v48 = vld [vmem:[%s8623_s3 + $0x40] sm:$0xff] }
  0x22   : > { %7682 = vmatprep.mubr.msk.f32.mxu1 %vm778_vm0, %v761_v23  ;;  %941 = vperm.xlu0 %7970, %v925_v35   ;;  %v766_v44 = vadd.f32 %v756_v41, %v746_v43  ;;  %v933_v47 = vld [vmem:[%s8623_s3 + $0x48] sm:$0xff]  ;;  %v8685_v22 = vld [vmem:[%s12903_s6 + $0x3] ss:$0 sm:$0xff]  ;;  %s13194_s3 = sld [smem:[#allocation152_spill]] }
  0x23   : > { %7660 = vmatmul.mubr.msk.f32.gmra.mxu0 %vm778_vm0, %v742_v27 }
  0x24   : > { %7662 = vmatprep.mubr.msk.f32.mxu0 %vm778_vm0, %v743_v30  ;;  %v8703_v30 = vld [vmem:[%s12903_s6] ss:$0 sm:$0xff] }
  0x25   : > { %7683 = vmatmul.mubr.msk.f32.gmra.mxu1 %vm778_vm0, %v762_v29  ;;  %961 = vperm.xlu1 %7971, %v929_v39   ;;  %v8698_v29 = vld [vmem:[%s12903_s6 + $0x1] ss:$0 sm:$0xff] }
  0x26   : > { %7685 = vmatprep.mubr.msk.f32.mxu1 %vm778_vm0, %v763_v32  ;;  %956 = vperm.xlu0 %7970, %v928_v42   ;;  %s721_s1 = scalar_lea.vmem %s13186_s25, %s8590_s27 }
  0x27   : > { %7663 = vmatmul.mubr.msk.f32.gmra.mxu0 %vm778_vm0, %v744_v36 }
  0x28   : > { %7665 = vmatprep.mubr.msk.f32.mxu0 %vm778_vm0, %v745_v38  ;;  %s9242_s28 = scalar_lea.vmem %s13194_s3, %s8590_s27 }
  0x29   : > { %7686 = vmatmul.mubr.msk.f32.gmra.mxu1 %vm778_vm0, %v764_v37  ;;  %971 = vperm.xlu1 %7971, %v931_v45  }
  0x2a   : > { %7688 = vmatprep.mubr.msk.f32.mxu1 %vm778_vm0, %v765_v40  ;;  %966 = vperm.xlu0 %7970, %v930_v46  }
  0x2b   : > { %7666 = vmatmul.mubr.msk.f32.gmra.mxu0 %vm778_vm0, %v746_v43 }
  0x2d   : > { %7689 = vmatmul.mubr.msk.f32.gmra.mxu1 %vm778_vm0, %v766_v44  ;;  %981 = vperm.xlu1 %7971, %v933_v47   ;;  %v8723_v44 = vld [vmem:[%s12903_s6 + $0x2] ss:$0 sm:$0xff] }
  0x2e   : > { %976 = vperm.xlu0 %7970, %v932_v48  }
  0x98   : > { %v947_v49 = vpop.permute.xlu1 %946 }
  0x99   : > { %v937_v50 = vpop.permute.xlu0 %936 }
  0x9c   : > { %v952_v51 = vpop.permute.xlu1 %951 }
  0x9d   : > { %v942_v54 = vpop.permute.xlu0 %941 }
  0xa0   : > { %v962_v60 = vpop.permute.xlu1 %961 }
  0xa1   : > { %v957_v62 = vpop.permute.xlu0 %956 }
  0xa4   : > { %v972_v3 = vpop.permute.xlu1 %971 }
  0xa5   : > { %v967_v7 = vpop.permute.xlu0 %966 }
  0xa8   : > { %v982_v19 = vpop.permute.xlu1 %981 }
  0xa9   : > { %v977_v28 = vpop.permute.xlu0 %976 }
  0xdb   : > { %v7655_v53 = vpop.f32.mrf.mxu0 }
  0xdc   : > { %v881_v9 = vadd.f32 %v7655_v53, %v7382_v1 }
  0xdd   : > { %v7678_v55 = vpop.f32.mrf.mxu1  ;;  %v875_v57 = vpop.f32.mrf.mxu0 }
  0xde   : > { %v8669_v56 = vadd.f32 %v7678_v55, %v8666_v52  ;;  %v876_v10 = vadd.f32 %v7382_v1, %v875_v57  ;;  %v8693_v26 = vmul.f32 %v942_v54, %v881_v9 }
  0xdf   : > { %v7658_v59 = vpop.f32.mrf.mxu0 }
  0xe0   : > { %1192 = vrot.lane.b32.xlu1 %v8669_v56, %s8415_s0  ;;  %v1386_v58 = vsel %vm1382_vm1, %v8669_v56, -inf  ;;  %v1537_v63 = vsel %vm1533_vm2, %v8669_v56, -inf  ;;  %v1688_v5 = vsel %vm1684_vm3, %v8669_v56, -inf  ;;  %v891_v11 = vadd.f32 %v7658_v59, %v7382_v1 }
  0xe1   : > { %1387 = vmax.xlane.f32.xlu0 %v1386_v58  ;;  %v885_v61 = vpop.f32.mrf.mxu0  ;;  %v8687_v23 = vmul.f32 %v937_v50, %v876_v10  ;;  %v8749_v54 = vmul.f32 %v8685_v22, %v8693_v26  ;;  %v3836_v10 = vmul.f32 %v8698_v29, %v8693_v26 }
  0xe2   : > { %v886_v12 = vadd.f32 %v7382_v1, %v885_v61  ;;  %v8689_v24 = vmul.f32 %v952_v51, %v891_v11  ;;  %v2851_v11 = vmul.f32 %v8703_v30, %v8693_v26 }
  0xe3   : > { %v7661_v0 = vpop.f32.mrf.mxu0  ;;  %13151 = vst [vmem:[#allocation9_spill] sm:$0xff] %v8749_v54  ;;  %v8753_v55 = vmul.f32 %v8685_v22, %v8687_v23 }
  0xe4   : > { %v901_v4 = vadd.f32 %v7661_v0, %v7382_v1  ;;  %v8691_v25 = vmul.f32 %v947_v49, %v886_v12  ;;  %v8741_v51 = vmul.f32 %v8685_v22, %v8689_v24  ;;  %v8780_v0 = vmul.f32 %v8723_v44, %v8693_v26 }
  0xe5   : > { %1538 = vmax.xlane.f32.xlu0 %v1537_v63  ;;  %v895_v2 = vpop.f32.mrf.mxu0  ;;  %13152 = vst [vmem:[#allocation10_spill] sm:$0xff] %v8753_v55  ;;  %v3835_v12 = vmul.f32 %v8698_v29, %v8687_v23 }
  0xe6   : > { %v989_v14 = vmul.f32 %v962_v60, %v901_v4  ;;  %v896_v15 = vadd.f32 %v7382_v1, %v895_v2  ;;  %13149 = vst [vmem:[#allocation7_spill] sm:$0xff] %v8741_v51  ;;  %v8745_v53 = vmul.f32 %v8685_v22, %v8691_v25  ;;  %v8776_v63 = vmul.f32 %v8723_v44, %v8691_v25  ;;  %v1101_v4 = vpop.f32.mrf.mxu1 }
  0xe7   : > { %v7664_v6 = vpop.f32.mrf.mxu0  ;;  %13160 = vst [vmem:[#allocation18_spill] sm:$0xff] %v8780_v0  ;;  %v2852_v9 = vmul.f32 %v8703_v30, %v8691_v25 }
  0xe8   : > { %v911_v8 = vadd.f32 %v7664_v6, %v7382_v1  ;;  %v988_v31 = vmul.f32 %v957_v62, %v896_v15  ;;  %v3840_v34 = vmul.f32 %v8698_v29, %v989_v14  ;;  %v2855_v37 = vmul.f32 %v8703_v30, %v989_v14  ;;  %13150 = vst [vmem:[#allocation8_spill] sm:$0xff] %v8745_v53 }
  0xe9   : > { %1689 = vmax.xlane.f32.xlu0 %v1688_v5  ;;  %v905_v13 = vpop.f32.mrf.mxu0  ;;  %v8729_v46 = vmul.f32 %v8685_v22, %v989_v14  ;;  %v8765_v60 = vmul.f32 %v8723_v44, %v989_v14  ;;  %v8772_v62 = vmul.f32 %v8723_v44, %v8689_v24  ;;  %13159 = vst [vmem:[#allocation17_spill] sm:$0xff] %v8776_v63  ;;  %v1234_v14 = vsel %vm1230_vm4, %v8669_v56, -inf }
  0xea   : > { %v906_v16 = vadd.f32 %v7382_v1, %v905_v13  ;;  %v991_v17 = vmul.f32 %v972_v3, %v911_v8  ;;  %v8732_v47 = vmul.f32 %v8685_v22, %v988_v31  ;;  %v8768_v61 = vmul.f32 %v8723_v44, %v988_v31 }
  0xeb   : > { %v7667_v18 = vpop.f32.mrf.mxu0  ;;  %13146 = vst [vmem:[#allocation4_spill] sm:$0xff] %v8729_v46  ;;  %13156 = vst [vmem:[#allocation14_spill] sm:$0xff] %v8765_v60  ;;  %v3839_v2 = vmul.f32 %v8698_v29, %v988_v31  ;;  %v2854_v3 = vmul.f32 %v8703_v30, %v988_v31  ;;  %v3838_v5 = vmul.f32 %v8698_v29, %v8689_v24 }
  0xec   : > { %v990_v20 = vmul.f32 %v967_v7, %v906_v16  ;;  %v921_v21 = vadd.f32 %v7667_v18, %v7382_v1  ;;  %v3842_v35 = vmul.f32 %v8698_v29, %v991_v17  ;;  %v2857_v36 = vmul.f32 %v8703_v30, %v991_v17  ;;  %13147 = vst [vmem:[#allocation5_spill] sm:$0xff] %v8732_v47 }
  0xed   : > { %v915_v27 = vpop.f32.mrf.mxu0  ;;  %v8712_v38 = vmul.f32 %v8685_v22, %v991_v17  ;;  %v8759_v58 = vmul.f32 %v8723_v44, %v991_v17  ;;  %13157 = vst [vmem:[#allocation15_spill] sm:$0xff] %v8768_v61  ;;  %13158 = vst [vmem:[#allocation16_spill] sm:$0xff] %v8772_v62  ;;  %v2853_v6 = vmul.f32 %v8703_v30, %v8689_v24 }
  0xee   : > { %v8705_v32 = vmul.f32 %v982_v19, %v921_v21  ;;  %v916_v33 = vadd.f32 %v7382_v1, %v915_v27  ;;  %v3841_v42 = vmul.f32 %v8698_v29, %v990_v20  ;;  %v2856_v43 = vmul.f32 %v8703_v30, %v990_v20 }
  0xef   : > { %13144 = vst [vmem:[#allocation2_spill] sm:$0xff] %v8712_v38  ;;  %v8726_v45 = vmul.f32 %v8685_v22, %v990_v20  ;;  %13154 = vst [vmem:[#allocation12_spill] sm:$0xff] %v8759_v58  ;;  %v8762_v59 = vmul.f32 %v8723_v44, %v990_v20  ;;  %v8784_v1 = vmul.f32 %v8723_v44, %v8687_v23  ;;  %v7681_v20 = vpop.f32.mrf.mxu1 }
  0xf0   : > { %v992_v39 = vmul.f32 %v977_v28, %v916_v33  ;;  %v3844_v40 = vmul.f32 %v8698_v29, %v8705_v32  ;;  %v2859_v41 = vmul.f32 %v8703_v30, %v8705_v32  ;;  %v8793_v7 = vadd.f32 %v8666_v52, %v1101_v4 }
  0xf1   : > { %13145 = vst [vmem:[#allocation3_spill] sm:$0xff] %v8726_v45  ;;  %13155 = vst [vmem:[#allocation13_spill] sm:$0xff] %v8762_v59  ;;  %v3837_v8 = vmul.f32 %v8698_v29, %v8691_v25  ;;  %v2850_v13 = vmul.f32 %v8703_v30, %v8687_v23  ;;  %v8813_v15 = vmul.f32 %v8723_v44, %v8705_v32  ;;  %v1111_v27 = vpop.f32.mrf.mxu1 }
  0xf2   : > { %7691 = vmatprep.subr.mxu0 %v3844_v40  ;;  %7726 = vmatprep.subr.mxu1 %v2859_v41  ;;  %v3843_v48 = vmul.f32 %v8698_v29, %v992_v39  ;;  %v2858_v49 = vmul.f32 %v8703_v30, %v992_v39  ;;  %v8737_v50 = vmul.f32 %v8685_v22, %v992_v39  ;;  %v1383_v17 = vsel %vm1382_vm1, %v8793_v7, -inf }
  0xf3   : > { %7692 = vmatpush3.msra.mxu0 %v3844_v40  ;;  %7727 = vmatpush3.msra.mxu1 %v2859_v41  ;;  %v8756_v57 = vmul.f32 %v8723_v44, %v992_v39  ;;  %13161 = vst [vmem:[#allocation19_spill] sm:$0xff] %v8784_v1  ;;  %13162 = vst [vmem:[#allocation20_spill] sm:$0xff] %v8813_v15  ;;  %v8817_v16 = vmul.f32 %v8685_v22, %v8705_v32  ;;  %v1534_v18 = vsel %vm1533_vm2, %v8793_v7, -inf  ;;  %v7684_v32 = vpop.f32.mrf.mxu1 }
  0xf4   : > { %13148 = vst [vmem:[#allocation6_spill] sm:$0xff] %v8737_v50  ;;  %7693 = vmatprep.subr.mxu0 %v3843_v48  ;;  %7728 = vmatprep.subr.mxu1 %v2858_v49  ;;  %v1685_v19 = vsel %vm1684_vm3, %v8793_v7, -inf  ;;  %v8828_v21 = vadd.f32 %v7681_v20, %v8666_v52  ;;  %v1231_v22 = vsel %vm1230_vm4, %v8793_v7, -inf  ;;  %v8843_v28 = vadd.f32 %v8666_v52, %v1111_v27 }
  0xf5   : > { %13153 = vst [vmem:[#allocation11_spill] sm:$0xff] %v8756_v57  ;;  %7694 = vmatpush3.msra.mxu0 %v3843_v48  ;;  %7729 = vmatpush3.msra.mxu1 %v2858_v49  ;;  %13163 = vst [vmem:[#allocation21_spill] sm:$0xff] %v8817_v16  ;;  %v8854_v33 = vadd.f32 %v7684_v32, %v8666_v52  ;;  %v1121_v40 = vpop.f32.mrf.mxu1 }
  0xf6   : > { %7695 = vmatprep.subr.mxu0 %v3842_v35  ;;  %7730 = vmatprep.subr.mxu1 %v2857_v36  ;;  %v1240_v23 = vsel %vm1230_vm4, %v8828_v21, -inf  ;;  %v1392_v24 = vsel %vm1382_vm1, %v8828_v21, -inf  ;;  %v1543_v25 = vsel %vm1533_vm2, %v8828_v21, -inf  ;;  %v1694_v26 = vsel %vm1684_vm3, %v8828_v21, -inf }
  0xf7   : > { %7696 = vmatpush3.msra.mxu0 %v3842_v35  ;;  %7731 = vmatpush3.msra.mxu1 %v2857_v36  ;;  %v1389_v29 = vsel %vm1382_vm1, %v8843_v28, -inf  ;;  %v1540_v30 = vsel %vm1533_vm2, %v8843_v28, -inf  ;;  %v1691_v31 = vsel %vm1684_vm3, %v8843_v28, -inf  ;;  %v1246_v35 = vsel %vm1230_vm4, %v8854_v33, -inf  ;;  %v7687_v49 = vpop.f32.mrf.mxu1 }
  0xf8   : > { %7697 = vmatprep.subr.mxu0 %v3841_v42  ;;  %7732 = vmatprep.subr.mxu1 %v2856_v43  ;;  %v1398_v36 = vsel %vm1382_vm1, %v8854_v33, -inf  ;;  %v1700_v39 = vsel %vm1684_vm3, %v8854_v33, -inf  ;;  %v8869_v41 = vadd.f32 %v8666_v52, %v1121_v40 }
  0xf9   : > { %7698 = vmatpush3.msra.mxu0 %v3841_v42  ;;  %7733 = vmatpush3.msra.mxu1 %v2856_v43 }
  0xfa   : > { %7699 = vmatprep.subr.mxu0 %v3840_v34  ;;  %7734 = vmatprep.subr.mxu1 %v2855_v37  ;;  %v1243_v42 = vsel %vm1230_vm4, %v8869_v41, -inf  ;;  %v1395_v43 = vsel %vm1382_vm1, %v8869_v41, -inf  ;;  %v1546_v44 = vsel %vm1533_vm2, %v8869_v41, -inf  ;;  %v1697_v48 = vsel %vm1684_vm3, %v8869_v41, -inf }
  0xfb   : > { %7700 = vmatpush3.msra.mxu0 %v3840_v34  ;;  %7735 = vmatpush3.msra.mxu1 %v2855_v37  ;;  %v1237_v34 = vsel %vm1230_vm4, %v8843_v28, -inf  ;;  %v1549_v37 = vsel %vm1533_vm2, %v8854_v33, -inf }
  0xfc   : > { %7701 = vmatprep.subr.mxu0 %v3839_v2  ;;  %7736 = vmatprep.subr.mxu1 %v2854_v3 }
  0xfd   : > { %7702 = vmatpush3.msra.mxu0 %v3839_v2  ;;  %7737 = vmatpush3.msra.mxu1 %v2854_v3  ;;  %v8882_v2 = vadd.f32 %v7687_v49, %v8666_v52 }
  0xfe   : > { %7703 = vmatprep.subr.mxu0 %v3838_v5  ;;  %7738 = vmatprep.subr.mxu1 %v2853_v6 }
  0xff   : > { %1190 = vrot.lane.b32.xlu0 %v8793_v7, %s8415_s0  ;;  %7704 = vmatpush3.msra.mxu0 %v3838_v5  ;;  %v1252_v3 = vsel %vm1230_vm4, %v8882_v2, -inf  ;;  %v1404_v4 = vsel %vm1382_vm1, %v8882_v2, -inf  ;;  %v1555_v5 = vsel %vm1533_vm2, %v8882_v2, -inf }
 0x100   : > { %7739 = vmatpush3.msra.mxu1 %v2853_v6  ;;  %7705 = vmatprep.subr.mxu0 %v3837_v8  ;;  %v1706_v6 = vsel %vm1684_vm3, %v8882_v2, -inf }
 0x101   : > { %7740 = vmatprep.subr.mxu1 %v2852_v9  ;;  %7706 = vmatpush3.msra.mxu0 %v3837_v8  ;;  %v1131_v8 = vpop.f32.mrf.mxu1 }
 0x102   : > { %7741 = vmatpush3.msra.mxu1 %v2852_v9  ;;  %7707 = vmatprep.subr.mxu0 %v3836_v10  ;;  %v8895_v9 = vadd.f32 %v8666_v52, %v1131_v8 }
 0x103   : > { %7742 = vmatprep.subr.mxu1 %v2851_v11  ;;  %7708 = vmatpush3.msra.mxu0 %v3836_v10 }
 0x104   : > { %1235 = vmax.xlane.f32.xlu1 %v1234_v14  ;;  %7743 = vmatpush3.msra.mxu1 %v2851_v11  ;;  %v1249_v10 = vsel %vm1230_vm4, %v8895_v9, -inf  ;;  %v1401_v11 = vsel %vm1382_vm1, %v8895_v9, -inf }
 0x105   : > { %7709 = vmatprep.subr.mxu0 %v3835_v12  ;;  %7744 = vmatprep.subr.mxu1 %v2850_v13 }
 0x106   : > { %7710 = vmatpush3.msra.mxu0 %v3835_v12  ;;  %7745 = vmatpush3.msra.mxu1 %v2850_v13  ;;  %v1552_v12 = vsel %vm1533_vm2, %v8895_v9, -inf  ;;  %v1703_v13 = vsel %vm1684_vm3, %v8895_v9, -inf }
 0x107   : > { %7761 = vmatprep.subr.mxu0 %v8813_v15  ;;  %7796 = vmatprep.subr.mxu1 %v8817_v16 }
 0x108   : > { %1384 = vmax.xlane.f32.xlu1 %v1383_v17 }
 0x10c   : > { %1535 = vmax.xlane.f32.xlu1 %v1534_v18  ;;  %v7690_v18 = vpop.f32.mrf.mxu1 }
 0x110   : > { %1686 = vmax.xlane.f32.xlu1 %v1685_v19  ;;  %v8910_v19 = vadd.f32 %v7690_v18, %v8666_v52 }
 0x112   : > { %v1712_v32 = vsel %vm1684_vm3, %v8910_v19, -inf }
 0x11e   : > { %1232 = vmax.xlane.f32.xlu0 %v1231_v22 }
 0x121   : > { %1196 = vrot.lane.b32.xlu1 %v8828_v21, %s8415_s0 }
 0x122   : > { %1241 = vmax.xlane.f32.xlu0 %v1240_v23 }
 0x126   : > { %1393 = vmax.xlane.f32.xlu0 %v1392_v24  ;;  %v1258_v24 = vsel %vm1230_vm4, %v8910_v19, -inf }
 0x12a   : > { %1544 = vmax.xlane.f32.xlu0 %v1543_v25 }
 0x12e   : > { %1695 = vmax.xlane.f32.xlu0 %v1694_v26  ;;  %v1410_v26 = vsel %vm1382_vm1, %v8910_v19, -inf }
 0x144   : > { %1194 = vrot.lane.b32.xlu0 %v8843_v28, %s8415_s0 }
 0x145   : > { %1390 = vmax.xlane.f32.xlu1 %v1389_v29  ;;  %v1561_v29 = vsel %vm1533_vm2, %v8910_v19, -inf }
 0x149   : > { %1541 = vmax.xlane.f32.xlu1 %v1540_v30 }
 0x14d   : > { %1692 = vmax.xlane.f32.xlu1 %v1691_v31 }
 0x152   : > { %v8907_v14 = vpop.permute.xlu1 %1192 }
 0x15e   : > { %1200 = vrot.lane.b32.xlu1 %v8854_v33, %s8415_s0 }
 0x163   : > { %1238 = vmax.xlane.f32.xlu0 %v1237_v34 }
 0x167   : > { %1247 = vmax.xlane.f32.xlu0 %v1246_v35 }
 0x16a   : > { %v1388_v23 = vpop.xlane.xlu0 %1387 }
 0x16b   : > { %1399 = vmax.xlane.f32.xlu0 %v1398_v36  ;;  %v1414_v40 = vsub.f32 %v8669_v56, %v1388_v23 }
 0x16e   : > { %v1539_v27 = vpop.xlane.xlu0 %1538 }
 0x16f   : > { %1550 = vmax.xlane.f32.xlu0 %v1549_v37  ;;  %v1565_v49 = vsub.f32 %v8669_v56, %v1539_v27 }
 0x172   : > { %v1690_v31 = vpop.xlane.xlu0 %1689 }
 0x173   : > { %1701 = vmax.xlane.f32.xlu0 %v1700_v39  ;;  %v1141_v39 = vpop.f32.mrf.mxu1  ;;  %v1716_v8 = vsub.f32 %v8669_v56, %v1690_v31 }
 0x176   : > { %v8931_v36 = vpop.permute.xlu0 %1190 }
 0x182   : > { %1244 = vmax.xlane.f32.xlu1 %v1243_v42 }
 0x186   : > { %1396 = vmax.xlane.f32.xlu1 %v1395_v43 }
 0x189   : > { %1198 = vrot.lane.b32.xlu0 %v8869_v41, %s8415_s0 }
 0x18a   : > { %1547 = vmax.xlane.f32.xlu1 %v1546_v44  ;;  %v8937_v44 = vadd.f32 %v8666_v52, %v1141_v39 }
 0x18c   : > { %v1407_v52 = vsel %vm1382_vm1, %v8937_v44, -inf  ;;  %v1558_v18 = vsel %vm1533_vm2, %v8937_v44, -inf }
 0x18d   : > { %v1236_v17 = vpop.xlane.xlu1 %1235 }
 0x18e   : > { %1698 = vmax.xlane.f32.xlu1 %v1697_v48  ;;  %v1262_v35 = vsub.f32 %v8669_v56, %v1236_v17  ;;  %v1425_v48 = vmul.f32 1.442695, %v1414_v40 }
 0x190   : > { %v1273_v42 = vmul.f32 1.442695, %v1262_v35 }
 0x191   : > { %v1385_v20 = vpop.xlane.xlu1 %1384 }
 0x192   : > { %8178 = vpow2.f32 %v1273_v42  ;;  %v1413_v27 = vsub.f32 %v8793_v7, %v1385_v20 }
 0x193   : > { %8180 = vpow2.f32 %v1425_v48 }
 0x195   : > { %v8914_v22 = vpop.xlane.xlu1 %1535 }
 0x196   : > { %v1564_v20 = vsub.f32 %v8793_v7, %v8914_v22 }
 0x199   : > { %v8918_v25 = vpop.xlane.xlu1 %1686 }
 0x19d   : > { %v8924_v30 = vpop.permute.xlu1 %1196 }
 0x19f   : > { %1204 = vrot.lane.b32.xlu1 %v8882_v2, %s8415_s0 }
 0x1a7   : > { %v1233_v43 = vpop.xlane.xlu0 %1232 }
 0x1a8   : > { %1253 = vmax.xlane.f32.xlu0 %v1252_v3 }
 0x1ac   : > { %1405 = vmax.xlane.f32.xlu0 %v1404_v4  ;;  %v1255_v4 = vsel %vm1230_vm4, %v8937_v44, -inf }
 0x1b0   : > { %1556 = vmax.xlane.f32.xlu0 %v1555_v5  ;;  %v1242_v5 = vpop.xlane.xlu0 %1241 }
 0x1b4   : > { %1707 = vmax.xlane.f32.xlu0 %v1706_v6  ;;  %v1576_v6 = vmul.f32 1.442695, %v1565_v49 }
 0x1b6   : > { %8182 = vpow2.f32 %v1576_v6 }
 0x1c3   : > { %1250 = vmax.xlane.f32.xlu1 %v1249_v10 }
 0x1c7   : > { %1402 = vmax.xlane.f32.xlu1 %v1401_v11  ;;  %v1727_v11 = vmul.f32 1.442695, %v1716_v8 }
 0x1c9   : > { %8184 = vpow2.f32 %v1727_v11  ;;  %v1715_v11 = vsub.f32 %v8793_v7, %v8918_v25 }
 0x1ca   : > { %1202 = vrot.lane.b32.xlu0 %v8895_v9, %s8415_s0 }
 0x1cb   : > { %1553 = vmax.xlane.f32.xlu1 %v1552_v12  ;;  %v1394_v12 = vpop.xlane.xlu0 %1393 }
 0x1ce   : > { %v8928_v34 = vpop.xlane.xlu1 %1390 }
 0x1cf   : > { %1704 = vmax.xlane.f32.xlu1 %v1703_v13  ;;  %v1261_v13 = vsub.f32 %v8793_v7, %v1233_v43  ;;  %v1545_v35 = vpop.xlane.xlu0 %1544  ;;  %v1423_v43 = vmul.f32 1.442695, %v1413_v27 }
 0x1d2   : > { %v8933_v37 = vpop.xlane.xlu1 %1541 }
 0x1d3   : > { %v1696_v6 = vpop.xlane.xlu0 %1695 }
 0x1d6   : > { %v8940_v3 = vpop.xlane.xlu1 %1692 }
 0x1d7   : > { %v8982_v25 = vpop.permute.xlu0 %1194 }
 0x1da   : > { %v8945_v10 = vpop.permute.xlu1 %1200 }
 0x1e0   : > { %1208 = vrot.lane.b32.xlu1 %v8910_v19, %s8415_s0 }
 0x1e9   : > { %1259 = vmax.xlane.f32.xlu0 %v1258_v24  ;;  %v8955_v24 = vpop.eup %8178 }
 0x1ea   : > { %v8963_v40 = vpop.eup %8180 }
 0x1ed   : > { %1411 = vmax.xlane.f32.xlu0 %v1410_v26 }
 0x1f1   : > { %1562 = vmax.xlane.f32.xlu0 %v1561_v29  ;;  %v1271_v29 = vmul.f32 1.442695, %v1261_v13 }
 0x1f5   : > { %1713 = vmax.xlane.f32.xlu0 %v1712_v32  ;;  %v1709_v32 = vsel %vm1684_vm3, %v8937_v44, -inf }
 0x204   : > { %1256 = vmax.xlane.f32.xlu1 %v1255_v4  ;;  %v8970_v4 = vpop.eup %8182 }
 0x205   : > { %13164 = vst [vmem:[#allocation22_spill] sm:$0xff] %v8970_v4 }
 0x208   : > { %1408 = vmax.xlane.f32.xlu1 %v1407_v52  ;;  %v1574_v52 = vmul.f32 1.442695, %v1564_v20 }
 0x20b   : > { %v1245_v17 = vpop.xlane.xlu1 %1244  ;;  %1206 = vrot.lane.b32.xlu0 %v8937_v44, %s8415_s0  ;;  %s8417_s0 = smov 92  }
 0x20c   : > { %v1265_v23 = vsub.f32 %v8869_v41, %v1245_v17  ;;  %1559 = vmax.xlane.f32.xlu1 %v1558_v18  ;;  %v8977_v17 = vpop.eup %8184 }
 0x20d   : > { %13165 = vst [vmem:[#allocation23_spill] sm:$0xff] %v8977_v17 }
 0x20e   : > { %v1279_v26 = vmul.f32 1.442695, %v1265_v23  ;;  %v1725_v23 = vmul.f32 1.442695, %v1715_v11 }
 0x20f   : > { %v1397_v31 = vpop.xlane.xlu1 %1396  ;;  %1303 = vrot.lane.b32.xlu0 %v8955_v24, %s8416_s29 }
 0x210   : > { %8186 = vpow2.f32 %v1279_v26  ;;  %v1417_v39 = vsub.f32 %v8869_v41, %v1397_v31  ;;  %1710 = vmax.xlane.f32.xlu1 %v1709_v32  ;;  %v1264_v26 = vsub.f32 %v8828_v21, %v1242_v5  ;;  %v1416_v31 = vsub.f32 %v8828_v21, %v1394_v12 }
 0x211   : > { %8188 = vpow2.f32 %v1271_v29 }
 0x212   : > { %v1431_v42 = vmul.f32 1.442695, %v1417_v39  ;;  %v1277_v29 = vmul.f32 1.442695, %v1264_v26  ;;  %v1239_v39 = vpop.xlane.xlu0 %1238 }
 0x213   : > { %v1548_v48 = vpop.xlane.xlu1 %1547  ;;  %1455 = vrot.lane.b32.xlu0 %v8963_v40, %s8417_s0 }
 0x214   : > { %8190 = vpow2.f32 %v1431_v42  ;;  %v1568_v49 = vsub.f32 %v8869_v41, %v1548_v48  ;;  %v1429_v42 = vmul.f32 1.442695, %v1416_v31 }
 0x215   : > { %8192 = vpow2.f32 %v1423_v43  ;;  %v1567_v43 = vsub.f32 %v8828_v21, %v1545_v35 }
 0x216   : > { %v1582_v8 = vmul.f32 1.442695, %v1568_v49  ;;  %v1248_v48 = vpop.xlane.xlu0 %1247 }
 0x217   : > { %v1699_v13 = vpop.xlane.xlu1 %1698  ;;  %1606 = vrot.lane.b32.xlu0 %v8970_v4, %s8418_s4  ;;  %v1580_v49 = vmul.f32 1.442695, %v1567_v43 }
 0x218   : > { %8194 = vpow2.f32 %v1582_v8  ;;  %v1719_v22 = vsub.f32 %v8869_v41, %v1699_v13  ;;  %v1718_v8 = vsub.f32 %v8828_v21, %v1696_v6  ;;  %v1263_v13 = vsub.f32 %v8843_v28, %v1239_v39 }
 0x219   : > { %8196 = vpow2.f32 %v1574_v52  ;;  %v1566_v39 = vsub.f32 %v8843_v28, %v8933_v37  ;;  %v1266_v37 = vsub.f32 %v8854_v33, %v1248_v48 }
 0x21a   : > { %v1733_v18 = vmul.f32 1.442695, %v1719_v22  ;;  %v1731_v11 = vmul.f32 1.442695, %v1718_v8  ;;  %v1400_v6 = vpop.xlane.xlu0 %1399 }
 0x21b   : > { %1757 = vrot.lane.b32.xlu0 %v8977_v17, %s8419_s5  ;;  %v1578_v43 = vmul.f32 1.442695, %v1566_v39  ;;  %v9058_v4 = vpop.permute.xlu1 %1204 }
 0x21c   : > { %8198 = vpow2.f32 %v1733_v18  ;;  %v1415_v18 = vsub.f32 %v8843_v28, %v8928_v34  ;;  %v1717_v34 = vsub.f32 %v8843_v28, %v8940_v3  ;;  %v1418_v3 = vsub.f32 %v8854_v33, %v1400_v6 }
 0x21d   : > { %v8984_v27 = vpop.eup %8186  ;;  %8200 = vpow2.f32 %v1725_v23  ;;  %v1275_v23 = vmul.f32 1.442695, %v1263_v13 }
 0x21e   : > { %v8989_v32 = vpop.eup %8188  ;;  %8202 = vpow2.f32 %v1277_v29  ;;  %v1551_v29 = vpop.xlane.xlu0 %1550  ;;  %v1427_v31 = vmul.f32 1.442695, %v1415_v18 }
 0x21f   : > { %1309 = vrot.lane.b32.xlu0 %v8984_v27, %s8416_s29  ;;  %8204 = vpow2.f32 %v1429_v42  ;;  %v1569_v48 = vsub.f32 %v8854_v33, %v1551_v29 }
 0x220   : > { %8206 = vpow2.f32 %v1580_v49 }
 0x221   : > { %v8991_v5 = vpop.eup %8190  ;;  %1301 = vrot.lane.b32.xlu1 %v8989_v32, %s8416_s29  ;;  %8208 = vpow2.f32 %v1731_v11  ;;  %v1729_v11 = vmul.f32 1.442695, %v1717_v34 }
 0x222   : > { %v8998_v20 = vpop.eup %8192  ;;  %8210 = vpow2.f32 %v1275_v23  ;;  %v1702_v8 = vpop.xlane.xlu0 %1701  ;;  %v1281_v23 = vmul.f32 1.442695, %v1266_v37 }
 0x223   : > { %1461 = vrot.lane.b32.xlu0 %v8991_v5, %s8417_s0  ;;  %8212 = vpow2.f32 %v1427_v31  ;;  %v1720_v37 = vsub.f32 %v8854_v33, %v1702_v8 }
 0x224   : > { %8214 = vpow2.f32 %v1578_v43  ;;  %v1433_v43 = vmul.f32 1.442695, %v1418_v3 }
 0x225   : > { %v9000_v12 = vpop.eup %8194  ;;  %1453 = vrot.lane.b32.xlu1 %v8998_v20, %s8417_s0  ;;  %8216 = vpow2.f32 %v1729_v11  ;;  %v1584_v11 = vmul.f32 1.442695, %v1569_v48 }
 0x226   : > { %13166 = vst [vmem:[#allocation24_spill] sm:$0xff] %v9000_v12  ;;  %v9007_v52 = vpop.eup %8196  ;;  %v9043_v18 = vpop.permute.xlu0 %1198  ;;  %8218 = vpow2.f32 %v1281_v23  ;;  %v1735_v23 = vmul.f32 1.442695, %v1720_v37 }
 0x227   : > { %1612 = vrot.lane.b32.xlu0 %v9000_v12, %s8418_s4  ;;  %13167 = vst [vmem:[#allocation25_spill] sm:$0xff] %v9007_v52  ;;  %8220 = vpow2.f32 %v1433_v43 }
 0x228   : > { %8222 = vpow2.f32 %v1584_v11 }
 0x229   : > { %v9009_v35 = vpop.eup %8198  ;;  %1604 = vrot.lane.b32.xlu1 %v9007_v52, %s8418_s4  ;;  %8224 = vpow2.f32 %v1735_v23 }
 0x22a   : > { %13168 = vst [vmem:[#allocation26_spill] sm:$0xff] %v9009_v35  ;;  %v9016_v22 = vpop.eup %8200 }
 0x22b   : > { %1763 = vrot.lane.b32.xlu0 %v9009_v35, %s8419_s5  ;;  %13169 = vst [vmem:[#allocation27_spill] sm:$0xff] %v9016_v22  ;;  %v9022_v26 = vpop.eup %8202 }
 0x22c   : > { %v9028_v42 = vpop.eup %8204 }
 0x22d   : > { %1755 = vrot.lane.b32.xlu1 %v9016_v22, %s8419_s5  ;;  %v9034_v49 = vpop.eup %8206 }
 0x22e   : > { %13170 = vst [vmem:[#allocation28_spill] sm:$0xff] %v9034_v49  ;;  %v9039_v13 = vpop.eup %8208 }
 0x22f   : > { %13171 = vst [vmem:[#allocation29_spill] sm:$0xff] %v9039_v13  ;;  %v9046_v31 = vpop.eup %8210 }
 0x230   : > { %v9051_v34 = vpop.eup %8212 }
 0x231   : > { %1307 = vrot.lane.b32.xlu1 %v9022_v26, %s8416_s29  ;;  %v1254_v39 = vpop.xlane.xlu0 %1253  ;;  %v9056_v6 = vpop.eup %8214 }
 0x232   : > { %13172 = vst [vmem:[#allocation30_spill] sm:$0xff] %v9056_v6  ;;  %v1268_v29 = vsub.f32 %v8882_v2, %v1254_v39  ;;  %v9063_v3 = vpop.eup %8216 }
 0x233   : > { %13173 = vst [vmem:[#allocation31_spill] sm:$0xff] %v9063_v3  ;;  %v9069_v63 = vpop.eup %8218 }
 0x234   : > { %v1285_v48 = vmul.f32 1.442695, %v1268_v29  ;;  %v9075_v61 = vpop.eup %8220 }
 0x235   : > { %1459 = vrot.lane.b32.xlu1 %v9028_v42, %s8417_s0  ;;  %v1406_v52 = vpop.xlane.xlu0 %1405 }
 0x236   : > { %v1420_v1 = vsub.f32 %v8882_v2, %v1406_v52 }
 0x239   : > { %1610 = vrot.lane.b32.xlu1 %v9034_v49, %s8418_s4  ;;  %v1557_v8 = vpop.xlane.xlu0 %1556 }
 0x23a   : > { %v1571_v37 = vsub.f32 %v8882_v2, %v1557_v8 }
 0x23d   : > { %1761 = vrot.lane.b32.xlu1 %v9039_v13, %s8419_s5  ;;  %v1708_v23 = vpop.xlane.xlu0 %1707 }
 0x241   : > { %1305 = vrot.lane.b32.xlu1 %v9046_v31, %s8416_s29 }
 0x245   : > { %1457 = vrot.lane.b32.xlu1 %v9051_v34, %s8417_s0 }
 0x249   : > { %1608 = vrot.lane.b32.xlu1 %v9056_v6, %s8418_s4 }
 0x24c   : > { %v1251_v35 = vpop.xlane.xlu1 %1250 }
 0x24d   : > { %v1267_v43 = vsub.f32 %v8895_v9, %v1251_v35  ;;  %1759 = vrot.lane.b32.xlu1 %v9063_v3, %s8419_s5  ;;  %v1437_v35 = vmul.f32 1.442695, %v1420_v1 }
 0x24f   : > { %v1283_v0 = vmul.f32 1.442695, %v1267_v43  ;;  %v1722_v43 = vsub.f32 %v8882_v2, %v1708_v23 }
 0x250   : > { %v1403_v11 = vpop.xlane.xlu1 %1402 }
 0x251   : > { %8226 = vpow2.f32 %v1283_v0  ;;  %v1419_v39 = vsub.f32 %v8895_v9, %v1403_v11  ;;  %1311 = vrot.lane.b32.xlu1 %v9069_v63, %s8416_s29  ;;  %v1588_v0 = vmul.f32 1.442695, %v1571_v37 }
 0x252   : > { %8228 = vpow2.f32 %v1285_v48  ;;  %v9081_v48 = vpop.eup %8222 }
 0x253   : > { %v1435_v62 = vmul.f32 1.442695, %v1419_v39  ;;  %13174 = vst [vmem:[#allocation32_spill] sm:$0xff] %v9081_v48 }
 0x254   : > { %v1554_v29 = vpop.xlane.xlu1 %1553 }
 0x255   : > { %8230 = vpow2.f32 %v1435_v62  ;;  %v1570_v52 = vsub.f32 %v8895_v9, %v1554_v29  ;;  %1463 = vrot.lane.b32.xlu1 %v9075_v61, %s8417_s0  ;;  %v1739_v62 = vmul.f32 1.442695, %v1722_v43  ;;  %v9086_v29 = vpop.eup %8224 }
 0x256   : > { %8232 = vpow2.f32 %v1437_v35  ;;  %13175 = vst [vmem:[#allocation33_spill] sm:$0xff] %v9086_v29 }
 0x257   : > { %v1586_v11 = vmul.f32 1.442695, %v1570_v52 }
 0x258   : > { %v1705_v1 = vpop.xlane.xlu1 %1704 }
 0x259   : > { %8234 = vpow2.f32 %v1586_v11  ;;  %v1721_v8 = vsub.f32 %v8895_v9, %v1705_v1  ;;  %1614 = vrot.lane.b32.xlu1 %v9081_v48, %s8418_s4 }
 0x25a   : > { %8236 = vpow2.f32 %v1588_v0 }
 0x25b   : > { %v1737_v39 = vmul.f32 1.442695, %v1721_v8  ;;  %v9122_v8 = vpop.permute.xlu0 %1202 }
 0x25d   : > { %8238 = vpow2.f32 %v1737_v39  ;;  %1765 = vrot.lane.b32.xlu1 %v9086_v29, %s8419_s5 }
 0x25e   : > { %v9090_v35 = vpop.eup %8226  ;;  %8240 = vpow2.f32 %v1739_v62 }
 0x25f   : > { %1313 = vrot.lane.b32.xlu0 %v9090_v35, %s8416_s29  ;;  %v9094_v37 = vpop.eup %8228 }
 0x261   : > { %1315 = vrot.lane.b32.xlu1 %v9094_v37, %s8416_s29 }
 0x262   : > { %v9098_v23 = vpop.eup %8230 }
 0x263   : > { %1465 = vrot.lane.b32.xlu0 %v9098_v23, %s8417_s0  ;;  %v9102_v52 = vpop.eup %8232 }
 0x265   : > { %1467 = vrot.lane.b32.xlu1 %v9102_v52, %s8417_s0 }
 0x266   : > { %v9106_v0 = vpop.eup %8234 }
 0x267   : > { %13176 = vst [vmem:[#allocation34_spill] sm:$0xff] %v9106_v0  ;;  %1616 = vrot.lane.b32.xlu0 %v9106_v0, %s8418_s4  ;;  %v9110_v43 = vpop.eup %8236 }
 0x268   : > { %13177 = vst [vmem:[#allocation35_spill] sm:$0xff] %v9110_v43 }
 0x269   : > { %1618 = vrot.lane.b32.xlu1 %v9110_v43, %s8418_s4 }
 0x26a   : > { %v9114_v11 = vpop.eup %8238 }
 0x26b   : > { %13178 = vst [vmem:[#allocation36_spill] sm:$0xff] %v9114_v11  ;;  %1767 = vrot.lane.b32.xlu0 %v9114_v11, %s8419_s5  ;;  %v9118_v1 = vpop.eup %8240 }
 0x26c   : > { %13179 = vst [vmem:[#allocation37_spill] sm:$0xff] %v9118_v1 }
 0x26d   : > { %1769 = vrot.lane.b32.xlu1 %v9118_v1, %s8419_s5 }
 0x272   : > { %v1260_v62 = vpop.xlane.xlu0 %1259 }
 0x273   : > { %v1270_v39 = vsub.f32 %v8910_v19, %v1260_v62 }
 0x275   : > { %v1289_v0 = vmul.f32 1.442695, %v1270_v39 }
 0x276   : > { %v1412_v29 = vpop.xlane.xlu0 %1411 }
 0x277   : > { %8242 = vpow2.f32 %v1289_v0  ;;  %v1422_v43 = vsub.f32 %v8910_v19, %v1412_v29  ;;  %v9134_v29 = vpop.permute.xlu1 %1208 }
 0x279   : > { %v1441_v60 = vmul.f32 1.442695, %v1422_v43 }
 0x27a   : > { %v1563_v59 = vpop.xlane.xlu0 %1562 }
 0x27b   : > { %8244 = vpow2.f32 %v1441_v60  ;;  %v1573_v11 = vsub.f32 %v8910_v19, %v1563_v59 }
 0x27d   : > { %v1592_v58 = vmul.f32 1.442695, %v1573_v11 }
 0x27e   : > { %v1714_v57 = vpop.xlane.xlu0 %1713 }
 0x27f   : > { %8246 = vpow2.f32 %v1592_v58  ;;  %v1724_v1 = vsub.f32 %v8910_v19, %v1714_v57 }
 0x281   : > { %v1743_v15 = vmul.f32 1.442695, %v1724_v1 }
 0x282   : > { %v9150_v6 = vpop.permute.xlu0 %1206 }
 0x283   : > { %8248 = vpow2.f32 %v1743_v15 }
 0x284   : > { %v9128_v48 = vpop.eup %8242 }
 0x285   : > { %1319 = vrot.lane.b32.xlu1 %v9128_v48, %s8416_s29 }
 0x288   : > { %v9132_v0 = vpop.eup %8244 }
 0x289   : > { %13180 = vst [vmem:[#allocation38_spill] sm:$0xff] %v9132_v0  ;;  %1471 = vrot.lane.b32.xlu1 %v9132_v0, %s8417_s0 }
 0x28c   : > { %v9138_v59 = vpop.eup %8246 }
 0x28d   : > { %13181 = vst [vmem:[#allocation39_spill] sm:$0xff] %v9138_v59  ;;  %v1257_v60 = vpop.xlane.xlu1 %1256  ;;  %1622 = vrot.lane.b32.xlu1 %v9138_v59, %s8418_s4 }
 0x28e   : > { %v1269_v57 = vsub.f32 %v8937_v44, %v1257_v60 }
 0x290   : > { %v9143_v58 = vpop.eup %8248  ;;  %v1287_v15 = vmul.f32 1.442695, %v1269_v57 }
 0x291   : > { %13182 = vst [vmem:[#allocation40_spill] sm:$0xff] %v9143_v58  ;;  %v1409_v43 = vpop.xlane.xlu1 %1408  ;;  %1773 = vrot.lane.b32.xlu1 %v9143_v58, %s8419_s5 }
 0x292   : > { %8250 = vpow2.f32 %v1287_v15  ;;  %v1421_v11 = vsub.f32 %v8937_v44, %v1409_v43 }
 0x294   : > { %v1439_v1 = vmul.f32 1.442695, %v1421_v11  ;;  %v1304_v11 = vpop.permute.xlu0 %1303 }
 0x295   : > { %v1560_v62 = vpop.xlane.xlu1 %1559  ;;  %v1335_v58 = vsel %vm1331_vm5, %v1304_v11, 0.0 }
 0x296   : > { %8252 = vpow2.f32 %v1439_v1  ;;  %v1572_v39 = vsub.f32 %v8937_v44, %v1560_v62 }
 0x298   : > { %v1590_v12 = vmul.f32 1.442695, %v1572_v39  ;;  %v1456_v1 = vpop.permute.xlu0 %1455 }
 0x299   : > { %v1711_v49 = vpop.xlane.xlu1 %1710  ;;  %v1486_v17 = vsel %vm1331_vm5, %v1456_v1, 0.0 }
 0x29a   : > { %8254 = vpow2.f32 %v1590_v12  ;;  %v1723_v60 = vsub.f32 %v8937_v44, %v1711_v49 }
 0x29c   : > { %v1741_v59 = vmul.f32 1.442695, %v1723_v60  ;;  %v1607_v39 = vpop.permute.xlu0 %1606 }
 0x29d   : > { %v1302_v57 = vpop.permute.xlu1 %1301 }
 0x29e   : > { %8256 = vpow2.f32 %v1741_v59  ;;  %v1332_v1 = vsel %vm1331_vm5, %v1302_v57, 0.0 }
 0x29f   : > { %v9152_v13 = vpop.eup %8250 }
 0x2a0   : > { %1317 = vrot.lane.b32.xlu0 %v9152_v13, %s8416_s29  ;;  %v1758_v3 = vpop.permute.xlu0 %1757  ;;  %s12846_s29 = scalar_lea.vmem %s12918_s21, %s8590_s27 }
 0x2a1   : > { %v1454_v15 = vpop.permute.xlu1 %1453  ;;  %v1788_v53 = vsel %vm1331_vm5, %v1758_v3, 0.0 }
 0x2a2   : > { %v1483_v3 = vsel %vm1331_vm5, %v1454_v15, 0.0 }
 0x2a3   : > { %v9156_v43 = vpop.eup %8252 }
 0x2a4   : > { %13183 = vst [vmem:[#allocation41_spill] sm:$0xff] %v9156_v43  ;;  %1469 = vrot.lane.b32.xlu0 %v9156_v43, %s8417_s0  ;;  %v1310_v55 = vpop.permute.xlu0 %1309 }
 0x2a5   : > { %v1605_v49 = vpop.permute.xlu1 %1604  ;;  %v1344_v51 = vsel %vm1331_vm5, %v1310_v55, 0.0 }
 0x2a6   : > { %v1634_v46 = vsel %vm1331_vm5, %v1605_v49, 0.0 }
 0x2a7   : > { %v9160_v12 = vpop.eup %8254 }
 0x2a8   : > { %13184 = vst [vmem:[#allocation42_spill] sm:$0xff] %v9160_v12  ;;  %1620 = vrot.lane.b32.xlu0 %v9160_v12, %s8418_s4  ;;  %v1637_v12 = vsel %vm1331_vm5, %v1607_v39, 0.0  ;;  %s13282_s4 = sld [smem:[#allocation154_spill]] }
 0x2a9   : > { %v1756_v62 = vpop.permute.xlu1 %1755 }
 0x2ab   : > { %v9164_v59 = vpop.eup %8256 }
 0x2ac   : > { %13185 = vst [vmem:[#allocation43_spill] sm:$0xff] %v9164_v59  ;;  %1771 = vrot.lane.b32.xlu0 %v9164_v59, %s8419_s5  ;;  %v1462_v59 = vpop.permute.xlu0 %1461 }
 0x2ad   : > { %v1308_v60 = vpop.permute.xlu1 %1307 }
 0x2b0   : > { %v1613_v11 = vpop.permute.xlu0 %1612 }
 0x2b1   : > { %v1460_v22 = vpop.permute.xlu1 %1459  ;;  %v1646_v39 = vsel %vm1331_vm5, %v1613_v11, 0.0 }
 0x2b2   : > { %v1492_v49 = vsel %vm1331_vm5, %v1460_v22, 0.0 }
 0x2b5   : > { %1336 = vadd.xlane.f32.xlu1 %v1335_v58  ;;  %v1611_v54 = vpop.permute.xlu1 %1610  ;;  %v1495_v58 = vsel %vm1331_vm5, %v1462_v59, 0.0 }
 0x2b9   : > { %1487 = vadd.xlane.f32.xlu1 %v1486_v17  ;;  %v1762_v47 = vpop.permute.xlu1 %1761 }
 0x2bd   : > { %1638 = vadd.xlane.f32.xlu1 %v1637_v12  ;;  %v1306_v17 = vpop.permute.xlu1 %1305  ;;  %v1764_v12 = vpop.permute.xlu0 %1763 }
 0x2c1   : > { %1789 = vadd.xlane.f32.xlu1 %v1788_v53  ;;  %v1797_v53 = vsel %vm1331_vm5, %v1764_v12, 0.0  ;;  %v1458_v55 = vpop.permute.xlu1 %1457 }
 0x2c5   : > { %1345 = vadd.xlane.f32.xlu1 %v1344_v51  ;;  %v1609_v11 = vpop.permute.xlu1 %1608 }
 0x2c6   : > { %v1640_v22 = vsel %vm1331_vm5, %v1609_v11, 0.0 }
 0x2c9   : > { %1496 = vadd.xlane.f32.xlu1 %v1495_v58  ;;  %v1785_v58 = vsel %vm1331_vm5, %v1756_v62, 0.0  ;;  %v1643_v62 = vsel %vm1331_vm5, %v1611_v54, 0.0 }
 0x2cb   : > { %1333 = vadd.xlane.f32.xlu0 %v1332_v1 }
 0x2cd   : > { %1647 = vadd.xlane.f32.xlu1 %v1646_v39  ;;  %v1341_v39 = vsel %vm1331_vm5, %v1308_v60, 0.0 }
 0x2cf   : > { %1484 = vadd.xlane.f32.xlu0 %v1483_v3  ;;  %v1760_v3 = vpop.permute.xlu1 %1759 }
 0x2d1   : > { %1798 = vadd.xlane.f32.xlu1 %v1797_v53  ;;  %v1314_v51 = vpop.permute.xlu0 %1313 }
 0x2d2   : > { %v1350_v59 = vsel %vm1331_vm5, %v1314_v51, 0.0 }
 0x2d3   : > { %1635 = vadd.xlane.f32.xlu0 %v1634_v46  ;;  %v1312_v51 = vpop.permute.xlu1 %1311 }
 0x2d4   : > { %v1347_v54 = vsel %vm1331_vm5, %v1312_v51, 0.0 }
 0x2d5   : > { %1351 = vadd.xlane.f32.xlu1 %v1350_v59  ;;  %v1466_v57 = vpop.permute.xlu0 %1465  ;;  %v1794_v59 = vsel %vm1331_vm5, %v1762_v47, 0.0 }
 0x2d6   : > { %v1501_v1 = vsel %vm1331_vm5, %v1466_v57, 0.0  ;;  %v1338_v57 = vsel %vm1331_vm5, %v1306_v17, 0.0 }
 0x2d7   : > { %1786 = vadd.xlane.f32.xlu0 %v1785_v58  ;;  %v1464_v60 = vpop.permute.xlu1 %1463  ;;  %v1489_v58 = vsel %vm1331_vm5, %v1458_v55, 0.0 }
 0x2d8   : > { %v1498_v47 = vsel %vm1331_vm5, %v1464_v60, 0.0 }
 0x2d9   : > { %1502 = vadd.xlane.f32.xlu1 %v1501_v1  ;;  %v1617_v15 = vpop.permute.xlu0 %1616 }
 0x2da   : > { %v1652_v12 = vsel %vm1331_vm5, %v1617_v15, 0.0 }
 0x2db   : > { %1342 = vadd.xlane.f32.xlu0 %v1341_v39  ;;  %v1615_v1 = vpop.permute.xlu1 %1614  ;;  %v1791_v39 = vsel %vm1331_vm5, %v1760_v3, 0.0 }
 0x2dd   : > { %1653 = vadd.xlane.f32.xlu1 %v1652_v12  ;;  %v1768_v46 = vpop.permute.xlu0 %1767 }
 0x2de   : > { %v1803_v53 = vsel %vm1331_vm5, %v1768_v46, 0.0  ;;  %v1649_v46 = vsel %vm1331_vm5, %v1615_v1, 0.0 }
 0x2df   : > { %1493 = vadd.xlane.f32.xlu0 %v1492_v49  ;;  %v1766_v15 = vpop.permute.xlu1 %1765 }
 0x2e0   : > { %v1800_v55 = vsel %vm1331_vm5, %v1766_v15, 0.0 }
 0x2e1   : > { %1804 = vadd.xlane.f32.xlu1 %v1803_v53 }
 0x2e3   : > { %1644 = vadd.xlane.f32.xlu0 %v1643_v62  ;;  %v1316_v12 = vpop.permute.xlu1 %1315 }
 0x2e4   : > { %v1353_v11 = vsel %vm1331_vm5, %v1316_v12, 0.0 }
 0x2e7   : > { %1795 = vadd.xlane.f32.xlu0 %v1794_v59  ;;  %v1468_v17 = vpop.permute.xlu1 %1467 }
 0x2e8   : > { %v1504_v53 = vsel %vm1331_vm5, %v1468_v17, 0.0 }
 0x2eb   : > { %1339 = vadd.xlane.f32.xlu0 %v1338_v57  ;;  %v1619_v49 = vpop.permute.xlu1 %1618 }
 0x2ec   : > { %v1655_v59 = vsel %vm1331_vm5, %v1619_v49, 0.0 }
 0x2ef   : > { %1490 = vadd.xlane.f32.xlu0 %v1489_v58  ;;  %v1770_v3 = vpop.permute.xlu1 %1769 }
 0x2f0   : > { %v1806_v58 = vsel %vm1331_vm5, %v1770_v3, 0.0  ;;  %v1150_v3 = vld [vmem:[%s721_s1] sm:$0xff] }
 0x2f3   : > { %1641 = vadd.xlane.f32.xlu0 %v1640_v22 }
 0x2f7   : > { %1792 = vadd.xlane.f32.xlu0 %v1791_v39  ;;  %v1320_v62 = vpop.permute.xlu1 %1319 }
 0x2f8   : > { %v1359_v39 = vsel %vm1331_vm5, %v1320_v62, 0.0  ;;  %v1152_v62 = vld [vmem:[%s721_s1 + $0x10] sm:$0xff] }
 0x2fb   : > { %1348 = vadd.xlane.f32.xlu0 %v1347_v54  ;;  %v1472_v1 = vpop.permute.xlu1 %1471 }
 0x2fc   : > { %v1510_v17 = vsel %vm1331_vm5, %v1472_v1, 0.0 }
 0x2ff   : > { %1499 = vadd.xlane.f32.xlu0 %v1498_v47  ;;  %v1623_v12 = vpop.permute.xlu1 %1622 }
 0x303   : > { %1650 = vadd.xlane.f32.xlu0 %v1649_v46  ;;  %v1774_v49 = vpop.permute.xlu1 %1773 }
 0x307   : > { %1801 = vadd.xlane.f32.xlu0 %v1800_v55  ;;  %v1661_v55 = vsel %vm1331_vm5, %v1623_v12, 0.0 }
 0x30b   : > { %1354 = vadd.xlane.f32.xlu0 %v1353_v11  ;;  %v1812_v11 = vsel %vm1331_vm5, %v1774_v49, 0.0 }
 0x30f   : > { %1505 = vadd.xlane.f32.xlu0 %v1504_v53  ;;  %v9213_v53 = vadd.f32 %v1150_v3, %v8793_v7  ;;  %v1177_v3 = vld [vmem:[%s9242_s28 + $0x38] sm:$0xff] }
 0x311   : > { %13187 = vst [vmem:[#allocation44_spill] sm:$0xff] %v9213_v53 }
 0x312   : > { %v1318_v51 = vpop.permute.xlu0 %1317 }
 0x313   : > { %1656 = vadd.xlane.f32.xlu0 %v1655_v59  ;;  %v1356_v60 = vsel %vm1331_vm5, %v1318_v51, 0.0  ;;  %v9217_v51 = vadd.f32 %v1152_v62, %v8843_v28  ;;  %v1153_v59 = vld [vmem:[%s721_s1 + $0x18] sm:$0xff]  ;;  %v1176_v62 = vld [vmem:[%s9242_s28 + $0x30] sm:$0xff] }
 0x314   : > { %1357 = vadd.xlane.f32.xlu1 %v1356_v60  ;;  %v9221_v60 = vadd.f32 %v1153_v59, %v8828_v21  ;;  %v1157_v28 = vld [vmem:[%s721_s1 + $0x38] sm:$0xff]  ;;  %v1179_v59 = vld [vmem:[%s9242_s28 + $0x48] sm:$0xff] }
 0x315   : > { %13188 = vst [vmem:[#allocation45_spill] sm:$0xff] %v9217_v51  ;;  %v9236_v21 = vadd.f32 %v1157_v28, %v8882_v2  ;;  %v1158_v2 = vld [vmem:[%s721_s1 + $0x40] sm:$0xff] }
 0x316   : > { %v1470_v57 = vpop.permute.xlu0 %1469  ;;  %13189 = vst [vmem:[#allocation46_spill] sm:$0xff] %v9221_v60 }
 0x317   : > { %1807 = vadd.xlane.f32.xlu0 %v1806_v58  ;;  %v1507_v22 = vsel %vm1331_vm5, %v1470_v57, 0.0  ;;  %v1151_v57 = vld [vmem:[%s721_s1 + $0x8] sm:$0xff]  ;;  %13193 = vst [vmem:[#allocation50_spill] sm:$0xff] %v9236_v21 }
 0x318   : > { %1508 = vadd.xlane.f32.xlu1 %v1507_v22  ;;  %v1155_v58 = vld [vmem:[%s721_s1 + $0x28] sm:$0xff]  ;;  %v9225_v7 = vadd.f32 %v1151_v57, %v8669_v56  ;;  %v1154_v22 = vld [vmem:[%s721_s1 + $0x20] sm:$0xff]  ;;  %v9299_v57 = vadd.f32 %v9134_v29, %v1179_v59 }
 0x319   : > { %v9228_v1 = vadd.f32 %v1155_v58, %v8854_v33 }
 0x31a   : > { %v1621_v15 = vpop.permute.xlu0 %1620  ;;  %13190 = vst [vmem:[#allocation47_spill] sm:$0xff] %v9225_v7  ;;  %13206 = vst [vmem:[#allocation62_spill] sm:$0xff] %v9299_v57 }
 0x31b   : > { %1360 = vadd.xlane.f32.xlu0 %v1359_v39  ;;  %v1658_v54 = vsel %vm1331_vm5, %v1621_v15, 0.0  ;;  %13191 = vst [vmem:[#allocation48_spill] sm:$0xff] %v9228_v1  ;;  %v9233_v15 = vadd.f32 %v1154_v22, %v8869_v41  ;;  %v1156_v39 = vld [vmem:[%s721_s1 + $0x30] sm:$0xff]  ;;  %v1171_v41 = vld [vmem:[%s9242_s28 + $0x8] sm:$0xff]  ;;  %v1178_v22 = vld [vmem:[%s9242_s28 + $0x40] sm:$0xff] }
 0x31c   : > { %1659 = vadd.xlane.f32.xlu1 %v1658_v54  ;;  %v1159_v54 = vld [vmem:[%s721_s1 + $0x48] sm:$0xff]  ;;  %v9247_v56 = vadd.f32 %v1156_v39, %v8895_v9  ;;  %v9256_v12 = vadd.f32 %v8907_v14, %v1171_v41  ;;  %v1173_v9 = vld [vmem:[%s9242_s28 + $0x18] sm:$0xff] }
 0x31d   : > { %13192 = vst [vmem:[#allocation49_spill] sm:$0xff] %v9233_v15  ;;  %v9250_v33 = vadd.f32 %v1159_v54, %v8910_v19  ;;  %v1175_v14 = vld [vmem:[%s9242_s28 + $0x28] sm:$0xff] }
 0x31e   : > { %v1772_v47 = vpop.permute.xlu0 %1771  ;;  %13195 = vst [vmem:[#allocation51_spill] sm:$0xff] %v9247_v56  ;;  %13197 = vst [vmem:[#allocation53_spill] sm:$0xff] %v9256_v12  ;;  %v9279_v49 = vadd.f32 %v8945_v10, %v1175_v14  ;;  %v9296_v10 = vadd.f32 %v9122_v8, %v1176_v62  ;;  %v8420_v8 = vmov 1  }
 0x31f   : > { %1511 = vadd.xlane.f32.xlu0 %v1510_v17  ;;  %v1809_v46 = vsel %vm1331_vm5, %v1772_v47, 0.0  ;;  %13196 = vst [vmem:[#allocation52_spill] sm:$0xff] %v9250_v33  ;;  %v9259_v47 = vadd.f32 %v1158_v2, %v8937_v44  ;;  %v1170_v17 = vld [vmem:[%s9242_s28] sm:$0xff] }
 0x320   : > { %1810 = vadd.xlane.f32.xlu1 %v1809_v46  ;;  %v9266_v19 = vadd.f32 %v8931_v36, %v1170_v17  ;;  %v9269_v46 = vadd.f32 %v8924_v30, %v1173_v9  ;;  %13202 = vst [vmem:[#allocation58_spill] sm:$0xff] %v9279_v49  ;;  %v9289_v36 = vadd.f32 %v9058_v4, %v1177_v3  ;;  %13205 = vst [vmem:[#allocation61_spill] sm:$0xff] %v9296_v10 }
 0x321   : > { %13198 = vst [vmem:[#allocation54_spill] sm:$0xff] %v9259_v47  ;;  %v9307_v4 = vadd.f32 %v9150_v6, %v1178_v22 }
 0x322   : > { %13199 = vst [vmem:[#allocation55_spill] sm:$0xff] %v9266_v19  ;;  %13200 = vst [vmem:[#allocation56_spill] sm:$0xff] %v9269_v46 }
 0x323   : > { %1662 = vadd.xlane.f32.xlu0 %v1661_v55  ;;  %v1172_v55 = vld [vmem:[%s9242_s28 + $0x10] sm:$0xff]  ;;  %13204 = vst [vmem:[#allocation60_spill] sm:$0xff] %v9289_v36  ;;  %13207 = vst [vmem:[#allocation63_spill] sm:$0xff] %v9307_v4 }
 0x324   : > { %v9276_v44 = vadd.f32 %v8982_v25, %v1172_v55 }
 0x326   : > { %13201 = vst [vmem:[#allocation57_spill] sm:$0xff] %v9276_v44 }
 0x327   : > { %1813 = vadd.xlane.f32.xlu0 %v1812_v11  ;;  %v1174_v11 = vld [vmem:[%s9242_s28 + $0x20] sm:$0xff] }
 0x328   : > { %v9286_v30 = vadd.f32 %v9043_v18, %v1174_v11 }
 0x32a   : > { %13203 = vst [vmem:[#allocation59_spill] sm:$0xff] %v9286_v30 }
 0x331   : > { %1840 = vperm.xlu1 %7971, %v9213_v53  }
 0x335   : > { %1850 = vperm.xlu1 %7971, %v9217_v51  }
 0x339   : > { %1855 = vperm.xlu1 %7971, %v9221_v60  }
 0x33d   : > { %1845 = vperm.xlu0 %7970, %v9225_v7   ;;  %1865 = vperm.xlu1 %7971, %v9228_v1  }
 0x33e   : > { %v1337_v58 = vpop.xlane.xlu1 %1336 }
 0x341   : > { %1860 = vperm.xlu0 %7970, %v9233_v15   ;;  %1875 = vperm.xlu1 %7971, %v9236_v21  }
 0x342   : > { %v9311_v39 = vpop.xlane.xlu1 %1487 }
 0x345   : > { %1870 = vperm.xlu0 %7970, %v9247_v56   ;;  %1885 = vperm.xlu1 %7971, %v9250_v33  }
 0x346   : > { %v9319_v54 = vpop.xlane.xlu1 %1638 }
 0x347   : > { %13210 = vst [vmem:[#allocation66_spill] sm:$0xff] %v9319_v54 }
 0x349   : > { %1880 = vperm.xlu0 %7970, %v9259_v47   ;;  %1939 = vperm.xlu1 %7971, %v9256_v12  }
 0x34a   : > { %v9325_v2 = vpop.xlane.xlu1 %1789 }
 0x34b   : > { %13211 = vst [vmem:[#allocation67_spill] sm:$0xff] %v9325_v2  ;;  %v12958_v2 = vmov 32  }
 0x34d   : > { %1934 = vperm.xlu0 %7970, %v9266_v19   ;;  %1949 = vperm.xlu1 %7971, %v9269_v46  }
 0x34e   : > { %v9333_v9 = vpop.xlane.xlu1 %1345 }
 0x351   : > { %1944 = vperm.xlu0 %7970, %v9276_v44   ;;  %1959 = vperm.xlu1 %7971, %v9279_v49  }
 0x352   : > { %v9339_v11 = vpop.xlane.xlu1 %1496 }
 0x354   : > { %v1334_v25 = vpop.xlane.xlu0 %1333 }
 0x355   : > { %1954 = vperm.xlu0 %7970, %v9286_v30   ;;  %1969 = vperm.xlu1 %7971, %v9289_v36   ;;  %8258 = vrcp.f32 %v1334_v25 }
 0x356   : > { %v9347_v62 = vpop.xlane.xlu1 %1647 }
 0x357   : > { %13214 = vst [vmem:[#allocation70_spill] sm:$0xff] %v9347_v62 }
 0x358   : > { %v9302_v18 = vpop.xlane.xlu0 %1484 }
 0x359   : > { %1964 = vperm.xlu0 %7970, %v9296_v10   ;;  %1979 = vperm.xlu1 %7971, %v9299_v57  }
 0x35c   : > { %v9309_v28 = vpop.xlane.xlu0 %1635 }
 0x35d   : > { %13208 = vst [vmem:[#allocation64_spill] sm:$0xff] %v9309_v28  ;;  %1974 = vperm.xlu0 %7970, %v9307_v4   ;;  %7972 = vset.pattern.permute.xlu1 %v8420_v8  ;;  %v12956_v28 = vmov 2  }
 0x35e   : > { %2121 = vperm.xlu1 %7972, %v9213_v53  }
 0x360   : > { %v9315_v29 = vpop.xlane.xlu0 %1786 }
 0x361   : > { %13209 = vst [vmem:[#allocation65_spill] sm:$0xff] %v9315_v29  ;;  %7973 = vset.pattern.permute.xlu0 %v8420_v8  ;;  %v9355_v8 = vpop.xlane.xlu1 %1798 }
 0x362   : > { %2125 = vperm.xlu0 %7973, %v9225_v7   ;;  %2129 = vperm.xlu1 %7972, %v9217_v51   ;;  %13217 = vst [vmem:[#allocation73_spill] sm:$0xff] %v9355_v8 }
 0x364   : > { %v1343_v6 = vpop.xlane.xlu0 %1342 }
 0x365   : > { %v9361_v62 = vpop.xlane.xlu1 %1351  ;;  %8260 = vrcp.f32 %v1343_v6 }
 0x366   : > { %2137 = vperm.xlu0 %7973, %v9233_v15   ;;  %2133 = vperm.xlu1 %7972, %v9221_v60   ;;  %8262 = vrcp.f32 %v1337_v58 }
 0x368   : > { %v9323_v41 = vpop.xlane.xlu0 %1493 }
 0x369   : > { %v9371_v25 = vpop.xlane.xlu1 %1502 }
 0x36a   : > { %2145 = vperm.xlu0 %7973, %v9247_v56   ;;  %2141 = vperm.xlu1 %7972, %v9228_v1  }
 0x36c   : > { %v9329_v17 = vpop.xlane.xlu0 %1644 }
 0x36d   : > { %13212 = vst [vmem:[#allocation68_spill] sm:$0xff] %v9329_v17 }
 0x36e   : > { %2153 = vperm.xlu0 %7973, %v9259_v47   ;;  %2149 = vperm.xlu1 %7972, %v9236_v21  }
 0x370   : > { %v9335_v55 = vpop.xlane.xlu0 %1795 }
 0x371   : > { %13213 = vst [vmem:[#allocation69_spill] sm:$0xff] %v9335_v55  ;;  %v8259_v55 = vpop.eup %8258 }
 0x372   : > { %2201 = vperm.xlu0 %7973, %v9266_v19   ;;  %2157 = vperm.xlu1 %7972, %v9250_v33  }
 0x374   : > { %v1340_v14 = vpop.xlane.xlu0 %1339 }
 0x376   : > { %2209 = vperm.xlu0 %7973, %v9276_v44   ;;  %2205 = vperm.xlu1 %7972, %v9256_v12  }
 0x378   : > { %v9343_v3 = vpop.xlane.xlu0 %1490 }
 0x37a   : > { %2217 = vperm.xlu0 %7973, %v9286_v30   ;;  %2213 = vperm.xlu1 %7972, %v9269_v46  }
 0x37c   : > { %v9349_v59 = vpop.xlane.xlu0 %1641 }
 0x37d   : > { %13215 = vst [vmem:[#allocation71_spill] sm:$0xff] %v9349_v59 }
 0x37e   : > { %2225 = vperm.xlu0 %7973, %v9296_v10   ;;  %2221 = vperm.xlu1 %7972, %v9279_v49  }
 0x380   : > { %v9353_v22 = vpop.xlane.xlu0 %1792 }
 0x381   : > { %13216 = vst [vmem:[#allocation72_spill] sm:$0xff] %v9353_v22  ;;  %v9377_v22 = vpop.xlane.xlu1 %1653 }
 0x382   : > { %2233 = vperm.xlu0 %7973, %v9307_v4   ;;  %2229 = vperm.xlu1 %7972, %v9289_v36   ;;  %13220 = vst [vmem:[#allocation76_spill] sm:$0xff] %v9377_v22  ;;  %v12960_v22 = vmov 33  }
 0x384   : > { %v1349_v54 = vpop.xlane.xlu0 %1348 }
 0x385   : > { %v9389_v58 = vpop.xlane.xlu1 %1804  ;;  %8264 = vrcp.f32 %v1349_v54 }
 0x386   : > { %7975 = vset.pattern.permute.xlu0 %v12956_v28  ;;  %2237 = vperm.xlu1 %7972, %v9299_v57   ;;  %13221 = vst [vmem:[#allocation77_spill] sm:$0xff] %v9389_v58  ;;  %8266 = vrcp.f32 %v1340_v14  ;;  %v13224_v14 = vmov 32  }
 0x387   : > { %2366 = vperm.xlu0 %7975, %v9225_v7  }
 0x388   : > { %v9364_v17 = vpop.xlane.xlu0 %1499 }
 0x38a   : > { %7974 = vset.pattern.permute.xlu1 %v12956_v28 }
 0x38b   : > { %2378 = vperm.xlu0 %7975, %v9233_v15   ;;  %2362 = vperm.xlu1 %7974, %v9213_v53  }
 0x38c   : > { %v9369_v8 = vpop.xlane.xlu0 %1650 }
 0x38d   : > { %13218 = vst [vmem:[#allocation74_spill] sm:$0xff] %v9369_v8  ;;  %v9382_v8 = vmul.f32 %v8259_v55, %v8989_v32  ;;  %v8261_v55 = vpop.eup %8260 }
 0x38e   : > { %v9400_v58 = vmul.f32 %v8261_v55, %v9022_v26  ;;  %v13226_v26 = vmov 33  }
 0x38f   : > { %2386 = vperm.xlu0 %7975, %v9247_v56   ;;  %2370 = vperm.xlu1 %7974, %v9217_v51  }
 0x390   : > { %v9375_v59 = vpop.xlane.xlu0 %1801 }
 0x391   : > { %13219 = vst [vmem:[#allocation75_spill] sm:$0xff] %v9375_v59 }
 0x393   : > { %2394 = vperm.xlu0 %7975, %v9259_v47   ;;  %2374 = vperm.xlu1 %7974, %v9221_v60  }
 0x394   : > { %v1355_v28 = vpop.xlane.xlu0 %1354 }
 0x395   : > { %8268 = vrcp.f32 %v1355_v28 }
 0x396   : > { %8270 = vrcp.f32 %v9333_v9 }
 0x397   : > { %7978 = vset.pattern.permute.xlu0 %v12958_v2  ;;  %2382 = vperm.xlu1 %7974, %v9228_v1   ;;  %v8263_v2 = vpop.eup %8262 }
 0x398   : > { %2028 = vperm.xlu0 %7978, %v9382_v8   ;;  %v9387_v6 = vpop.xlane.xlu0 %1505  ;;  %v8265_v55 = vpop.eup %8264 }
 0x399   : > { %v9423_v28 = vmul.f32 %v8265_v55, %v9069_v63 }
 0x39b   : > { %2390 = vperm.xlu1 %7974, %v9236_v21  }
 0x39c   : > { %7979 = vset.pattern.permute.xlu0 %v12960_v22  ;;  %v9393_v32 = vpop.xlane.xlu0 %1656  ;;  %v9407_v22 = vmul.f32 %v8263_v2, %v8955_v24  ;;  %v8267_v24 = vpop.eup %8266 }
 0x39d   : > { %13222 = vst [vmem:[#allocation78_spill] sm:$0xff] %v9393_v32  ;;  %v1358_v59 = vpop.xlane.xlu1 %1357  ;;  %2281 = vperm.xlu0 %7979, %v9382_v8   ;;  %v9428_v9 = vmul.f32 %v8267_v24, %v9046_v31 }
 0x39f   : > { %2398 = vperm.xlu1 %7974, %v9250_v33  }
 0x3a0   : > { %v9397_v29 = vpop.xlane.xlu0 %1807 }
 0x3a1   : > { %13223 = vst [vmem:[#allocation79_spill] sm:$0xff] %v9397_v29  ;;  %v9402_v54 = vpop.xlane.xlu1 %1508  ;;  %7980 = vset.pattern.permute.xlu0 %v13224_v14 }
 0x3a2   : > { %2043 = vperm.xlu0 %7980, %v9400_v58   ;;  %v8269_v63 = vpop.eup %8268 }
 0x3a3   : > { %7976 = vset.pattern.permute.xlu1 %v13224_v14  ;;  %v8271_v31 = vpop.eup %8270 }
 0x3a4   : > { %v1361_v32 = vpop.xlane.xlu0 %1360  ;;  %2033 = vperm.xlu1 %7976, %v9407_v22  }
 0x3a5   : > { %v9411_v45 = vpop.xlane.xlu1 %1659  ;;  %8272 = vrcp.f32 %v1361_v32  ;;  %v9446_v32 = vmul.f32 %v8269_v63, %v9094_v37 }
 0x3a6   : > { %13225 = vst [vmem:[#allocation80_spill] sm:$0xff] %v9411_v45  ;;  %7981 = vset.pattern.permute.xlu0 %v13226_v26  ;;  %8274 = vrcp.f32 %v9361_v62 }
 0x3a7   : > { %2293 = vperm.xlu0 %7981, %v9400_v58   ;;  %8276 = vrcp.f32 %v1358_v59 }
 0x3a8   : > { %v9416_v29 = vpop.xlane.xlu0 %1511  ;;  %7977 = vset.pattern.permute.xlu1 %v13226_v26  ;;  %8278 = vrcp.f32 %v9311_v39 }
 0x3a9   : > { %v9419_v2 = vpop.xlane.xlu1 %1810  ;;  %2285 = vperm.xlu1 %7977, %v9407_v22   ;;  %8280 = vrcp.f32 %v9339_v11 }
 0x3aa   : > { %13227 = vst [vmem:[#allocation81_spill] sm:$0xff] %v9419_v2  ;;  %v9453_v2 = vmul.f32 %v8271_v31, %v8984_v27  ;;  %8282 = vrcp.f32 %v9302_v18  ;;  %v9668_v18 = vld [vmem:[%s13282_s4 + $0x1] ss:$0 sm:$0xff] }
 0x3ab   : > { %7984 = vset.pattern.permute.xlu0 %v13224_v14  ;;  %8284 = vrcp.f32 %v9371_v25 }
 0x3ac   : > { %2053 = vperm.xlu0 %7984, %v9423_v28   ;;  %v9433_v38 = vpop.xlane.xlu0 %1662  ;;  %8286 = vrcp.f32 %v9323_v41 }
 0x3ad   : > { %7982 = vset.pattern.permute.xlu1 %v13224_v14  ;;  %v9431_v45 = vpop.permute.xlu1 %1840  ;;  %13228 = vst [vmem:[#allocation82_spill] sm:$0xff] %v9433_v38  ;;  %8288 = vrcp.f32 %v9343_v3 }
 0x3ae   : > { %2038 = vperm.xlu1 %7982, %v9428_v9   ;;  %8290 = vrcp.f32 %v9364_v17  ;;  %v1892_v3 = vsub.f32 %v9431_v45, %v9668_v18 }
 0x3af   : > { %8292 = vrcp.f32 %v9387_v6 }
 0x3b0   : > { %7985 = vset.pattern.permute.xlu0 %v13226_v26  ;;  %v9443_v24 = vpop.xlane.xlu0 %1813  ;;  %8294 = vrcp.f32 %v9402_v54 }
 0x3b1   : > { %2301 = vperm.xlu0 %7985, %v9423_v28   ;;  %v9439_v55 = vpop.permute.xlu1 %1850  ;;  %13229 = vst [vmem:[#allocation83_spill] sm:$0xff] %v9443_v24  ;;  %8296 = vrcp.f32 %v9416_v29 }
 0x3b2   : > { %7983 = vset.pattern.permute.xlu1 %v13226_v26  ;;  %v8273_v37 = vpop.eup %8272  ;;  %v1894_v17 = vsub.f32 %v9439_v55, %v9668_v18 }
 0x3b3   : > { %2289 = vperm.xlu1 %7983, %v9428_v9   ;;  %v8275_v27 = vpop.eup %8274  ;;  %v9470_v24 = vmul.f32 %v8273_v37, %v9128_v48 }
 0x3b4   : > { %v9477_v16 = vmul.f32 %v8275_v27, %v9090_v35  ;;  %v8277_v37 = vpop.eup %8276  ;;  %v13235_v27 = vmov 2  }
 0x3b5   : > { %7988 = vset.pattern.permute.xlu0 %v13224_v14  ;;  %v9449_v62 = vpop.permute.xlu1 %1855  ;;  %v8279_v25 = vpop.eup %8278 }
 0x3b6   : > { %2063 = vperm.xlu0 %7988, %v9446_v32   ;;  %v8281_v6 = vpop.eup %8280 }
 0x3b7   : > { %7986 = vset.pattern.permute.xlu1 %v13224_v14  ;;  %v8283_v54 = vpop.eup %8282 }
 0x3b8   : > { %v9456_v38 = vpop.permute.xlu0 %1845  ;;  %2048 = vperm.xlu1 %7986, %v9453_v2   ;;  %v8285_v55 = vpop.eup %8284 }
 0x3b9   : > { %v9459_v50 = vpop.permute.xlu1 %1865  ;;  %v1893_v45 = vsub.f32 %v9456_v38, %v9668_v18 }
 0x3ba   : > { %7989 = vset.pattern.permute.xlu0 %v13226_v26  ;;  %v1897_v38 = vsub.f32 %v9459_v50, %v9668_v18  ;;  %v9711_v50 = vld [vmem:[%s13282_s4] ss:$0 sm:$0xff] }
 0x3bb   : > { %2309 = vperm.xlu0 %7989, %v9446_v32  }
 0x3bc   : > { %v9463_v63 = vpop.permute.xlu0 %1860  ;;  %7987 = vset.pattern.permute.xlu1 %v13226_v26 }
 0x3bd   : > { %2297 = vperm.xlu1 %7987, %v9453_v2   ;;  %v9467_v31 = vpop.permute.xlu1 %1875 }
 0x3bf   : > { %7992 = vset.pattern.permute.xlu0 %v13224_v14 }
 0x3c0   : > { %2073 = vperm.xlu0 %7992, %v9470_v24   ;;  %v9474_v59 = vpop.permute.xlu0 %1870 }
 0x3c1   : > { %13230 = vst [vmem:[#allocation84_spill] sm:$0xff] %v9474_v59  ;;  %7990 = vset.pattern.permute.xlu1 %v13224_v14  ;;  %v9480_v0 = vpop.permute.xlu1 %1885  ;;  %v9498_v59 = vmul.f32 %v8277_v37, %v9152_v13 }
 0x3c2   : > { %13231 = vst [vmem:[#allocation85_spill] sm:$0xff] %v9480_v0  ;;  %2058 = vperm.xlu1 %7990, %v9477_v16  }
 0x3c4   : > { %7993 = vset.pattern.permute.xlu0 %v13226_v26  ;;  %v9484_v43 = vpop.permute.xlu0 %1880 }
 0x3c5   : > { %13232 = vst [vmem:[#allocation86_spill] sm:$0xff] %v9484_v43  ;;  %2317 = vperm.xlu0 %7993, %v9470_v24   ;;  %v9487_v48 = vpop.permute.xlu1 %1939 }
 0x3c6   : > { %13233 = vst [vmem:[#allocation87_spill] sm:$0xff] %v9487_v48  ;;  %7991 = vset.pattern.permute.xlu1 %v13226_v26 }
 0x3c7   : > { %2305 = vperm.xlu1 %7991, %v9477_v16  }
 0x3c8   : > { %v9491_v35 = vpop.permute.xlu0 %1934 }
 0x3c9   : > { %13234 = vst [vmem:[#allocation88_spill] sm:$0xff] %v9491_v35  ;;  %7994 = vset.pattern.permute.xlu0 %v13235_v27  ;;  %v9494_v0 = vpop.permute.xlu1 %1949 }
 0x3ca   : > { %13236 = vst [vmem:[#allocation89_spill] sm:$0xff] %v9494_v0  ;;  %2442 = vperm.xlu0 %7994, %v9266_v19  }
 0x3cb   : > { %7995 = vset.pattern.permute.xlu1 %v13224_v14 }
 0x3cc   : > { %v9501_v43 = vpop.permute.xlu0 %1944  ;;  %2068 = vperm.xlu1 %7995, %v9498_v59  }
 0x3cd   : > { %v9504_v48 = vpop.permute.xlu1 %1959 }
 0x3ce   : > { %2450 = vperm.xlu0 %7994, %v9276_v44  }
 0x3d0   : > { %v9507_v35 = vpop.permute.xlu0 %1954  ;;  %7996 = vset.pattern.permute.xlu1 %v13226_v26 }
 0x3d1   : > { %13237 = vst [vmem:[#allocation90_spill] sm:$0xff] %v9507_v35  ;;  %2313 = vperm.xlu1 %7996, %v9498_v59   ;;  %v9511_v0 = vpop.permute.xlu1 %1969 }
 0x3d2   : > { %13238 = vst [vmem:[#allocation91_spill] sm:$0xff] %v9511_v0  ;;  %2458 = vperm.xlu0 %7994, %v9286_v30  }
 0x3d4   : > { %v9514_v13 = vpop.permute.xlu0 %1964 }
 0x3d5   : > { %13239 = vst [vmem:[#allocation92_spill] sm:$0xff] %v9514_v13  ;;  %7997 = vset.pattern.permute.xlu1 %v13235_v27  ;;  %v9517_v14 = vpop.permute.xlu1 %1979  ;;  %v8424_v13 = vmov 34  }
 0x3d6   : > { %13240 = vst [vmem:[#allocation93_spill] sm:$0xff] %v9517_v14  ;;  %2466 = vperm.xlu0 %7994, %v9296_v10   ;;  %2446 = vperm.xlu1 %7997, %v9256_v12  }
 0x3d8   : > { %v9521_v37 = vpop.permute.xlu0 %1974 }
 0x3d9   : > { %13241 = vst [vmem:[#allocation94_spill] sm:$0xff] %v9521_v37  ;;  %v9523_v35 = vpop.permute.xlu1 %2121 }
 0x3da   : > { %13242 = vst [vmem:[#allocation95_spill] sm:$0xff] %v9523_v35  ;;  %2474 = vperm.xlu0 %7994, %v9307_v4   ;;  %2454 = vperm.xlu1 %7997, %v9269_v46  }
 0x3dd   : > { %v9527_v26 = vpop.permute.xlu0 %2125  ;;  %v9529_v0 = vpop.permute.xlu1 %2129 }
 0x3de   : > { %13243 = vst [vmem:[#allocation96_spill] sm:$0xff] %v9527_v26  ;;  %13244 = vst [vmem:[#allocation97_spill] sm:$0xff] %v9529_v0  ;;  %7998 = vset.pattern.permute.xlu0 %v8424_v13  ;;  %2462 = vperm.xlu1 %7997, %v9279_v49  }
 0x3df   : > { %2522 = vperm.xlu0 %7998, %v9382_v8  }
 0x3e1   : > { %v9533_v27 = vpop.permute.xlu0 %2137  ;;  %v9535_v14 = vpop.permute.xlu1 %2133 }
 0x3e2   : > { %13245 = vst [vmem:[#allocation98_spill] sm:$0xff] %v9533_v27  ;;  %13246 = vst [vmem:[#allocation99_spill] sm:$0xff] %v9535_v14  ;;  %2470 = vperm.xlu1 %7997, %v9289_v36  }
 0x3e3   : > { %2534 = vperm.xlu0 %7998, %v9400_v58  }
 0x3e5   : > { %v9539_v35 = vpop.permute.xlu0 %2145  ;;  %v9541_v37 = vpop.permute.xlu1 %2141 }
 0x3e6   : > { %13247 = vst [vmem:[#allocation100_spill] sm:$0xff] %v9539_v35  ;;  %13248 = vst [vmem:[#allocation101_spill] sm:$0xff] %v9541_v37  ;;  %2478 = vperm.xlu1 %7997, %v9299_v57  }
 0x3e7   : > { %2542 = vperm.xlu0 %7998, %v9423_v28  }
 0x3e9   : > { %v9545_v0 = vpop.permute.xlu0 %2153  ;;  %v9547_v26 = vpop.permute.xlu1 %2149 }
 0x3ea   : > { %13249 = vst [vmem:[#allocation102_spill] sm:$0xff] %v9545_v0  ;;  %13250 = vst [vmem:[#allocation103_spill] sm:$0xff] %v9547_v26  ;;  %7999 = vset.pattern.permute.xlu1 %v8424_v13  ;;  %v8425_v0 = vmov 3  }
 0x3eb   : > { %2550 = vperm.xlu0 %7998, %v9446_v32   ;;  %2526 = vperm.xlu1 %7999, %v9407_v22  }
 0x3ed   : > { %v9551_v14 = vpop.permute.xlu0 %2201  ;;  %v9553_v27 = vpop.permute.xlu1 %2157 }
 0x3ee   : > { %13251 = vst [vmem:[#allocation104_spill] sm:$0xff] %v9551_v14  ;;  %13252 = vst [vmem:[#allocation105_spill] sm:$0xff] %v9553_v27 }
 0x3ef   : > { %2558 = vperm.xlu0 %7998, %v9470_v24   ;;  %2530 = vperm.xlu1 %7999, %v9428_v9  }
 0x3f1   : > { %v9557_v37 = vpop.permute.xlu0 %2209  ;;  %v9559_v35 = vpop.permute.xlu1 %2205 }
 0x3f2   : > { %13253 = vst [vmem:[#allocation106_spill] sm:$0xff] %v9557_v37  ;;  %13254 = vst [vmem:[#allocation107_spill] sm:$0xff] %v9559_v35 }
 0x3f3   : > { %8001 = vset.pattern.permute.xlu0 %v8425_v0  ;;  %2538 = vperm.xlu1 %7999, %v9453_v2  }
 0x3f4   : > { %2610 = vperm.xlu0 %8001, %v9225_v7  }
 0x3f5   : > { %v9563_v13 = vpop.permute.xlu0 %2217  ;;  %v9565_v26 = vpop.permute.xlu1 %2213 }
 0x3f6   : > { %13255 = vst [vmem:[#allocation108_spill] sm:$0xff] %v9563_v13  ;;  %13256 = vst [vmem:[#allocation109_spill] sm:$0xff] %v9565_v26 }
 0x3f7   : > { %2546 = vperm.xlu1 %7999, %v9477_v16  }
 0x3f8   : > { %2622 = vperm.xlu0 %8001, %v9233_v15  }
 0x3f9   : > { %v9569_v27 = vpop.permute.xlu0 %2225  ;;  %v9571_v14 = vpop.permute.xlu1 %2221 }
 0x3fa   : > { %13257 = vst [vmem:[#allocation110_spill] sm:$0xff] %v9569_v27  ;;  %13258 = vst [vmem:[#allocation111_spill] sm:$0xff] %v9571_v14 }
 0x3fb   : > { %2554 = vperm.xlu1 %7999, %v9498_v59  }
 0x3fc   : > { %2630 = vperm.xlu0 %8001, %v9247_v56  }
 0x3fd   : > { %v9575_v35 = vpop.permute.xlu0 %2233  ;;  %v9577_v37 = vpop.permute.xlu1 %2229 }
 0x3fe   : > { %13259 = vst [vmem:[#allocation112_spill] sm:$0xff] %v9575_v35  ;;  %13260 = vst [vmem:[#allocation113_spill] sm:$0xff] %v9577_v37 }
 0x3ff   : > { %8000 = vset.pattern.permute.xlu1 %v8425_v0 }
 0x400   : > { %2638 = vperm.xlu0 %8001, %v9259_v47   ;;  %2606 = vperm.xlu1 %8000, %v9213_v53  }
 0x401   : > { %v9581_v26 = vpop.permute.xlu1 %2237 }
 0x402   : > { %13261 = vst [vmem:[#allocation114_spill] sm:$0xff] %v9581_v26  ;;  %v9583_v13 = vpop.permute.xlu0 %2366 }
 0x403   : > { %13262 = vst [vmem:[#allocation115_spill] sm:$0xff] %v9583_v13 }
 0x404   : > { %2686 = vperm.xlu0 %8001, %v9266_v19   ;;  %2614 = vperm.xlu1 %8000, %v9217_v51  }
 0x406   : > { %v9587_v14 = vpop.permute.xlu0 %2378  ;;  %v9589_v27 = vpop.permute.xlu1 %2362 }
 0x407   : > { %13263 = vst [vmem:[#allocation116_spill] sm:$0xff] %v9587_v14  ;;  %13264 = vst [vmem:[#allocation117_spill] sm:$0xff] %v9589_v27 }
 0x408   : > { %2694 = vperm.xlu0 %8001, %v9276_v44   ;;  %2618 = vperm.xlu1 %8000, %v9221_v60  }
 0x40a   : > { %v9593_v0 = vpop.permute.xlu0 %2386  ;;  %v9595_v37 = vpop.permute.xlu1 %2370 }
 0x40b   : > { %13265 = vst [vmem:[#allocation118_spill] sm:$0xff] %v9593_v0  ;;  %13266 = vst [vmem:[#allocation119_spill] sm:$0xff] %v9595_v37  ;;  %v8426_v0 = vmov 35  }
 0x40c   : > { %2702 = vperm.xlu0 %8001, %v9286_v30   ;;  %2626 = vperm.xlu1 %8000, %v9228_v1  }
 0x40e   : > { %v9599_v13 = vpop.permute.xlu0 %2394  ;;  %v9601_v26 = vpop.permute.xlu1 %2374 }
 0x40f   : > { %13267 = vst [vmem:[#allocation120_spill] sm:$0xff] %v9601_v26 }
 0x410   : > { %2710 = vperm.xlu0 %8001, %v9296_v10   ;;  %2634 = vperm.xlu1 %8000, %v9236_v21  }
 0x412   : > { %v9605_v27 = vpop.permute.xlu1 %2382 }
 0x413   : > { %13268 = vst [vmem:[#allocation121_spill] sm:$0xff] %v9605_v27  ;;  %v9607_v14 = vpop.permute.xlu0 %2028 }
 0x414   : > { %13269 = vst [vmem:[#allocation122_spill] sm:$0xff] %v9607_v14  ;;  %2718 = vperm.xlu0 %8001, %v9307_v4   ;;  %2642 = vperm.xlu1 %8000, %v9250_v33  }
 0x416   : > { %v9611_v37 = vpop.permute.xlu1 %2390 }
 0x417   : > { %13270 = vst [vmem:[#allocation123_spill] sm:$0xff] %v9611_v37 }
 0x418   : > { %8002 = vset.pattern.permute.xlu0 %v8426_v0  ;;  %v9613_v35 = vpop.permute.xlu0 %2281  ;;  %2690 = vperm.xlu1 %8000, %v9256_v12  }
 0x419   : > { %13271 = vst [vmem:[#allocation124_spill] sm:$0xff] %v9613_v35  ;;  %2766 = vperm.xlu0 %8002, %v9382_v8  }
 0x41a   : > { %v9617_v26 = vpop.permute.xlu1 %2398 }
 0x41c   : > { %2698 = vperm.xlu1 %8000, %v9269_v46  }
 0x41d   : > { %2778 = vperm.xlu0 %8002, %v9400_v58   ;;  %v9621_v14 = vpop.permute.xlu0 %2043 }
 0x41e   : > { %13272 = vst [vmem:[#allocation125_spill] sm:$0xff] %v9621_v14 }
 0x41f   : > { %v9623_v27 = vpop.permute.xlu1 %2033 }
 0x420   : > { %13273 = vst [vmem:[#allocation126_spill] sm:$0xff] %v9623_v27  ;;  %2706 = vperm.xlu1 %8000, %v9279_v49  }
 0x421   : > { %2786 = vperm.xlu0 %8002, %v9423_v28   ;;  %v8427_v28 = vmov 4  }
 0x422   : > { %v9627_v37 = vpop.permute.xlu0 %2293 }
 0x424   : > { %2714 = vperm.xlu1 %8000, %v9289_v36   ;;  %v9630_v35 = vpop.permute.xlu1 %2285 }
 0x425   : > { %2794 = vperm.xlu0 %8002, %v9446_v32  }
 0x427   : > { %v9633_v8 = vpop.permute.xlu0 %2053 }
 0x428   : > { %13274 = vst [vmem:[#allocation127_spill] sm:$0xff] %v9633_v8  ;;  %2722 = vperm.xlu1 %8000, %v9299_v57  }
 0x429   : > { %2802 = vperm.xlu0 %8002, %v9470_v24   ;;  %v9637_v58 = vpop.permute.xlu1 %2038 }
 0x42a   : > { %13275 = vst [vmem:[#allocation128_spill] sm:$0xff] %v9637_v58  ;;  %v13308_v58 = vld [vmem:[#allocation41_spill] sm:$0xff] }
 0x42c   : > { %v9639_v27 = vpop.permute.xlu0 %2301  ;;  %8003 = vset.pattern.permute.xlu1 %v8426_v0  ;;  %v8287_v0 = vpop.eup %8286 }
 0x42d   : > { %13276 = vst [vmem:[#allocation129_spill] sm:$0xff] %v9639_v27  ;;  %8005 = vset.pattern.permute.xlu0 %v8427_v28  ;;  %2770 = vperm.xlu1 %8003, %v9407_v22  }
 0x42e   : > { %2865 = vperm.xlu0 %8005, %v9225_v7   ;;  %v9643_v14 = vpop.permute.xlu1 %2289 }
 0x42f   : > { %13277 = vst [vmem:[#allocation130_spill] sm:$0xff] %v9643_v14 }
 0x431   : > { %v9646_v32 = vpop.permute.xlu0 %2063  ;;  %2774 = vperm.xlu1 %8003, %v9428_v9  }
 0x432   : > { %13278 = vst [vmem:[#allocation131_spill] sm:$0xff] %v9646_v32  ;;  %2877 = vperm.xlu0 %8005, %v9233_v15  }
 0x433   : > { %v9652_v24 = vpop.permute.xlu1 %2048 }
 0x434   : > { %13279 = vst [vmem:[#allocation132_spill] sm:$0xff] %v9652_v24 }
 0x435   : > { %2782 = vperm.xlu1 %8003, %v9453_v2   ;;  %v1902_v2 = vand.u32 2147483647, %v1892_v3 }
 0x436   : > { %2885 = vperm.xlu0 %8005, %v9247_v56   ;;  %v9659_v39 = vpop.permute.xlu0 %2309 }
 0x437   : > { %13280 = vst [vmem:[#allocation133_spill] sm:$0xff] %v9659_v39  ;;  %v1912_v3 = vsub.f32 1.0, %v1902_v2 }
 0x438   : > { %v9663_v11 = vpop.permute.xlu1 %2297 }
 0x439   : > { %13281 = vst [vmem:[#allocation134_spill] sm:$0xff] %v9663_v11  ;;  %2790 = vperm.xlu1 %8003, %v9477_v16   ;;  %v1895_v16 = vsub.f32 %v9449_v62, %v9668_v18  ;;  %v8289_v62 = vpop.eup %8288 }
 0x43a   : > { %2893 = vperm.xlu0 %8005, %v9259_v47   ;;  %v8291_v24 = vpop.eup %8290  ;;  %v9730_v2 = vmul.f32 %v8289_v62, %v9051_v34 }
 0x43b   : > { %v9672_v41 = vpop.permute.xlu0 %2073 }
 0x43c   : > { %13283 = vst [vmem:[#allocation135_spill] sm:$0xff] %v9672_v41  ;;  %v1903_v41 = vand.u32 2147483647, %v1893_v45  ;;  %v9706_v45 = vmul.f32 %v8281_v6, %v8991_v5  ;;  %v9727_v6 = vmul.f32 %v8291_v24, %v9075_v61  ;;  %13295 = vst [vmem:[#allocation147_spill] sm:$0xff] %v9730_v2  ;;  %v13299_v61 = vld [vmem:[#allocation87_spill] sm:$0xff] }
 0x43d   : > { %2798 = vperm.xlu1 %8003, %v9498_v59   ;;  %v9680_v22 = vpop.permute.xlu1 %2058  ;;  %v1904_v59 = vand.u32 2147483647, %v1894_v17  ;;  %v8293_v17 = vpop.eup %8292  ;;  %v1987_v24 = vsub.f32 %v13299_v61, %v9711_v50 }
 0x43e   : > { %13284 = vst [vmem:[#allocation136_spill] sm:$0xff] %v9680_v22  ;;  %2941 = vperm.xlu0 %8005, %v9266_v19   ;;  %v1905_v22 = vand.u32 2147483647, %v1895_v16  ;;  %13289 = vst [vmem:[#allocation141_spill] sm:$0xff] %v9706_v45  ;;  %v1913_v5 = vsub.f32 1.0, %v1903_v41  ;;  %v8295_v62 = vpop.eup %8294 }
 0x43f   : > { %v1914_v16 = vsub.f32 1.0, %v1904_v59  ;;  %13294 = vst [vmem:[#allocation146_spill] sm:$0xff] %v9727_v6  ;;  %v9732_v59 = vmax.f32 %v1912_v3, 0.0  ;;  %v1997_v32 = vand.u32 2147483647, %v1987_v24 }
 0x440   : > { %v9688_v9 = vpop.permute.xlu0 %2317 }
 0x441   : > { %13285 = vst [vmem:[#allocation137_spill] sm:$0xff] %v9688_v9  ;;  %8004 = vset.pattern.permute.xlu1 %v8427_v28  ;;  %v1896_v9 = vsub.f32 %v9463_v63, %v9668_v18  ;;  %v1899_v28 = vsub.f32 %v9467_v31, %v9668_v18  ;;  %v9716_v63 = vmul.f32 %v8283_v54, %v8998_v20 }
 0x442   : > { %2949 = vperm.xlu0 %8005, %v9276_v44   ;;  %2861 = vperm.xlu1 %8004, %v9213_v53   ;;  %v9692_v29 = vpop.permute.xlu1 %2305  ;;  %v9703_v53 = vmul.f32 %v8279_v25, %v8963_v40  ;;  %v9719_v31 = vmul.f32 %v8287_v0, %v9028_v42  ;;  %v9722_v40 = vmul.f32 %v8285_v55, %v9098_v23  ;;  %v9737_v0 = vmax.f32 %v1914_v16, 0.0  ;;  %v13297_v23 = vld [vmem:[#allocation84_spill] sm:$0xff]  ;;  %v13298_v55 = vld [vmem:[#allocation85_spill] sm:$0xff] }
 0x443   : > { %13286 = vst [vmem:[#allocation138_spill] sm:$0xff] %v9692_v29  ;;  %v1915_v29 = vsub.f32 1.0, %v1905_v22  ;;  %13290 = vst [vmem:[#allocation142_spill] sm:$0xff] %v9716_v63  ;;  %v1907_v22 = vand.u32 2147483647, %v1897_v38  ;;  %v9735_v42 = vmul.f32 %v8293_v17, %v9102_v52  ;;  %v1898_v41 = vsub.f32 %v13297_v23, %v9668_v18  ;;  %v8297_v23 = vpop.eup %8296 }
 0x444   : > { %13288 = vst [vmem:[#allocation140_spill] sm:$0xff] %v9703_v53  ;;  %13291 = vst [vmem:[#allocation143_spill] sm:$0xff] %v9719_v31  ;;  %v1906_v20 = vand.u32 2147483647, %v1896_v9  ;;  %v1909_v54 = vand.u32 2147483647, %v1899_v28  ;;  %v1901_v38 = vsub.f32 %v13298_v55, %v9668_v18  ;;  %v1988_v16 = vsub.f32 %v9501_v43, %v9711_v50 }
 0x445   : > { %v9700_v11 = vpop.permute.xlu0 %2442  ;;  %13292 = vst [vmem:[#allocation144_spill] sm:$0xff] %v9722_v40  ;;  %13296 = vst [vmem:[#allocation148_spill] sm:$0xff] %v9735_v42  ;;  %v9747_v3 = vmax.f32 %v1915_v29, 0.0  ;;  %v13301_v9 = vld [vmem:[#allocation88_spill] sm:$0xff]  ;;  %v13302_v28 = vld [vmem:[#allocation89_spill] sm:$0xff]  ;;  %v9757_v55 = vmax.f32 %v1913_v5, 0.0  ;;  %v1991_v29 = vsub.f32 %v9504_v48, %v9711_v50  ;;  %v9772_v48 = vmul.f32 %v8295_v62, %v13308_v58 }
 0x446   : > { %13287 = vst [vmem:[#allocation139_spill] sm:$0xff] %v9700_v11  ;;  %2957 = vperm.xlu0 %8005, %v9286_v30   ;;  %2869 = vperm.xlu1 %8004, %v9217_v51   ;;  %v1986_v52 = vsub.f32 %v13301_v9, %v9711_v50  ;;  %v1989_v17 = vsub.f32 %v13302_v28, %v9711_v50  ;;  %v1917_v61 = vsub.f32 1.0, %v1907_v22  ;;  %v1916_v51 = vsub.f32 1.0, %v1906_v20  ;;  %v13304_v28 = vld [vmem:[#allocation86_spill] sm:$0xff]  ;;  %v13305_v43 = vld [vmem:[#allocation91_spill] sm:$0xff]  ;;  %v13313_v58 = vld [vmem:[#allocation93_spill] sm:$0xff] }
 0x447   : > { %v9724_v25 = vpop.permute.xlu1 %2068  ;;  %v1900_v11 = vsub.f32 %v13304_v28, %v9668_v18  ;;  %v1911_v5 = vand.u32 2147483647, %v1901_v38  ;;  %13309 = vst [vmem:[#allocation88_spill] sm:$0xff] %v9772_v48  ;;  %v1998_v20 = vand.u32 2147483647, %v1988_v16  ;;  %v1995_v62 = vsub.f32 %v13313_v58, %v9711_v50 }
 0x448   : > { %13293 = vst [vmem:[#allocation145_spill] sm:$0xff] %v9724_v25  ;;  %v13303_v25 = vld [vmem:[#allocation90_spill] sm:$0xff]  ;;  %v1996_v8 = vand.u32 2147483647, %v1986_v52  ;;  %v1927_v24 = vmax.f32 %v1917_v61, 0.0  ;;  %v1926_v52 = vmax.f32 %v1916_v51, 0.0 }
 0x449   : > { %v9745_v34 = vpop.permute.xlu0 %2450  ;;  %v1990_v9 = vsub.f32 %v13303_v25, %v9711_v50  ;;  %v1999_v25 = vand.u32 2147483647, %v1989_v17  ;;  %v12983_v61 = vmov 36   ;;  %v2005_v58 = vand.u32 2147483647, %v1995_v62 }
 0x44a   : > { %13300 = vst [vmem:[#allocation84_spill] sm:$0xff] %v9745_v34  ;;  %2965 = vperm.xlu0 %8005, %v9296_v10   ;;  %2873 = vperm.xlu1 %8004, %v9221_v60   ;;  %v1919_v34 = vsub.f32 1.0, %v1909_v54  ;;  %v1993_v10 = vsub.f32 %v13305_v43, %v9711_v50  ;;  %v1908_v60 = vand.u32 2147483647, %v1898_v41  ;;  %v13310_v54 = vld [vmem:[#allocation38_spill] sm:$0xff]  ;;  %v13312_v41 = vld [vmem:[#allocation92_spill] sm:$0xff] }
 0x44b   : > { %v9777_v28 = vmul.f32 %v8297_v23, %v13310_v54  ;;  %v2001_v43 = vand.u32 2147483647, %v1991_v29  ;;  %v1992_v38 = vsub.f32 %v13312_v41, %v9711_v50  ;;  %v2007_v23 = vsub.f32 1.0, %v1997_v32  ;;  %v13316_v54 = vld [vmem:[#allocation94_spill] sm:$0xff] }
 0x44c   : > { %v9767_v30 = vpop.permute.xlu1 %2313  ;;  %v2003_v39 = vand.u32 2147483647, %v1993_v10  ;;  %v1929_v17 = vmax.f32 %v1919_v34, 0.0  ;;  %v1918_v16 = vsub.f32 1.0, %v1908_v60  ;;  %v2006_v29 = vsub.f32 1.0, %v1996_v8  ;;  %v13317_v8 = vld [vmem:[#allocation95_spill] sm:$0xff] }
 0x44d   : > { %13306 = vst [vmem:[#allocation85_spill] sm:$0xff] %v9767_v30  ;;  %v9769_v22 = vpop.permute.xlu0 %2458  ;;  %13311 = vst [vmem:[#allocation89_spill] sm:$0xff] %v9777_v28  ;;  %v2000_v30 = vand.u32 2147483647, %v1990_v9  ;;  %v2009_v9 = vsub.f32 1.0, %v1999_v25  ;;  %v1994_v41 = vsub.f32 %v13316_v54, %v9711_v50  ;;  %v2008_v10 = vsub.f32 1.0, %v1998_v20 }
 0x44e   : > { %13307 = vst [vmem:[#allocation87_spill] sm:$0xff] %v9769_v22  ;;  %2973 = vperm.xlu0 %8005, %v9307_v4   ;;  %2881 = vperm.xlu1 %8004, %v9228_v1   ;;  %v1910_v22 = vand.u32 2147483647, %v1900_v11  ;;  %v1921_v4 = vsub.f32 1.0, %v1911_v5  ;;  %v2011_v51 = vsub.f32 1.0, %v2001_v43  ;;  %v2013_v5 = vsub.f32 1.0, %v2003_v39 }
 0x44f   : > { %v2010_v11 = vsub.f32 1.0, %v2000_v30  ;;  %v2002_v60 = vand.u32 2147483647, %v1992_v38  ;;  %v2160_v32 = vsub.f32 %v13317_v8, %v9668_v18  ;;  %v1928_v25 = vmax.f32 %v1918_v16, 0.0  ;;  %v13318_v54 = vld [vmem:[#allocation96_spill] sm:$0xff] }
 0x450   : > { %v1920_v34 = vsub.f32 1.0, %v1910_v22  ;;  %v2017_v43 = vmax.f32 %v2007_v23, 0.0  ;;  %v2016_v38 = vmax.f32 %v2006_v29, 0.0  ;;  %v2019_v22 = vmax.f32 %v2009_v9, 0.0  ;;  %v13323_v29 = vld [vmem:[#allocation99_spill] sm:$0xff] }
 0x451   : > { %v9783_v48 = vpop.permute.xlu0 %2466  ;;  %v9785_v1 = vpop.permute.xlu1 %2446  ;;  %v2004_v39 = vand.u32 2147483647, %v1994_v41  ;;  %v2018_v62 = vmax.f32 %v2008_v10, 0.0  ;;  %v2021_v8 = vmax.f32 %v2011_v51, 0.0  ;;  %v2020_v16 = vmax.f32 %v2010_v11, 0.0 }
 0x452   : > { %13314 = vst [vmem:[#allocation90_spill] sm:$0xff] %v9783_v48  ;;  %13315 = vst [vmem:[#allocation86_spill] sm:$0xff] %v9785_v1  ;;  %8006 = vset.pattern.permute.xlu0 %v12983_v61  ;;  %2889 = vperm.xlu1 %8004, %v9236_v21   ;;  %v1931_v1 = vmax.f32 %v1921_v4, 0.0  ;;  %v2161_v48 = vsub.f32 %v13318_v54, %v9668_v18  ;;  %v13319_v61 = vld [vmem:[#allocation97_spill] sm:$0xff]  ;;  %v2012_v4 = vsub.f32 1.0, %v2002_v60  ;;  %v1930_v54 = vmax.f32 %v1920_v34, 0.0 }
 0x453   : > { %3022 = vperm.xlu0 %8006, %v9716_v63   ;;  %v2162_v21 = vsub.f32 %v13319_v61, %v9668_v18  ;;  %v2023_v63 = vmax.f32 %v2013_v5, 0.0  ;;  %v2015_v14 = vsub.f32 1.0, %v2005_v58  ;;  %v2170_v61 = vand.u32 2147483647, %v2160_v32  ;;  %v13324_v32 = vld [vmem:[#allocation104_spill] sm:$0xff] }
 0x454   : > { %v2171_v27 = vand.u32 2147483647, %v2161_v48  ;;  %v2163_v9 = vsub.f32 %v13323_v29, %v9668_v18  ;;  %v9811_v10 = vmul.f32 %v2017_v43, %v9757_v55  ;;  %v9814_v51 = vmul.f32 %v2016_v38, %v9732_v59  ;;  %v13331_v29 = vld [vmem:[#allocation105_spill] sm:$0xff] }
 0x455   : > { %v9798_v20 = vpop.permute.xlu0 %2474  ;;  %v9800_v30 = vpop.permute.xlu1 %2454  ;;  %v9817_v11 = vmul.f32 %v2019_v22, %v9747_v3  ;;  %v2014_v60 = vsub.f32 1.0, %v2004_v39  ;;  %v9825_v34 = vmul.f32 %v2021_v8, %v1927_v24  ;;  %v9827_v5 = vmul.f32 %v2020_v16, %v1926_v52  ;;  %v13325_v52 = vld [vmem:[#allocation100_spill] sm:$0xff]  ;;  %v13326_v8 = vld [vmem:[#allocation101_spill] sm:$0xff] }
 0x456   : > { %13320 = vst [vmem:[#allocation91_spill] sm:$0xff] %v9798_v20  ;;  %13321 = vst [vmem:[#allocation41_spill] sm:$0xff] %v9800_v30  ;;  %2897 = vperm.xlu1 %8004, %v9250_v33   ;;  %v2172_v20 = vand.u32 2147483647, %v2162_v21  ;;  %v13322_v30 = vld [vmem:[#allocation98_spill] sm:$0xff]  ;;  %v9823_v21 = vmul.f32 %v2018_v62, %v9737_v0  ;;  %v2022_v55 = vmax.f32 %v2012_v4, 0.0  ;;  %v9830_v59 = vmul.f32 %v2023_v63, %v1929_v17 }
 0x457   : > { %3037 = vperm.xlu0 %8006, %v9719_v31   ;;  %v2164_v23 = vsub.f32 %v13322_v30, %v9668_v18  ;;  %v2025_v58 = vmax.f32 %v2015_v14, 0.0  ;;  %v2180_v3 = vsub.f32 1.0, %v2170_v61  ;;  %v2240_v30 = vsub.f32 %v13324_v32, %v9711_v50  ;;  %v13327_v63 = vld [vmem:[#allocation106_spill] sm:$0xff]  ;;  %v13330_v61 = vld [vmem:[#allocation103_spill] sm:$0xff] }
 0x458   : > { %v2181_v43 = vsub.f32 1.0, %v2171_v27  ;;  %v2182_v38 = vsub.f32 1.0, %v2172_v20  ;;  %v2173_v39 = vand.u32 2147483647, %v2163_v9  ;;  %v2024_v24 = vmax.f32 %v2014_v60, 0.0  ;;  %v13329_v20 = vld [vmem:[#allocation102_spill] sm:$0xff] }
 0x459   : > { %v9808_v41 = vpop.permute.xlu1 %2462  ;;  %v2174_v22 = vand.u32 2147483647, %v2164_v23  ;;  %v2166_v62 = vsub.f32 %v13325_v52, %v9668_v18  ;;  %v2165_v16 = vsub.f32 %v13326_v8, %v9668_v18  ;;  %v2242_v14 = vsub.f32 %v13327_v63, %v9711_v50  ;;  %v13332_v8 = vld [vmem:[#allocation107_spill] sm:$0xff] }
 0x45a   : > { %v9819_v48 = vpop.permute.xlu0 %2522  ;;  %2945 = vperm.xlu1 %8004, %v9256_v12   ;;  %v9845_v27 = vmul.f32 %v2022_v55, %v1928_v25  ;;  %v2168_v4 = vsub.f32 %v13329_v20, %v9668_v18  ;;  %v2167_v23 = vsub.f32 %v13330_v61, %v9668_v18  ;;  %v2169_v9 = vsub.f32 %v13331_v29, %v9668_v18 }
 0x45b   : > { %3047 = vperm.xlu0 %8006, %v9727_v6   ;;  %v9854_v60 = vmul.f32 %v2025_v58, %v1931_v1  ;;  %v2190_v32 = vmax.f32 %v2180_v3, 0.0  ;;  %v2250_v52 = vand.u32 2147483647, %v2240_v30  ;;  %v2241_v63 = vsub.f32 %v13332_v8, %v9711_v50  ;;  %v13338_v8 = vld [vmem:[#allocation111_spill] sm:$0xff] }
 0x45c   : > { %v9858_v25 = vmax.f32 %v2181_v43, 0.0  ;;  %v9860_v55 = vmax.f32 %v2182_v38, 0.0  ;;  %v2184_v20 = vsub.f32 1.0, %v2174_v22  ;;  %v9864_v61 = vmul.f32 %v2024_v24, %v1930_v54  ;;  %v13335_v43 = vld [vmem:[#allocation108_spill] sm:$0xff]  ;;  %v13336_v54 = vld [vmem:[#allocation109_spill] sm:$0xff] }
 0x45d   : > { %v9834_v0 = vpop.permute.xlu1 %2470  ;;  %v2176_v29 = vand.u32 2147483647, %v2166_v62  ;;  %v2175_v33 = vand.u32 2147483647, %v2165_v16  ;;  %v2178_v58 = vand.u32 2147483647, %v2168_v4  ;;  %v2244_v38 = vsub.f32 %v13335_v43, %v9711_v50 }
 0x45e   : > { %v9842_v17 = vpop.permute.xlu0 %2534  ;;  %2953 = vperm.xlu1 %8004, %v9269_v46   ;;  %v2183_v46 = vsub.f32 1.0, %v2173_v39  ;;  %v2177_v3 = vand.u32 2147483647, %v2167_v23  ;;  %v2179_v30 = vand.u32 2147483647, %v2169_v9  ;;  %v2260_v22 = vsub.f32 1.0, %v2250_v52 }
 0x45f   : > { %13328 = vst [vmem:[#allocation38_spill] sm:$0xff] %v9842_v17  ;;  %3057 = vperm.xlu0 %8006, %v9735_v42   ;;  %v2252_v42 = vand.u32 2147483647, %v2242_v14  ;;  %v2251_v39 = vand.u32 2147483647, %v2241_v63  ;;  %v2243_v24 = vsub.f32 %v13336_v54, %v9711_v50  ;;  %v9874_v62 = vmax.f32 %v2184_v20, 0.0 }
 0x460   : > { %v13337_v16 = vld [vmem:[#allocation110_spill] sm:$0xff]  ;;  %v2245_v4 = vsub.f32 %v13338_v8, %v9711_v50  ;;  %v13339_v23 = vld [vmem:[#allocation112_spill] sm:$0xff]  ;;  %v2185_v43 = vsub.f32 1.0, %v2175_v33  ;;  %v13340_v52 = vld [vmem:[#allocation113_spill] sm:$0xff]  ;;  %v2188_v54 = vsub.f32 1.0, %v2178_v58  ;;  %v13006_v8 = vmov 5  }
 0x461   : > { %v9862_v12 = vpop.permute.xlu1 %2478  ;;  %v2246_v14 = vsub.f32 %v13337_v16, %v9711_v50  ;;  %v2248_v9 = vsub.f32 %v13339_v23, %v9711_v50  ;;  %v2262_v6 = vsub.f32 1.0, %v2252_v42  ;;  %v2247_v63 = vsub.f32 %v13340_v52, %v9711_v50 }
 0x462   : > { %13333 = vst [vmem:[#allocation92_spill] sm:$0xff] %v9862_v12  ;;  %v9866_v1 = vpop.permute.xlu0 %2542  ;;  %2961 = vperm.xlu1 %8004, %v9279_v49   ;;  %v2186_v49 = vsub.f32 1.0, %v2176_v29  ;;  %v2187_v16 = vsub.f32 1.0, %v2177_v3  ;;  %v2254_v17 = vand.u32 2147483647, %v2244_v38  ;;  %v2193_v23 = vmax.f32 %v2183_v46, 0.0 }
 0x463   : > { %13334 = vst [vmem:[#allocation93_spill] sm:$0xff] %v9866_v1  ;;  %3067 = vperm.xlu0 %8006, %v9777_v28   ;;  %v2189_v1 = vsub.f32 1.0, %v2179_v30  ;;  %v2270_v29 = vmax.f32 %v2260_v22, 0.0  ;;  %v2261_v33 = vsub.f32 1.0, %v2251_v39  ;;  %v2253_v42 = vand.u32 2147483647, %v2243_v24 }
 0x464   : > { %v2256_v52 = vand.u32 2147483647, %v2246_v14  ;;  %v2255_v12 = vand.u32 2147483647, %v2245_v4  ;;  %v2195_v58 = vmax.f32 %v2185_v43, 0.0  ;;  %v2272_v3 = vmax.f32 %v2262_v6, 0.0 }
 0x465   : > { %v2257_v30 = vand.u32 2147483647, %v2247_v63  ;;  %v2198_v22 = vmax.f32 %v2188_v54, 0.0  ;;  %v2197_v39 = vmax.f32 %v2187_v16, 0.0  ;;  %v9898_v24 = vmax.f32 %v2189_v1, 0.0  ;;  %v13347_v1 = vld [vmem:[#allocation116_spill] sm:$0xff] }
 0x466   : > { %v9884_v28 = vpop.permute.xlu0 %2550  ;;  %2969 = vperm.xlu1 %8004, %v9289_v36   ;;  %v9887_v20 = vpop.permute.xlu1 %2526  ;;  %v13343_v36 = vld [vmem:[#allocation114_spill] sm:$0xff]  ;;  %v2264_v14 = vsub.f32 1.0, %v2254_v17  ;;  %v9900_v4 = vmul.f32 %v2270_v29, %v2190_v32  ;;  %v2266_v6 = vsub.f32 1.0, %v2256_v52  ;;  %v2265_v43 = vsub.f32 1.0, %v2255_v12  ;;  %v13348_v32 = vld [vmem:[#allocation117_spill] sm:$0xff] }
 0x467   : > { %13341 = vst [vmem:[#allocation94_spill] sm:$0xff] %v9884_v28  ;;  %13342 = vst [vmem:[#allocation95_spill] sm:$0xff] %v9887_v20  ;;  %8009 = vset.pattern.permute.xlu0 %v13006_v8  ;;  %v2258_v28 = vand.u32 2147483647, %v2248_v9  ;;  %v2249_v31 = vsub.f32 %v13343_v36, %v9711_v50  ;;  %v2196_v20 = vmax.f32 %v2186_v49, 0.0  ;;  %v2271_v9 = vmax.f32 %v2261_v33, 0.0 }
 0x468   : > { %3115 = vperm.xlu0 %8009, %v9225_v7   ;;  %v2263_v8 = vsub.f32 1.0, %v2253_v42  ;;  %v13346_v49 = vld [vmem:[#allocation115_spill] sm:$0xff]  ;;  %v2267_v54 = vsub.f32 1.0, %v2257_v30  ;;  %v2405_v17 = vsub.f32 %v13347_v1, %v9668_v18  ;;  %v2401_v16 = vsub.f32 %v13348_v32, %v9668_v18  ;;  %v13351_v52 = vld [vmem:[#allocation118_spill] sm:$0xff] }
 0x469   : > { %v2402_v36 = vsub.f32 %v13346_v49, %v9668_v18  ;;  %v2268_v63 = vsub.f32 1.0, %v2258_v28  ;;  %v13349_v29 = vmov 36   ;;  %v2274_v42 = vmax.f32 %v2264_v14, 0.0  ;;  %v13354_v14 = vld [vmem:[#allocation120_spill] sm:$0xff] }
 0x46a   : > { %v9893_v38 = vpop.permute.xlu0 %2558  ;;  %2977 = vperm.xlu1 %8004, %v9299_v57   ;;  %v9896_v46 = vpop.permute.xlu1 %2530  ;;  %v9906_v57 = vmul.f32 %v2272_v3, %v9860_v55  ;;  %v2407_v12 = vsub.f32 %v13351_v52, %v9668_v18  ;;  %v2409_v55 = vsub.f32 %v9599_v13, %v9668_v18  ;;  %v9925_v30 = vmul.f32 %v2271_v9, %v9858_v25 }
 0x46b   : > { %13344 = vst [vmem:[#allocation96_spill] sm:$0xff] %v9893_v38  ;;  %13345 = vst [vmem:[#allocation97_spill] sm:$0xff] %v9896_v46  ;;  %v2259_v38 = vand.u32 2147483647, %v2249_v31  ;;  %v13352_v31 = vld [vmem:[#allocation119_spill] sm:$0xff]  ;;  %v2273_v49 = vmax.f32 %v2263_v8, 0.0  ;;  %v2404_v32 = vsub.f32 %v13354_v14, %v9668_v18  ;;  %v9935_v25 = vmul.f32 %v2274_v42, %v9874_v62 }
 0x46c   : > { %3127 = vperm.xlu0 %8009, %v9233_v15   ;;  %v2403_v28 = vsub.f32 %v13352_v31, %v9668_v18  ;;  %v2412_v1 = vand.u32 2147483647, %v2402_v36  ;;  %v2275_v52 = vmax.f32 %v2265_v43, 0.0  ;;  %v2278_v31 = vmax.f32 %v2268_v63, 0.0  ;;  %v13356_v63 = vld [vmem:[#allocation123_spill] sm:$0xff] }
 0x46d   : > { %v2269_v15 = vsub.f32 1.0, %v2259_v38  ;;  %v2277_v7 = vmax.f32 %v2267_v54, 0.0  ;;  %v2415_v13 = vand.u32 2147483647, %v2405_v17  ;;  %v2417_v8 = vand.u32 2147483647, %v2407_v12 }
 0x46e   : > { %8007 = vset.pattern.permute.xlu1 %v13349_v29  ;;  %v9913_v33 = vpop.permute.xlu1 %2538  ;;  %v2276_v29 = vmax.f32 %v2266_v6, 0.0  ;;  %v2413_v9 = vand.u32 2147483647, %v2403_v28  ;;  %v2419_v36 = vand.u32 2147483647, %v2409_v55  ;;  %v2333_v6 = vmul.f32 %v2273_v49, %v2193_v23 }
 0x46f   : > { %13350 = vst [vmem:[#allocation98_spill] sm:$0xff] %v9913_v33  ;;  %v9921_v3 = vpop.permute.xlu0 %2610  ;;  %3027 = vperm.xlu1 %8007, %v9703_v53   ;;  %v2411_v33 = vand.u32 2147483647, %v2401_v16  ;;  %v2422_v38 = vsub.f32 1.0, %v2412_v1  ;;  %v2414_v43 = vand.u32 2147483647, %v2404_v32  ;;  %v2408_v54 = vsub.f32 %v13356_v63, %v9668_v18 }
 0x470   : > { %13353 = vst [vmem:[#allocation99_spill] sm:$0xff] %v9921_v3  ;;  %3135 = vperm.xlu0 %8009, %v9247_v56   ;;  %v13355_v3 = vld [vmem:[#allocation121_spill] sm:$0xff]  ;;  %v9943_v17 = vmul.f32 %v2276_v29, %v2196_v20  ;;  %v2335_v16 = vmul.f32 %v2275_v52, %v2195_v58  ;;  %v2279_v62 = vmax.f32 %v2269_v15, 0.0  ;;  %v2410_v42 = vsub.f32 %v9617_v26, %v9668_v18  ;;  %v9952_v23 = vld [vmem:[%s13282_s4 + $0x2] ss:$0 sm:$0xff] }
 0x471   : > { %v2406_v53 = vsub.f32 %v13355_v3, %v9668_v18  ;;  %v9947_v12 = vmul.f32 %v2278_v31, %v2198_v22  ;;  %v2425_v28 = vsub.f32 1.0, %v2415_v13  ;;  %v2421_v55 = vsub.f32 1.0, %v2411_v33 }
 0x472   : > { %v9932_v46 = vpop.permute.xlu1 %2546  ;;  %v2337_v1 = vmul.f32 %v2277_v7, %v2197_v39  ;;  %v2427_v20 = vsub.f32 1.0, %v2417_v8  ;;  %v2423_v32 = vsub.f32 1.0, %v2413_v9  ;;  %v2429_v58 = vsub.f32 1.0, %v2419_v36  ;;  %v13359_v7 = vld [vmem:[#allocation122_spill] sm:$0xff] }
 0x473   : > { %v9937_v14 = vpop.permute.xlu0 %2622  ;;  %3032 = vperm.xlu1 %8007, %v9730_v2   ;;  %v2416_v3 = vand.u32 2147483647, %v2406_v53  ;;  %v9959_v26 = vmax.f32 %v2422_v38, 0.0  ;;  %v2424_v22 = vsub.f32 1.0, %v2414_v43  ;;  %v2418_v33 = vand.u32 2147483647, %v2408_v54 }
 0x474   : > { %3143 = vperm.xlu0 %8009, %v9259_v47   ;;  %v13358_v53 = vld [vmem:[#allocation124_spill] sm:$0xff]  ;;  %v9965_v52 = vmul.f32 %v2279_v62, %v9898_v24  ;;  %v2080_v39 = vmul.f32 %v9952_v23, %v13359_v7  ;;  %v2420_v31 = vand.u32 2147483647, %v2410_v42  ;;  %v9969_v13 = vmax.f32 %v2425_v28, 0.0 }
 0x475   : > { %v2320_v29 = vmul.f32 %v9952_v23, %v13358_v53  ;;  %v9971_v8 = vmax.f32 %v2421_v55, 0.0  ;;  %v2426_v9 = vsub.f32 1.0, %v2416_v3  ;;  %v2323_v36 = vmul.f32 %v9952_v23, %v9627_v37  ;;  %v13360_v55 = vld [vmem:[#allocation125_spill] sm:$0xff]  ;;  %v13368_v2 = vld [vmem:[#allocation88_spill] sm:$0xff] }
 0x476   : > { %v9954_v49 = vpop.permute.xlu1 %2554  ;;  %v9975_v38 = vmax.f32 %v2427_v20, 0.0  ;;  %v9977_v43 = vmax.f32 %v2423_v32, 0.0  ;;  %v9979_v63 = vmax.f32 %v2429_v58, 0.0  ;;  %v2321_v24 = vmul.f32 %v9952_v23, %v9630_v35  ;;  %v13361_v35 = vld [vmem:[#allocation126_spill] sm:$0xff]  ;;  %v13362_v53 = vld [vmem:[#allocation129_spill] sm:$0xff] }
 0x477   : > { %13357 = vst [vmem:[#allocation104_spill] sm:$0xff] %v9954_v49  ;;  %v9956_v15 = vpop.permute.xlu0 %2630  ;;  %3042 = vperm.xlu1 %8007, %v9706_v45   ;;  %v9988_v42 = vmax.f32 %v2424_v22, 0.0  ;;  %v2428_v28 = vsub.f32 1.0, %v2418_v33  ;;  %v2340_v37 = vmul.f32 %v9900_v4, %v2320_v29  ;;  %v2083_v3 = vmul.f32 %v9952_v23, %v13360_v55  ;;  %v13363_v33 = vld [vmem:[#allocation130_spill] sm:$0xff]  ;;  %v13364_v29 = vld [vmem:[#allocation133_spill] sm:$0xff]  ;;  %v13365_v45 = vld [vmem:[#allocation127_spill] sm:$0xff] }
 0x478   : > { %3191 = vperm.xlu0 %8009, %v9266_v19   ;;  %v2100_v20 = vmul.f32 %v9814_v51, %v2080_v39  ;;  %v2430_v32 = vsub.f32 1.0, %v2420_v31  ;;  %v2081_v58 = vmul.f32 %v9952_v23, %v13361_v35  ;;  %v2325_v7 = vmul.f32 %v9952_v23, %v13362_v53  ;;  %v13366_v39 = vld [vmem:[#allocation128_spill] sm:$0xff]  ;;  %v13367_v35 = vld [vmem:[#allocation131_spill] sm:$0xff] }
 0x479   : > { %v2343_v22 = vmul.f32 %v2333_v6, %v2323_v36  ;;  %v2322_v4 = vmul.f32 %v9952_v23, %v13363_v33  ;;  %v2327_v55 = vmul.f32 %v9952_v23, %v13364_v29  ;;  %v2085_v51 = vmul.f32 %v9952_v23, %v13365_v45  ;;  %v13370_v29 = vld [vmem:[#allocation59_spill] sm:$0xff] }
 0x47a   : > { %v2082_v31 = vmul.f32 %v9952_v23, %v13366_v39  ;;  %v2087_v53 = vmul.f32 %v9952_v23, %v13367_v35  ;;  %v10015_v36 = vmax.f32 %v2428_v28, 0.0  ;;  %v10017_v33 = vadd.f32 %v2340_v37, %v2100_v20  ;;  %v13373_v37 = vld [vmem:[#allocation132_spill] sm:$0xff] }
 0x47b   : > { %v9983_v54 = vpop.permute.xlu0 %2638  ;;  %3052 = vperm.xlu1 %8007, %v9722_v40   ;;  %v9986_v62 = vpop.permute.xlu1 %2606  ;;  %v9999_v40 = vmax.f32 %v2426_v9, 0.0  ;;  %v10023_v39 = vmax.f32 %v2430_v32, 0.0  ;;  %v2101_v35 = vmul.f32 %v9811_v10, %v2081_v58  ;;  %v2345_v19 = vmul.f32 %v2335_v16, %v2325_v7  ;;  %v13375_v7 = vld [vmem:[#allocation41_spill] sm:$0xff] }
 0x47c   : > { %3199 = vperm.xlu0 %8009, %v9276_v44   ;;  %v2341_v44 = vmul.f32 %v9925_v30, %v2321_v24  ;;  %v2103_v30 = vmul.f32 %v9817_v11, %v2083_v3  ;;  %v13369_v24 = vld [vmem:[#allocation134_spill] sm:$0xff]  ;;  %v2342_v28 = vmul.f32 %v9906_v57, %v2322_v4  ;;  %v2084_v11 = vmul.f32 %v9952_v23, %v13373_v37 }
 0x47d   : > { %v2324_v45 = vmul.f32 %v9952_v23, %v13369_v24  ;;  %13371 = vst [vmem:[#allocation100_spill] sm:$0xff] %v10023_v39  ;;  %v2347_v3 = vmul.f32 %v2337_v1, %v2327_v55  ;;  %v2105_v24 = vmul.f32 %v9825_v34, %v2085_v51  ;;  %v2102_v32 = vmul.f32 %v9823_v21, %v2082_v31  ;;  %v13376_v1 = vld [vmem:[#allocation61_spill] sm:$0xff]  ;;  %v13377_v34 = vld [vmem:[#allocation44_spill] sm:$0xff] }
 0x47e   : > { %v10028_v47 = vadd.f32 %v2343_v22, %v2103_v30  ;;  %v10033_v20 = vadd.f32 %v2341_v44, %v2101_v35  ;;  %v2107_v10 = vmul.f32 %v9830_v59, %v2087_v53  ;;  %v13374_v58 = vmov 5   ;;  %v13378_v59 = vld [vmem:[#allocation135_spill] sm:$0xff] }
 0x47f   : > { %v2687_v9 = vpop.permute.xlu0 %2686  ;;  %3062 = vperm.xlu1 %8007, %v13368_v2   ;;  %v10013_v6 = vpop.permute.xlu1 %2614  ;;  %v13372_v2 = vld [vmem:[#allocation139_spill] sm:$0xff]  ;;  %v2344_v57 = vmul.f32 %v9935_v25, %v2324_v45  ;;  %v2484_v22 = vsub.f32 %v13375_v7, %v9711_v50  ;;  %v2486_v44 = vsub.f32 %v9808_v41, %v9711_v50  ;;  %v10050_v21 = vadd.f32 %v2345_v19, %v2105_v24  ;;  %v13380_v41 = vld [vmem:[#allocation84_spill] sm:$0xff]  ;;  %v13383_v24 = vld [vmem:[#allocation90_spill] sm:$0xff] }
 0x480   : > { %3207 = vperm.xlu0 %8009, %v13370_v29   ;;  %v2481_v49 = vsub.f32 %v13372_v2, %v9711_v50  ;;  %v2089_v4 = vmul.f32 %v9952_v23, %v13378_v59  ;;  %v2725_v51 = vsub.f32 %v2687_v9, %v9711_v50  ;;  %v10055_v31 = vadd.f32 %v2342_v28, %v2102_v32  ;;  %v13381_v45 = vld [vmem:[#allocation136_spill] sm:$0xff]  ;;  %v13382_v19 = vld [vmem:[#allocation87_spill] sm:$0xff]  ;;  %v13386_v59 = vld [vmem:[#allocation45_spill] sm:$0xff] }
 0x481   : > { %v2104_v25 = vmul.f32 %v9827_v5, %v2084_v11  ;;  %v10058_v53 = vadd.f32 %v2347_v3, %v2107_v10  ;;  %v2483_v30 = vsub.f32 %v13380_v41, %v9711_v50  ;;  %v2086_v35 = vmul.f32 %v9952_v23, %v13381_v45  ;;  %v13384_v3 = vld [vmem:[#allocation138_spill] sm:$0xff]  ;;  %v13385_v7 = vld [vmem:[#allocation63_spill] sm:$0xff]  ;;  %v13389_v29 = vld [vmem:[#allocation137_spill] sm:$0xff] }
 0x482   : > { %v2491_v55 = vand.u32 2147483647, %v2481_v49  ;;  %v2485_v37 = vsub.f32 %v13382_v19, %v9711_v50  ;;  %v2487_v49 = vsub.f32 %v13383_v24, %v9711_v50  ;;  %v2645_v9 = vsub.f32 %v9986_v62, %v9668_v18  ;;  %v13388_v62 = vld [vmem:[#allocation86_spill] sm:$0xff] }
 0x483   : > { %v10038_v16 = vpop.permute.xlu0 %2694  ;;  %8008 = vset.pattern.permute.xlu1 %v13374_v58  ;;  %v10041_v2 = vpop.permute.xlu1 %2618  ;;  %13379 = vst [vmem:[#allocation101_spill] sm:$0xff] %v10058_v53  ;;  %v10074_v11 = vadd.f32 %v2344_v57, %v2104_v25  ;;  %v2326_v32 = vmul.f32 %v9952_v23, %v13384_v3  ;;  %v2494_v10 = vand.u32 2147483647, %v2484_v22  ;;  %v2496_v58 = vand.u32 2147483647, %v2486_v44  ;;  %v13390_v3 = vld [vmem:[#allocation91_spill] sm:$0xff] }
 0x484   : > { %3215 = vperm.xlu0 %8009, %v13376_v1   ;;  %3111 = vperm.xlu1 %8008, %v13377_v34   ;;  %v10081_v41 = vmul.f32 %v9854_v60, %v2089_v4  ;;  %v2501_v45 = vsub.f32 1.0, %v2491_v55  ;;  %v2482_v19 = vsub.f32 %v13388_v62, %v9711_v50  ;;  %v2735_v24 = vand.u32 2147483647, %v2725_v51  ;;  %v13391_v62 = vld [vmem:[#allocation145_spill] sm:$0xff] }
 0x485   : > { %v2329_v57 = vmul.f32 %v9952_v23, %v13389_v29  ;;  %v2493_v25 = vand.u32 2147483647, %v2483_v30  ;;  %v2489_v22 = vsub.f32 %v13390_v3, %v9711_v50  ;;  %v2488_v44 = vsub.f32 %v9834_v0, %v9711_v50  ;;  %v10102_v0 = vld [vmem:[%s13282_s4 + $0x3] ss:$0 sm:$0xff] }
 0x486   : > { %13387 = vst [vmem:[#allocation106_spill] sm:$0xff] %v10081_v41  ;;  %v2106_v1 = vmul.f32 %v9845_v27, %v2086_v35  ;;  %v2497_v60 = vand.u32 2147483647, %v2487_v49  ;;  %v2655_v4 = vand.u32 2147483647, %v2645_v9  ;;  %v2346_v51 = vmul.f32 %v9943_v17, %v2326_v32  ;;  %v13392_v35 = vld [vmem:[#allocation46_spill] sm:$0xff] }
 0x487   : > { %v10070_v28 = vpop.permute.xlu0 %2702  ;;  %v10072_v5 = vpop.permute.xlu1 %2626  ;;  %v2088_v29 = vmul.f32 %v9952_v23, %v13391_v62  ;;  %v2504_v30 = vsub.f32 1.0, %v2494_v10  ;;  %v13027_v27 = vmov 37   ;;  %v13393_v49 = vld [vmem:[#allocation85_spill] sm:$0xff]  ;;  %v2492_v17 = vand.u32 2147483647, %v2482_v19  ;;  %v13394_v3 = vld [vmem:[#allocation142_spill] sm:$0xff] }
 0x488   : > { %3223 = vperm.xlu0 %8009, %v13385_v7   ;;  %3119 = vperm.xlu1 %8008, %v13386_v59   ;;  %v2495_v59 = vand.u32 2147483647, %v2485_v37  ;;  %v2506_v7 = vsub.f32 1.0, %v2496_v58  ;;  %v2511_v37 = vmax.f32 %v2501_v45, 0.0  ;;  %v2328_v9 = vmul.f32 %v9952_v23, %v13393_v49 }
 0x489   : > { %v2745_v32 = vsub.f32 1.0, %v2735_v24  ;;  %v10110_v10 = vmul.f32 %v9965_v52, %v2329_v57  ;;  %v2503_v58 = vsub.f32 1.0, %v2493_v25  ;;  %v2499_v62 = vand.u32 2147483647, %v2489_v22  ;;  %v13395_v57 = vld [vmem:[#allocation48_spill] sm:$0xff] }
 0x48a   : > { %v2498_v41 = vand.u32 2147483647, %v2488_v44  ;;  %v2505_v53 = vsub.f32 1.0, %v2495_v59  ;;  %v2507_v39 = vsub.f32 1.0, %v2497_v60  ;;  %v10118_v23 = vadd.f32 %v2346_v51, %v2106_v1  ;;  %v13396_v44 = vld [vmem:[#allocation143_spill] sm:$0xff]  ;;  %v13397_v1 = vld [vmem:[#allocation92_spill] sm:$0xff] }
 0x48b   : > { %v10092_v55 = vpop.permute.xlu0 %2710  ;;  %v10094_v34 = vpop.permute.xlu1 %2634  ;;  %v2108_v19 = vmul.f32 %v9864_v61, %v2088_v29  ;;  %v2514_v24 = vmax.f32 %v2504_v30, 0.0  ;;  %v2516_v52 = vmax.f32 %v2506_v7, 0.0  ;;  %v2575_v59 = vmul.f32 %v2511_v37, %v9971_v8 }
 0x48c   : > { %8010 = vset.pattern.permute.xlu0 %v13027_v27  ;;  %3123 = vperm.xlu1 %8008, %v13392_v35   ;;  %v2565_v27 = vmul.f32 %v10102_v0, %v9819_v48  ;;  %v2665_v35 = vsub.f32 1.0, %v2655_v4  ;;  %v2348_v25 = vmul.f32 %v9947_v12, %v2328_v9  ;;  %v2502_v22 = vsub.f32 1.0, %v2492_v17  ;;  %v13398_v12 = vld [vmem:[#allocation38_spill] sm:$0xff]  ;;  %v13399_v9 = vld [vmem:[#allocation93_spill] sm:$0xff] }
 0x48d   : > { %3271 = vperm.xlu0 %8010, %v13394_v3   ;;  %v2755_v48 = vmax.f32 %v2745_v32, 0.0  ;;  %v2513_v60 = vmax.f32 %v2503_v58, 0.0  ;;  %v2509_v4 = vsub.f32 1.0, %v2499_v62  ;;  %v2508_v49 = vsub.f32 1.0, %v2498_v41  ;;  %v13400_v41 = vld [vmem:[#allocation50_spill] sm:$0xff] }
 0x48e   : > { %v2490_v51 = vsub.f32 %v13397_v1, %v9711_v50  ;;  %v2515_v61 = vmax.f32 %v2505_v53, 0.0  ;;  %v2517_v29 = vmax.f32 %v2507_v39, 0.0  ;;  %v2585_v7 = vmul.f32 %v2575_v59, %v2565_v27 }
 0x48f   : > { %v10114_v45 = vpop.permute.xlu0 %2718  ;;  %v10116_v56 = vpop.permute.xlu1 %2642  ;;  %v2675_v30 = vmax.f32 %v2665_v35, 0.0  ;;  %v2580_v8 = vmul.f32 %v2516_v52, %v9999_v40  ;;  %v2568_v37 = vmul.f32 %v10102_v0, %v13398_v12  ;;  %v2570_v17 = vmul.f32 %v10102_v0, %v13399_v9  ;;  %v13401_v35 = vld [vmem:[#allocation146_spill] sm:$0xff]  ;;  %v13403_v9 = vld [vmem:[#allocation97_spill] sm:$0xff] }
 0x490   : > { %3131 = vperm.xlu1 %8008, %v13395_v57   ;;  %v2578_v57 = vmul.f32 %v2514_v24, %v9988_v42  ;;  %v10134_v58 = vadd.f32 %v2348_v25, %v2108_v19  ;;  %v2512_v53 = vmax.f32 %v2502_v22, 0.0  ;;  %v2577_v42 = vmul.f32 %v2513_v60, %v9977_v43 }
 0x491   : > { %3283 = vperm.xlu0 %8010, %v13396_v44   ;;  %v2815_v39 = vmul.f32 %v2755_v48, %v2675_v30  ;;  %v2519_v40 = vmax.f32 %v2509_v4, 0.0  ;;  %v2518_v62 = vmax.f32 %v2508_v49, 0.0  ;;  %v2500_v24 = vand.u32 2147483647, %v2490_v51  ;;  %v13402_v30 = vld [vmem:[#allocation95_spill] sm:$0xff]  ;;  %v13404_v4 = vld [vmem:[#allocation52_spill] sm:$0xff] }
 0x492   : > { %v2579_v52 = vmul.f32 %v2515_v61, %v9969_v13  ;;  %v10141_v59 = vmul.f32 %v2517_v29, %v9975_v38  ;;  %v2595_v1 = vadd.f32 %v2585_v7, %v10017_v33  ;;  %v2588_v22 = vmul.f32 %v2578_v57, %v2568_v37  ;;  %v13405_v38 = vld [vmem:[#allocation99_spill] sm:$0xff]  ;;  %v13406_v57 = vld [vmem:[#allocation148_spill] sm:$0xff]  ;;  %v13407_v37 = vld [vmem:[#allocation94_spill] sm:$0xff] }
 0x493   : > { %v2691_v3 = vpop.permute.xlu1 %2690  ;;  %v2590_v48 = vmul.f32 %v2580_v8, %v2570_v17  ;;  %v2566_v12 = vmul.f32 %v10102_v0, %v13402_v30  ;;  %v2567_v43 = vmul.f32 %v10102_v0, %v13403_v9  ;;  %v2576_v13 = vmul.f32 %v2512_v53, %v9959_v26  ;;  %v13408_v17 = vld [vmem:[#allocation98_spill] sm:$0xff] }
 0x494   : > { %v2767_v32 = vpop.permute.xlu0 %2766  ;;  %3139 = vperm.xlu1 %8008, %v13400_v41   ;;  %v2646_v49 = vsub.f32 %v13405_v38, %v9668_v18  ;;  %v2726_v33 = vsub.f32 %v2691_v3, %v9711_v50  ;;  %v10157_v61 = vmul.f32 %v2519_v40, %v9979_v63  ;;  %v2582_v29 = vmul.f32 %v2518_v62, %v10015_v36  ;;  %v13409_v62 = vld [vmem:[#allocation53_spill] sm:$0xff] }
 0x495   : > { %v2805_v27 = vmul.f32 %v10102_v0, %v2767_v32  ;;  %3291 = vperm.xlu0 %8010, %v13401_v35   ;;  %v2510_v7 = vsub.f32 1.0, %v2500_v24  ;;  %v2727_v8 = vsub.f32 %v10038_v16, %v9711_v50  ;;  %v2572_v26 = vmul.f32 %v10102_v0, %v13407_v37  ;;  %v13412_v37 = vld [vmem:[#allocation47_spill] sm:$0xff] }
 0x496   : > { %v2569_v32 = vmul.f32 %v10102_v0, %v13408_v17  ;;  %v2647_v3 = vsub.f32 %v10013_v6, %v9668_v18  ;;  %v10171_v36 = vadd.f32 %v2588_v22, %v10028_v47  ;;  %v2586_v16 = vmul.f32 %v2576_v13, %v2566_v12 }
 0x497   : > { %v2825_v19 = vmul.f32 %v2815_v39, %v2805_v27  ;;  %v2699_v25 = vpop.permute.xlu1 %2698  ;;  %v10174_v39 = vadd.f32 %v2590_v48, %v10050_v21  ;;  %v2587_v27 = vmul.f32 %v2577_v42, %v2567_v43  ;;  %v2656_v24 = vand.u32 2147483647, %v2646_v49  ;;  %v13411_v49 = vld [vmem:[#allocation56_spill] sm:$0xff] }
 0x498   : > { %v10148_v60 = vpop.permute.xlu0 %2778  ;;  %3147 = vperm.xlu1 %8008, %v13404_v4   ;;  %v2728_v53 = vsub.f32 %v2699_v25, %v9711_v50  ;;  %v2649_v6 = vsub.f32 %v9937_v14, %v9668_v18  ;;  %v13410_v25 = vld [vmem:[#allocation89_spill] sm:$0xff]  ;;  %v10184_v47 = vmax.f32 %v2510_v7, 0.0  ;;  %v2737_v21 = vand.u32 2147483647, %v2727_v8 }
 0x499   : > { %v2835_v51 = vadd.f32 %v2825_v19, %v2595_v1  ;;  %3299 = vperm.xlu0 %8010, %v13406_v57   ;;  %v2648_v1 = vsub.f32 %v10041_v2, %v9668_v18  ;;  %v2736_v19 = vand.u32 2147483647, %v2726_v33  ;;  %v2729_v42 = vsub.f32 %v10070_v28, %v9711_v50 }
 0x49a   : > { %v10189_v48 = vmul.f32 %v2582_v29, %v2572_v26  ;;  %v2589_v30 = vmul.f32 %v2579_v52, %v2569_v32  ;;  %v2657_v12 = vand.u32 2147483647, %v2647_v3  ;;  %v2738_v9 = vand.u32 2147483647, %v2728_v53 }
 0x49b   : > { %7746 = vmatprep.mubr.msk.f32.mxu1 %vm3845_vm6, %v2835_v51  ;;  %v2707_v63 = vpop.permute.xlu1 %2706  ;;  %v10192_v43 = vadd.f32 %v2586_v16, %v10033_v20  ;;  %v10195_v2 = vadd.f32 %v2587_v27, %v10055_v31  ;;  %v2571_v13 = vmul.f32 %v10102_v0, %v9932_v46  ;;  %v2650_v28 = vsub.f32 %v10072_v5, %v9668_v18  ;;  %v13413_v27 = vld [vmem:[#allocation58_spill] sm:$0xff] }
 0x49c   : > { %v10176_v40 = vpop.permute.xlu0 %2786  ;;  %3195 = vperm.xlu1 %8008, %v13409_v62   ;;  %v2730_v22 = vsub.f32 %v2707_v63, %v9711_v50  ;;  %v2666_v52 = vsub.f32 1.0, %v2656_v24  ;;  %v10204_v33 = vand.u32 2147483647, %v2649_v6  ;;  %v2658_v51 = vand.u32 2147483647, %v2648_v1 }
 0x49d   : > { %3307 = vperm.xlu0 %8010, %v13410_v25   ;;  %v2746_v29 = vsub.f32 1.0, %v2736_v19  ;;  %v13030_v20 = vmov 6   ;;  %v2651_v31 = vsub.f32 %v9956_v15, %v9668_v18  ;;  %v2747_v7 = vsub.f32 1.0, %v2737_v21  ;;  %v10222_v15 = vld [vmem:[%s13282_s4 + $0x1] ss:$0 sm:$0xff] }
 0x49e   : > { %v2739_v46 = vand.u32 2147483647, %v2729_v42  ;;  %v2740_v8 = vand.u32 2147483647, %v2730_v22  ;;  %v10211_v5 = vadd.f32 %v2589_v30, %v10074_v11  ;;  %v2667_v26 = vsub.f32 1.0, %v2657_v12  ;;  %v13414_v22 = vld [vmem:[#allocation49_spill] sm:$0xff] }
 0x49f   : > { %v2715_v14 = vpop.permute.xlu1 %2714  ;;  %v2748_v17 = vsub.f32 1.0, %v2738_v9  ;;  %v10215_v53 = vmul.f32 %v10141_v59, %v2571_v13  ;;  %v2660_v63 = vand.u32 2147483647, %v2650_v28  ;;  %v2731_v18 = vsub.f32 %v10092_v55, %v9711_v50 }
 0x4a0   : > { %v10201_v38 = vpop.permute.xlu0 %2794  ;;  %3203 = vperm.xlu1 %8008, %v13411_v49   ;;  %v2732_v32 = vsub.f32 %v2715_v14, %v9711_v50  ;;  %v2652_v11 = vsub.f32 %v10094_v34, %v10222_v15  ;;  %v2676_v24 = vmax.f32 %v2666_v52, 0.0  ;;  %v2669_v59 = vsub.f32 1.0, %v10204_v33  ;;  %v13415_v33 = vld [vmem:[#allocation60_spill] sm:$0xff] }
 0x4a1   : > { %8013 = vset.pattern.permute.xlu0 %v13030_v20  ;;  %v2668_v6 = vsub.f32 1.0, %v2658_v51  ;;  %v2756_v1 = vmax.f32 %v2746_v29, 0.0  ;;  %v10230_v19 = vand.u32 2147483647, %v2651_v31  ;;  %v2757_v55 = vmax.f32 %v2747_v7, 0.0 }
 0x4a2   : > { %3355 = vperm.xlu0 %8013, %v13412_v37   ;;  %v2749_v21 = vsub.f32 1.0, %v2739_v46  ;;  %v2750_v42 = vsub.f32 1.0, %v2740_v8  ;;  %v2677_v30 = vmax.f32 %v2667_v26, 0.0  ;;  %v2758_v12 = vmax.f32 %v2748_v17, 0.0 }
 0x4a3   : > { %v2723_v3 = vpop.permute.xlu1 %2722  ;;  %v2742_v9 = vand.u32 2147483647, %v2732_v32  ;;  %v2670_v14 = vsub.f32 1.0, %v2660_v63  ;;  %v2741_v13 = vand.u32 2147483647, %v2731_v18  ;;  %v2733_v52 = vsub.f32 %v10114_v45, %v9711_v50  ;;  %v13416_v63 = vld [vmem:[#allocation51_spill] sm:$0xff] }
 0x4a4   : > { %v10226_v16 = vpop.permute.xlu0 %2802  ;;  %3211 = vperm.xlu1 %8008, %v13413_v27   ;;  %v2734_v34 = vsub.f32 %v2723_v3, %v9711_v50  ;;  %v2662_v28 = vand.u32 2147483647, %v2652_v11  ;;  %v2678_v29 = vmax.f32 %v2668_v6, 0.0  ;;  %v2654_v31 = vsub.f32 %v10116_v56, %v10222_v15 }
 0x4a5   : > { %v2816_v7 = vmul.f32 %v2756_v1, %v2676_v24  ;;  %v2653_v26 = vsub.f32 %v9983_v54, %v10222_v15  ;;  %v2817_v17 = vmul.f32 %v2757_v55, %v2677_v30  ;;  %v2759_v32 = vmax.f32 %v2749_v21, 0.0  ;;  %v13417_v1 = vld [vmem:[#allocation62_spill] sm:$0xff] }
 0x4a6   : > { %3367 = vperm.xlu0 %8013, %v13414_v22   ;;  %v2760_v3 = vmax.f32 %v2750_v42, 0.0  ;;  %v2818_v50 = vmul.f32 %v2758_v12, %v2678_v29  ;;  %v2752_v45 = vsub.f32 1.0, %v2742_v9  ;;  %v2744_v18 = vand.u32 2147483647, %v2734_v34 }
 0x4a7   : > { %v2680_v6 = vmax.f32 %v2670_v14, 0.0  ;;  %v2751_v20 = vsub.f32 1.0, %v2741_v13  ;;  %v2672_v56 = vsub.f32 1.0, %v2662_v28  ;;  %v2743_v24 = vand.u32 2147483647, %v2733_v52  ;;  %v13418_v14 = vld [vmem:[#allocation54_spill] sm:$0xff] }
 0x4a8   : > { %3219 = vperm.xlu1 %8008, %v13415_v33   ;;  %v2771_v51 = vpop.permute.xlu1 %2770  ;;  %v2664_v25 = vand.u32 2147483647, %v2654_v31  ;;  %v2808_v54 = vmul.f32 %v10102_v0, %v10148_v60  ;;  %v2679_v30 = vmax.f32 %v2669_v59, 0.0  ;;  %v2671_v12 = vsub.f32 1.0, %v10230_v19 }
 0x4a9   : > { %v2806_v46 = vmul.f32 %v10102_v0, %v2771_v51  ;;  %v10240_v8 = vpop.permute.xlu0 %2865  ;;  %v2663_v9 = vand.u32 2147483647, %v2653_v26  ;;  %v2820_v34 = vmul.f32 %v2760_v3, %v2680_v6  ;;  %v2762_v28 = vmax.f32 %v2752_v45, 0.0  ;;  %v13421_v45 = vld [vmem:[#allocation6_spill] sm:$0xff] }
 0x4aa   : > { %3375 = vperm.xlu0 %8013, %v13416_v63   ;;  %v2828_v13 = vmul.f32 %v2818_v50, %v2808_v54  ;;  %v2754_v52 = vsub.f32 1.0, %v2744_v18  ;;  %v2819_v60 = vmul.f32 %v2759_v32, %v2679_v30  ;;  %v2761_v31 = vmax.f32 %v2751_v20, 0.0  ;;  %v13423_v20 = vld [vmem:[#allocation140_spill] sm:$0xff] }
 0x4ab   : > { %v2826_v11 = vmul.f32 %v2816_v7, %v2806_v46  ;;  %v2810_v7 = vmul.f32 %v10102_v0, %v10176_v40  ;;  %v13419_v46 = vld [vmem:[#allocation21_spill] sm:$0xff]  ;;  %v13420_v59 = vmov 37   ;;  %v2682_v26 = vmax.f32 %v2672_v56, 0.0  ;;  %v13424_v32 = vld [vmem:[#allocation104_spill] sm:$0xff]  ;;  %v13425_v56 = vld [vmem:[#allocation55_spill] sm:$0xff] }
 0x4ac   : > { %3227 = vperm.xlu1 %8008, %v13417_v1   ;;  %v2775_v51 = vpop.permute.xlu1 %2774  ;;  %v2674_v3 = vsub.f32 1.0, %v2664_v25  ;;  %v2573_v40 = vmul.f32 %v10102_v0, %v13424_v32  ;;  %v2673_v6 = vsub.f32 1.0, %v2663_v9  ;;  %v2838_v25 = vadd.f32 %v2828_v13, %v10171_v36  ;;  %v13434_v32 = vld [vmem:[#allocation5_spill] sm:$0xff] }
 0x4ad   : > { %v2836_v55 = vadd.f32 %v2826_v11, %v10192_v43  ;;  %v2807_v21 = vmul.f32 %v10102_v0, %v2775_v51  ;;  %v10250_v42 = vpop.permute.xlu0 %2877  ;;  %v2753_v43 = vsub.f32 1.0, %v2743_v24  ;;  %v2681_v11 = vmax.f32 %v2671_v12, 0.0 }
 0x4ae   : > { %3383 = vperm.xlu0 %8013, %v13418_v14   ;;  %v2830_v24 = vmul.f32 %v2820_v34, %v2810_v7  ;;  %v2764_v51 = vmax.f32 %v2754_v52, 0.0  ;;  %v2812_v36 = vmul.f32 %v10102_v0, %v10201_v38 }
 0x4af   : > { %v2827_v29 = vmul.f32 %v2817_v17, %v2807_v21  ;;  %7747 = vmatmul.mubr.msk.f32.vlgmr.msra.gmra.mxu1 %vm3845_vm6, %v2836_v55  ;;  %v13426_v55 = vld [vmem:[#allocation2_spill] sm:$0xff]  ;;  %v13427_v21 = vld [vmem:[#allocation100_spill] sm:$0xff]  ;;  %v2821_v9 = vmul.f32 %v2761_v31, %v2681_v11  ;;  %v2763_v34 = vmax.f32 %v2753_v43, 0.0  ;;  %v2593_v31 = vmul.f32 %v10157_v61, %v2573_v40 }
 0x4b0   : > { %7797 = vmatpush3.msra.mxu1 %v13419_v46  ;;  %8011 = vset.pattern.permute.xlu1 %v13420_v59  ;;  %v2783_v19 = vpop.permute.xlu1 %2782  ;;  %v2584_v30 = vmul.f32 %v10184_v47, %v13427_v21  ;;  %v2684_v46 = vmax.f32 %v2674_v3, 0.0  ;;  %v2683_v43 = vmax.f32 %v2673_v6, 0.0  ;;  %v2840_v59 = vadd.f32 %v2830_v24, %v10174_v39  ;;  %v13432_v3 = vld [vmem:[#allocation4_spill] sm:$0xff] }
 0x4b1   : > { %v2837_v50 = vadd.f32 %v2827_v29, %v10195_v2  ;;  %7798 = vmatprep.subr.mxu1 %v13421_v45  ;;  %v2809_v17 = vmul.f32 %v10102_v0, %v2783_v19  ;;  %v10262_v18 = vpop.permute.xlu0 %2885  ;;  %3275 = vperm.xlu1 %8011, %v13423_v20   ;;  %v2822_v2 = vmul.f32 %v2762_v28, %v2682_v26  ;;  %v13428_v29 = vld [vmem:[#allocation96_spill] sm:$0xff]  ;;  %v13429_v28 = vld [vmem:[#allocation3_spill] sm:$0xff] }
 0x4b2   : > { %13422 = vst [vmem:[#allocation102_spill] sm:$0xff] %v10262_v18  ;;  %7799 = vmatpush3.msra.mxu1 %v13421_v45  ;;  %3431 = vperm.xlu0 %8013, %v13425_v56   ;;  %v2574_v12 = vmul.f32 %v10102_v0, %v13428_v29  ;;  %v13431_v19 = vld [vmem:[#allocation147_spill] sm:$0xff]  ;;  %v2814_v39 = vmul.f32 %v10102_v0, %v10226_v16 }
 0x4b3   : > { %v2829_v54 = vmul.f32 %v2819_v60, %v2809_v17  ;;  %7800 = vmatprep.subr.mxu1 %v13426_v55  ;;  %7749 = vmatprep.mubr.msk.f32.mxu1 %vm3845_vm6, %v2837_v50  ;;  %v2601_v60 = vadd.f32 %v10215_v53, %v10118_v23  ;;  %v2832_v38 = vmul.f32 %v2822_v2, %v2812_v36  ;;  %v13433_v50 = vld [vmem:[#allocation101_spill] sm:$0xff]  ;;  %v13443_v36 = vld [vmem:[#allocation88_spill] sm:$0xff] }
 0x4b4   : > { %7801 = vmatpush3.msra.mxu1 %v13426_v55  ;;  %v2791_v7 = vpop.permute.xlu1 %2790  ;;  %v2602_v45 = vadd.f32 %v10189_v48, %v13433_v50  ;;  %v2594_v23 = vmul.f32 %v2584_v30, %v2574_v12  ;;  %v2823_v53 = vmul.f32 %v2763_v34, %v2683_v43  ;;  %v13435_v48 = vld [vmem:[#allocation106_spill] sm:$0xff]  ;;  %v2603_v24 = vadd.f32 %v2593_v31, %v10134_v58  ;;  %v13439_v30 = vld [vmem:[#allocation144_spill] sm:$0xff]  ;;  %v13440_v12 = vld [vmem:[#allocation63_spill] sm:$0xff] }
 0x4b5   : > { %v2839_v13 = vadd.f32 %v2829_v54, %v10211_v5  ;;  %7750 = vmatmul.mubr.msk.f32.gmra.mxu1 %vm3845_vm6, %v2838_v25  ;;  %7802 = vmatprep.subr.mxu1 %v13429_v28  ;;  %v2811_v47 = vmul.f32 %v10102_v0, %v2791_v7  ;;  %v10283_v52 = vpop.permute.xlu0 %2893  ;;  %v2824_v5 = vmul.f32 %v2764_v51, %v2684_v46  ;;  %v13436_v25 = vld [vmem:[#allocation141_spill] sm:$0xff]  ;;  %v13437_v54 = vld [vmem:[#allocation7_spill] sm:$0xff]  ;;  %v13442_v34 = vld [vmem:[#allocation10_spill] sm:$0xff] }
 0x4b6   : > { %13430 = vst [vmem:[#allocation103_spill] sm:$0xff] %v10283_v52  ;;  %3279 = vperm.xlu1 %8011, %v13431_v19   ;;  %7803 = vmatpush3.msra.mxu1 %v13429_v28  ;;  %v2359_v6 = vadd.f32 %v10110_v10, %v13435_v48  ;;  %v2842_v2 = vadd.f32 %v2832_v38, %v2602_v45  ;;  %v13438_v10 = vld [vmem:[#allocation8_spill] sm:$0xff]  ;;  %v13449_v38 = vld [vmem:[#allocation45_spill] sm:$0xff]  ;;  %v13451_v50 = vld [vmem:[#allocation46_spill] sm:$0xff] }
 0x4b7   : > { %v2831_v26 = vmul.f32 %v2821_v9, %v2811_v47  ;;  %3443 = vperm.xlu0 %8013, %v13411_v49   ;;  %7804 = vmatprep.subr.mxu1 %v13432_v3  ;;  %v2834_v16 = vmul.f32 %v2824_v5, %v2814_v39  ;;  %v13441_v9 = vld [vmem:[#allocation9_spill] sm:$0xff]  ;;  %v13446_v31 = vld [vmem:[#allocation44_spill] sm:$0xff]  ;;  %v13037_v5 = vmov 7  }
 0x4b8   : > { %7752 = vmatprep.mubr.msk.f32.mxu1 %vm3845_vm6, %v2839_v13  ;;  %7805 = vmatpush3.msra.mxu1 %v13432_v3  ;;  %v2799_v61 = vpop.permute.xlu1 %2798  ;;  %v13032_v13 = vmov 39  }
 0x4b9   : > { %v2841_v17 = vadd.f32 %v2831_v26, %v2601_v60  ;;  %7753 = vmatmul.mubr.msk.f32.gmra.mxu1 %vm3845_vm6, %v2840_v59  ;;  %7806 = vmatprep.subr.mxu1 %v13434_v32  ;;  %v2813_v40 = vmul.f32 %v10102_v0, %v2799_v61  ;;  %v10302_v11 = vpop.permute.xlu0 %2941  ;;  %v2604_v0 = vadd.f32 %v2594_v23, %v2359_v6  ;;  %v13445_v60 = vmov 6   ;;  %v13459_v6 = vld [vmem:[#allocation61_spill] sm:$0xff] }
 0x4ba   : > { %3287 = vperm.xlu1 %8011, %v13436_v25   ;;  %7807 = vmatpush3.msra.mxu1 %v13434_v32 }
 0x4bb   : > { %v2833_v51 = vmul.f32 %v2823_v53, %v2813_v40  ;;  %3459 = vperm.xlu0 %8013, %v13415_v33   ;;  %7808 = vmatprep.subr.mxu1 %v13437_v54  ;;  %v2844_v29 = vadd.f32 %v2834_v16, %v2604_v0  ;;  %v13454_v53 = vld [vmem:[#allocation48_spill] sm:$0xff] }
 0x4bc   : > { %7755 = vmatprep.mubr.msk.f32.mxu1 %vm3845_vm6, %v2841_v17  ;;  %7809 = vmatpush3.msra.mxu1 %v13437_v54 }
 0x4bd   : > { %v2843_v55 = vadd.f32 %v2833_v51, %v2603_v24  ;;  %7756 = vmatmul.mubr.msk.f32.gmra.mxu1 %vm3845_vm6, %v2842_v2  ;;  %7810 = vmatprep.subr.mxu1 %v13438_v10  ;;  %v10315_v58 = vpop.permute.xlu0 %2949  ;;  %v10317_v21 = vpop.permute.xlu1 %2861 }
 0x4be   : > { %3295 = vperm.xlu1 %8011, %v13439_v30   ;;  %7811 = vmatpush3.msra.mxu1 %v13438_v10  ;;  %v13464_v10 = vld [vmem:[#allocation57_spill] sm:$0xff] }
 0x4bf   : > { %3463 = vperm.xlu0 %8013, %v13440_v12   ;;  %7812 = vmatprep.subr.mxu1 %v13441_v9 }
 0x4c0   : > { %7758 = vmatprep.mubr.msk.f32.mxu1 %vm3845_vm6, %v2843_v55  ;;  %7813 = vmatpush3.msra.mxu1 %v13441_v9  ;;  %v13035_v55 = vmov 38  }
 0x4c1   : > { %7759 = vmatmul.mubr.msk.f32.gmra.mxu1 %vm3845_vm6, %v2844_v29  ;;  %7814 = vmatprep.subr.mxu1 %v13442_v34  ;;  %v10327_v7 = vpop.permute.xlu0 %2957  ;;  %v10329_v46 = vpop.permute.xlu1 %2869  ;;  %v13465_v29 = vld [vmem:[#allocation142_spill] sm:$0xff] }
 0x4c2   : > { %3303 = vperm.xlu1 %8011, %v13443_v36   ;;  %7815 = vmatpush3.msra.mxu1 %v13442_v34 }
 0x4c3   : > { %8028 = vset.pattern.permute.xlu0 %v13032_v13 }
 0x4c4   : > { %3755 = vperm.xlu0 %8028, %v13423_v20  }
 0x4c5   : > { %v10335_v28 = vpop.permute.xlu0 %2965  ;;  %v10337_v47 = vpop.permute.xlu1 %2873 }
 0x4c6   : > { %13444 = vst [vmem:[#allocation105_spill] sm:$0xff] %v10335_v28  ;;  %8012 = vset.pattern.permute.xlu1 %v13445_v60  ;;  %v13482_v28 = vmov 39  }
 0x4c7   : > { %3351 = vperm.xlu1 %8012, %v13446_v31  }
 0x4c8   : > { %3767 = vperm.xlu0 %8028, %v13436_v25  }
 0x4c9   : > { %v10342_v43 = vpop.permute.xlu0 %2973  ;;  %v10344_v59 = vpop.permute.xlu1 %2881 }
 0x4ca   : > { %13447 = vst [vmem:[#allocation107_spill] sm:$0xff] %v10342_v43  ;;  %13448 = vst [vmem:[#allocation108_spill] sm:$0xff] %v10344_v59 }
 0x4cb   : > { %3359 = vperm.xlu1 %8012, %v13449_v38  }
 0x4cc   : > { %8032 = vset.pattern.permute.xlu0 %v13037_v5 }
 0x4cd   : > { %3591 = vperm.xlu0 %8032, %v13446_v31   ;;  %v10349_v26 = vpop.permute.xlu1 %2889 }
 0x4ce   : > { %13450 = vst [vmem:[#allocation109_spill] sm:$0xff] %v10349_v26  ;;  %v10351_v3 = vpop.permute.xlu0 %3022 }
 0x4cf   : > { %3363 = vperm.xlu1 %8012, %v13451_v50  }
 0x4d1   : > { %3675 = vperm.xlu0 %8032, %v13409_v62   ;;  %v10355_v45 = vpop.permute.xlu1 %2897 }
 0x4d2   : > { %13452 = vst [vmem:[#allocation110_spill] sm:$0xff] %v10355_v45  ;;  %v10357_v23 = vpop.permute.xlu0 %3037  ;;  %v13039_v45 = vmov 8  }
 0x4d3   : > { %13453 = vst [vmem:[#allocation111_spill] sm:$0xff] %v10357_v23  ;;  %3371 = vperm.xlu1 %8012, %v13454_v53  }
 0x4d5   : > { %3603 = vperm.xlu0 %8032, %v13451_v50   ;;  %v10361_v61 = vpop.permute.xlu1 %2945 }
 0x4d6   : > { %v10363_v39 = vpop.permute.xlu0 %3047 }
 0x4d7   : > { %13455 = vst [vmem:[#allocation112_spill] sm:$0xff] %v10363_v39  ;;  %3379 = vperm.xlu1 %8012, %v13400_v41   ;;  %v13046_v39 = vmov 10  }
 0x4d9   : > { %3607 = vperm.xlu0 %8032, %v13414_v22   ;;  %v10367_v17 = vpop.permute.xlu1 %2953 }
 0x4da   : > { %v10369_v32 = vpop.permute.xlu0 %3057 }
 0x4db   : > { %13456 = vst [vmem:[#allocation113_spill] sm:$0xff] %v10369_v32  ;;  %3387 = vperm.xlu1 %8012, %v13404_v4  }
 0x4dd   : > { %3611 = vperm.xlu0 %8032, %v13454_v53   ;;  %v10373_v40 = vpop.permute.xlu1 %2961  ;;  %v13475_v53 = vmov 38  }
 0x4de   : > { %13457 = vst [vmem:[#allocation114_spill] sm:$0xff] %v10373_v40  ;;  %v10375_v48 = vpop.permute.xlu0 %3067  ;;  %v13053_v40 = vmov 13  }
 0x4df   : > { %13458 = vst [vmem:[#allocation115_spill] sm:$0xff] %v10375_v48  ;;  %3435 = vperm.xlu1 %8012, %v13409_v62  }
 0x4e1   : > { %3695 = vperm.xlu0 %8032, %v13459_v6   ;;  %v10379_v24 = vpop.permute.xlu1 %2969 }
 0x4e2   : > { %13460 = vst [vmem:[#allocation116_spill] sm:$0xff] %v10379_v24 }
 0x4e3   : > { %8014 = vset.pattern.permute.xlu1 %v13037_v5  ;;  %v10382_v2 = vpop.permute.xlu0 %3115 }
 0x4e4   : > { %3671 = vperm.xlu1 %8014, %v13425_v56  }
 0x4e5   : > { %3699 = vperm.xlu0 %8032, %v13415_v33   ;;  %v10386_v16 = vpop.permute.xlu1 %2977 }
 0x4e6   : > { %13461 = vst [vmem:[#allocation117_spill] sm:$0xff] %v10386_v16 }
 0x4e7   : > { %v10388_v51 = vpop.permute.xlu0 %3127 }
 0x4e8   : > { %13462 = vst [vmem:[#allocation118_spill] sm:$0xff] %v10388_v51  ;;  %3595 = vperm.xlu1 %8014, %v13412_v37   ;;  %v13059_v51 = vmov 46  }
 0x4e9   : > { %3707 = vperm.xlu0 %8032, %v13417_v1  }
 0x4ea   : > { %v10392_v54 = vpop.permute.xlu1 %3027 }
 0x4eb   : > { %v10394_v0 = vpop.permute.xlu0 %3135 }
 0x4ec   : > { %13463 = vst [vmem:[#allocation119_spill] sm:$0xff] %v10394_v0  ;;  %8015 = vset.pattern.permute.xlu1 %v13445_v60 }
 0x4ed   : > { %8036 = vset.pattern.permute.xlu0 %v13035_v55  ;;  %3439 = vperm.xlu1 %8015, %v13464_v10  }
 0x4ee   : > { %3511 = vperm.xlu0 %8036, %v13465_v29   ;;  %v10400_v9 = vpop.permute.xlu1 %3032 }
 0x4ef   : > { %13466 = vst [vmem:[#allocation120_spill] sm:$0xff] %v10400_v9  ;;  %v10402_v34 = vpop.permute.xlu0 %3143  ;;  %v13064_v9 = vmov 42  }
 0x4f0   : > { %13467 = vst [vmem:[#allocation121_spill] sm:$0xff] %v10402_v34  ;;  %v13472_v34 = vld [vmem:[#allocation59_spill] sm:$0xff] }
 0x4f1   : > { %8016 = vset.pattern.permute.xlu1 %v13037_v5 }
 0x4f2   : > { %3531 = vperm.xlu0 %8036, %v13401_v35   ;;  %3599 = vperm.xlu1 %8016, %v13449_v38   ;;  %v10407_v13 = vpop.permute.xlu1 %3042 }
 0x4f3   : > { %13468 = vst [vmem:[#allocation123_spill] sm:$0xff] %v10407_v13  ;;  %v10409_v33 = vpop.permute.xlu0 %3191  ;;  %v13505_v13 = vmov 8  }
 0x4f6   : > { %3535 = vperm.xlu0 %8036, %v13439_v30   ;;  %3679 = vperm.xlu1 %8016, %v13464_v10   ;;  %v10413_v55 = vpop.permute.xlu1 %3052 }
 0x4f7   : > { %13469 = vst [vmem:[#allocation124_spill] sm:$0xff] %v10413_v55  ;;  %v10415_v48 = vpop.permute.xlu0 %3199  ;;  %v13478_v55 = vmov 7  }
 0x4fa   : > { %8040 = vset.pattern.permute.xlu0 %v13039_v45  ;;  %3683 = vperm.xlu1 %8016, %v13411_v49   ;;  %v10419_v5 = vpop.permute.xlu1 %3062 }
 0x4fb   : > { %13470 = vst [vmem:[#allocation122_spill] sm:$0xff] %v10419_v5  ;;  %4221 = vperm.xlu0 %8040, %v13409_v62   ;;  %v10422_v16 = vpop.permute.xlu0 %3207 }
 0x4fc   : > { %13471 = vst [vmem:[#allocation125_spill] sm:$0xff] %v10422_v16 }
 0x4fe   : > { %8017 = vset.pattern.permute.xlu1 %v13445_v60 }
 0x4ff   : > { %4145 = vperm.xlu0 %8040, %v13449_v38   ;;  %3447 = vperm.xlu1 %8017, %v13472_v34   ;;  %v10427_v43 = vpop.permute.xlu0 %3215  ;;  %v10429_v52 = vpop.permute.xlu1 %3111 }
 0x500   : > { %13473 = vst [vmem:[#allocation126_spill] sm:$0xff] %v10427_v43 }
 0x503   : > { %4149 = vperm.xlu0 %8040, %v13451_v50   ;;  %3451 = vperm.xlu1 %8017, %v13413_v27   ;;  %v10433_v45 = vpop.permute.xlu0 %3223  ;;  %v10435_v5 = vpop.permute.xlu1 %3119 }
 0x504   : > { %13474 = vst [vmem:[#allocation129_spill] sm:$0xff] %v10433_v45  ;;  %v13042_v45 = vmov 9  }
 0x507   : > { %4153 = vperm.xlu0 %8040, %v13414_v22   ;;  %8018 = vset.pattern.permute.xlu1 %v13475_v53  ;;  %v10439_v32 = vpop.permute.xlu1 %3123 }
 0x508   : > { %13476 = vst [vmem:[#allocation130_spill] sm:$0xff] %v10439_v32  ;;  %3515 = vperm.xlu1 %8018, %v13423_v20   ;;  %v10442_v26 = vpop.permute.xlu0 %3271 }
 0x50b   : > { %4237 = vperm.xlu0 %8040, %v13413_v27   ;;  %v10445_v24 = vpop.permute.xlu1 %3131 }
 0x50c   : > { %13477 = vst [vmem:[#allocation133_spill] sm:$0xff] %v10445_v24  ;;  %8019 = vset.pattern.permute.xlu1 %v13478_v55  ;;  %v10448_v18 = vpop.permute.xlu0 %3283  ;;  %v13051_v24 = vmov 12  }
 0x50d   : > { %13479 = vst [vmem:[#allocation127_spill] sm:$0xff] %v10448_v18  ;;  %3687 = vperm.xlu1 %8019, %v13472_v34   ;;  %v13512_v18 = vmov 9  }
 0x50f   : > { %8077 = vset.pattern.permute.xlu0 %v13042_v45  ;;  %v10452_v0 = vpop.permute.xlu1 %3139 }
 0x510   : > { %13480 = vst [vmem:[#allocation128_spill] sm:$0xff] %v10452_v0  ;;  %4387 = vperm.xlu0 %8077, %v13446_v31   ;;  %v10455_v20 = vpop.permute.xlu0 %3291 }
 0x511   : > { %13481 = vst [vmem:[#allocation131_spill] sm:$0xff] %v10455_v20  ;;  %8020 = vset.pattern.permute.xlu1 %v13482_v28 }
 0x512   : > { %3751 = vperm.xlu1 %8020, %v13465_v29  }
 0x513   : > { %v10459_v43 = vpop.permute.xlu1 %3147 }
 0x514   : > { %13483 = vst [vmem:[#allocation134_spill] sm:$0xff] %v10459_v43  ;;  %4475 = vperm.xlu0 %8077, %v13464_v10   ;;  %v10462_v36 = vpop.permute.xlu0 %3299 }
 0x515   : > { %13484 = vst [vmem:[#allocation139_spill] sm:$0xff] %v10462_v36 }
 0x516   : > { %8021 = vset.pattern.permute.xlu1 %v13478_v55 }
 0x517   : > { %3691 = vperm.xlu1 %8021, %v13413_v27   ;;  %v10466_v45 = vpop.permute.xlu1 %3195 }
 0x518   : > { %4479 = vperm.xlu0 %8077, %v13411_v49   ;;  %v10469_v0 = vpop.permute.xlu0 %3307 }
 0x519   : > { %13485 = vst [vmem:[#allocation132_spill] sm:$0xff] %v10469_v0 }
 0x51b   : > { %8022 = vset.pattern.permute.xlu1 %v13445_v60  ;;  %v10472_v34 = vpop.permute.xlu1 %3203 }
 0x51c   : > { %13486 = vst [vmem:[#allocation41_spill] sm:$0xff] %v10472_v34  ;;  %4403 = vperm.xlu0 %8077, %v13414_v22   ;;  %3455 = vperm.xlu1 %8022, %v13459_v6   ;;  %v13545_v34 = vmov 13  }
 0x51d   : > { %v10476_v29 = vpop.permute.xlu0 %3355 }
 0x51f   : > { %v10478_v43 = vpop.permute.xlu1 %3211 }
 0x520   : > { %13487 = vst [vmem:[#allocation135_spill] sm:$0xff] %v10478_v43  ;;  %4487 = vperm.xlu0 %8077, %v13413_v27   ;;  %8023 = vset.pattern.permute.xlu1 %v13475_v53 }
 0x521   : > { %3519 = vperm.xlu1 %8023, %v13431_v19   ;;  %v10483_v36 = vpop.permute.xlu0 %3367 }
 0x522   : > { %13488 = vst [vmem:[#allocation84_spill] sm:$0xff] %v10483_v36  ;;  %v13513_v36 = vld [vmem:[#allocation69_spill] sm:$0xff] }
 0x523   : > { %v10485_v0 = vpop.permute.xlu1 %3219 }
 0x524   : > { %13489 = vst [vmem:[#allocation136_spill] sm:$0xff] %v10485_v0  ;;  %8080 = vset.pattern.permute.xlu0 %v13046_v39 }
 0x525   : > { %4711 = vperm.xlu0 %8080, %v13409_v62   ;;  %3523 = vperm.xlu1 %8023, %v13396_v44   ;;  %v10490_v6 = vpop.permute.xlu0 %3375 }
 0x526   : > { %13490 = vst [vmem:[#allocation87_spill] sm:$0xff] %v10490_v6 }
 0x527   : > { %v10492_v20 = vpop.permute.xlu1 %3227 }
 0x528   : > { %13491 = vst [vmem:[#allocation90_spill] sm:$0xff] %v10492_v20 }
 0x529   : > { %4635 = vperm.xlu0 %8080, %v13449_v38   ;;  %8024 = vset.pattern.permute.xlu1 %v13478_v55  ;;  %v10496_v59 = vpop.permute.xlu0 %3383 }
 0x52a   : > { %13492 = vst [vmem:[#allocation138_spill] sm:$0xff] %v10496_v59  ;;  %3615 = vperm.xlu1 %8024, %v13416_v63  }
 0x52c   : > { %v10499_v0 = vpop.permute.xlu1 %3275 }
 0x52d   : > { %4639 = vperm.xlu0 %8080, %v13451_v50   ;;  %v10502_v39 = vpop.permute.xlu0 %3431 }
 0x52e   : > { %8025 = vset.pattern.permute.xlu1 %v13482_v28 }
 0x52f   : > { %3759 = vperm.xlu1 %8025, %v13431_v19  }
 0x531   : > { %4643 = vperm.xlu0 %8080, %v13414_v22   ;;  %v10507_v20 = vpop.permute.xlu1 %3279 }
 0x532   : > { %13493 = vst [vmem:[#allocation86_spill] sm:$0xff] %v10507_v20  ;;  %v10509_v6 = vpop.permute.xlu0 %3443 }
 0x533   : > { %13494 = vst [vmem:[#allocation137_spill] sm:$0xff] %v10509_v6  ;;  %8026 = vset.pattern.permute.xlu1 %v13478_v55 }
 0x534   : > { %3619 = vperm.xlu1 %8026, %v13400_v41  }
 0x535   : > { %4727 = vperm.xlu0 %8080, %v13413_v27   ;;  %v10514_v63 = vpop.permute.xlu1 %3287 }
 0x536   : > { %13495 = vst [vmem:[#allocation91_spill] sm:$0xff] %v10514_v63  ;;  %v10516_v59 = vpop.permute.xlu0 %3459  ;;  %v13506_v63 = vld [vmem:[#allocation67_spill] sm:$0xff] }
 0x537   : > { %13496 = vst [vmem:[#allocation145_spill] sm:$0xff] %v10516_v59 }
 0x538   : > { %8027 = vset.pattern.permute.xlu1 %v13482_v28 }
 0x539   : > { %8092 = vset.pattern.permute.xlu0 %v13051_v24  ;;  %3763 = vperm.xlu1 %8027, %v13396_v44   ;;  %v10521_v19 = vpop.permute.xlu1 %3295 }
 0x53a   : > { %13497 = vst [vmem:[#allocation85_spill] sm:$0xff] %v10521_v19  ;;  %v10523_v50 = vpop.permute.xlu0 %3463  ;;  %5277 = vperm.xlu0 %8092, %v13446_v31   ;;  %v13502_v19 = vld [vmem:[#allocation65_spill] sm:$0xff] }
 0x53b   : > { %13498 = vst [vmem:[#allocation143_spill] sm:$0xff] %v10523_v50  ;;  %8298 = vrcp.f32 %v13502_v19 }
 0x53c   : > { %8300 = vrcp.f32 %v13506_v63 }
 0x53d   : > { %8029 = vset.pattern.permute.xlu1 %v13475_v53  ;;  %v10527_v41 = vpop.permute.xlu1 %3303 }
 0x53e   : > { %13499 = vst [vmem:[#allocation92_spill] sm:$0xff] %v10527_v41  ;;  %5365 = vperm.xlu0 %8092, %v13464_v10   ;;  %3527 = vperm.xlu1 %8029, %v13436_v25  }
 0x53f   : > { %v10531_v59 = vpop.permute.xlu0 %3755 }
 0x542   : > { %5369 = vperm.xlu0 %8092, %v13411_v49   ;;  %8030 = vset.pattern.permute.xlu1 %v13445_v60  ;;  %v10535_v44 = vpop.permute.xlu1 %3351 }
 0x543   : > { %v10537_v24 = vpop.permute.xlu0 %3767  ;;  %3467 = vperm.xlu1 %8030, %v13417_v1  }
 0x544   : > { %13500 = vst [vmem:[#allocation38_spill] sm:$0xff] %v10537_v24 }
 0x546   : > { %5293 = vperm.xlu0 %8092, %v13414_v22   ;;  %v10541_v50 = vpop.permute.xlu1 %3359 }
 0x547   : > { %8031 = vset.pattern.permute.xlu1 %v13478_v55 }
 0x548   : > { %v10544_v41 = vpop.permute.xlu0 %3591  ;;  %3623 = vperm.xlu1 %8031, %v13418_v14  }
 0x54a   : > { %5377 = vperm.xlu0 %8092, %v13413_v27   ;;  %v10548_v25 = vpop.permute.xlu1 %3363 }
 0x54b   : > { %13501 = vst [vmem:[#allocation93_spill] sm:$0xff] %v10548_v25 }
 0x54c   : > { %v10550_v60 = vpop.permute.xlu0 %3675  ;;  %3703 = vperm.xlu1 %8031, %v13440_v12  }
 0x54e   : > { %8095 = vset.pattern.permute.xlu0 %v13053_v40  ;;  %v10555_v43 = vpop.permute.xlu1 %3371  ;;  %v13509_v40 = vld [vmem:[#allocation72_spill] sm:$0xff] }
 0x54f   : > { %13503 = vst [vmem:[#allocation146_spill] sm:$0xff] %v10555_v43  ;;  %5607 = vperm.xlu0 %8095, %v13425_v56   ;;  %8302 = vrcp.f32 %v13509_v40  ;;  %v13515_v40 = vld [vmem:[#allocation27_spill] sm:$0xff] }
 0x550   : > { %v10558_v24 = vpop.permute.xlu0 %3603  ;;  %8033 = vset.pattern.permute.xlu1 %v13505_v13  ;;  %8304 = vrcp.f32 %v13513_v36 }
 0x551   : > { %13504 = vst [vmem:[#allocation95_spill] sm:$0xff] %v10558_v24  ;;  %4137 = vperm.xlu1 %8033, %v13446_v31   ;;  %v13522_v24 = vld [vmem:[#allocation70_spill] sm:$0xff] }
 0x552   : > { %v10563_v23 = vpop.permute.xlu1 %3379 }
 0x553   : > { %13507 = vst [vmem:[#allocation97_spill] sm:$0xff] %v10563_v23  ;;  %5531 = vperm.xlu0 %8095, %v13412_v37   ;;  %v8299_v23 = vpop.eup %8298 }
 0x554   : > { %v10566_v19 = vpop.permute.xlu0 %3607 }
 0x555   : > { %13508 = vst [vmem:[#allocation99_spill] sm:$0xff] %v10566_v19  ;;  %4217 = vperm.xlu1 %8033, %v13425_v56  }
 0x556   : > { %v10570_v43 = vpop.permute.xlu1 %3387 }
 0x557   : > { %13510 = vst [vmem:[#allocation148_spill] sm:$0xff] %v10570_v43  ;;  %5543 = vperm.xlu0 %8095, %v13414_v22   ;;  %v10585_v43 = vmul.f32 %v8299_v23, %v13515_v40  ;;  %v8301_v22 = vpop.eup %8300  ;;  %v13519_v23 = vld [vmem:[#allocation68_spill] sm:$0xff] }
 0x558   : > { %v10573_v12 = vpop.permute.xlu0 %3611 }
 0x559   : > { %13511 = vst [vmem:[#allocation94_spill] sm:$0xff] %v10573_v12  ;;  %8034 = vset.pattern.permute.xlu1 %v13512_v18  ;;  %v13516_v12 = vld [vmem:[#allocation71_spill] sm:$0xff] }
 0x55a   : > { %4467 = vperm.xlu1 %8034, %v13425_v56   ;;  %v10578_v63 = vpop.permute.xlu1 %3435  ;;  %8306 = vrcp.f32 %v13516_v12 }
 0x55b   : > { %5627 = vperm.xlu0 %8095, %v13413_v27   ;;  %8308 = vrcp.f32 %v13519_v23  ;;  %v13523_v23 = vld [vmem:[#allocation29_spill] sm:$0xff] }
 0x55c   : > { %v10581_v19 = vpop.permute.xlu0 %3695  ;;  %8310 = vrcp.f32 %v13522_v24 }
 0x55d   : > { %13514 = vst [vmem:[#allocation98_spill] sm:$0xff] %v10581_v19  ;;  %v13518_v19 = vld [vmem:[#allocation23_spill] sm:$0xff] }
 0x55e   : > { %8035 = vset.pattern.permute.xlu1 %v13478_v55  ;;  %v10596_v10 = vmul.f32 %v8301_v22, %v13518_v19  ;;  %v8303_v55 = vpop.eup %8302 }
 0x55f   : > { %8104 = vset.pattern.permute.xlu0 %v13059_v51  ;;  %3627 = vperm.xlu1 %8035, %v13404_v4   ;;  %v10590_v36 = vpop.permute.xlu1 %3671  ;;  %v13521_v51 = vld [vmem:[#allocation31_spill] sm:$0xff] }
 0x560   : > { %5927 = vperm.xlu0 %8104, %v10585_v43   ;;  %v10593_v27 = vpop.permute.xlu0 %3699  ;;  %v10607_v4 = vmul.f32 %v8303_v55, %v13521_v51 }
 0x561   : > { %13517 = vst [vmem:[#allocation53_spill] sm:$0xff] %v10593_v27  ;;  %v8305_v27 = vpop.eup %8304 }
 0x563   : > { %8037 = vset.pattern.permute.xlu1 %v13482_v28  ;;  %v10600_v12 = vpop.permute.xlu1 %3595 }
 0x564   : > { %5931 = vperm.xlu0 %8104, %v10596_v10   ;;  %v10603_v40 = vpop.permute.xlu0 %3707  ;;  %3771 = vperm.xlu1 %8037, %v13401_v35   ;;  %v13524_v35 = vld [vmem:[#allocation74_spill] sm:$0xff] }
 0x565   : > { %13520 = vst [vmem:[#allocation56_spill] sm:$0xff] %v10603_v40  ;;  %v10618_v40 = vmul.f32 %v8305_v27, %v13523_v23  ;;  %8312 = vrcp.f32 %v13524_v35  ;;  %v13530_v35 = vld [vmem:[#allocation28_spill] sm:$0xff] }
 0x567   : > { %v8307_v51 = vpop.eup %8306 }
 0x568   : > { %5935 = vperm.xlu0 %8104, %v10607_v4   ;;  %8038 = vset.pattern.permute.xlu1 %v13505_v13  ;;  %v10612_v22 = vpop.permute.xlu1 %3439  ;;  %v13527_v13 = vld [vmem:[#allocation30_spill] sm:$0xff]  ;;  %v8309_v6 = vpop.eup %8308 }
 0x569   : > { %v10614_v19 = vpop.permute.xlu0 %3511  ;;  %4141 = vperm.xlu1 %8038, %v13412_v37   ;;  %v10629_v16 = vmul.f32 %v8307_v51, %v13527_v13  ;;  %v2901_v13 = vsub.f32 %v10240_v8, %v10222_v15  ;;  %v10646_v51 = vld [vmem:[%s13282_s4] ss:$0 sm:$0xff]  ;;  %v13534_v8 = vmov 10  }
 0x56a   : > { %v2981_v30 = vsub.f32 %v10361_v61, %v10646_v51  ;;  %v3471_v61 = vsub.f32 %v10578_v63, %v10646_v51 }
 0x56b   : > { %13528 = vst [vmem:[#allocation6_spill] sm:$0xff] %v10629_v16 }
 0x56c   : > { %5939 = vperm.xlu0 %8104, %v10618_v40   ;;  %v2991_v1 = vand.u32 2147483647, %v2981_v30  ;;  %v3631_v30 = vsub.f32 %v10600_v12, %v10222_v15 }
 0x56d   : > { %v10622_v55 = vpop.permute.xlu0 %3531  ;;  %8039 = vset.pattern.permute.xlu1 %v13512_v18  ;;  %v10625_v24 = vpop.permute.xlu1 %3599 }
 0x56e   : > { %13525 = vst [vmem:[#allocation47_spill] sm:$0xff] %v10622_v55  ;;  %13526 = vst [vmem:[#allocation21_spill] sm:$0xff] %v10625_v24  ;;  %4391 = vperm.xlu1 %8039, %v13412_v37   ;;  %v10639_v55 = vmul.f32 %v8309_v6, %v13530_v35  ;;  %v8311_v18 = vpop.eup %8310  ;;  %v3150_v6 = vsub.f32 %v10429_v52, %v10222_v15  ;;  %v3151_v52 = vsub.f32 %v10382_v2, %v10222_v15 }
 0x56f   : > { %v3481_v24 = vand.u32 2147483647, %v3471_v61 }
 0x570   : > { %8125 = vset.pattern.permute.xlu0 %v13064_v9  ;;  %13531 = vst [vmem:[#allocation104_spill] sm:$0xff] %v10639_v55  ;;  %v2980_v9 = vsub.f32 %v10302_v11, %v10646_v51  ;;  %v3231_v11 = vsub.f32 %v10466_v45, %v10646_v51  ;;  %v3160_v45 = vand.u32 2147483647, %v3150_v6 }
 0x571   : > { %4795 = vperm.xlu0 %8125, %v10629_v16   ;;  %v10633_v27 = vpop.permute.xlu0 %3535  ;;  %v10635_v23 = vpop.permute.xlu1 %3679 }
 0x572   : > { %13529 = vst [vmem:[#allocation140_spill] sm:$0xff] %v10633_v27  ;;  %4471 = vperm.xlu1 %8039, %v13409_v62   ;;  %v2900_v27 = vsub.f32 %v10317_v21, %v10222_v15  ;;  %v13535_v21 = vld [vmem:[#allocation24_spill] sm:$0xff]  ;;  %v2990_v28 = vand.u32 2147483647, %v2980_v9  ;;  %v3241_v2 = vand.u32 2147483647, %v3231_v11 }
 0x573   : > { %v10666_v20 = vmul.f32 %v8311_v18, %v13535_v21  ;;  %v3390_v18 = vsub.f32 %v10535_v44, %v10222_v15  ;;  %v13539_v9 = vld [vmem:[#allocation32_spill] sm:$0xff]  ;;  %v3470_v44 = vsub.f32 %v10502_v39, %v10646_v51 }
 0x574   : > { %v2910_v25 = vand.u32 2147483647, %v2900_v27  ;;  %v3000_v32 = vsub.f32 1.0, %v2990_v28  ;;  %v3711_v28 = vsub.f32 %v10550_v60, %v10646_v51 }
 0x575   : > { %4799 = vperm.xlu0 %8125, %v10639_v55   ;;  %v10653_v16 = vpop.permute.xlu1 %3683  ;;  %13536 = vst [vmem:[#allocation96_spill] sm:$0xff] %v10666_v20  ;;  %v8313_v55 = vpop.eup %8312  ;;  %v3400_v11 = vand.u32 2147483647, %v3390_v18 }
 0x576   : > { %13532 = vst [vmem:[#allocation2_spill] sm:$0xff] %v10653_v16  ;;  %v10657_v35 = vpop.permute.xlu0 %4221  ;;  %8041 = vset.pattern.permute.xlu1 %v13534_v8  ;;  %v2911_v16 = vand.u32 2147483647, %v2901_v13  ;;  %v10685_v27 = vmul.f32 %v8313_v55, %v13539_v9  ;;  %v3710_v55 = vsub.f32 %v10590_v36, %v10646_v51  ;;  %v3010_v18 = vmax.f32 %v3000_v32, 0.0 }
 0x577   : > { %13533 = vst [vmem:[#allocation100_spill] sm:$0xff] %v10657_v35  ;;  %4627 = vperm.xlu1 %8041, %v13446_v31   ;;  %v3230_v35 = vsub.f32 %v10409_v33, %v10646_v51  ;;  %v3391_v33 = vsub.f32 %v10476_v29, %v10222_v15  ;;  %v3170_v29 = vsub.f32 1.0, %v3160_v45  ;;  %v3630_v45 = vsub.f32 %v10544_v41, %v10222_v15 }
 0x578   : > { %13540 = vst [vmem:[#allocation4_spill] sm:$0xff] %v10685_v27  ;;  %v2921_v63 = vsub.f32 1.0, %v2911_v16  ;;  %v3410_v60 = vsub.f32 1.0, %v3400_v11  ;;  %v3721_v15 = vand.u32 2147483647, %v3711_v28 }
 0x579   : > { %4803 = vperm.xlu0 %8125, %v10666_v20   ;;  %v3161_v20 = vand.u32 2147483647, %v3151_v52  ;;  %v3240_v6 = vand.u32 2147483647, %v3230_v35  ;;  %v3001_v35 = vsub.f32 1.0, %v2991_v1  ;;  %v3251_v52 = vsub.f32 1.0, %v3241_v2 }
 0x57a   : > { %v10677_v21 = vpop.permute.xlu0 %4145  ;;  %v10679_v13 = vpop.permute.xlu1 %3447  ;;  %v3401_v39 = vand.u32 2147483647, %v3391_v33  ;;  %v2931_v36 = vmax.f32 %v2921_v63, 0.0  ;;  %v13078_v1 = vmov 47   ;;  %v3180_v33 = vmax.f32 %v3170_v29, 0.0 }
 0x57b   : > { %13537 = vst [vmem:[#allocation3_spill] sm:$0xff] %v10677_v21  ;;  %13538 = vst [vmem:[#allocation147_spill] sm:$0xff] %v10679_v13  ;;  %4707 = vperm.xlu1 %8041, %v13425_v56   ;;  %v2920_v21 = vsub.f32 1.0, %v2910_v25  ;;  %v13543_v25 = vmov 12   ;;  %v3171_v12 = vsub.f32 1.0, %v3161_v20  ;;  %v3250_v61 = vsub.f32 1.0, %v3240_v6 }
 0x57c   : > { %v3720_v13 = vand.u32 2147483647, %v3710_v55  ;;  %v3011_v6 = vmax.f32 %v3001_v35, 0.0  ;;  %v3411_v41 = vsub.f32 1.0, %v3401_v39  ;;  %v3420_v39 = vmax.f32 %v3410_v60, 0.0 }
 0x57d   : > { %4807 = vperm.xlu0 %8125, %v10685_v27   ;;  %v3480_v27 = vand.u32 2147483647, %v3470_v44  ;;  %v2930_v2 = vmax.f32 %v2920_v21, 0.0  ;;  %v3261_v44 = vmax.f32 %v3251_v52, 0.0  ;;  %v3181_v63 = vmax.f32 %v3171_v12, 0.0 }
 0x57e   : > { %v10694_v9 = vpop.permute.xlu0 %4149  ;;  %v10696_v16 = vpop.permute.xlu1 %3451  ;;  %v3260_v32 = vmax.f32 %v3250_v61, 0.0  ;;  %v10712_v21 = vld [vmem:[%s13282_s4 + $0x2] ss:$0 sm:$0xff]  ;;  %v3730_v28 = vsub.f32 1.0, %v3720_v13 }
 0x57f   : > { %13541 = vst [vmem:[#allocation101_spill] sm:$0xff] %v10694_v9  ;;  %13542 = vst [vmem:[#allocation5_spill] sm:$0xff] %v10696_v16  ;;  %8042 = vset.pattern.permute.xlu1 %v13543_v25  ;;  %v3491_v9 = vsub.f32 1.0, %v3481_v24  ;;  %v3641_v16 = vand.u32 2147483647, %v3631_v30  ;;  %v3490_v24 = vsub.f32 1.0, %v3480_v27  ;;  %v3071_v29 = vmul.f32 %v10712_v21, %v10392_v54 }
 0x580   : > { %5357 = vperm.xlu1 %8042, %v13425_v56   ;;  %v3640_v30 = vand.u32 2147483647, %v3630_v45  ;;  %v3311_v11 = vmul.f32 %v10712_v21, %v10499_v0  ;;  %v3320_v52 = vmul.f32 %v3260_v32, %v3180_v33  ;;  %v3310_v27 = vmul.f32 %v10712_v21, %v10442_v26  ;;  %v10727_v0 = vld [vmem:[%s13282_s4 + $0x3] ss:$0 sm:$0xff] }
 0x581   : > { %8131 = vset.pattern.permute.xlu0 %v13078_v1  ;;  %v3501_v55 = vmax.f32 %v3491_v9, 0.0  ;;  %v3651_v35 = vsub.f32 1.0, %v3641_v16  ;;  %v3321_v61 = vmul.f32 %v3261_v44, %v3181_v63  ;;  %v3421_v45 = vmax.f32 %v3411_v41, 0.0 }
 0x582   : > { %6167 = vperm.xlu0 %8131, %v10585_v43   ;;  %v10706_v20 = vpop.permute.xlu0 %4153  ;;  %v3731_v54 = vsub.f32 1.0, %v3721_v15  ;;  %v3070_v16 = vmul.f32 %v10712_v21, %v10351_v3  ;;  %v3500_v26 = vmax.f32 %v3490_v24, 0.0  ;;  %v3650_v33 = vsub.f32 1.0, %v3640_v30 }
 0x583   : > { %13544 = vst [vmem:[#allocation106_spill] sm:$0xff] %v10706_v20  ;;  %v3516_v56 = vpop.permute.xlu1 %3515  ;;  %v3550_v13 = vmul.f32 %v10727_v0, %v10614_v19  ;;  %v3081_v44 = vmul.f32 %v3011_v6, %v2931_v36  ;;  %v3331_v41 = vmul.f32 %v3321_v61, %v3311_v11  ;;  %v3561_v15 = vmul.f32 %v3501_v55, %v3421_v45 }
 0x584   : > { %8043 = vset.pattern.permute.xlu1 %v13545_v34  ;;  %v3551_v9 = vmul.f32 %v10727_v0, %v3516_v56  ;;  %v3661_v63 = vmax.f32 %v3651_v35, 0.0  ;;  %v3080_v32 = vmul.f32 %v3010_v18, %v2930_v2  ;;  %v3330_v1 = vmul.f32 %v3320_v52, %v3310_v27 }
 0x585   : > { %5527 = vperm.xlu1 %8043, %v13446_v31   ;;  %v3740_v56 = vmax.f32 %v3730_v28, 0.0  ;;  %v3091_v3 = vmul.f32 %v3081_v44, %v3071_v29  ;;  %v3741_v24 = vmax.f32 %v3731_v54, 0.0  ;;  %v3660_v36 = vmax.f32 %v3650_v33, 0.0 }
 0x586   : > { %6171 = vperm.xlu0 %8131, %v10596_v10   ;;  %v10722_v12 = vpop.permute.xlu0 %4237  ;;  %v3571_v30 = vmul.f32 %v3561_v15, %v3551_v9  ;;  %v3090_v20 = vmul.f32 %v3080_v32, %v3070_v16  ;;  %v3791_v29 = vmul.f32 %v10727_v0, %v10531_v59  ;;  %v2982_v54 = vsub.f32 %v10315_v58, %v10646_v51  ;;  %v10761_v16 = vld [vmem:[%s13282_s4 + $0x1] ss:$0 sm:$0xff] }
 0x587   : > { %13546 = vst [vmem:[#allocation141_spill] sm:$0xff] %v10722_v12  ;;  %v3560_v12 = vmul.f32 %v3500_v26, %v3420_v39  ;;  %v3341_v11 = vadd.f32 %v3331_v41, %v3091_v3  ;;  %v3801_v55 = vmul.f32 %v3741_v24, %v3661_v63  ;;  %v3800_v18 = vmul.f32 %v3740_v56, %v3660_v36  ;;  %v13549_v41 = vld [vmem:[#allocation20_spill] sm:$0xff]  ;;  %v13550_v63 = vld [vmem:[#allocation11_spill] sm:$0xff] }
 0x588   : > { %v10734_v60 = vpop.permute.xlu1 %3687  ;;  %v3340_v61 = vadd.f32 %v3330_v1, %v3090_v20  ;;  %v13082_v1 = vmov 11   ;;  %v3152_v26 = vsub.f32 %v10435_v5, %v10761_v16  ;;  %v2902_v58 = vsub.f32 %v10329_v46, %v10761_v16  ;;  %v13551_v3 = vld [vmem:[#allocation12_spill] sm:$0xff] }
 0x589   : > { %8044 = vset.pattern.permute.xlu1 %v13475_v53  ;;  %v3570_v6 = vmul.f32 %v3560_v12, %v3550_v13  ;;  %v3581_v52 = vadd.f32 %v3571_v30, %v3341_v11  ;;  %v3811_v12 = vmul.f32 %v3801_v55, %v3791_v29  ;;  %v2903_v33 = vsub.f32 %v10337_v47, %v10761_v16  ;;  %v13552_v55 = vld [vmem:[#allocation13_spill] sm:$0xff] }
 0x58a   : > { %6175 = vperm.xlu0 %8131, %v10607_v4   ;;  %3539 = vperm.xlu1 %8044, %v13406_v57   ;;  %v2904_v13 = vsub.f32 %v10250_v42, %v10761_v16  ;;  %v2983_v44 = vsub.f32 %v10367_v17, %v10646_v51  ;;  %v3232_v5 = vsub.f32 %v10415_v48, %v10646_v51  ;;  %v2992_v15 = vand.u32 2147483647, %v2982_v54 }
 0x58b   : > { %v10739_v19 = vpop.permute.xlu0 %4387  ;;  %v3580_v39 = vadd.f32 %v3570_v6, %v3340_v61  ;;  %v3821_v9 = vadd.f32 %v3811_v12, %v3581_v52  ;;  %v2984_v46 = vsub.f32 %v10327_v7, %v10646_v51  ;;  %v3472_v47 = vsub.f32 %v10612_v22, %v10646_v51 }
 0x58c   : > { %v3162_v17 = vand.u32 2147483647, %v3152_v26  ;;  %v3392_v48 = vsub.f32 %v10541_v50, %v10761_v16  ;;  %v2912_v7 = vand.u32 2147483647, %v2902_v58  ;;  %v2913_v56 = vand.u32 2147483647, %v2903_v33 }
 0x58d   : > { %v3752_v35 = vpop.permute.xlu1 %3751  ;;  %v10794_v22 = vand.u32 2147483647, %v2904_v13  ;;  %v2993_v24 = vand.u32 2147483647, %v2983_v44  ;;  %v3242_v30 = vand.u32 2147483647, %v3232_v5  ;;  %v3712_v50 = vsub.f32 %v10635_v23, %v10646_v51 }
 0x58e   : > { %v3790_v2 = vmul.f32 %v10727_v0, %v3752_v35  ;;  %6179 = vperm.xlu0 %8131, %v10618_v40   ;;  %8045 = vset.pattern.permute.xlu1 %v13534_v8  ;;  %v3002_v36 = vsub.f32 1.0, %v2992_v15  ;;  %v10797_v6 = vand.u32 2147483647, %v2984_v46  ;;  %v3482_v11 = vand.u32 2147483647, %v3472_v47  ;;  %v13555_v23 = vld [vmem:[#allocation21_spill] sm:$0xff] }
 0x58f   : > { %v10746_v27 = vpop.permute.xlu0 %4475  ;;  %4631 = vperm.xlu1 %8045, %v13412_v37   ;;  %v3172_v61 = vsub.f32 1.0, %v3162_v17  ;;  %v3402_v29 = vand.u32 2147483647, %v3392_v48  ;;  %v3632_v12 = vsub.f32 %v13555_v23, %v10761_v16  ;;  %v3252_v26 = vsub.f32 1.0, %v3242_v30  ;;  %v13557_v58 = vld [vmem:[#allocation130_spill] sm:$0xff]  ;;  %v13558_v15 = vld [vmem:[#allocation15_spill] sm:$0xff] }
 0x590   : > { %13547 = vst [vmem:[#allocation7_spill] sm:$0xff] %v10746_v27  ;;  %v3810_v28 = vmul.f32 %v3800_v18, %v3790_v2  ;;  %v13554_v18 = vld [vmem:[#allocation41_spill] sm:$0xff]  ;;  %v3153_v33 = vsub.f32 %v13557_v58, %v10761_v16  ;;  %v3012_v13 = vmax.f32 %v3002_v36, 0.0  ;;  %v3492_v5 = vsub.f32 1.0, %v3482_v11  ;;  %v13559_v46 = vld [vmem:[#allocation62_spill] sm:$0xff]  ;;  %v13562_v11 = vld [vmem:[#allocation16_spill] sm:$0xff] }
 0x591   : > { %v3233_v2 = vsub.f32 %v13554_v18, %v10646_v51  ;;  %v3182_v47 = vmax.f32 %v3172_v61, 0.0  ;;  %v3412_v17 = vsub.f32 1.0, %v3402_v29  ;;  %v3642_v36 = vand.u32 2147483647, %v3632_v12  ;;  %v13565_v23 = vld [vmem:[#allocation144_spill] sm:$0xff] }
 0x592   : > { %v3820_v45 = vadd.f32 %v3810_v28, %v3580_v39  ;;  %8135 = vset.pattern.permute.xlu0 %v13082_v1  ;;  %v10750_v20 = vpop.permute.xlu1 %3691  ;;  %v2922_v39 = vsub.f32 1.0, %v2912_v7  ;;  %v2923_v28 = vsub.f32 1.0, %v2913_v56  ;;  %v3262_v61 = vmax.f32 %v3252_v26, 0.0  ;;  %v13569_v26 = vld [vmem:[#allocation125_spill] sm:$0xff] }
 0x593   : > { %4875 = vperm.xlu0 %8135, %v13449_v38   ;;  %v10755_v59 = vpop.permute.xlu0 %4479  ;;  %8046 = vset.pattern.permute.xlu1 %v13543_v25  ;;  %v3163_v18 = vand.u32 2147483647, %v3153_v33  ;;  %v3502_v58 = vmax.f32 %v3492_v5, 0.0  ;;  %v3234_v33 = vsub.f32 %v13569_v26, %v10646_v51  ;;  %v3422_v44 = vmax.f32 %v3412_v17, 0.0 }
 0x594   : > { %13548 = vst [vmem:[#allocation8_spill] sm:$0xff] %v10755_v59  ;;  %5281 = vperm.xlu1 %8046, %v13412_v37   ;;  %7711 = vmatprep.mubr.msk.f32.mxu0 %vm3845_vm6, %v3820_v45  ;;  %v13556_v45 = vld [vmem:[#allocation14_spill] sm:$0xff]  ;;  %v2932_v56 = vmax.f32 %v2922_v39, 0.0  ;;  %v13566_v39 = vld [vmem:[#allocation120_spill] sm:$0xff]  ;;  %v3652_v5 = vsub.f32 1.0, %v3642_v36  ;;  %v13574_v36 = vld [vmem:[#allocation95_spill] sm:$0xff] }
 0x595   : > { %7712 = vmatmul.mubr.msk.f32.vlgmr.msra.gmra.mxu0 %vm3845_vm6, %v3821_v9  ;;  %v3003_v9 = vsub.f32 1.0, %v2993_v24  ;;  %v13561_v24 = vld [vmem:[#allocation93_spill] sm:$0xff]  ;;  %v3173_v17 = vsub.f32 1.0, %v3163_v18  ;;  %v3633_v26 = vsub.f32 %v13574_v36, %v10761_v16  ;;  %v13579_v36 = vld [vmem:[#allocation147_spill] sm:$0xff] }
 0x596   : > { %7762 = vmatpush3.msra.mxu0 %v13549_v41  ;;  %v3722_v41 = vand.u32 2147483647, %v3712_v50  ;;  %v3393_v30 = vsub.f32 %v13561_v24, %v10761_v16  ;;  %v13563_v50 = vmov 39   ;;  %v13568_v24 = vld [vmem:[#allocation17_spill] sm:$0xff]  ;;  %v3474_v59 = vsub.f32 %v13579_v36, %v10646_v51 }
 0x597   : > { %7763 = vmatprep.subr.mxu0 %v13550_v63  ;;  %4959 = vperm.xlu0 %8135, %v13411_v49   ;;  %v10785_v42 = vpop.permute.xlu0 %4403  ;;  %v10787_v32 = vpop.permute.xlu1 %3455 }
 0x598   : > { %7764 = vmatpush3.msra.mxu0 %v13550_v63  ;;  %5361 = vperm.xlu1 %8046, %v13409_v62   ;;  %v3243_v63 = vand.u32 2147483647, %v3233_v2  ;;  %v13564_v2 = vld [vmem:[#allocation86_spill] sm:$0xff] }
 0x599   : > { %7765 = vmatprep.subr.mxu0 %v13551_v3  ;;  %v3312_v29 = vmul.f32 %v10712_v21, %v13564_v2  ;;  %v3322_v2 = vmul.f32 %v3262_v61, %v3182_v47  ;;  %v3082_v47 = vmul.f32 %v3012_v13, %v2932_v56  ;;  %v13577_v13 = vld [vmem:[#allocation118_spill] sm:$0xff] }
 0x59a   : > { %7766 = vmatpush3.msra.mxu0 %v13551_v3  ;;  %v2933_v3 = vmax.f32 %v2923_v28, 0.0  ;;  %v3072_v28 = vmul.f32 %v10712_v21, %v13566_v39  ;;  %v3403_v39 = vand.u32 2147483647, %v3393_v30  ;;  %v3154_v56 = vsub.f32 %v13577_v13, %v10761_v16 }
 0x59b   : > { %7767 = vmatprep.subr.mxu0 %v13552_v55  ;;  %4899 = vperm.xlu0 %8135, %v13418_v14   ;;  %v10803_v35 = vpop.permute.xlu0 %4487  ;;  %v3332_v61 = vmul.f32 %v3322_v2, %v3312_v29 }
 0x59c   : > { %13553 = vst [vmem:[#allocation9_spill] sm:$0xff] %v10803_v35  ;;  %7768 = vmatpush3.msra.mxu0 %v13552_v55  ;;  %8047 = vset.pattern.permute.xlu1 %v13545_v34  ;;  %v3520_v52 = vpop.permute.xlu1 %3519  ;;  %v3013_v55 = vmax.f32 %v3003_v9, 0.0  ;;  %v13080_v9 = vmov 14   ;;  %v13580_v35 = vmov 9  }
 0x59d   : > { %7769 = vmatprep.subr.mxu0 %v13556_v45  ;;  %5611 = vperm.xlu1 %8047, %v13409_v62   ;;  %v3552_v54 = vmul.f32 %v10727_v0, %v3520_v52  ;;  %v13575_v52 = vld [vmem:[#allocation19_spill] sm:$0xff] }
 0x59e   : > { %7770 = vmatpush3.msra.mxu0 %v13556_v45  ;;  %v13567_v45 = vld [vmem:[#allocation137_spill] sm:$0xff] }
 0x59f   : > { %7771 = vmatprep.subr.mxu0 %v13558_v15  ;;  %4983 = vperm.xlu0 %8135, %v13559_v46   ;;  %v3473_v12 = vsub.f32 %v13567_v45, %v10646_v51 }
 0x5a0   : > { %7772 = vmatpush3.msra.mxu0 %v13558_v15  ;;  %v10821_v48 = vpop.permute.xlu0 %4711  ;;  %v10823_v7 = vpop.permute.xlu1 %3523  ;;  %v3732_v15 = vsub.f32 1.0, %v3722_v41  ;;  %v13571_v41 = vld [vmem:[#allocation2_spill] sm:$0xff] }
 0x5a1   : > { %13560 = vst [vmem:[#allocation10_spill] sm:$0xff] %v10821_v48  ;;  %7773 = vmatprep.subr.mxu0 %v13562_v11  ;;  %8048 = vset.pattern.permute.xlu1 %v13563_v50  ;;  %v3713_v45 = vsub.f32 %v13571_v41, %v10646_v51  ;;  %v3483_v30 = vand.u32 2147483647, %v3473_v12  ;;  %v3562_v41 = vmul.f32 %v3502_v58, %v3422_v44  ;;  %v13576_v48 = vld [vmem:[#allocation57_spill] sm:$0xff]  ;;  %v3413_v12 = vsub.f32 1.0, %v3403_v39 }
 0x5a2   : > { %7774 = vmatpush3.msra.mxu0 %v13562_v11  ;;  %3775 = vperm.xlu1 %8048, %v13565_v23   ;;  %v3253_v11 = vsub.f32 1.0, %v3243_v63  ;;  %v10851_v63 = vmul.f32 %v3013_v55, %v2933_v3  ;;  %v3092_v3 = vmul.f32 %v3082_v47, %v3072_v28  ;;  %v3244_v55 = vand.u32 2147483647, %v3234_v33 }
 0x5a3   : > { %7775 = vmatprep.subr.mxu0 %v13568_v24  ;;  %8144 = vset.pattern.permute.xlu0 %v13080_v9  ;;  %v13572_v9 = vld [vmem:[#allocation18_spill] sm:$0xff]  ;;  %v3723_v44 = vand.u32 2147483647, %v3713_v45  ;;  %v3572_v58 = vmul.f32 %v3562_v41, %v3552_v54  ;;  %v3714_v28 = vsub.f32 %v10734_v60, %v10646_v51  ;;  %v3643_v47 = vand.u32 2147483647, %v3633_v26  ;;  %v13581_v54 = vld [vmem:[#allocation84_spill] sm:$0xff] }
 0x5a4   : > { %7776 = vmatpush3.msra.mxu0 %v13568_v24  ;;  %5767 = vperm.xlu0 %8144, %v13446_v31   ;;  %v10843_v23 = vpop.permute.xlu0 %4635  ;;  %v13573_v24 = vmov 8   ;;  %v3263_v18 = vmax.f32 %v3253_v11, 0.0  ;;  %v3342_v2 = vadd.f32 %v3332_v61, %v3092_v3  ;;  %v3493_v11 = vsub.f32 1.0, %v3483_v30 }
 0x5a5   : > { %13570 = vst [vmem:[#allocation44_spill] sm:$0xff] %v10843_v23  ;;  %7777 = vmatprep.subr.mxu0 %v13572_v9  ;;  %v10849_v1 = vpop.permute.xlu1 %3615  ;;  %v3742_v23 = vmax.f32 %v3732_v15, 0.0  ;;  %v3183_v15 = vmax.f32 %v3173_v17, 0.0  ;;  %v3164_v39 = vand.u32 2147483647, %v3154_v56  ;;  %v3394_v45 = vsub.f32 %v13581_v54, %v10761_v16  ;;  %v13582_v17 = vld [vmem:[#allocation99_spill] sm:$0xff] }
 0x5a6   : > { %7778 = vmatpush3.msra.mxu0 %v13572_v9  ;;  %8049 = vset.pattern.permute.xlu1 %v13573_v24  ;;  %v3662_v9 = vmax.f32 %v3652_v5, 0.0  ;;  %v3634_v61 = vsub.f32 %v13582_v17, %v10761_v16  ;;  %v3423_v60 = vmax.f32 %v3413_v12, 0.0  ;;  %v3582_v30 = vadd.f32 %v3572_v58, %v3342_v2  ;;  %v13587_v58 = vld [vmem:[#allocation111_spill] sm:$0xff] }
 0x5a7   : > { %7779 = vmatprep.subr.mxu0 %v13575_v52  ;;  %4225 = vperm.xlu1 %8049, %v13576_v48   ;;  %v3323_v5 = vmul.f32 %v3263_v18, %v3183_v15  ;;  %v3254_v3 = vsub.f32 1.0, %v3244_v55  ;;  %v3484_v18 = vand.u32 2147483647, %v3474_v59  ;;  %v3724_v15 = vand.u32 2147483647, %v3714_v28 }
 0x5a8   : > { %7780 = vmatpush3.msra.mxu0 %v13575_v52  ;;  %5771 = vperm.xlu0 %8144, %v13412_v37   ;;  %v10863_v29 = vpop.permute.xlu0 %4639  ;;  %v3802_v52 = vmul.f32 %v3742_v23, %v3662_v9  ;;  %v3733_v23 = vsub.f32 1.0, %v3723_v44  ;;  %v13584_v9 = vld [vmem:[#allocation127_spill] sm:$0xff]  ;;  %v3503_v36 = vmax.f32 %v3493_v11, 0.0  ;;  %v3553_v54 = vmul.f32 %v10727_v0, %v10823_v7 }
 0x5a9   : > { %13578 = vst [vmem:[#allocation45_spill] sm:$0xff] %v10863_v29  ;;  %v3313_v56 = vmul.f32 %v10712_v21, %v13584_v9  ;;  %v3404_v27 = vand.u32 2147483647, %v3394_v45  ;;  %v3644_v12 = vand.u32 2147483647, %v3634_v61  ;;  %v13586_v55 = vmov 11  }
 0x5aa   : > { %v3760_v33 = vpop.permute.xlu1 %3759  ;;  %v3073_v59 = vmul.f32 %v10712_v21, %v13587_v58  ;;  %v3563_v28 = vmul.f32 %v3503_v36, %v3423_v60  ;;  %v3743_v11 = vmax.f32 %v3733_v23, 0.0  ;;  %v13588_v7 = vsub.f32 1.0, %v10794_v22  ;;  %v13590_v23 = vld [vmem:[#allocation91_spill] sm:$0xff] }
 0x5ab   : > { %v3792_v13 = vmul.f32 %v10727_v0, %v3760_v33  ;;  %8050 = vset.pattern.permute.xlu1 %v13580_v35  ;;  %v3653_v33 = vsub.f32 1.0, %v3643_v47  ;;  %v3333_v2 = vmul.f32 %v3323_v5, %v3313_v56  ;;  %v13589_v45 = vsub.f32 1.0, %v10797_v6  ;;  %v13591_v6 = vld [vmem:[#allocation55_spill] sm:$0xff] }
 0x5ac   : > { %5855 = vperm.xlu0 %8144, %v13576_v48   ;;  %v10876_v41 = vpop.permute.xlu0 %4643  ;;  %4395 = vperm.xlu1 %8050, %v13449_v38   ;;  %v2934_v47 = vmax.f32 %v13588_v7, 0.0  ;;  %v3573_v9 = vmul.f32 %v3563_v28, %v3553_v54  ;;  %v3414_v60 = vsub.f32 1.0, %v3404_v27  ;;  %v3314_v56 = vmul.f32 %v10712_v21, %v13590_v23 }
 0x5ad   : > { %13583 = vst [vmem:[#allocation142_spill] sm:$0xff] %v10876_v41  ;;  %v3812_v26 = vmul.f32 %v3802_v52, %v3792_v13  ;;  %v3174_v41 = vsub.f32 1.0, %v3164_v39  ;;  %v3264_v52 = vmax.f32 %v3254_v3, 0.0  ;;  %v3494_v13 = vsub.f32 1.0, %v3484_v18 }
 0x5ae   : > { %v3734_v39 = vsub.f32 1.0, %v3724_v15  ;;  %v3014_v61 = vmax.f32 %v13589_v45, 0.0  ;;  %v3654_v36 = vsub.f32 1.0, %v3644_v12  ;;  %v3424_v28 = vmax.f32 %v3414_v60, 0.0 }
 0x5af   : > { %v3822_v17 = vadd.f32 %v3812_v26, %v3582_v30  ;;  %v10883_v29 = vpop.permute.xlu1 %3619  ;;  %v3093_v30 = vmul.f32 %v10851_v63, %v3073_v59  ;;  %v3663_v26 = vmax.f32 %v3653_v33, 0.0  ;;  %v3184_v5 = vmax.f32 %v3174_v41, 0.0  ;;  %v13592_v63 = vld [vmem:[#allocation123_spill] sm:$0xff] }
 0x5b0   : > { %5799 = vperm.xlu0 %8144, %v13418_v14   ;;  %v10886_v44 = vpop.permute.xlu0 %4727  ;;  %8051 = vset.pattern.permute.xlu1 %v13586_v55  ;;  %v3074_v33 = vmul.f32 %v10712_v21, %v13592_v63  ;;  %v3504_v27 = vmax.f32 %v3494_v13, 0.0  ;;  %v3744_v54 = vmax.f32 %v3734_v39, 0.0  ;;  %v3084_v12 = vmul.f32 %v3014_v61, %v2934_v47  ;;  %v13594_v61 = vld [vmem:[#allocation38_spill] sm:$0xff] }
 0x5b1   : > { %13585 = vst [vmem:[#allocation65_spill] sm:$0xff] %v10886_v44  ;;  %4867 = vperm.xlu1 %8051, %v13446_v31   ;;  %7714 = vmatprep.mubr.msk.f32.mxu0 %vm3845_vm6, %v3822_v17  ;;  %v3803_v17 = vmul.f32 %v3743_v11, %v3663_v26  ;;  %v3343_v3 = vadd.f32 %v3333_v2, %v3093_v30  ;;  %v3664_v45 = vmax.f32 %v3654_v36, 0.0  ;;  %v13084_v11 = vmov 15  }
 0x5b2   : > { %v3324_v41 = vmul.f32 %v3264_v52, %v3184_v5  ;;  %v13593_v26 = vmov 14   ;;  %v3094_v52 = vmul.f32 %v3084_v12, %v3074_v33  ;;  %v3564_v13 = vmul.f32 %v3504_v27, %v3424_v28  ;;  %v13598_v27 = vld [vmem:[#allocation114_spill] sm:$0xff]  ;;  %v13601_v12 = vld [vmem:[#allocation133_spill] sm:$0xff] }
 0x5b3   : > { %v3583_v58 = vadd.f32 %v3573_v9, %v3343_v3  ;;  %v3804_v39 = vmul.f32 %v3744_v54, %v3664_v45  ;;  %v3794_v5 = vmul.f32 %v10727_v0, %v13594_v61  ;;  %v2985_v54 = vsub.f32 %v13598_v27, %v10646_v51 }
 0x5b4   : > { %5883 = vperm.xlu0 %8144, %v13559_v46   ;;  %v3764_v22 = vpop.permute.xlu1 %3763  ;;  %v3334_v7 = vmul.f32 %v3324_v41, %v3314_v56  ;;  %v3155_v28 = vsub.f32 %v13601_v12, %v10761_v16  ;;  %v3715_v27 = vsub.f32 %v10750_v20, %v10646_v51 }
 0x5b5   : > { %v3793_v18 = vmul.f32 %v10727_v0, %v3764_v22  ;;  %v10902_v15 = vpop.permute.xlu0 %5277  ;;  %4947 = vperm.xlu1 %8051, %v13591_v6   ;;  %v3814_v56 = vmul.f32 %v3804_v39, %v3794_v5  ;;  %v13605_v39 = vld [vmem:[#allocation146_spill] sm:$0xff]  ;;  %v2995_v61 = vand.u32 2147483647, %v2985_v54  ;;  %v13086_v54 = vmov 41  }
 0x5b6   : > { %v3344_v47 = vadd.f32 %v3334_v7, %v3094_v52  ;;  %v13602_v7 = vld [vmem:[#allocation5_spill] sm:$0xff]  ;;  %v3165_v5 = vand.u32 2147483647, %v3155_v28 }
 0x5b7   : > { %v3813_v59 = vmul.f32 %v3803_v17, %v3793_v18  ;;  %v3475_v45 = vsub.f32 %v13602_v7, %v10646_v51  ;;  %v3005_v7 = vsub.f32 1.0, %v2995_v61 }
 0x5b8   : > { %8147 = vset.pattern.permute.xlu0 %v13084_v11  ;;  %v3175_v28 = vsub.f32 1.0, %v3165_v5 }
 0x5b9   : > { %v3823_v2 = vadd.f32 %v3813_v59, %v3583_v58  ;;  %6007 = vperm.xlu0 %8147, %v13446_v31   ;;  %v10909_v30 = vpop.permute.xlu0 %5365  ;;  %8052 = vset.pattern.permute.xlu1 %v13593_v26  ;;  %v3528_v23 = vpop.permute.xlu1 %3527  ;;  %v13599_v58 = vld [vmem:[#allocation63_spill] sm:$0xff]  ;;  %v13600_v59 = vld [vmem:[#allocation46_spill] sm:$0xff]  ;;  %v3015_v44 = vmax.f32 %v3005_v7, 0.0 }
 0x5ba   : > { %v3554_v9 = vmul.f32 %v10727_v0, %v3528_v23  ;;  %5847 = vperm.xlu1 %8052, %v13591_v6   ;;  %v13604_v23 = vld [vmem:[#allocation108_spill] sm:$0xff] }
 0x5bb   : > { %7715 = vmatmul.mubr.msk.f32.gmra.mxu0 %vm3845_vm6, %v3823_v2  ;;  %v2905_v52 = vsub.f32 %v13604_v23, %v10761_v16 }
 0x5bc   : > { %v3574_v60 = vmul.f32 %v3564_v13, %v3554_v9  ;;  %v3395_v9 = vsub.f32 %v13605_v39, %v10761_v16 }
 0x5bd   : > { %6011 = vperm.xlu0 %8147, %v13412_v37   ;;  %v10918_v31 = vpop.permute.xlu0 %5369 }
 0x5be   : > { %v3584_v36 = vadd.f32 %v3574_v60, %v3344_v47  ;;  %8053 = vset.pattern.permute.xlu1 %v13563_v50  ;;  %v10921_v22 = vpop.permute.xlu1 %3467  ;;  %v3485_v60 = vand.u32 2147483647, %v3475_v45  ;;  %v13609_v45 = vld [vmem:[#allocation94_spill] sm:$0xff] }
 0x5bf   : > { %3779 = vperm.xlu1 %8053, %v13406_v57   ;;  %v13597_v57 = vld [vmem:[#allocation135_spill] sm:$0xff]  ;;  %v3635_v23 = vsub.f32 %v13609_v45, %v10761_v16 }
 0x5c0   : > { %v3824_v17 = vadd.f32 %v3814_v56, %v3584_v36  ;;  %v3235_v41 = vsub.f32 %v13597_v57, %v10646_v51  ;;  %v13608_v36 = vld [vmem:[#allocation80_spill] sm:$0xff]  ;;  %v3495_v39 = vsub.f32 1.0, %v3485_v60 }
 0x5c1   : > { %6015 = vperm.xlu0 %8147, %v13449_v38   ;;  %v10925_v3 = vpop.permute.xlu0 %5293  ;;  %8314 = vrcp.f32 %v13608_v36  ;;  %v3645_v61 = vand.u32 2147483647, %v3635_v23  ;;  %v13616_v23 = vld [vmem:[#allocation96_spill] sm:$0xff] }
 0x5c2   : > { %13595 = vst [vmem:[#allocation67_spill] sm:$0xff] %v10925_v3  ;;  %7717 = vmatprep.mubr.msk.f32.mxu0 %vm3845_vm6, %v3824_v17  ;;  %v3245_v13 = vand.u32 2147483647, %v3235_v41  ;;  %v2915_v17 = vand.u32 2147483647, %v2905_v52  ;;  %v3505_v5 = vmax.f32 %v3495_v39, 0.0 }
 0x5c3   : > { %8054 = vset.pattern.permute.xlu1 %v13573_v24  ;;  %v10929_v18 = vpop.permute.xlu1 %3623  ;;  %v3405_v41 = vand.u32 2147483647, %v3395_v9  ;;  %v3725_v9 = vand.u32 2147483647, %v3715_v27  ;;  %v13615_v27 = vld [vmem:[#allocation131_spill] sm:$0xff]  ;;  %v3655_v7 = vsub.f32 1.0, %v3645_v61 }
 0x5c4   : > { %4229 = vperm.xlu1 %8054, %v13411_v49   ;;  %v3255_v57 = vsub.f32 1.0, %v3245_v13  ;;  %v2925_v52 = vsub.f32 1.0, %v2915_v17  ;;  %v3315_v14 = vmul.f32 %v10712_v21, %v13615_v27 }
 0x5c5   : > { %6099 = vperm.xlu0 %8147, %v13411_v49   ;;  %v10933_v63 = vpop.permute.xlu0 %5377  ;;  %v3415_v20 = vsub.f32 1.0, %v3405_v41 }
 0x5c6   : > { %13596 = vst [vmem:[#allocation72_spill] sm:$0xff] %v10933_v63  ;;  %v3265_v13 = vmax.f32 %v3255_v57, 0.0  ;;  %v2935_v60 = vmax.f32 %v2925_v52, 0.0  ;;  %v3735_v57 = vsub.f32 1.0, %v3725_v9  ;;  %v13620_v9 = vld [vmem:[#allocation88_spill] sm:$0xff] }
 0x5c7   : > { %v10935_v33 = vpop.permute.xlu1 %3703  ;;  %v3425_v17 = vmax.f32 %v3415_v20, 0.0 }
 0x5c8   : > { %8055 = vset.pattern.permute.xlu1 %v13580_v35  ;;  %v3085_v41 = vmul.f32 %v3015_v44, %v2935_v60  ;;  %v3745_v20 = vmax.f32 %v3735_v57, 0.0 }
 0x5c9   : > { %6119 = vperm.xlu0 %8147, %v13599_v58   ;;  %4399 = vperm.xlu1 %8055, %v13600_v59  }
 0x5ca   : > { %v10948_v2 = vpop.permute.xlu0 %5607 }
 0x5cb   : > { %13603 = vst [vmem:[#allocation69_spill] sm:$0xff] %v10948_v2 }
 0x5cc   : > { %v10954_v47 = vpop.permute.xlu1 %4137 }
 0x5cd   : > { %13606 = vst [vmem:[#allocation27_spill] sm:$0xff] %v10954_v47  ;;  %6123 = vperm.xlu0 %8147, %v13559_v46   ;;  %8056 = vset.pattern.permute.xlu1 %v13586_v55  ;;  %v13613_v46 = vld [vmem:[#allocation104_spill] sm:$0xff] }
 0x5ce   : > { %v10958_v56 = vpop.permute.xlu0 %5531  ;;  %4871 = vperm.xlu1 %8056, %v13412_v37   ;;  %v13610_v37 = vld [vmem:[#allocation6_spill] sm:$0xff] }
 0x5cf   : > { %13607 = vst [vmem:[#allocation71_spill] sm:$0xff] %v10958_v56 }
 0x5d0   : > { %v10964_v12 = vpop.permute.xlu1 %4217 }
 0x5d1   : > { %8156 = vset.pattern.permute.xlu0 %v13086_v54  ;;  %v3185_v54 = vmax.f32 %v3175_v28, 0.0  ;;  %v3565_v28 = vmul.f32 %v3505_v5, %v3425_v17  ;;  %v3665_v5 = vmax.f32 %v3655_v7, 0.0  ;;  %v13621_v17 = vld [vmem:[#allocation4_spill] sm:$0xff] }
 0x5d2   : > { %4555 = vperm.xlu0 %8156, %v13610_v37   ;;  %v10970_v36 = vpop.permute.xlu0 %5543  ;;  %4951 = vperm.xlu1 %8056, %v13409_v62  }
 0x5d3   : > { %13611 = vst [vmem:[#allocation23_spill] sm:$0xff] %v10970_v36  ;;  %v3325_v58 = vmul.f32 %v3265_v13, %v3185_v54  ;;  %v13619_v13 = vld [vmem:[#allocation47_spill] sm:$0xff]  ;;  %v3805_v47 = vmul.f32 %v3745_v20, %v3665_v5 }
 0x5d4   : > { %v3555_v44 = vmul.f32 %v10727_v0, %v13619_v13 }
 0x5d5   : > { %v10973_v11 = vpop.permute.xlu1 %4467  ;;  %v3335_v52 = vmul.f32 %v3325_v58, %v3315_v14  ;;  %v13623_v14 = vld [vmem:[#allocation42_spill] sm:$0xff] }
 0x5d6   : > { %13612 = vst [vmem:[#allocation68_spill] sm:$0xff] %v10973_v11  ;;  %4559 = vperm.xlu0 %8156, %v13613_v46   ;;  %v10976_v45 = vpop.permute.xlu0 %5627  ;;  %8057 = vset.pattern.permute.xlu1 %v13593_v26  ;;  %v13618_v11 = vld [vmem:[#allocation112_spill] sm:$0xff]  ;;  %v3575_v60 = vmul.f32 %v3565_v28, %v3555_v44 }
 0x5d7   : > { %13614 = vst [vmem:[#allocation31_spill] sm:$0xff] %v10976_v45  ;;  %5851 = vperm.xlu1 %8057, %v13409_v62   ;;  %v8315_v45 = vpop.eup %8314  ;;  %v3075_v54 = vmul.f32 %v10712_v21, %v13618_v11 }
 0x5d8   : > { %v10999_v11 = vmul.f32 %v8315_v45, %v13623_v14 }
 0x5d9   : > { %v3095_v61 = vmul.f32 %v3085_v41, %v3075_v54  ;;  %v13627_v54 = vld [vmem:[#allocation78_spill] sm:$0xff] }
 0x5da   : > { %4563 = vperm.xlu0 %8156, %v13616_v23   ;;  %v10983_v39 = vpop.permute.xlu1 %3627  ;;  %13624 = vst [vmem:[#allocation74_spill] sm:$0xff] %v10999_v11  ;;  %8316 = vrcp.f32 %v13627_v54 }
 0x5db   : > { %v10985_v36 = vpop.permute.xlu0 %5927  ;;  %8058 = vset.pattern.permute.xlu1 %v13475_v53  ;;  %v3345_v56 = vadd.f32 %v3335_v52, %v3095_v61  ;;  %v13635_v61 = vmov 15  }
 0x5dc   : > { %13617 = vst [vmem:[#allocation70_spill] sm:$0xff] %v10985_v36  ;;  %3543 = vperm.xlu1 %8058, %v13620_v9  }
 0x5dd   : > { %v3585_v58 = vadd.f32 %v3575_v60, %v3345_v56  ;;  %v13637_v60 = vld [vmem:[#allocation35_spill] sm:$0xff] }
 0x5de   : > { %4567 = vperm.xlu0 %8156, %v13621_v17  }
 0x5df   : > { %v10994_v27 = vpop.permute.xlu0 %5931  ;;  %v3772_v36 = vpop.permute.xlu1 %3771 }
 0x5e0   : > { %13622 = vst [vmem:[#allocation29_spill] sm:$0xff] %v10994_v27  ;;  %v3795_v2 = vmul.f32 %v10727_v0, %v3772_v36  ;;  %8059 = vset.pattern.permute.xlu1 %v13534_v8  ;;  %v13090_v36 = vmov 40   ;;  %v13658_v27 = vld [vmem:[#allocation87_spill] sm:$0xff] }
 0x5e1   : > { %4715 = vperm.xlu1 %8059, %v13576_v48  }
 0x5e2   : > { %v3815_v57 = vmul.f32 %v3805_v47, %v3795_v2  ;;  %4579 = vperm.xlu0 %8156, %v10999_v11   ;;  %v13629_v47 = vld [vmem:[#allocation82_spill] sm:$0xff] }
 0x5e3   : > { %v11003_v41 = vpop.permute.xlu0 %5935  ;;  %8318 = vrcp.f32 %v13629_v47  ;;  %v13642_v47 = vld [vmem:[#allocation89_spill] sm:$0xff] }
 0x5e4   : > { %13625 = vst [vmem:[#allocation30_spill] sm:$0xff] %v11003_v41  ;;  %v3825_v7 = vadd.f32 %v3815_v57, %v3585_v58  ;;  %v11005_v28 = vpop.permute.xlu1 %4141  ;;  %v13639_v57 = vld [vmem:[#allocation73_spill] sm:$0xff] }
 0x5e5   : > { %13626 = vst [vmem:[#allocation28_spill] sm:$0xff] %v11005_v28  ;;  %8060 = vset.pattern.permute.xlu1 %v13543_v25  ;;  %8320 = vrcp.f32 %v13639_v57  ;;  %v13648_v57 = vld [vmem:[#allocation81_spill] sm:$0xff] }
 0x5e6   : > { %8159 = vset.pattern.permute.xlu0 %v13090_v36  ;;  %5285 = vperm.xlu1 %8060, %v13449_v38   ;;  %v13643_v36 = vld [vmem:[#allocation39_spill] sm:$0xff] }
 0x5e7   : > { %7718 = vmatmul.mubr.msk.f32.gmra.mxu0 %vm3845_vm6, %v3825_v7  ;;  %4308 = vperm.xlu0 %8159, %v13610_v37   ;;  %v11013_v2 = vpop.permute.xlu0 %5939  ;;  %v8317_v44 = vpop.eup %8316 }
 0x5e8   : > { %13628 = vst [vmem:[#allocation24_spill] sm:$0xff] %v11013_v2  ;;  %v11037_v14 = vmul.f32 %v8317_v44, %v13637_v60  ;;  %v3476_v2 = vsub.f32 %v10787_v32, %v10646_v51 }
 0x5e9   : > { %v11016_v56 = vpop.permute.xlu1 %4391 }
 0x5ea   : > { %13630 = vst [vmem:[#allocation32_spill] sm:$0xff] %v11016_v56  ;;  %8061 = vset.pattern.permute.xlu1 %v13545_v34  ;;  %13638 = vst [vmem:[#allocation21_spill] sm:$0xff] %v11037_v14  ;;  %v3486_v56 = vand.u32 2147483647, %v3476_v2 }
 0x5eb   : > { %4313 = vperm.xlu0 %8159, %v13613_v46   ;;  %5535 = vperm.xlu1 %8061, %v13449_v38  }
 0x5ec   : > { %v11021_v45 = vpop.permute.xlu0 %4795 }
 0x5ed   : > { %13631 = vst [vmem:[#allocation20_spill] sm:$0xff] %v11021_v45  ;;  %v11023_v52 = vpop.permute.xlu1 %4471 }
 0x5ee   : > { %13632 = vst [vmem:[#allocation11_spill] sm:$0xff] %v11023_v52 }
 0x5ef   : > { %4318 = vperm.xlu0 %8159, %v13616_v23   ;;  %5615 = vperm.xlu1 %8061, %v13576_v48  }
 0x5f0   : > { %v11027_v13 = vpop.permute.xlu0 %4799  ;;  %v8319_v58 = vpop.eup %8318 }
 0x5f1   : > { %13633 = vst [vmem:[#allocation12_spill] sm:$0xff] %v11027_v13 }
 0x5f2   : > { %v11029_v20 = vpop.permute.xlu1 %4627 }
 0x5f3   : > { %13634 = vst [vmem:[#allocation13_spill] sm:$0xff] %v11029_v20  ;;  %4323 = vperm.xlu0 %8159, %v13621_v17   ;;  %8062 = vset.pattern.permute.xlu1 %v13635_v61  ;;  %v11112_v20 = vld [vmem:[%s13282_s4] ss:$0 sm:$0xff] }
 0x5f4   : > { %v11033_v5 = vpop.permute.xlu0 %4803  ;;  %6087 = vperm.xlu1 %8062, %v13591_v6   ;;  %v13645_v6 = vld [vmem:[#allocation75_spill] sm:$0xff] }
 0x5f5   : > { %13636 = vst [vmem:[#allocation41_spill] sm:$0xff] %v11033_v5  ;;  %v11048_v5 = vmul.f32 %v8319_v58, %v13643_v36  ;;  %8322 = vrcp.f32 %v13645_v6  ;;  %v8321_v6 = vpop.eup %8320 }
 0x5f6   : > { %v11040_v7 = vpop.permute.xlu1 %4707  ;;  %8324 = vrcp.f32 %v13648_v57 }
 0x5f7   : > { %13640 = vst [vmem:[#allocation14_spill] sm:$0xff] %v11040_v7  ;;  %4333 = vperm.xlu0 %8159, %v11037_v14   ;;  %13644 = vst [vmem:[#allocation15_spill] sm:$0xff] %v11048_v5  ;;  %v13654_v14 = vld [vmem:[#allocation126_spill] sm:$0xff]  ;;  %v13102_v7 = vmov 44  }
 0x5f8   : > { %v11043_v54 = vpop.permute.xlu0 %4807  ;;  %8063 = vset.pattern.permute.xlu1 %v13475_v53  ;;  %v13095_v53 = vmov 45   ;;  %v3236_v23 = vsub.f32 %v13654_v14, %v10646_v51  ;;  %v13660_v14 = vld [vmem:[#allocation33_spill] sm:$0xff] }
 0x5f9   : > { %13641 = vst [vmem:[#allocation130_spill] sm:$0xff] %v11043_v54  ;;  %3547 = vperm.xlu1 %8063, %v13642_v47  }
 0x5fa   : > { %v3246_v52 = vand.u32 2147483647, %v3236_v23 }
 0x5fb   : > { %4343 = vperm.xlu0 %8159, %v11048_v5   ;;  %v11052_v44 = vpop.permute.xlu1 %5357  ;;  %v13652_v5 = vld [vmem:[#allocation26_spill] sm:$0xff] }
 0x5fc   : > { %13646 = vst [vmem:[#allocation93_spill] sm:$0xff] %v11052_v44  ;;  %v11073_v17 = vmul.f32 %v8321_v6, %v13652_v5  ;;  %v13657_v5 = vld [vmem:[#allocation119_spill] sm:$0xff]  ;;  %v3256_v2 = vsub.f32 1.0, %v3246_v52 }
 0x5fd   : > { %v11054_v60 = vpop.permute.xlu0 %6167  ;;  %8064 = vset.pattern.permute.xlu1 %v13534_v8  ;;  %v3156_v6 = vsub.f32 %v13657_v5, %v10761_v16 }
 0x5fe   : > { %13647 = vst [vmem:[#allocation16_spill] sm:$0xff] %v11054_v60  ;;  %4719 = vperm.xlu1 %8064, %v13411_v49   ;;  %13653 = vst [vmem:[#allocation137_spill] sm:$0xff] %v11073_v17  ;;  %v3396_v60 = vsub.f32 %v13658_v27, %v10761_v16  ;;  %v3266_v28 = vmax.f32 %v3256_v2, 0.0  ;;  %v13674_v2 = vld [vmem:[#allocation79_spill] sm:$0xff] }
 0x5ff   : > { %8162 = vset.pattern.permute.xlu0 %v13095_v53  ;;  %v3166_v5 = vand.u32 2147483647, %v3156_v6  ;;  %v3496_v6 = vsub.f32 1.0, %v3486_v56 }
 0x600   : > { %5695 = vperm.xlu0 %8162, %v10607_v4   ;;  %v11061_v36 = vpop.permute.xlu1 %5527  ;;  %v3406_v27 = vand.u32 2147483647, %v3396_v60 }
 0x601   : > { %13649 = vst [vmem:[#allocation86_spill] sm:$0xff] %v11061_v36  ;;  %v11063_v58 = vpop.permute.xlu0 %6171  ;;  %v13662_v36 = vld [vmem:[#allocation102_spill] sm:$0xff]  ;;  %v3506_v56 = vmax.f32 %v3496_v6, 0.0  ;;  %v13675_v6 = vld [vmem:[#allocation124_spill] sm:$0xff] }
 0x602   : > { %13650 = vst [vmem:[#allocation144_spill] sm:$0xff] %v11063_v58  ;;  %8065 = vset.pattern.permute.xlu1 %v13543_v25  ;;  %v8323_v53 = vpop.eup %8322  ;;  %v13655_v58 = vld [vmem:[#allocation105_spill] sm:$0xff]  ;;  %v2906_v44 = vsub.f32 %v13662_v36, %v10761_v16 }
 0x603   : > { %5289 = vperm.xlu1 %8065, %v13600_v59   ;;  %v11093_v45 = vmul.f32 %v8323_v53, %v13660_v14  ;;  %v8325_v32 = vpop.eup %8324  ;;  %v13665_v14 = vld [vmem:[#allocation43_spill] sm:$0xff] }
 0x604   : > { %5699 = vperm.xlu0 %8162, %v10618_v40   ;;  %v2916_v36 = vand.u32 2147483647, %v2906_v44  ;;  %v3176_v44 = vsub.f32 1.0, %v3166_v5 }
 0x605   : > { %v11068_v54 = vpop.permute.xlu0 %6175  ;;  %v11070_v57 = vpop.permute.xlu1 %3539  ;;  %13661 = vst [vmem:[#allocation2_spill] sm:$0xff] %v11093_v45 }
 0x606   : > { %13651 = vst [vmem:[#allocation120_spill] sm:$0xff] %v11068_v54  ;;  %v2986_v54 = vsub.f32 %v13655_v58, %v10646_v51  ;;  %v13663_v51 = vld [vmem:[#allocation64_spill] sm:$0xff] }
 0x607   : > { %8066 = vset.pattern.permute.xlu1 %v13545_v34  ;;  %8326 = vrcp.f32 %v13663_v51 }
 0x608   : > { %5703 = vperm.xlu0 %8162, %v11073_v17   ;;  %5539 = vperm.xlu1 %8066, %v13600_v59   ;;  %v2996_v58 = vand.u32 2147483647, %v2986_v54  ;;  %v13668_v54 = vld [vmem:[#allocation98_spill] sm:$0xff] }
 0x609   : > { %v11084_v41 = vpop.permute.xlu0 %6179  ;;  %v3716_v60 = vsub.f32 %v13668_v54, %v11112_v20 }
 0x60a   : > { %13656 = vst [vmem:[#allocation17_spill] sm:$0xff] %v11084_v41  ;;  %v11090_v13 = vpop.permute.xlu1 %4631  ;;  %v3636_v41 = vsub.f32 %v10849_v1, %v10761_v16  ;;  %v3006_v1 = vsub.f32 1.0, %v2996_v58  ;;  %v13672_v58 = vld [vmem:[#allocation85_spill] sm:$0xff] }
 0x60b   : > { %13659 = vst [vmem:[#allocation125_spill] sm:$0xff] %v11090_v13  ;;  %v11105_v13 = vmul.f32 %v8325_v32, %v13665_v14  ;;  %v3416_v32 = vsub.f32 1.0, %v3406_v27  ;;  %v13670_v14 = vld [vmem:[#allocation77_spill] sm:$0xff]  ;;  %v3726_v54 = vand.u32 2147483647, %v3716_v60  ;;  %v3316_v5 = vmul.f32 %v10712_v21, %v13672_v58  ;;  %v13677_v58 = vld [vmem:[#allocation140_spill] sm:$0xff] }
 0x60c   : > { %5707 = vperm.xlu0 %8162, %v11093_v45   ;;  %5619 = vperm.xlu1 %8066, %v13411_v49   ;;  %v3646_v51 = vand.u32 2147483647, %v3636_v41  ;;  %8328 = vrcp.f32 %v13670_v14 }
 0x60d   : > { %13666 = vst [vmem:[#allocation95_spill] sm:$0xff] %v11105_v13  ;;  %v3426_v41 = vmax.f32 %v3416_v32, 0.0  ;;  %8330 = vrcp.f32 %v13674_v2 }
 0x60e   : > { %v11102_v53 = vpop.permute.xlu0 %4875  ;;  %v3656_v27 = vsub.f32 1.0, %v3646_v51 }
 0x60f   : > { %13664 = vst [vmem:[#allocation18_spill] sm:$0xff] %v11102_v53  ;;  %v11107_v23 = vpop.permute.xlu1 %5281 }
 0x610   : > { %13667 = vst [vmem:[#allocation19_spill] sm:$0xff] %v11107_v23  ;;  %5719 = vperm.xlu0 %8162, %v11105_v13   ;;  %8067 = vset.pattern.permute.xlu1 %v13635_v61  ;;  %v2926_v23 = vsub.f32 1.0, %v2916_v36  ;;  %v3016_v13 = vmax.f32 %v3006_v1, 0.0  ;;  %v3076_v1 = vmul.f32 %v10712_v21, %v13675_v6  ;;  %v13680_v21 = vld [vmem:[#allocation59_spill] sm:$0xff] }
 0x611   : > { %6091 = vperm.xlu1 %8067, %v13409_v62   ;;  %v3186_v62 = vmax.f32 %v3176_v44, 0.0 }
 0x612   : > { %v11119_v52 = vpop.permute.xlu0 %4959  ;;  %v2936_v60 = vmax.f32 %v2926_v23, 0.0  ;;  %v13679_v23 = vld [vmem:[#allocation83_spill] sm:$0xff] }
 0x613   : > { %13669 = vst [vmem:[#allocation57_spill] sm:$0xff] %v11119_v52  ;;  %v11122_v53 = vpop.permute.xlu1 %5361  ;;  %v3326_v14 = vmul.f32 %v3266_v28, %v3186_v62  ;;  %8332 = vrcp.f32 %v13679_v23  ;;  %v13690_v23 = vld [vmem:[#allocation116_spill] sm:$0xff] }
 0x614   : > { %13671 = vst [vmem:[#allocation118_spill] sm:$0xff] %v11122_v53  ;;  %8167 = vset.pattern.permute.xlu0 %v13102_v7  ;;  %v3566_v7 = vmul.f32 %v3506_v56, %v3426_v41  ;;  %v8327_v44 = vpop.eup %8326  ;;  %v3086_v32 = vmul.f32 %v3016_v13, %v2936_v60  ;;  %v13683_v60 = vmov 40  }
 0x615   : > { %5448 = vperm.xlu0 %8167, %v10607_v4   ;;  %8068 = vset.pattern.permute.xlu1 %v13563_v50  ;;  %v3736_v4 = vsub.f32 1.0, %v3726_v54  ;;  %v3336_v51 = vmul.f32 %v3326_v14, %v3316_v5  ;;  %v13681_v5 = vld [vmem:[#allocation25_spill] sm:$0xff] }
 0x616   : > { %v11129_v36 = vpop.permute.xlu0 %4899  ;;  %3783 = vperm.xlu1 %8068, %v13620_v9   ;;  %v3666_v9 = vmax.f32 %v3656_v27, 0.0  ;;  %v3096_v28 = vmul.f32 %v3086_v32, %v3076_v1  ;;  %v11148_v27 = vmul.f32 %v8327_v44, %v13681_v5  ;;  %v13685_v1 = vld [vmem:[#allocation136_spill] sm:$0xff] }
 0x617   : > { %13673 = vst [vmem:[#allocation147_spill] sm:$0xff] %v11129_v36  ;;  %v3556_v36 = vmul.f32 %v10727_v0, %v13677_v58  ;;  %v3746_v54 = vmax.f32 %v3736_v4, 0.0  ;;  %v13687_v44 = vld [vmem:[#allocation36_spill] sm:$0xff] }
 0x618   : > { %v11135_v53 = vpop.permute.xlu1 %5611  ;;  %v3346_v13 = vadd.f32 %v3336_v51, %v3096_v28  ;;  %v2987_v28 = vsub.f32 %v13690_v23, %v11112_v20  ;;  %v13698_v23 = vld [vmem:[#allocation145_spill] sm:$0xff] }
 0x619   : > { %13676 = vst [vmem:[#allocation84_spill] sm:$0xff] %v11135_v53  ;;  %5453 = vperm.xlu0 %8167, %v10618_v40   ;;  %v3576_v56 = vmul.f32 %v3566_v7, %v3556_v36  ;;  %v3806_v62 = vmul.f32 %v3746_v54, %v3666_v9  ;;  %v8329_v6 = vpop.eup %8328  ;;  %v13689_v9 = vld [vmem:[#allocation66_spill] sm:$0xff]  ;;  %v13691_v54 = vld [vmem:[#allocation128_spill] sm:$0xff] }
 0x61a   : > { %v11140_v52 = vpop.permute.xlu0 %4983  ;;  %8069 = vset.pattern.permute.xlu1 %v13573_v24  ;;  %v11162_v32 = vmul.f32 %v8329_v6, %v13687_v44  ;;  %v8331_v51 = vpop.eup %8330  ;;  %8334 = vrcp.f32 %v13689_v9  ;;  %v2997_v44 = vand.u32 2147483647, %v2987_v28 }
 0x61b   : > { %13678 = vst [vmem:[#allocation99_spill] sm:$0xff] %v11140_v52  ;;  %4233 = vperm.xlu1 %8069, %v13680_v21   ;;  %v3586_v14 = vadd.f32 %v3576_v56, %v3346_v13  ;;  %v3157_v56 = vsub.f32 %v13691_v54, %v10761_v16  ;;  %v3477_v54 = vsub.f32 %v13698_v23, %v11112_v20 }
 0x61c   : > { %13688 = vst [vmem:[#allocation55_spill] sm:$0xff] %v11162_v32 }
 0x61d   : > { %5458 = vperm.xlu0 %8167, %v11073_v17   ;;  %v3776_v40 = vpop.permute.xlu1 %3775  ;;  %v3167_v9 = vand.u32 2147483647, %v3157_v56  ;;  %v3007_v56 = vsub.f32 1.0, %v2997_v44  ;;  %v3487_v17 = vand.u32 2147483647, %v3477_v54 }
 0x61e   : > { %v3796_v41 = vmul.f32 %v10727_v0, %v3776_v40  ;;  %v3237_v0 = vsub.f32 %v13685_v1, %v11112_v20  ;;  %v13692_v40 = vld [vmem:[#allocation109_spill] sm:$0xff] }
 0x61f   : > { %v11150_v2 = vpop.permute.xlu0 %5767  ;;  %8070 = vset.pattern.permute.xlu1 %v13683_v60  ;;  %v2907_v13 = vsub.f32 %v13692_v40, %v10761_v16  ;;  %v13699_v40 = vmov 41   ;;  %v3177_v23 = vsub.f32 1.0, %v3167_v9 }
 0x620   : > { %13682 = vst [vmem:[#allocation127_spill] sm:$0xff] %v11150_v2  ;;  %v3816_v58 = vmul.f32 %v3806_v62, %v3796_v41  ;;  %4298 = vperm.xlu1 %8070, %v11148_v27   ;;  %v3247_v62 = vand.u32 2147483647, %v3237_v0  ;;  %v13693_v41 = vld [vmem:[#allocation97_spill] sm:$0xff]  ;;  %v8333_v1 = vpop.eup %8332 }
 0x621   : > { %5463 = vperm.xlu0 %8167, %v11093_v45   ;;  %v3397_v5 = vsub.f32 %v13693_v41, %v10761_v16  ;;  %v2917_v0 = vand.u32 2147483647, %v2907_v13  ;;  %v3187_v54 = vmax.f32 %v3177_v23, 0.0 }
 0x622   : > { %v3826_v7 = vadd.f32 %v3816_v58, %v3586_v14  ;;  %v11155_v36 = vpop.permute.xlu1 %4225  ;;  %v13696_v58 = vld [vmem:[#allocation37_spill] sm:$0xff]  ;;  %v3257_v41 = vsub.f32 1.0, %v3247_v62 }
 0x623   : > { %13684 = vst [vmem:[#allocation111_spill] sm:$0xff] %v11155_v36  ;;  %v11159_v4 = vpop.permute.xlu0 %5771  ;;  %v3407_v52 = vand.u32 2147483647, %v3397_v5  ;;  %v2927_v62 = vsub.f32 1.0, %v2917_v0 }
 0x624   : > { %13686 = vst [vmem:[#allocation91_spill] sm:$0xff] %v11159_v4  ;;  %8071 = vset.pattern.permute.xlu1 %v13580_v35  ;;  %7720 = vmatprep.mubr.msk.f32.mxu0 %vm3845_vm6, %v3826_v7  ;;  %v11182_v7 = vmul.f32 %v8331_v51, %v13696_v58  ;;  %v13701_v58 = vld [vmem:[#allocation40_spill] sm:$0xff]  ;;  %v13704_v4 = vld [vmem:[#allocation53_spill] sm:$0xff]  ;;  %v3267_v5 = vmax.f32 %v3257_v41, 0.0 }
 0x625   : > { %5468 = vperm.xlu0 %8167, %v11162_v32   ;;  %4483 = vperm.xlu1 %8071, %v13680_v21   ;;  %v3637_v32 = vsub.f32 %v10883_v29, %v10761_v16  ;;  %v11194_v28 = vmul.f32 %v8333_v1, %v13701_v58  ;;  %v3717_v13 = vsub.f32 %v13704_v4, %v11112_v20  ;;  %v3417_v16 = vsub.f32 1.0, %v3407_v52 }
 0x626   : > { %13697 = vst [vmem:[#allocation135_spill] sm:$0xff] %v11182_v7  ;;  %v3017_v1 = vmax.f32 %v3007_v56, 0.0  ;;  %v3497_v58 = vsub.f32 1.0, %v3487_v17  ;;  %v13111_v4 = vmov 43   ;;  %v2937_v0 = vmax.f32 %v2927_v62, 0.0  ;;  %v13708_v56 = vld [vmem:[#allocation22_spill] sm:$0xff] }
 0x627   : > { %v11177_v6 = vpop.permute.xlu0 %5855  ;;  %v11179_v14 = vpop.permute.xlu1 %4395  ;;  %13702 = vst [vmem:[#allocation46_spill] sm:$0xff] %v11194_v28  ;;  %v3647_v29 = vand.u32 2147483647, %v3637_v32  ;;  %v3327_v41 = vmul.f32 %v3267_v5, %v3187_v54  ;;  %v3427_v52 = vmax.f32 %v3417_v16, 0.0  ;;  %v11219_v17 = vld [vmem:[%s13282_s4 + $0x2] ss:$0 sm:$0xff] }
 0x628   : > { %13694 = vst [vmem:[#allocation123_spill] sm:$0xff] %v11177_v6  ;;  %13695 = vst [vmem:[#allocation38_spill] sm:$0xff] %v11179_v14  ;;  %v8335_v9 = vpop.eup %8334  ;;  %v3727_v6 = vand.u32 2147483647, %v3717_v13  ;;  %v13709_v13 = vld [vmem:[#allocation139_spill] sm:$0xff]  ;;  %v3507_v5 = vmax.f32 %v3497_v58, 0.0 }
 0x629   : > { %5473 = vperm.xlu0 %8167, %v11182_v7   ;;  %8072 = vset.pattern.permute.xlu1 %v13699_v40  ;;  %v3657_v32 = vsub.f32 1.0, %v3647_v29  ;;  %v11214_v23 = vmul.f32 %v8335_v9, %v13708_v56  ;;  %v3317_v62 = vmul.f32 %v11219_v17, %v13709_v13  ;;  %v11226_v29 = vld [vmem:[%s13282_s4 + $0x3] ss:$0 sm:$0xff]  ;;  %v13711_v9 = vld [vmem:[#allocation113_spill] sm:$0xff] }
 0x62a   : > { %4547 = vperm.xlu1 %8072, %v11148_v27   ;;  %v3737_v16 = vsub.f32 1.0, %v3727_v6  ;;  %v3077_v54 = vmul.f32 %v11219_v17, %v13711_v9  ;;  %v3567_v56 = vmul.f32 %v3507_v5, %v3427_v52 }
 0x62b   : > { %v11191_v51 = vpop.permute.xlu0 %5799  ;;  %v3667_v13 = vmax.f32 %v3657_v32, 0.0 }
 0x62c   : > { %13700 = vst [vmem:[#allocation114_spill] sm:$0xff] %v11191_v51  ;;  %v11196_v45 = vpop.permute.xlu1 %4867 }
 0x62d   : > { %13703 = vst [vmem:[#allocation133_spill] sm:$0xff] %v11196_v45  ;;  %5483 = vperm.xlu0 %8167, %v11194_v28  }
 0x62e   : > { %8073 = vset.pattern.permute.xlu1 %v13586_v55 }
 0x62f   : > { %v11202_v51 = vpop.permute.xlu0 %5883  ;;  %4955 = vperm.xlu1 %8073, %v13576_v48  }
 0x630   : > { %13705 = vst [vmem:[#allocation5_spill] sm:$0xff] %v11202_v51  ;;  %v11205_v44 = vpop.permute.xlu1 %4947  ;;  %v3087_v51 = vmul.f32 %v3017_v1, %v2937_v0  ;;  %v3337_v0 = vmul.f32 %v3327_v41, %v3317_v62  ;;  %v13724_v62 = vmov 47  }
 0x631   : > { %13706 = vst [vmem:[#allocation108_spill] sm:$0xff] %v11205_v44  ;;  %8170 = vset.pattern.permute.xlu0 %v13111_v4  ;;  %v3747_v4 = vmax.f32 %v3737_v16, 0.0  ;;  %v5399_v44 = vsub.f32 %v10918_v31, %v11112_v20 }
 0x632   : > { %5027 = vperm.xlu0 %8170, %v11148_v27   ;;  %v3097_v6 = vmul.f32 %v3087_v51, %v3077_v54 }
 0x633   : > { %8074 = vset.pattern.permute.xlu1 %v13593_v26  ;;  %v5409_v63 = vand.u32 2147483647, %v5399_v44 }
 0x634   : > { %v11210_v53 = vpop.permute.xlu0 %6007  ;;  %5775 = vperm.xlu1 %8074, %v13449_v38   ;;  %v3557_v38 = vmul.f32 %v11226_v29, %v11070_v57  ;;  %v3347_v36 = vadd.f32 %v3337_v0, %v3097_v6 }
 0x635   : > { %13707 = vst [vmem:[#allocation146_spill] sm:$0xff] %v11210_v53  ;;  %v11230_v1 = vpop.permute.xlu1 %5847  ;;  %v3807_v53 = vmul.f32 %v3747_v4, %v3667_v13 }
 0x636   : > { %13710 = vst [vmem:[#allocation80_spill] sm:$0xff] %v11230_v1  ;;  %5031 = vperm.xlu0 %8170, %v11214_v23   ;;  %v3577_v14 = vmul.f32 %v3567_v56, %v3557_v38 }
 0x638   : > { %v11235_v58 = vpop.permute.xlu0 %6011  ;;  %8075 = vset.pattern.permute.xlu1 %v13563_v50  ;;  %v3587_v41 = vadd.f32 %v3577_v14, %v3347_v36  ;;  %v13714_v50 = vld [vmem:[#allocation48_spill] sm:$0xff] }
 0x639   : > { %13712 = vst [vmem:[#allocation94_spill] sm:$0xff] %v11235_v58  ;;  %3787 = vperm.xlu1 %8075, %v13642_v47  }
 0x63a   : > { %5035 = vperm.xlu0 %8170, %v13610_v37   ;;  %v3780_v57 = vpop.permute.xlu1 %3779 }
 0x63b   : > { %v3797_v2 = vmul.f32 %v11226_v29, %v3780_v57 }
 0x63c   : > { %v11241_v9 = vpop.permute.xlu0 %6015 }
 0x63d   : > { %13713 = vst [vmem:[#allocation6_spill] sm:$0xff] %v11241_v9  ;;  %v3817_v52 = vmul.f32 %v3807_v53, %v3797_v2  ;;  %8076 = vset.pattern.permute.xlu1 %v13573_v24  ;;  %v13742_v9 = vld [vmem:[#allocation121_spill] sm:$0xff] }
 0x63e   : > { %5039 = vperm.xlu0 %8170, %v13613_v46   ;;  %4157 = vperm.xlu1 %8076, %v13714_v50   ;;  %v13719_v46 = vmov 46  }
 0x63f   : > { %v3827_v51 = vadd.f32 %v3817_v52, %v3587_v41  ;;  %v11246_v32 = vpop.permute.xlu1 %4229  ;;  %v13731_v41 = vmov 42  }
 0x640   : > { %13715 = vst [vmem:[#allocation104_spill] sm:$0xff] %v11246_v32  ;;  %v11248_v47 = vpop.permute.xlu0 %6099 }
 0x641   : > { %13716 = vst [vmem:[#allocation131_spill] sm:$0xff] %v11248_v47  ;;  %7721 = vmatmul.mubr.msk.f32.gmra.mxu0 %vm3845_vm6, %v3827_v51 }
 0x642   : > { %5059 = vperm.xlu0 %8170, %v10999_v11   ;;  %8078 = vset.pattern.permute.xlu1 %v13683_v60  ;;  %v13739_v60 = vmov 45  }
 0x643   : > { %4303 = vperm.xlu1 %8078, %v11214_v23  }
 0x644   : > { %v11254_v37 = vpop.permute.xlu0 %6119  ;;  %v11256_v53 = vpop.permute.xlu1 %4399 }
 0x645   : > { %13717 = vst [vmem:[#allocation112_spill] sm:$0xff] %v11254_v37  ;;  %13718 = vst [vmem:[#allocation47_spill] sm:$0xff] %v11256_v53  ;;  %v13734_v37 = vmov 44  }
 0x646   : > { %8173 = vset.pattern.permute.xlu0 %v13719_v46  ;;  %v13738_v46 = vld [vmem:[#allocation103_spill] sm:$0xff] }
 0x647   : > { %5955 = vperm.xlu0 %8173, %v11182_v7   ;;  %8079 = vset.pattern.permute.xlu1 %v13580_v35 }
 0x648   : > { %v11261_v2 = vpop.permute.xlu0 %6123  ;;  %4407 = vperm.xlu1 %8079, %v13714_v50  }
 0x649   : > { %13720 = vst [vmem:[#allocation88_spill] sm:$0xff] %v11261_v2  ;;  %v11264_v36 = vpop.permute.xlu1 %4871 }
 0x64a   : > { %13721 = vst [vmem:[#allocation42_spill] sm:$0xff] %v11264_v36  ;;  %v13744_v36 = vld [vmem:[#allocation143_spill] sm:$0xff] }
 0x64b   : > { %5963 = vperm.xlu0 %8173, %v11194_v28  }
 0x64c   : > { %8081 = vset.pattern.permute.xlu1 %v13699_v40 }
 0x64d   : > { %v11268_v14 = vpop.permute.xlu0 %4555  ;;  %4551 = vperm.xlu1 %8081, %v11214_v23   ;;  %v11271_v4 = vpop.permute.xlu1 %4951 }
 0x64e   : > { %13722 = vst [vmem:[#allocation78_spill] sm:$0xff] %v11268_v14  ;;  %13723 = vst [vmem:[#allocation82_spill] sm:$0xff] %v11271_v4  ;;  %v13745_v4 = vld [vmem:[#allocation138_spill] sm:$0xff] }
 0x64f   : > { %8177 = vset.pattern.permute.xlu0 %v13724_v62  ;;  %v11322_v62 = vld [vmem:[%s13282_s4 + $0x1] ss:$0 sm:$0xff] }
 0x650   : > { %v2908_v40 = vsub.f32 %v13738_v46, %v11322_v62 }
 0x651   : > { %v11274_v5 = vpop.permute.xlu0 %4559  ;;  %8082 = vset.pattern.permute.xlu1 %v13586_v55 }
 0x652   : > { %13725 = vst [vmem:[#allocation35_spill] sm:$0xff] %v11274_v5  ;;  %4879 = vperm.xlu1 %8082, %v13600_v59   ;;  %v11278_v16 = vpop.permute.xlu1 %5851  ;;  %v2918_v14 = vand.u32 2147483647, %v2908_v40 }
 0x653   : > { %13726 = vst [vmem:[#allocation73_spill] sm:$0xff] %v11278_v16  ;;  %v13743_v16 = vld [vmem:[#allocation129_spill] sm:$0xff] }
 0x654   : > { %v3238_v5 = vsub.f32 %v13743_v16, %v11112_v20  ;;  %v2928_v16 = vsub.f32 1.0, %v2918_v14 }
 0x655   : > { %v11280_v38 = vpop.permute.xlu0 %4563 }
 0x656   : > { %8083 = vset.pattern.permute.xlu1 %v13593_v26 }
 0x657   : > { %5779 = vperm.xlu1 %8083, %v13600_v59   ;;  %v11284_v54 = vpop.permute.xlu1 %3543 }
 0x659   : > { %v11286_v0 = vpop.permute.xlu0 %4567 }
 0x65a   : > { %13727 = vst [vmem:[#allocation89_spill] sm:$0xff] %v11286_v0 }
 0x65b   : > { %5859 = vperm.xlu1 %8083, %v13411_v49  }
 0x65c   : > { %v11289_v56 = vpop.permute.xlu1 %4715 }
 0x65d   : > { %13728 = vst [vmem:[#allocation39_spill] sm:$0xff] %v11289_v56  ;;  %v11291_v13 = vpop.permute.xlu0 %4579 }
 0x65e   : > { %13729 = vst [vmem:[#allocation75_spill] sm:$0xff] %v11291_v13 }
 0x65f   : > { %8084 = vset.pattern.permute.xlu1 %v13534_v8 }
 0x660   : > { %4723 = vperm.xlu1 %8084, %v13680_v21  }
 0x661   : > { %v5286_v6 = vpop.permute.xlu1 %5285 }
 0x662   : > { %v11295_v57 = vpop.permute.xlu0 %4308  ;;  %v5318_v53 = vsub.f32 %v5286_v6, %v11322_v62 }
 0x663   : > { %13730 = vst [vmem:[#allocation81_spill] sm:$0xff] %v11295_v57 }
 0x664   : > { %8085 = vset.pattern.permute.xlu1 %v13731_v41 }
 0x665   : > { %4787 = vperm.xlu1 %8085, %v11148_v27  }
 0x666   : > { %v11299_v52 = vpop.permute.xlu0 %4313  ;;  %v5536_v51 = vpop.permute.xlu1 %5535 }
 0x667   : > { %13732 = vst [vmem:[#allocation26_spill] sm:$0xff] %v11299_v52 }
 0x669   : > { %8086 = vset.pattern.permute.xlu1 %v13543_v25 }
 0x66a   : > { %v11302_v49 = vpop.permute.xlu0 %4318  ;;  %5373 = vperm.xlu1 %8086, %v13680_v21   ;;  %v5616_v2 = vpop.permute.xlu1 %5615 }
 0x66e   : > { %v11305_v13 = vpop.permute.xlu0 %4323  ;;  %8087 = vset.pattern.permute.xlu1 %v13734_v37 }
 0x66f   : > { %13733 = vst [vmem:[#allocation126_spill] sm:$0xff] %v11305_v13  ;;  %5438 = vperm.xlu1 %8087, %v10585_v43   ;;  %v11309_v28 = vpop.permute.xlu1 %6087 }
 0x670   : > { %13735 = vst [vmem:[#allocation105_spill] sm:$0xff] %v11309_v28  ;;  %v5568_v28 = vsub.f32 %v5536_v51, %v11322_v62 }
 0x672   : > { %v11311_v11 = vpop.permute.xlu0 %4333 }
 0x673   : > { %13736 = vst [vmem:[#allocation119_spill] sm:$0xff] %v11311_v11  ;;  %8088 = vset.pattern.permute.xlu1 %v13545_v34  ;;  %v13740_v11 = vld [vmem:[#allocation107_spill] sm:$0xff] }
 0x674   : > { %5623 = vperm.xlu1 %8088, %v13680_v21   ;;  %v11315_v27 = vpop.permute.xlu1 %3547  ;;  %v2988_v47 = vsub.f32 %v13740_v11, %v11112_v20  ;;  %v3478_v11 = vsub.f32 %v13744_v36, %v11112_v20  ;;  %v5398_v36 = vsub.f32 %v10909_v30, %v11112_v20 }
 0x676   : > { %v11317_v7 = vpop.permute.xlu0 %4343  ;;  %v2998_v57 = vand.u32 2147483647, %v2988_v47  ;;  %v5648_v47 = vsub.f32 %v5616_v2, %v11112_v20  ;;  %v2938_v2 = vmax.f32 %v2928_v16, 0.0  ;;  %v5408_v1 = vand.u32 2147483647, %v5398_v36 }
 0x677   : > { %13737 = vst [vmem:[#allocation87_spill] sm:$0xff] %v11317_v7  ;;  %v3158_v7 = vsub.f32 %v13742_v9, %v11322_v62  ;;  %v3398_v9 = vsub.f32 %v13745_v4, %v11322_v62  ;;  %v5578_v16 = vand.u32 2147483647, %v5568_v28 }
 0x678   : > { %8089 = vset.pattern.permute.xlu1 %v13739_v60  ;;  %v3008_v40 = vsub.f32 1.0, %v2998_v57  ;;  %v3638_v57 = vsub.f32 %v10929_v18, %v11322_v62 }
 0x679   : > { %5687 = vperm.xlu1 %8089, %v10585_v43   ;;  %v11330_v58 = vpop.permute.xlu1 %4719  ;;  %v3168_v46 = vand.u32 2147483647, %v3158_v7  ;;  %v3488_v7 = vand.u32 2147483647, %v3478_v11  ;;  %v3408_v4 = vand.u32 2147483647, %v3398_v9 }
 0x67a   : > { %13741 = vst [vmem:[#allocation33_spill] sm:$0xff] %v11330_v58  ;;  %v3248_v58 = vand.u32 2147483647, %v3238_v5  ;;  %v3018_v30 = vmax.f32 %v3008_v40, 0.0  ;;  %v5658_v11 = vand.u32 2147483647, %v5648_v47 }
 0x67b   : > { %v11336_v52 = vpop.permute.xlu0 %5695  ;;  %v3178_v32 = vsub.f32 1.0, %v3168_v46  ;;  %v5328_v46 = vand.u32 2147483647, %v5318_v53  ;;  %v3498_v9 = vsub.f32 1.0, %v3488_v7  ;;  %v13748_v53 = vld [vmem:[#allocation122_spill] sm:$0xff]  ;;  %v13749_v7 = vld [vmem:[#allocation92_spill] sm:$0xff] }
 0x67c   : > { %v3258_v5 = vsub.f32 1.0, %v3248_v58  ;;  %v3648_v40 = vand.u32 2147483647, %v3638_v57  ;;  %v3318_v36 = vmul.f32 %v11219_v17, %v13749_v7 }
 0x67d   : > { %8090 = vset.pattern.permute.xlu1 %v13635_v61  ;;  %v3188_v58 = vmax.f32 %v3178_v32, 0.0  ;;  %v5338_v47 = vsub.f32 1.0, %v5328_v46 }
 0x67e   : > { %6095 = vperm.xlu1 %8090, %v13576_v48   ;;  %v5290_v43 = vpop.permute.xlu1 %5289  ;;  %v3718_v48 = vsub.f32 %v10935_v33, %v11112_v20  ;;  %v3268_v45 = vmax.f32 %v3258_v5, 0.0  ;;  %v3508_v5 = vmax.f32 %v3498_v9, 0.0  ;;  %v3658_v46 = vsub.f32 1.0, %v3648_v40 }
 0x67f   : > { %v11344_v56 = vpop.permute.xlu0 %5699  ;;  %v5319_v33 = vsub.f32 %v5290_v43, %v11322_v62  ;;  %v3078_v43 = vmul.f32 %v11219_v17, %v13748_v53  ;;  %v5588_v53 = vsub.f32 1.0, %v5578_v16 }
 0x680   : > { %v3728_v51 = vand.u32 2147483647, %v3718_v48  ;;  %v5668_v48 = vsub.f32 1.0, %v5658_v11 }
 0x681   : > { %v5329_v31 = vand.u32 2147483647, %v5319_v33  ;;  %v5598_v16 = vmax.f32 %v5588_v53, 0.0 }
 0x682   : > { %8091 = vset.pattern.permute.xlu1 %v13534_v8 }
 0x683   : > { %v11354_v14 = vpop.permute.xlu0 %5703  ;;  %4647 = vperm.xlu1 %8091, %v13714_v50   ;;  %v5540_v6 = vpop.permute.xlu1 %5539  ;;  %v5339_v33 = vsub.f32 1.0, %v5329_v31 }
 0x684   : > { %13746 = vst [vmem:[#allocation102_spill] sm:$0xff] %v11354_v14  ;;  %v5569_v8 = vsub.f32 %v5540_v6, %v11322_v62  ;;  %v3418_v14 = vsub.f32 1.0, %v3408_v4  ;;  %v5418_v4 = vsub.f32 1.0, %v5408_v1  ;;  %v3738_v6 = vsub.f32 1.0, %v3728_v51 }
 0x685   : > { %v5678_v1 = vmax.f32 %v5668_v48, 0.0  ;;  %v5419_v51 = vsub.f32 1.0, %v5409_v63  ;;  %v5349_v48 = vmax.f32 %v5339_v33, 0.0 }
 0x686   : > { %v5579_v28 = vand.u32 2147483647, %v5569_v8  ;;  %v3428_v0 = vmax.f32 %v3418_v14, 0.0  ;;  %v3088_v8 = vmul.f32 %v3018_v30, %v2938_v2  ;;  %v5428_v14 = vmax.f32 %v5418_v4, 0.0 }
 0x687   : > { %v11363_v13 = vpop.permute.xlu0 %5707  ;;  %8093 = vset.pattern.permute.xlu1 %v13731_v41  ;;  %v5620_v18 = vpop.permute.xlu1 %5619  ;;  %v5738_v30 = vmul.f32 %v5678_v1, %v5598_v16 }
 0x688   : > { %13747 = vst [vmem:[#allocation64_spill] sm:$0xff] %v11363_v13  ;;  %v5649_v32 = vsub.f32 %v5620_v18, %v11112_v20  ;;  %4791 = vperm.xlu1 %8093, %v11214_v23   ;;  %v3328_v13 = vmul.f32 %v3268_v45, %v3188_v58  ;;  %v3558_v23 = vmul.f32 %v11226_v29, %v11284_v54  ;;  %v5348_v18 = vmax.f32 %v5338_v47, 0.0 }
 0x689   : > { %v5589_v9 = vsub.f32 1.0, %v5579_v28  ;;  %v3568_v45 = vmul.f32 %v3508_v5, %v3428_v0  ;;  %v3748_v58 = vmax.f32 %v3738_v6, 0.0  ;;  %v5728_v54 = vmul.f32 %v11219_v17, %v11336_v52 }
 0x68a   : > { %v5659_v41 = vand.u32 2147483647, %v5649_v32  ;;  %v3338_v44 = vmul.f32 %v3328_v13, %v3318_v36  ;;  %v3098_v40 = vmul.f32 %v3088_v8, %v3078_v43  ;;  %v3668_v47 = vmax.f32 %v3658_v46, 0.0 }
 0x68b   : > { %v11372_v57 = vpop.permute.xlu0 %5719  ;;  %v3578_v32 = vmul.f32 %v3568_v45, %v3558_v23  ;;  %v5498_v2 = vmul.f32 %v5428_v14, %v5348_v18  ;;  %v5599_v31 = vmax.f32 %v5589_v9, 0.0  ;;  %v5748_v52 = vmul.f32 %v5738_v30, %v5728_v54  ;;  %v13752_v14 = vld [vmem:[#allocation106_spill] sm:$0xff] }
 0x68c   : > { %13750 = vst [vmem:[#allocation43_spill] sm:$0xff] %v11372_v57  ;;  %v5669_v3 = vsub.f32 1.0, %v5659_v41  ;;  %8094 = vset.pattern.permute.xlu1 %v13543_v25  ;;  %v11377_v11 = vpop.permute.xlu1 %6091  ;;  %v3348_v13 = vadd.f32 %v3338_v44, %v3098_v40  ;;  %v3808_v63 = vmul.f32 %v3748_v58, %v3668_v47  ;;  %v5729_v46 = vmul.f32 %v11219_v17, %v11344_v56 }
 0x68d   : > { %5297 = vperm.xlu1 %8094, %v13714_v50   ;;  %v4180_v56 = vsub.f32 %v13752_v14, %v11322_v62  ;;  %v13759_v14 = vld [vmem:[#allocation51_spill] sm:$0xff] }
 0x68e   : > { %v5679_v41 = vmax.f32 %v5669_v3, 0.0  ;;  %v5429_v3 = vmax.f32 %v5419_v51, 0.0  ;;  %v3588_v4 = vadd.f32 %v3578_v32, %v3348_v13  ;;  %v4430_v51 = vsub.f32 %v10785_v42, %v11322_v62  ;;  %v13755_v32 = vld [vmem:[#allocation117_spill] sm:$0xff]  ;;  %v13757_v42 = vld [vmem:[#allocation110_spill] sm:$0xff] }
 0x68f   : > { %v4190_v47 = vand.u32 2147483647, %v4180_v56  ;;  %v3479_v13 = vsub.f32 %v10921_v22, %v11112_v20  ;;  %v13760_v56 = vld [vmem:[#allocation56_spill] sm:$0xff] }
 0x690   : > { %v5449_v7 = vpop.permute.xlu0 %5448  ;;  %v5739_v43 = vmul.f32 %v5679_v41, %v5599_v31  ;;  %v5499_v8 = vmul.f32 %v5429_v3, %v5349_v48  ;;  %v13754_v41 = vld [vmem:[#allocation90_spill] sm:$0xff]  ;;  %v4440_v48 = vand.u32 2147483647, %v4430_v51  ;;  %v3719_v51 = vsub.f32 %v13760_v56, %v11112_v20 }
 0x691   : > { %v5488_v28 = vmul.f32 %v11219_v17, %v5449_v7  ;;  %8096 = vset.pattern.permute.xlu1 %v13734_v37  ;;  %v3784_v0 = vpop.permute.xlu1 %3783  ;;  %v3239_v40 = vsub.f32 %v13754_v41, %v11112_v20  ;;  %v2989_v7 = vsub.f32 %v13755_v32, %v11112_v20  ;;  %v13787_v37 = vld [vmem:[#allocation60_spill] sm:$0xff] }
 0x692   : > { %v3798_v36 = vmul.f32 %v11226_v29, %v3784_v0  ;;  %5443 = vperm.xlu1 %8096, %v10596_v10   ;;  %v5749_v45 = vmul.f32 %v5739_v43, %v5729_v46  ;;  %v13758_v43 = vld [vmem:[#allocation148_spill] sm:$0xff] }
 0x693   : > { %v5508_v5 = vmul.f32 %v5498_v2, %v5488_v28  ;;  %v13756_v2 = vld [vmem:[#allocation134_spill] sm:$0xff]  ;;  %v2909_v28 = vsub.f32 %v13757_v42, %v11322_v62  ;;  %v3249_v0 = vand.u32 2147483647, %v3239_v40  ;;  %v2999_v3 = vand.u32 2147483647, %v2989_v7 }
 0x694   : > { %v3818_v6 = vmul.f32 %v3808_v63, %v3798_v36  ;;  %v5454_v53 = vpop.permute.xlu0 %5453  ;;  %v3159_v30 = vsub.f32 %v13756_v2, %v11322_v62  ;;  %v4590_v2 = vmul.f32 %v11219_v17, %v11280_v38 }
 0x695   : > { %v11388_v23 = vadd.f32 %v5748_v52, %v5508_v5  ;;  %v5489_v18 = vmul.f32 %v11219_v17, %v5454_v53  ;;  %v3399_v5 = vsub.f32 %v13758_v43, %v11322_v62  ;;  %v2919_v46 = vand.u32 2147483647, %v2909_v28  ;;  %v13761_v28 = vld [vmem:[#allocation61_spill] sm:$0xff] }
 0x696   : > { %v3828_v1 = vadd.f32 %v3818_v6, %v3588_v4  ;;  %8097 = vset.pattern.permute.xlu1 %v13545_v34  ;;  %v4234_v33 = vpop.permute.xlu1 %4233  ;;  %v3169_v52 = vand.u32 2147483647, %v3159_v30  ;;  %v4450_v4 = vsub.f32 1.0, %v4440_v48  ;;  %v4350_v30 = vmul.f32 %v11219_v17, %v11302_v49  ;;  %v13763_v49 = vld [vmem:[#allocation132_spill] sm:$0xff] }
 0x697   : > { %13751 = vst [vmem:[#allocation98_spill] sm:$0xff] %v11388_v23  ;;  %v5509_v9 = vmul.f32 %v5499_v8, %v5489_v18  ;;  %v4260_v44 = vsub.f32 %v4234_v33, %v11112_v20  ;;  %5547 = vperm.xlu1 %8097, %v13714_v50   ;;  %v3259_v18 = vsub.f32 1.0, %v3249_v0  ;;  %v3489_v8 = vand.u32 2147483647, %v3479_v13 }
 0x698   : > { %7723 = vmatprep.mubr.msk.f32.mxu0 %vm3845_vm6, %v3828_v1  ;;  %v3639_v1 = vsub.f32 %v10983_v39, %v11322_v62 }
 0x699   : > { %v11397_v58 = vadd.f32 %v5749_v45, %v5509_v9  ;;  %v4270_v16 = vand.u32 2147483647, %v4260_v44  ;;  %v3179_v45 = vsub.f32 1.0, %v3169_v52  ;;  %v3409_v44 = vand.u32 2147483647, %v3399_v5 }
 0x69a   : > { %v3269_v32 = vmax.f32 %v3259_v18, 0.0  ;;  %v3499_v7 = vsub.f32 1.0, %v3489_v8  ;;  %v3649_v39 = vand.u32 2147483647, %v3639_v1  ;;  %v3559_v18 = vmul.f32 %v11226_v29, %v11315_v27 }
 0x69b   : > { %13753 = vst [vmem:[#allocation77_spill] sm:$0xff] %v11397_v58  ;;  %8098 = vset.pattern.permute.xlu1 %v13739_v60  ;;  %v11402_v54 = vpop.permute.xlu1 %4298  ;;  %v4280_v31 = vsub.f32 1.0, %v4270_v16  ;;  %v4460_v16 = vmax.f32 %v4450_v4, 0.0  ;;  %v3189_v42 = vmax.f32 %v3179_v45, 0.0  ;;  %v3419_v13 = vsub.f32 1.0, %v3409_v44 }
 0x69c   : > { %5691 = vperm.xlu1 %8098, %v10596_v10   ;;  %v4200_v10 = vsub.f32 1.0, %v4190_v47  ;;  %v2929_v47 = vsub.f32 1.0, %v2919_v46  ;;  %v3509_v43 = vmax.f32 %v3499_v7, 0.0  ;;  %v3659_v5 = vsub.f32 1.0, %v3649_v39  ;;  %v13765_v7 = vld [vmem:[#allocation49_spill] sm:$0xff] }
 0x69d   : > { %v4290_v6 = vmax.f32 %v4280_v31, 0.0  ;;  %v3329_v52 = vmul.f32 %v3269_v32, %v3189_v42  ;;  %v13767_v42 = vld [vmem:[#allocation3_spill] sm:$0xff] }
 0x69e   : > { %v4210_v22 = vmax.f32 %v4200_v10, 0.0  ;;  %v3669_v45 = vmax.f32 %v3659_v5, 0.0 }
 0x6a0   : > { %8099 = vset.pattern.permute.xlu1 %v13635_v61  ;;  %v4484_v63 = vpop.permute.xlu1 %4483  ;;  %v4360_v41 = vmul.f32 %v4290_v6, %v4210_v22  ;;  %v3319_v6 = vmul.f32 %v11219_v17, %v13763_v49  ;;  %v13764_v22 = vld [vmem:[#allocation115_spill] sm:$0xff] }
 0x6a1   : > { %v4510_v36 = vsub.f32 %v4484_v63, %v11112_v20  ;;  %6019 = vperm.xlu1 %8099, %v13600_v59   ;;  %v3009_v59 = vsub.f32 1.0, %v2999_v3  ;;  %v3729_v63 = vand.u32 2147483647, %v3719_v51  ;;  %v2939_v3 = vmax.f32 %v2929_v47, 0.0 }
 0x6a2   : > { %v4370_v10 = vmul.f32 %v4360_v41, %v4350_v30  ;;  %v3079_v1 = vmul.f32 %v11219_v17, %v13764_v22 }
 0x6a3   : > { %v4520_v53 = vand.u32 2147483647, %v4510_v36  ;;  %v3019_v31 = vmax.f32 %v3009_v59, 0.0  ;;  %v3739_v46 = vsub.f32 1.0, %v3729_v63  ;;  %v13768_v63 = vld [vmem:[#allocation101_spill] sm:$0xff] }
 0x6a5   : > { %v4530_v33 = vsub.f32 1.0, %v4520_v53  ;;  %8100 = vset.pattern.permute.xlu1 %v13573_v24  ;;  %v11423_v9 = vpop.permute.xlu1 %4547  ;;  %v3089_v38 = vmul.f32 %v3019_v31, %v2939_v3  ;;  %v3429_v53 = vmax.f32 %v3419_v13, 0.0  ;;  %v3749_v56 = vmax.f32 %v3739_v46, 0.0 }
 0x6a6   : > { %4161 = vperm.xlu1 %8100, %v13759_v14   ;;  %v4178_v13 = vsub.f32 %v13767_v42, %v11322_v62 }
 0x6a7   : > { %v4540_v40 = vmax.f32 %v4530_v33, 0.0  ;;  %v3339_v33 = vmul.f32 %v3329_v52, %v3319_v6  ;;  %v3569_v59 = vmul.f32 %v3509_v43, %v3429_v53  ;;  %v3099_v44 = vmul.f32 %v3089_v38, %v3079_v1  ;;  %v13770_v43 = vld [vmem:[#allocation7_spill] sm:$0xff]  ;;  %v13771_v38 = vld [vmem:[#allocation9_spill] sm:$0xff] }
 0x6a8   : > { %v3809_v41 = vmul.f32 %v3749_v56, %v3669_v45  ;;  %v4426_v52 = vsub.f32 %v10739_v19, %v11322_v62  ;;  %v4508_v5 = vsub.f32 %v13770_v43, %v11112_v20  ;;  %v4511_v49 = vsub.f32 %v13771_v38, %v11112_v20  ;;  %v11470_v45 = vpop.permute.xlu0 %5458  ;;  %v13772_v19 = vld [vmem:[#allocation8_spill] sm:$0xff] }
 0x6a9   : > { %v4600_v48 = vmul.f32 %v4540_v40, %v4460_v16  ;;  %v3579_v51 = vmul.f32 %v3569_v59, %v3559_v18  ;;  %v3349_v40 = vadd.f32 %v3339_v33, %v3099_v44  ;;  %v4188_v18 = vand.u32 2147483647, %v4178_v13 }
 0x6aa   : > { %4241 = vperm.xlu1 %8100, %v13761_v28   ;;  %v11433_v0 = vpop.permute.xlu1 %4955  ;;  %v4436_v33 = vand.u32 2147483647, %v4426_v52  ;;  %v4518_v59 = vand.u32 2147483647, %v4508_v5  ;;  %v4509_v44 = vsub.f32 %v13772_v19, %v11112_v20  ;;  %v4521_v56 = vand.u32 2147483647, %v4511_v49 }
 0x6ab   : > { %v4610_v36 = vmul.f32 %v4600_v48, %v4590_v2  ;;  %v3589_v47 = vadd.f32 %v3579_v51, %v3349_v40  ;;  %v13766_v48 = vld [vmem:[#allocation100_spill] sm:$0xff]  ;;  %v13773_v51 = vld [vmem:[#allocation10_spill] sm:$0xff]  ;;  %v13776_v49 = vld [vmem:[#allocation45_spill] sm:$0xff] }
 0x6ac   : > { %v4257_v31 = vsub.f32 %v13766_v48, %v11112_v20  ;;  %v4531_v42 = vsub.f32 1.0, %v4521_v56 }
 0x6ad   : > { %v11435_v4 = vadd.f32 %v4610_v36, %v4370_v10  ;;  %v4179_v10 = vsub.f32 %v13768_v63, %v11322_v62  ;;  %v13769_v36 = vld [vmem:[#allocation141_spill] sm:$0xff]  ;;  %v13774_v63 = vld [vmem:[#allocation44_spill] sm:$0xff] }
 0x6ae   : > { %8101 = vset.pattern.permute.xlu1 %v13580_v35  ;;  %v4261_v3 = vsub.f32 %v13769_v36, %v11112_v20  ;;  %v4267_v46 = vand.u32 2147483647, %v4257_v31  ;;  %v4519_v31 = vand.u32 2147483647, %v4509_v44  ;;  %v11482_v36 = vpop.permute.xlu0 %5463  ;;  %v4541_v19 = vmax.f32 %v4531_v42, 0.0  ;;  %v13781_v42 = vld [vmem:[#allocation27_spill] sm:$0xff] }
 0x6af   : > { %13762 = vst [vmem:[#allocation85_spill] sm:$0xff] %v11435_v4  ;;  %4411 = vperm.xlu1 %8101, %v13759_v14   ;;  %v11443_v8 = vpop.permute.xlu1 %5775  ;;  %v4189_v22 = vand.u32 2147483647, %v4179_v10  ;;  %v4668_v10 = vsub.f32 %v13774_v63, %v11322_v62  ;;  %13775 = vst [vmem:[#allocation79_spill] sm:$0xff] %v11482_v36  ;;  %v13783_v63 = vld [vmem:[#allocation126_spill] sm:$0xff] }
 0x6b0   : > { %v4271_v1 = vand.u32 2147483647, %v4261_v3  ;;  %v4277_v40 = vsub.f32 1.0, %v4267_v46 }
 0x6b1   : > { %v4678_v56 = vand.u32 2147483647, %v4668_v10  ;;  %v4351_v10 = vmul.f32 %v11219_v17, %v13783_v63 }
 0x6b2   : > { %v11484_v43 = vmax.f32 %v4277_v40, 0.0 }
 0x6b3   : > { %4491 = vperm.xlu1 %8101, %v13761_v28  }
 0x6b4   : > { %v3788_v16 = vpop.permute.xlu1 %3787 }
 0x6b5   : > { %v3799_v27 = vmul.f32 %v11226_v29, %v3788_v16  ;;  %v4747_v16 = vsub.f32 %v13773_v51, %v11112_v20  ;;  %v5316_v51 = vsub.f32 %v10902_v15, %v11322_v62  ;;  %v4176_v15 = vsub.f32 %v13781_v42, %v11322_v62 }
 0x6b7   : > { %v3819_v32 = vmul.f32 %v3809_v41, %v3799_v27  ;;  %8102 = vset.pattern.permute.xlu1 %v13586_v55  ;;  %v4198_v27 = vsub.f32 1.0, %v4188_v18  ;;  %v4757_v13 = vand.u32 2147483647, %v4747_v16  ;;  %v4256_v16 = vsub.f32 %v10964_v12, %v11112_v20 }
 0x6b8   : > { %4883 = vperm.xlu1 %8102, %v13765_v7   ;;  %v5326_v42 = vand.u32 2147483647, %v5316_v51 }
 0x6b9   : > { %v3829_v39 = vadd.f32 %v3819_v32, %v3589_v47  ;;  %v4158_v2 = vpop.permute.xlu1 %4157  ;;  %v4199_v47 = vsub.f32 1.0, %v4189_v22  ;;  %v11486_v5 = vmax.f32 %v4198_v27, 0.0  ;;  %v4767_v44 = vsub.f32 1.0, %v4757_v13  ;;  %v13777_v27 = vld [vmem:[#allocation50_spill] sm:$0xff]  ;;  %v13782_v13 = vld [vmem:[#allocation89_spill] sm:$0xff] }
 0x6ba   : > { %v4181_v30 = vsub.f32 %v4158_v2, %v11322_v62  ;;  %v4446_v2 = vsub.f32 1.0, %v4436_v33  ;;  %v4591_v12 = vmul.f32 %v11219_v17, %v13782_v13  ;;  %v4266_v57 = vand.u32 2147483647, %v4256_v16  ;;  %v13790_v16 = vld [vmem:[#allocation23_spill] sm:$0xff] }
 0x6bb   : > { %7724 = vmatmul.mubr.msk.f32.gmra.mxu0 %vm3845_vm6, %v3829_v39  ;;  %v4281_v39 = vsub.f32 1.0, %v4271_v1  ;;  %v11488_v38 = vmax.f32 %v4199_v47, 0.0  ;;  %v11527_v63 = vmax.f32 %v4767_v44, 0.0 }
 0x6bc   : > { %4963 = vperm.xlu1 %8102, %v13680_v21   ;;  %v4191_v6 = vand.u32 2147483647, %v4181_v30  ;;  %v4528_v30 = vsub.f32 1.0, %v4518_v59  ;;  %v11492_v18 = vmax.f32 %v4446_v2, 0.0  ;;  %v4529_v59 = vsub.f32 1.0, %v4519_v31  ;;  %v13779_v2 = vld [vmem:[#allocation72_spill] sm:$0xff] }
 0x6bd   : > { %v4291_v46 = vmax.f32 %v4281_v39, 0.0  ;;  %v4276_v44 = vsub.f32 1.0, %v4266_v57  ;;  %v13795_v57 = vld [vmem:[#allocation31_spill] sm:$0xff] }
 0x6be   : > { %v11468_v53 = vpop.permute.xlu1 %4303  ;;  %v4201_v41 = vsub.f32 1.0, %v4191_v6  ;;  %v4669_v6 = vsub.f32 %v13776_v49, %v11322_v62  ;;  %v11494_v22 = vmax.f32 %v4528_v30, 0.0  ;;  %v5401_v30 = vsub.f32 %v13779_v2, %v11112_v20 }
 0x6bf   : > { %v11518_v49 = vmax.f32 %v4529_v59, 0.0  ;;  %v4286_v58 = vmax.f32 %v4276_v44, 0.0 }
 0x6c0   : > { %8103 = vset.pattern.permute.xlu1 %v13593_v26  ;;  %v4211_v3 = vmax.f32 %v4201_v41, 0.0  ;;  %v4679_v47 = vand.u32 2147483647, %v4669_v6  ;;  %v4688_v6 = vsub.f32 1.0, %v4678_v56 }
 0x6c1   : > { %5783 = vperm.xlu1 %8103, %v13765_v7  }
 0x6c2   : > { %v4361_v41 = vmul.f32 %v4291_v46, %v4211_v3  ;;  %v11516_v3 = vpop.permute.xlu0 %5468  ;;  %v13785_v46 = vld [vmem:[#allocation71_spill] sm:$0xff] }
 0x6c3   : > { %v4408_v32 = vpop.permute.xlu1 %4407  ;;  %13784 = vst [vmem:[#allocation124_spill] sm:$0xff] %v11516_v3  ;;  %v4186_v3 = vand.u32 2147483647, %v4176_v15 }
 0x6c4   : > { %v4431_v48 = vsub.f32 %v4408_v32, %v11322_v62  ;;  %v13778_v32 = vld [vmem:[#allocation67_spill] sm:$0xff]  ;;  %v4371_v13 = vmul.f32 %v4361_v41, %v4351_v10  ;;  %v5570_v41 = vsub.f32 %v13790_v16, %v11322_v62  ;;  %v5336_v10 = vsub.f32 1.0, %v5326_v42 }
 0x6c5   : > { %5863 = vperm.xlu1 %8103, %v13680_v21   ;;  %v5320_v39 = vsub.f32 %v13778_v32, %v11322_v62  ;;  %v13786_v32 = vld [vmem:[#allocation68_spill] sm:$0xff]  ;;  %v4196_v16 = vsub.f32 1.0, %v4186_v3 }
 0x6c6   : > { %v4441_v52 = vand.u32 2147483647, %v4431_v48  ;;  %v13780_v48 = vld [vmem:[#allocation69_spill] sm:$0xff]  ;;  %v4506_v2 = vsub.f32 %v13786_v32, %v11112_v20  ;;  %v11533_v32 = vmax.f32 %v4688_v6, 0.0  ;;  %v11541_v15 = vpop.permute.xlu0 %5473  ;;  %v11551_v6 = vld [vmem:[%s13282_s4] ss:$0 sm:$0xff] }
 0x6c7   : > { %v5646_v31 = vsub.f32 %v13780_v48, %v11112_v20  ;;  %v5330_v59 = vand.u32 2147483647, %v5320_v39  ;;  %13793 = vst [vmem:[#allocation83_spill] sm:$0xff] %v11541_v15  ;;  %v13797_v15 = vld [vmem:[#allocation133_spill] sm:$0xff] }
 0x6c8   : > { %v4451_v1 = vsub.f32 1.0, %v4441_v52  ;;  %v11496_v33 = vpop.permute.xlu1 %4551 }
 0x6c9   : > { %8105 = vset.pattern.permute.xlu1 %v13573_v24  ;;  %v5656_v56 = vand.u32 2147483647, %v5646_v31 }
 0x6ca   : > { %v4461_v40 = vmax.f32 %v4451_v1, 0.0  ;;  %4165 = vperm.xlu1 %8105, %v13777_v27   ;;  %v5567_v1 = vsub.f32 %v13785_v46, %v11322_v62  ;;  %v13788_v46 = vld [vmem:[#allocation14_spill] sm:$0xff] }
 0x6cb   : > { %v4746_v60 = vsub.f32 %v13788_v46, %v11112_v20  ;;  %v5666_v46 = vsub.f32 1.0, %v5656_v56 }
 0x6cc   : > { %v4601_v52 = vmul.f32 %v4541_v19, %v4461_v40  ;;  %v4689_v19 = vsub.f32 1.0, %v4679_v47  ;;  %v5411_v40 = vand.u32 2147483647, %v5401_v30  ;;  %v5577_v51 = vand.u32 2147483647, %v5567_v1  ;;  %v13791_v47 = vld [vmem:[#allocation28_spill] sm:$0xff] }
 0x6cd   : > { %v11524_v48 = vpop.permute.xlu1 %4879  ;;  %v4177_v39 = vsub.f32 %v13791_v47, %v11322_v62  ;;  %v13792_v30 = vld [vmem:[#allocation13_spill] sm:$0xff]  ;;  %v5651_v1 = vsub.f32 %v13795_v57, %v11551_v6  ;;  %v4756_v47 = vand.u32 2147483647, %v4746_v60 }
 0x6ce   : > { %v4611_v4 = vmul.f32 %v4601_v52, %v4591_v12  ;;  %4245 = vperm.xlu1 %8105, %v13787_v37   ;;  %v4516_v12 = vand.u32 2147483647, %v4506_v2  ;;  %v4666_v31 = vsub.f32 %v13792_v30, %v11322_v62  ;;  %v5340_v52 = vsub.f32 1.0, %v5330_v59  ;;  %v13796_v2 = vld [vmem:[#allocation108_spill] sm:$0xff] }
 0x6cf   : > { %v4986_v42 = vsub.f32 %v13796_v2, %v11551_v6  ;;  %v5580_v30 = vand.u32 2147483647, %v5570_v41  ;;  %v4187_v23 = vand.u32 2147483647, %v4177_v39  ;;  %v4206_v41 = vmax.f32 %v4196_v16, 0.0 }
 0x6d0   : > { %v11531_v24 = vadd.f32 %v4611_v4, %v4371_v13  ;;  %v11546_v4 = vmax.f32 %v4689_v19, 0.0  ;;  %v5421_v13 = vsub.f32 1.0, %v5411_v40  ;;  %v5587_v19 = vsub.f32 1.0, %v5577_v51  ;;  %v13799_v40 = vld [vmem:[#allocation32_spill] sm:$0xff] }
 0x6d1   : > { %v4526_v59 = vsub.f32 1.0, %v4516_v12  ;;  %v4676_v57 = vand.u32 2147483647, %v4666_v31  ;;  %v11564_v2 = vmax.f32 %v5340_v52, 0.0  ;;  %v4427_v3 = vsub.f32 %v13799_v40, %v11322_v62  ;;  %v13803_v40 = vld [vmem:[#allocation11_spill] sm:$0xff] }
 0x6d2   : > { %13789 = vst [vmem:[#allocation140_spill] sm:$0xff] %v11531_v24  ;;  %8106 = vset.pattern.permute.xlu1 %v13580_v35  ;;  %v11544_v20 = vpop.permute.xlu1 %5779  ;;  %v4906_v24 = vsub.f32 %v13797_v15, %v11322_v62  ;;  %v11560_v35 = vmax.f32 %v5336_v10, 0.0  ;;  %v4996_v60 = vand.u32 2147483647, %v4986_v42  ;;  %v11569_v56 = vmax.f32 %v5421_v13, 0.0  ;;  %v11573_v10 = vpop.permute.xlu0 %5483 }
 0x6d3   : > { %13794 = vst [vmem:[#allocation25_spill] sm:$0xff] %v11544_v20  ;;  %4415 = vperm.xlu1 %8106, %v13777_v27   ;;  %v5661_v27 = vand.u32 2147483647, %v5651_v1  ;;  %v11571_v51 = vmax.f32 %v5666_v46, 0.0  ;;  %v4766_v12 = vsub.f32 1.0, %v4756_v47  ;;  %13801 = vst [vmem:[#allocation66_spill] sm:$0xff] %v11573_v10  ;;  %v4356_v52 = vmul.f32 %v4286_v58, %v4206_v41 }
 0x6d4   : > { %13800 = vst [vmem:[#allocation36_spill] sm:$0xff] %v11569_v56  ;;  %v11575_v44 = vmax.f32 %v5587_v19, 0.0  ;;  %v5590_v39 = vsub.f32 1.0, %v5580_v30  ;;  %v4536_v31 = vmax.f32 %v4526_v59, 0.0  ;;  %v4916_v15 = vand.u32 2147483647, %v4906_v24 }
 0x6d5   : > { %v4197_v1 = vsub.f32 1.0, %v4187_v23  ;;  %v4507_v42 = vsub.f32 %v13803_v40, %v11551_v6  ;;  %v4686_v20 = vsub.f32 1.0, %v4676_v57  ;;  %v4437_v13 = vand.u32 2147483647, %v4427_v3  ;;  %v13805_v19 = vld [vmem:[#allocation93_spill] sm:$0xff]  ;;  %v13806_v23 = vld [vmem:[#allocation86_spill] sm:$0xff] }
 0x6d6   : > { %v11562_v36 = vpop.permute.xlu1 %5859  ;;  %13802 = vst [vmem:[#allocation116_spill] sm:$0xff] %v11575_v44  ;;  %v5006_v56 = vsub.f32 1.0, %v4996_v60  ;;  %v4586_v46 = vmul.f32 %v11219_v17, %v11423_v9  ;;  %v4776_v47 = vmax.f32 %v4766_v12, 0.0  ;;  %v5396_v24 = vsub.f32 %v13805_v19, %v11551_v6  ;;  %v13807_v30 = vld [vmem:[#allocation125_spill] sm:$0xff]  ;;  %v13808_v60 = vld [vmem:[#allocation70_spill] sm:$0xff] }
 0x6d7   : > { %13798 = vst [vmem:[#allocation136_spill] sm:$0xff] %v11562_v36  ;;  %4495 = vperm.xlu1 %8106, %v13787_v37   ;;  %v5671_v37 = vsub.f32 1.0, %v5661_v27  ;;  %v5566_v58 = vsub.f32 %v13806_v23, %v11322_v62  ;;  %v4667_v59 = vsub.f32 %v13807_v30, %v11322_v62  ;;  %v11591_v27 = vmax.f32 %v5590_v39, 0.0  ;;  %v5028_v23 = vpop.permute.xlu0 %5027 }
 0x6d8   : > { %v4596_v9 = vmul.f32 %v4536_v31, %v11492_v18  ;;  %v4926_v57 = vsub.f32 1.0, %v4916_v15  ;;  %v4346_v3 = vmul.f32 %v11219_v17, %v11402_v54  ;;  %v11598_v41 = vmul.f32 %v11226_v29, %v13808_v60  ;;  %v13810_v15 = vld [vmem:[#allocation58_spill] sm:$0xff] }
 0x6d9   : > { %v4207_v12 = vmax.f32 %v4197_v1, 0.0  ;;  %v4517_v40 = vand.u32 2147483647, %v4507_v42  ;;  %v4696_v19 = vmax.f32 %v4686_v20, 0.0  ;;  %v11600_v10 = vmax.f32 %v5671_v37, 0.0  ;;  %v13811_v37 = vld [vmem:[#allocation20_spill] sm:$0xff] }
 0x6da   : > { %v4447_v30 = vsub.f32 1.0, %v4437_v13  ;;  %v4606_v39 = vmul.f32 %v4596_v9, %v4586_v46  ;;  %v5406_v44 = vand.u32 2147483647, %v5396_v24  ;;  %v5576_v18 = vand.u32 2147483647, %v5566_v58  ;;  %v13812_v13 = vld [vmem:[#allocation18_spill] sm:$0xff] }
 0x6db   : > { %8107 = vset.pattern.permute.xlu1 %v13586_v55  ;;  %v11582_v16 = vpop.permute.xlu1 %4723  ;;  %13809 = vst [vmem:[#allocation109_spill] sm:$0xff] %v11600_v10  ;;  %v4836_v55 = vmul.f32 %v4776_v47, %v4696_v19  ;;  %v4677_v31 = vand.u32 2147483647, %v4667_v59  ;;  %v4936_v54 = vmax.f32 %v4926_v57, 0.0  ;;  %v4366_v36 = vmul.f32 %v4356_v52, %v4346_v3  ;;  %v13813_v57 = vld [vmem:[#allocation57_spill] sm:$0xff] }
 0x6dc   : > { %13804 = vst [vmem:[#allocation128_spill] sm:$0xff] %v11582_v16  ;;  %4887 = vperm.xlu1 %8107, %v13714_v50   ;;  %v5016_v16 = vmax.f32 %v5006_v56, 0.0  ;;  %v5066_v60 = vmul.f32 %v11226_v29, %v5028_v23  ;;  %v11606_v20 = vmul.f32 %v11484_v43, %v4207_v12  ;;  %v11610_v56 = vmul.f32 %v11226_v29, %v13811_v37  ;;  %v13814_v43 = vld [vmem:[#allocation80_spill] sm:$0xff] }
 0x6dd   : > { %v4527_v42 = vsub.f32 1.0, %v4517_v40  ;;  %v4908_v46 = vsub.f32 %v13812_v13, %v11322_v62  ;;  %v4457_v47 = vmax.f32 %v4447_v30, 0.0  ;;  %v4616_v24 = vadd.f32 %v4606_v39, %v4366_v36  ;;  %v13815_v40 = vld [vmem:[#allocation127_spill] sm:$0xff]  ;;  %v13819_v13 = vld [vmem:[#allocation105_spill] sm:$0xff] }
 0x6de   : > { %v5076_v58 = vmul.f32 %v5016_v16, %v4936_v54  ;;  %v5416_v52 = vsub.f32 1.0, %v5406_v44  ;;  %v5586_v9 = vsub.f32 1.0, %v5576_v18  ;;  %v4989_v3 = vsub.f32 %v13813_v57, %v11551_v6  ;;  %v13816_v16 = vld [vmem:[#allocation111_spill] sm:$0xff]  ;;  %v13817_v18 = vld [vmem:[#allocation118_spill] sm:$0xff] }
 0x6df   : > { %v5886_v12 = vsub.f32 %v13814_v43, %v11551_v6  ;;  %v4687_v19 = vsub.f32 1.0, %v4677_v31  ;;  %v5806_v23 = vsub.f32 %v13815_v40, %v11322_v62  ;;  %v4918_v44 = vand.u32 2147483647, %v4908_v46  ;;  %v13818_v31 = vld [vmem:[#allocation146_spill] sm:$0xff] }
 0x6e0   : > { %4967 = vperm.xlu1 %8107, %v13810_v15   ;;  %v4788_v17 = vpop.permute.xlu1 %4787  ;;  %v4258_v30 = vsub.f32 %v13816_v16, %v11551_v6  ;;  %v5397_v54 = vsub.f32 %v13817_v18, %v11551_v6  ;;  %v4999_v46 = vand.u32 2147483647, %v4989_v3  ;;  %v5596_v43 = vmax.f32 %v5586_v9, 0.0 }
 0x6e1   : > { %v4826_v1 = vmul.f32 %v11226_v29, %v4788_v17  ;;  %v5086_v17 = vmul.f32 %v5076_v58, %v5066_v60  ;;  %v6126_v60 = vsub.f32 %v13819_v13, %v11551_v6  ;;  %v13820_v58 = vld [vmem:[#allocation12_spill] sm:$0xff]  ;;  %v5896_v57 = vand.u32 2147483647, %v5886_v12 }
 0x6e2   : > { %v4697_v40 = vmax.f32 %v4687_v19, 0.0  ;;  %v5816_v18 = vand.u32 2147483647, %v5806_v23  ;;  %v4268_v13 = vand.u32 2147483647, %v4258_v30  ;;  %v13823_v19 = vld [vmem:[#allocation16_spill] sm:$0xff] }
 0x6e3   : > { %v4846_v59 = vmul.f32 %v4836_v55, %v4826_v1  ;;  %v4537_v55 = vmax.f32 %v4527_v42, 0.0  ;;  %v6046_v1 = vsub.f32 %v13818_v31, %v11322_v62  ;;  %v5426_v42 = vmax.f32 %v5416_v52, 0.0 }
 0x6e4   : > { %8108 = vset.pattern.permute.xlu1 %v13593_v26  ;;  %v4928_v31 = vsub.f32 1.0, %v4918_v44  ;;  %v11643_v3 = vand.u32 2147483647, %v5397_v54  ;;  %v6136_v12 = vand.u32 2147483647, %v6126_v60  ;;  %v11647_v23 = vmul.f32 %v11226_v29, %v13823_v19  ;;  %v13824_v44 = vld [vmem:[#allocation104_spill] sm:$0xff] }
 0x6e5   : > { %v4856_v37 = vadd.f32 %v4846_v59, %v4616_v24  ;;  %5787 = vperm.xlu1 %8108, %v13714_v50   ;;  %v5374_v36 = vpop.permute.xlu1 %5373  ;;  %v11633_v59 = vmul.f32 %v11226_v29, %v13820_v58  ;;  %v11641_v52 = vmul.f32 %v4537_v55, %v4457_v47  ;;  %v6056_v9 = vand.u32 2147483647, %v6046_v1 }
 0x6e6   : > { %v5400_v39 = vsub.f32 %v5374_v36, %v11551_v6  ;;  %v13821_v36 = vld [vmem:[#allocation19_spill] sm:$0xff]  ;;  %v4259_v30 = vsub.f32 %v13824_v44, %v11551_v6  ;;  %v5826_v47 = vsub.f32 1.0, %v5816_v18  ;;  %v13825_v55 = vmov 10  }
 0x6e7   : > { %v5096_v24 = vadd.f32 %v5086_v17, %v4856_v37  ;;  %v5317_v16 = vsub.f32 %v13821_v36, %v11322_v62  ;;  %v13822_v17 = vld [vmem:[#allocation38_spill] sm:$0xff]  ;;  %v5009_v36 = vsub.f32 1.0, %v4999_v46  ;;  %v11657_v54 = vmul.f32 %v11527_v63, %v4697_v40  ;;  %v13826_v63 = vld [vmem:[#allocation84_spill] sm:$0xff] }
 0x6e8   : > { %v4428_v37 = vsub.f32 %v13822_v17, %v11322_v62  ;;  %v5410_v58 = vand.u32 2147483647, %v5400_v39  ;;  %v5736_v39 = vmul.f32 %v11571_v51, %v5596_v43  ;;  %v4278_v1 = vsub.f32 1.0, %v4268_v13 }
 0x6e9   : > { %5867 = vperm.xlu1 %8108, %v13810_v15   ;;  %7781 = vmatprep.mubr.msk.f32.mxu0 %vm3845_vm6, %v5096_v24  ;;  %v5906_v15 = vsub.f32 1.0, %v5896_v57  ;;  %v5496_v24 = vmul.f32 %v5426_v42, %v11560_v35  ;;  %v11653_v17 = vand.u32 2147483647, %v5317_v16  ;;  %v11660_v46 = vmax.f32 %v4928_v31, 0.0  ;;  %v13828_v31 = vld [vmem:[#allocation39_spill] sm:$0xff] }
 0x6ea   : > { %v5439_v26 = vpop.permute.xlu1 %5438  ;;  %v4438_v29 = vand.u32 2147483647, %v4428_v37  ;;  %v5420_v60 = vsub.f32 1.0, %v5410_v58  ;;  %v6066_v35 = vsub.f32 1.0, %v6056_v9  ;;  %v6146_v42 = vsub.f32 1.0, %v6136_v12  ;;  %v13827_v37 = vld [vmem:[#allocation47_spill] sm:$0xff] }
 0x6eb   : > { %v11663_v43 = vmax.f32 %v5009_v36, 0.0  ;;  %v5916_v16 = vmax.f32 %v5906_v15, 0.0  ;;  %v4269_v18 = vand.u32 2147483647, %v4259_v30  ;;  %v5647_v40 = vsub.f32 %v13826_v63, %v11551_v6  ;;  %v13829_v30 = vld [vmem:[#allocation82_spill] sm:$0xff] }
 0x6ec   : > { %v5836_v13 = vmax.f32 %v5826_v47, 0.0  ;;  %v4429_v58 = vsub.f32 %v13827_v37, %v11322_v62  ;;  %v4748_v44 = vsub.f32 %v13828_v31, %v11551_v6  ;;  %v11672_v57 = vmax.f32 %v4278_v1, 0.0  ;;  %v11680_v47 = vld [vmem:[%s13282_s4 + $0x2] ss:$0 sm:$0xff] }
 0x6ed   : > { %8109 = vset.pattern.permute.xlu1 %v13825_v55  ;;  %v4448_v9 = vsub.f32 1.0, %v4438_v29  ;;  %v5430_v12 = vmax.f32 %v5420_v60, 0.0  ;;  %v6076_v15 = vmax.f32 %v6066_v35, 0.0  ;;  %v6156_v50 = vmax.f32 %v6146_v42, 0.0  ;;  %v13830_v29 = vld [vmem:[#allocation33_spill] sm:$0xff]  ;;  %v13831_v55 = vld [vmem:[#allocation42_spill] sm:$0xff] }
 0x6ee   : > { %4651 = vperm.xlu1 %8109, %v13759_v14   ;;  %v5486_v63 = vmul.f32 %v11680_v47, %v5439_v26  ;;  %v5976_v37 = vmul.f32 %v5916_v16, %v5836_v13  ;;  %v4279_v1 = vsub.f32 1.0, %v4269_v18  ;;  %v4749_v60 = vsub.f32 %v13830_v29, %v11551_v6  ;;  %v13832_v29 = vld [vmem:[#allocation102_spill] sm:$0xff] }
 0x6ef   : > { %v5624_v51 = vpop.permute.xlu1 %5623  ;;  %v4439_v10 = vand.u32 2147483647, %v4429_v58  ;;  %v4758_v35 = vand.u32 2147483647, %v4748_v44  ;;  %v4907_v21 = vsub.f32 %v13831_v55, %v11322_v62  ;;  %v4909_v26 = vsub.f32 %v11524_v48, %v11322_v62 }
 0x6f0   : > { %v5650_v19 = vsub.f32 %v5624_v51, %v11551_v6  ;;  %v4987_v51 = vsub.f32 %v13829_v30, %v11551_v6  ;;  %v4988_v30 = vsub.f32 %v11433_v0, %v11551_v6  ;;  %v5500_v16 = vmul.f32 %v5430_v12, %v11564_v2 }
 0x6f1   : > { %v5506_v58 = vmul.f32 %v5496_v24, %v5486_v63  ;;  %v4759_v0 = vand.u32 2147483647, %v4749_v60  ;;  %v5490_v55 = vmul.f32 %v11680_v47, %v11470_v45  ;;  %v5986_v48 = vmul.f32 %v5976_v37, %v11598_v41 }
 0x6f2   : > { %v5660_v36 = vand.u32 2147483647, %v5650_v19  ;;  %4731 = vperm.xlu1 %8109, %v13761_v28   ;;  %v4997_v13 = vand.u32 2147483647, %v4987_v51  ;;  %v4768_v2 = vsub.f32 1.0, %v4758_v35  ;;  %v4449_v24 = vsub.f32 1.0, %v4439_v10 }
 0x6f3   : > { %v4998_v12 = vand.u32 2147483647, %v4988_v30  ;;  %v4458_v60 = vmax.f32 %v4448_v9, 0.0  ;;  %v4289_v45 = vmax.f32 %v4279_v1, 0.0  ;;  %v4769_v41 = vsub.f32 1.0, %v4759_v0  ;;  %v13833_v30 = vld [vmem:[#allocation81_spill] sm:$0xff] }
 0x6f4   : > { %v5670_v19 = vsub.f32 1.0, %v5660_v36  ;;  %v5688_v31 = vpop.permute.xlu1 %5687  ;;  %v6216_v36 = vmul.f32 %v6156_v50, %v6076_v15  ;;  %v5510_v15 = vmul.f32 %v5500_v16, %v5490_v55  ;;  %v4778_v35 = vmax.f32 %v4768_v2, 0.0  ;;  %v13834_v1 = vld [vmem:[#allocation123_spill] sm:$0xff] }
 0x6f5   : > { %v5726_v42 = vmul.f32 %v11680_v47, %v5688_v31  ;;  %v5730_v31 = vmul.f32 %v11680_v47, %v13832_v29  ;;  %v5008_v10 = vsub.f32 1.0, %v4998_v12  ;;  %v11709_v16 = vand.u32 2147483647, %v5647_v40 }
 0x6f6   : > { %v5680_v18 = vmax.f32 %v5670_v19, 0.0  ;;  %8110 = vset.pattern.permute.xlu1 %v13543_v25  ;;  %v5032_v19 = vpop.permute.xlu0 %5031  ;;  %v6226_v29 = vmul.f32 %v6216_v36, %v11647_v23  ;;  %v4459_v9 = vmax.f32 %v4449_v24, 0.0  ;;  %v4359_v40 = vmul.f32 %v4289_v45, %v11488_v38 }
 0x6f7   : > { %v5746_v44 = vmul.f32 %v5736_v39, %v5726_v42  ;;  %5301 = vperm.xlu1 %8110, %v13759_v14   ;;  %v4919_v39 = vand.u32 2147483647, %v4909_v26  ;;  %v4917_v42 = vand.u32 2147483647, %v4907_v21  ;;  %v4587_v21 = vmul.f32 %v11680_v47, %v11496_v33 }
 0x6f8   : > { %v5740_v62 = vmul.f32 %v5680_v18, %v11591_v27  ;;  %v5007_v27 = vsub.f32 1.0, %v4997_v13  ;;  %v4348_v18 = vmul.f32 %v11680_v47, %v13833_v30  ;;  %v5888_v13 = vsub.f32 %v13834_v1, %v11551_v6 }
 0x6f9   : > { %v5756_v51 = vadd.f32 %v5746_v44, %v5506_v58  ;;  %v11701_v50 = vpop.permute.xlu1 %6095  ;;  %v4929_v23 = vsub.f32 1.0, %v4919_v39  ;;  %v4927_v58 = vsub.f32 1.0, %v4917_v42  ;;  %v13835_v44 = vld [vmem:[#allocation78_spill] sm:$0xff]  ;;  %v4598_v33 = vmul.f32 %v11494_v22, %v4458_v60 }
 0x6fa   : > { %v5750_v63 = vmul.f32 %v5740_v62, %v5730_v31  ;;  %v4588_v0 = vmul.f32 %v11680_v47, %v13835_v44  ;;  %v4358_v31 = vmul.f32 %v11672_v57, %v11486_v5  ;;  %v4779_v55 = vmax.f32 %v4769_v41, 0.0  ;;  %v11738_v60 = vld [vmem:[%s13282_s4 + $0x3] ss:$0 sm:$0xff] }
 0x6fb   : > { %v5996_v25 = vadd.f32 %v5986_v48, %v5756_v51  ;;  %5381 = vperm.xlu1 %8110, %v13761_v28   ;;  %v4347_v62 = vmul.f32 %v11680_v47, %v11468_v53  ;;  %v5017_v48 = vmax.f32 %v5007_v27, 0.0  ;;  %v4838_v2 = vmul.f32 %v4778_v35, %v11533_v32  ;;  %v13836_v51 = vld [vmem:[#allocation26_spill] sm:$0xff] }
 0x6fc   : > { %v11705_v37 = vadd.f32 %v5750_v63, %v5510_v15  ;;  %v4368_v12 = vmul.f32 %v4358_v31, %v4348_v18  ;;  %v5018_v5 = vmax.f32 %v5008_v10, 0.0  ;;  %v4599_v57 = vmul.f32 %v11518_v49, %v4459_v9  ;;  %v13837_v63 = vld [vmem:[#allocation35_spill] sm:$0xff] }
 0x6fd   : > { %v6236_v26 = vadd.f32 %v6226_v29, %v5996_v25  ;;  %v5036_v25 = vpop.permute.xlu0 %5035  ;;  %v4349_v24 = vmul.f32 %v11680_v47, %v13836_v51  ;;  %v4607_v22 = vmul.f32 %v11641_v52, %v4587_v21  ;;  %v4939_v39 = vmax.f32 %v4929_v23, 0.0  ;;  %v11755_v23 = vld [vmem:[%s13282_s4 + $0x1] ss:$0 sm:$0xff]  ;;  %v13839_v31 = vld [vmem:[#allocation91_spill] sm:$0xff] }
 0x6fe   : > { %v11713_v36 = vpop.permute.xlu1 %4647  ;;  %v4937_v38 = vmax.f32 %v4927_v58, 0.0  ;;  %v4608_v15 = vmul.f32 %v4598_v33, %v4588_v0  ;;  %v4589_v53 = vmul.f32 %v11680_v47, %v13837_v63  ;;  %v5068_v32 = vmul.f32 %v11738_v60, %v5036_v25 }
 0x6ff   : > { %8111 = vset.pattern.permute.xlu1 %v13545_v34  ;;  %7816 = vmatprep.mubr.msk.f32.mxu1 %vm3845_vm6, %v6236_v26  ;;  %v4839_v49 = vmul.f32 %v4779_v55, %v11546_v4  ;;  %v5067_v29 = vmul.f32 %v11738_v60, %v5032_v19  ;;  %v4367_v52 = vmul.f32 %v11606_v20, %v4347_v62  ;;  %v13838_v20 = vld [vmem:[#allocation73_spill] sm:$0xff] }
 0x700   : > { %5551 = vperm.xlu1 %8111, %v13759_v14   ;;  %v4848_v27 = vmul.f32 %v4838_v2, %v11610_v56  ;;  %v4618_v41 = vadd.f32 %v4608_v15, %v4368_v12  ;;  %v5077_v35 = vmul.f32 %v5017_v48, %v4937_v38  ;;  %v5078_v30 = vmul.f32 %v5018_v5, %v11660_v46  ;;  %v13840_v12 = vld [vmem:[#allocation6_spill] sm:$0xff] }
 0x701   : > { %v5040_v18 = vpop.permute.xlu0 %5039  ;;  %v4369_v10 = vmul.f32 %v4359_v40, %v4349_v24  ;;  %v4617_v26 = vadd.f32 %v4607_v22, %v4367_v52  ;;  %v5079_v9 = vmul.f32 %v11663_v43, %v4939_v39  ;;  %v4609_v19 = vmul.f32 %v4599_v57, %v4589_v53  ;;  %v13841_v24 = vld [vmem:[#allocation94_spill] sm:$0xff] }
 0x702   : > { %v5887_v21 = vsub.f32 %v13838_v20, %v11551_v6  ;;  %v5808_v56 = vsub.f32 %v11443_v8, %v11755_v23  ;;  %v5088_v46 = vmul.f32 %v5078_v30, %v5068_v32  ;;  %v4849_v58 = vmul.f32 %v4839_v49, %v11633_v59  ;;  %v13844_v32 = vld [vmem:[#allocation59_spill] sm:$0xff] }
 0x703   : > { %v4792_v42 = vpop.permute.xlu1 %4791  ;;  %v5087_v44 = vmul.f32 %v5077_v35, %v5067_v29  ;;  %v5069_v43 = vmul.f32 %v11738_v60, %v5040_v18  ;;  %v5807_v25 = vsub.f32 %v13839_v31, %v11755_v23  ;;  %v4858_v33 = vadd.f32 %v4848_v27, %v4618_v41  ;;  %v13845_v41 = vld [vmem:[#allocation136_spill] sm:$0xff] }
 0x704   : > { %v4827_v45 = vmul.f32 %v11738_v60, %v4792_v42  ;;  %5631 = vperm.xlu1 %8111, %v13761_v28   ;;  %v6128_v40 = vsub.f32 %v11701_v50, %v11551_v6  ;;  %v4619_v8 = vadd.f32 %v4609_v19, %v4369_v10  ;;  %v6127_v59 = vsub.f32 %v11377_v11, %v11551_v6  ;;  %v13842_v11 = vld [vmem:[#allocation29_spill] sm:$0xff] }
 0x705   : > { %v5089_v62 = vmul.f32 %v5079_v9, %v5069_v43  ;;  %v5337_v2 = vsub.f32 1.0, %v11653_v17  ;;  %v6048_v5 = vsub.f32 %v13840_v12, %v11755_v23  ;;  %v5818_v57 = vand.u32 2147483647, %v5808_v56  ;;  %v13846_v10 = vld [vmem:[#allocation25_spill] sm:$0xff]  ;;  %v13847_v9 = vld [vmem:[#allocation30_spill] sm:$0xff] }
 0x706   : > { %v4847_v4 = vmul.f32 %v11657_v54, %v4827_v45  ;;  %v5098_v51 = vadd.f32 %v5088_v46, %v4858_v33  ;;  %v5898_v50 = vand.u32 2147483647, %v5888_v13  ;;  %v5897_v22 = vand.u32 2147483647, %v5887_v21 }
 0x707   : > { %v4859_v39 = vadd.f32 %v4849_v58, %v4619_v8  ;;  %v11781_v38 = vmul.f32 %v11738_v60, %v13842_v11  ;;  %v13843_v17 = vsub.f32 1.0, %v11643_v3  ;;  %v6138_v63 = vand.u32 2147483647, %v6128_v40 }
 0x708   : > { %v4857_v0 = vadd.f32 %v4847_v4, %v4617_v26  ;;  %8112 = vset.pattern.permute.xlu1 %v13635_v61  ;;  %v5298_v54 = vpop.permute.xlu1 %5297  ;;  %v5667_v13 = vsub.f32 1.0, %v11709_v16  ;;  %v5817_v42 = vand.u32 2147483647, %v5807_v25  ;;  %v6137_v49 = vand.u32 2147483647, %v6127_v59  ;;  %v13848_v4 = vld [vmem:[#allocation120_spill] sm:$0xff] }
 0x709   : > { %v5321_v55 = vsub.f32 %v5298_v54, %v11755_v23  ;;  %6023 = vperm.xlu1 %8112, %v13765_v7   ;;  %v6047_v7 = vsub.f32 %v13841_v24, %v11755_v23  ;;  %v5427_v15 = vmax.f32 %v13843_v17, 0.0  ;;  %v5099_v29 = vadd.f32 %v5089_v62, %v4859_v39  ;;  %v13853_v39 = vld [vmem:[#allocation60_spill] sm:$0xff] }
 0x70a   : > { %v5097_v48 = vadd.f32 %v5087_v44, %v4857_v0  ;;  %v5347_v52 = vmax.f32 %v5337_v2, 0.0  ;;  %v6058_v45 = vand.u32 2147483647, %v6048_v5  ;;  %v5828_v27 = vsub.f32 1.0, %v5818_v57  ;;  %v13850_v0 = vld [vmem:[#allocation50_spill] sm:$0xff] }
 0x70b   : > { %v5331_v53 = vand.u32 2147483647, %v5321_v55  ;;  %v5889_v35 = vsub.f32 %v13845_v41, %v11551_v6  ;;  %v5908_v3 = vsub.f32 1.0, %v5898_v50  ;;  %v6057_v30 = vand.u32 2147483647, %v6047_v7  ;;  %v13855_v41 = vld [vmem:[#allocation64_spill] sm:$0xff] }
 0x70c   : > { %7782 = vmatmul.mubr.msk.f32.vlgmr.msra.gmra.mxu0 %vm3845_vm6, %v5097_v48  ;;  %v5907_v18 = vsub.f32 1.0, %v5897_v22  ;;  %v5809_v26 = vsub.f32 %v13846_v10, %v11755_v23  ;;  %v5968_v16 = vmul.f32 %v11738_v60, %v13847_v9  ;;  %v6208_v19 = vmul.f32 %v11738_v60, %v13848_v4  ;;  %v13851_v48 = vld [vmem:[#allocation131_spill] sm:$0xff] }
 0x70d   : > { %6103 = vperm.xlu1 %8112, %v13844_v32   ;;  %7784 = vmatprep.mubr.msk.f32.mxu0 %vm3845_vm6, %v5098_v51  ;;  %v5444_v1 = vpop.permute.xlu1 %5443  ;;  %v6148_v20 = vsub.f32 1.0, %v6138_v63  ;;  %v5341_v21 = vsub.f32 1.0, %v5331_v53  ;;  %v13849_v56 = vmov 10   ;;  %v5497_v46 = vmul.f32 %v5427_v15, %v5347_v52  ;;  %v13852_v51 = vld [vmem:[#allocation116_spill] sm:$0xff]  ;;  %v13857_v10 = vld [vmem:[#allocation79_spill] sm:$0xff] }
 0x70e   : > { %v5677_v58 = vmax.f32 %v5667_v13, 0.0  ;;  %v5827_v44 = vsub.f32 1.0, %v5817_v42  ;;  %v6147_v43 = vsub.f32 1.0, %v6137_v49  ;;  %v6068_v31 = vsub.f32 1.0, %v6058_v45  ;;  %v13854_v52 = vld [vmem:[#allocation36_spill] sm:$0xff] }
 0x70f   : > { %v5838_v25 = vmax.f32 %v5828_v27, 0.0  ;;  %v5899_v33 = vand.u32 2147483647, %v5889_v35  ;;  %v5918_v55 = vmax.f32 %v5908_v3, 0.0  ;;  %v6067_v8 = vsub.f32 1.0, %v6057_v30 }
 0x710   : > { %7785 = vmatmul.mubr.msk.f32.gmra.mxu0 %vm3845_vm6, %v5099_v29  ;;  %v5917_v59 = vmax.f32 %v5907_v18, 0.0  ;;  %v5819_v62 = vand.u32 2147483647, %v5809_v26  ;;  %v6129_v2 = vsub.f32 %v13851_v48, %v11551_v6  ;;  %v6158_v12 = vmax.f32 %v6148_v20, 0.0  ;;  %v13858_v20 = vld [vmem:[#allocation109_spill] sm:$0xff] }
 0x711   : > { %8113 = vset.pattern.permute.xlu1 %v13849_v56  ;;  %v5351_v5 = vmax.f32 %v5341_v21, 0.0  ;;  %v5737_v50 = vmul.f32 %v5677_v58, %v13852_v51  ;;  %v5837_v24 = vmax.f32 %v5827_v44, 0.0  ;;  %v6157_v7 = vmax.f32 %v6147_v43, 0.0  ;;  %v13859_v58 = vld [vmem:[#allocation144_spill] sm:$0xff] }
 0x712   : > { %4655 = vperm.xlu1 %8113, %v13850_v0   ;;  %v5548_v54 = vpop.permute.xlu1 %5547  ;;  %v5487_v22 = vmul.f32 %v11680_v47, %v5444_v1  ;;  %v6078_v11 = vmax.f32 %v6068_v31, 0.0  ;;  %v5978_v17 = vmul.f32 %v5918_v55, %v5838_v25  ;;  %v5909_v15 = vsub.f32 1.0, %v5899_v33 }
 0x713   : > { %v5571_v40 = vsub.f32 %v5548_v54, %v11755_v23  ;;  %v6077_v32 = vmax.f32 %v6067_v8, 0.0  ;;  %v5977_v13 = vmul.f32 %v5917_v59, %v5837_v24  ;;  %v5829_v42 = vsub.f32 1.0, %v5819_v62  ;;  %v13860_v62 = vld [vmem:[#allocation98_spill] sm:$0xff] }
 0x714   : > { %v6139_v49 = vand.u32 2147483647, %v6129_v2  ;;  %v6218_v29 = vmul.f32 %v6158_v12, %v6078_v11  ;;  %v5501_v45 = vmul.f32 %v13854_v52, %v5351_v5  ;;  %v5731_v1 = vmul.f32 %v11680_v47, %v13855_v41 }
 0x715   : > { %v5581_v57 = vand.u32 2147483647, %v5571_v40  ;;  %v6217_v35 = vmul.f32 %v6157_v7, %v6077_v32  ;;  %v5507_v3 = vmul.f32 %v5497_v46, %v5487_v22  ;;  %v13856_v18 = vmov 12   ;;  %v13863_v32 = vld [vmem:[#allocation77_spill] sm:$0xff] }
 0x716   : > { %4735 = vperm.xlu1 %8113, %v13853_v39   ;;  %v5491_v26 = vmul.f32 %v11680_v47, %v13857_v10  ;;  %v5988_v9 = vmul.f32 %v5978_v17, %v5968_v16  ;;  %v5919_v4 = vmax.f32 %v5909_v15, 0.0  ;;  %v6207_v44 = vmul.f32 %v11738_v60, %v13859_v58  ;;  %v13862_v17 = vld [vmem:[#allocation17_spill] sm:$0xff] }
 0x717   : > { %v5591_v63 = vsub.f32 1.0, %v5581_v57  ;;  %v5692_v53 = vpop.permute.xlu1 %5691  ;;  %v5987_v43 = vmul.f32 %v5977_v13, %v11781_v38  ;;  %v5839_v54 = vmax.f32 %v5829_v42, 0.0  ;;  %v6228_v25 = vmul.f32 %v6218_v29, %v6208_v19  ;;  %v13861_v57 = vld [vmem:[#allocation24_spill] sm:$0xff] }
 0x718   : > { %v5727_v6 = vmul.f32 %v11680_v47, %v5692_v53  ;;  %v5511_v33 = vmul.f32 %v5501_v45, %v5491_v26  ;;  %v6149_v8 = vsub.f32 1.0, %v6139_v49  ;;  %v6227_v16 = vmul.f32 %v6217_v35, %v6207_v44  ;;  %v13864_v29 = vld [vmem:[#allocation48_spill] sm:$0xff]  ;;  %v13865_v45 = vld [vmem:[#allocation58_spill] sm:$0xff] }
 0x719   : > { %v5601_v27 = vmax.f32 %v5591_v63, 0.0  ;;  %v5998_v48 = vadd.f32 %v5988_v9, %v13860_v62  ;;  %v5979_v2 = vmul.f32 %v5919_v4, %v5839_v54  ;;  %v5969_v51 = vmul.f32 %v11738_v60, %v13861_v57  ;;  %v13872_v54 = vld [vmem:[#allocation52_spill] sm:$0xff] }
 0x71a   : > { %v5747_v30 = vmul.f32 %v5737_v50, %v5727_v6  ;;  %8114 = vset.pattern.permute.xlu1 %v13856_v18  ;;  %v6159_v7 = vmax.f32 %v6149_v8, 0.0  ;;  %v6209_v15 = vmul.f32 %v11738_v60, %v13862_v17  ;;  %v13866_v41 = vmov 8  }
 0x71b   : > { %v5741_v21 = vmul.f32 %v13858_v20, %v5601_v27  ;;  %5305 = vperm.xlu1 %8114, %v13850_v0   ;;  %v6238_v24 = vadd.f32 %v6228_v25, %v5998_v48  ;;  %v5989_v22 = vmul.f32 %v5979_v2, %v5969_v51  ;;  %v13869_v10 = vmov 9  }
 0x71c   : > { %v5757_v31 = vadd.f32 %v5747_v30, %v5507_v3  ;;  %v6020_v46 = vpop.permute.xlu1 %6019  ;;  %v13868_v3 = vld [vmem:[#allocation63_spill] sm:$0xff]  ;;  %v13870_v4 = vmov 11   ;;  %v13871_v58 = vmov 14  }
 0x71d   : > { %v5751_v40 = vmul.f32 %v5741_v21, %v5731_v1  ;;  %v6049_v55 = vsub.f32 %v6020_v46, %v11755_v23  ;;  %v5999_v13 = vadd.f32 %v5989_v22, %v13863_v32  ;;  %v13867_v1 = vld [vmem:[#allocation54_spill] sm:$0xff]  ;;  %v13880_v32 = vmov 40  }
 0x71e   : > { %v5997_v59 = vadd.f32 %v5987_v43, %v5757_v31  ;;  %v13873_v46 = vld [vmem:[#allocation62_spill] sm:$0xff] }
 0x71f   : > { %v6059_v12 = vand.u32 2147483647, %v6049_v55  ;;  %5385 = vperm.xlu1 %8114, %v13853_v39   ;;  %v11820_v5 = vadd.f32 %v5751_v40, %v5511_v33 }
 0x720   : > { %v6237_v38 = vadd.f32 %v6227_v16, %v5997_v59 }
 0x721   : > { %v6069_v19 = vsub.f32 1.0, %v6059_v12  ;;  %v11824_v50 = vpop.permute.xlu1 %4161 }
 0x722   : > { %7817 = vmatmul.mubr.msk.f32.vlgmr.msra.gmra.mxu1 %vm3845_vm6, %v6237_v38 }
 0x723   : > { %v6079_v11 = vmax.f32 %v6069_v19, 0.0  ;;  %8115 = vset.pattern.permute.xlu1 %v13545_v34  ;;  %7819 = vmatprep.mubr.msk.f32.mxu1 %vm3845_vm6, %v6238_v24 }
 0x724   : > { %5555 = vperm.xlu1 %8115, %v13850_v0  }
 0x725   : > { %v6219_v63 = vmul.f32 %v6159_v7, %v6079_v11  ;;  %v11832_v53 = vpop.permute.xlu1 %4241 }
 0x727   : > { %v6229_v42 = vmul.f32 %v6219_v63, %v6209_v15  ;;  %v13879_v15 = vld [vmem:[#allocation34_spill] sm:$0xff] }
 0x728   : > { %5635 = vperm.xlu1 %8115, %v13853_v39  }
 0x729   : > { %v6239_v6 = vadd.f32 %v6229_v42, %v5999_v13  ;;  %v13881_v42 = vmov 41  }
 0x72a   : > { %v11836_v49 = vpop.permute.xlu1 %4411 }
 0x72b   : > { %7820 = vmatmul.mubr.msk.f32.gmra.mxu1 %vm3845_vm6, %v6239_v6  ;;  %v13884_v6 = vmov 43  }
 0x72c   : > { %8116 = vset.pattern.permute.xlu1 %v13635_v61 }
 0x72d   : > { %6027 = vperm.xlu1 %8116, %v13864_v29   ;;  %v13885_v29 = vld [vmem:[#allocation96_spill] sm:$0xff] }
 0x72e   : > { %v11841_v52 = vpop.permute.xlu1 %4491 }
 0x731   : > { %6107 = vperm.xlu1 %8116, %v13865_v45  }
 0x733   : > { %v11844_v27 = vpop.permute.xlu1 %4883 }
 0x735   : > { %8117 = vset.pattern.permute.xlu1 %v13866_v41 }
 0x736   : > { %4169 = vperm.xlu1 %8117, %v13867_v1  }
 0x737   : > { %v11848_v35 = vpop.permute.xlu1 %4963 }
 0x73a   : > { %4249 = vperm.xlu1 %8117, %v13868_v3  }
 0x73c   : > { %v11851_v30 = vpop.permute.xlu1 %5783 }
 0x73e   : > { %8118 = vset.pattern.permute.xlu1 %v13869_v10 }
 0x73f   : > { %4419 = vperm.xlu1 %8118, %v13867_v1  }
 0x740   : > { %v11855_v26 = vpop.permute.xlu1 %5863 }
 0x743   : > { %4499 = vperm.xlu1 %8118, %v13868_v3  }
 0x745   : > { %v11858_v9 = vpop.permute.xlu1 %4165 }
 0x747   : > { %8119 = vset.pattern.permute.xlu1 %v13870_v4 }
 0x748   : > { %4891 = vperm.xlu1 %8119, %v13759_v14  }
 0x749   : > { %v11862_v20 = vpop.permute.xlu1 %4245 }
 0x74c   : > { %4971 = vperm.xlu1 %8119, %v13761_v28  }
 0x74e   : > { %v11865_v21 = vpop.permute.xlu1 %4415 }
 0x750   : > { %8120 = vset.pattern.permute.xlu1 %v13871_v58 }
 0x751   : > { %5791 = vperm.xlu1 %8120, %v13759_v14  }
 0x752   : > { %v11869_v44 = vpop.permute.xlu1 %4495 }
 0x755   : > { %5871 = vperm.xlu1 %8120, %v13761_v28  }
 0x757   : > { %v11872_v43 = vpop.permute.xlu1 %4887 }
 0x759   : > { %8121 = vset.pattern.permute.xlu1 %v13866_v41 }
 0x75a   : > { %4173 = vperm.xlu1 %8121, %v13872_v54  }
 0x75b   : > { %v11876_v31 = vpop.permute.xlu1 %4967 }
 0x75e   : > { %4253 = vperm.xlu1 %8121, %v13873_v46  }
 0x760   : > { %v11879_v25 = vpop.permute.xlu1 %5787 }
 0x762   : > { %8122 = vset.pattern.permute.xlu1 %v13869_v10  ;;  %v13888_v10 = vmov 46  }
 0x763   : > { %4423 = vperm.xlu1 %8122, %v13872_v54  }
 0x764   : > { %v11883_v33 = vpop.permute.xlu1 %5867 }
 0x767   : > { %4503 = vperm.xlu1 %8122, %v13873_v46  }
 0x769   : > { %v11886_v40 = vpop.permute.xlu1 %4651 }
 0x76b   : > { %8123 = vset.pattern.permute.xlu1 %v13870_v4 }
 0x76c   : > { %4895 = vperm.xlu1 %8123, %v13850_v0  }
 0x76d   : > { %v11890_v55 = vpop.permute.xlu1 %4731 }
 0x770   : > { %4975 = vperm.xlu1 %8123, %v13853_v39  }
 0x772   : > { %v11893_v8 = vpop.permute.xlu1 %5301 }
 0x774   : > { %8124 = vset.pattern.permute.xlu1 %v13871_v58 }
 0x775   : > { %5795 = vperm.xlu1 %8124, %v13850_v0  }
 0x776   : > { %v11897_v16 = vpop.permute.xlu1 %5381 }
 0x779   : > { %5875 = vperm.xlu1 %8124, %v13853_v39  }
 0x77b   : > { %v11900_v59 = vpop.permute.xlu1 %5551 }
 0x77d   : > { %8126 = vset.pattern.permute.xlu1 %v13849_v56 }
 0x77e   : > { %4659 = vperm.xlu1 %8126, %v13867_v1  }
 0x77f   : > { %v11904_v62 = vpop.permute.xlu1 %5631 }
 0x782   : > { %4739 = vperm.xlu1 %8126, %v13868_v3  }
 0x784   : > { %v11907_v48 = vpop.permute.xlu1 %6023 }
 0x786   : > { %8127 = vset.pattern.permute.xlu1 %v13856_v18 }
 0x787   : > { %5309 = vperm.xlu1 %8127, %v13867_v1  }
 0x788   : > { %v11911_v2 = vpop.permute.xlu1 %6103 }
 0x78b   : > { %5389 = vperm.xlu1 %8127, %v13868_v3  }
 0x78d   : > { %v11914_v12 = vpop.permute.xlu1 %4655 }
 0x78f   : > { %8128 = vset.pattern.permute.xlu1 %v13545_v34 }
 0x790   : > { %5559 = vperm.xlu1 %8128, %v13867_v1  }
 0x791   : > { %v11918_v38 = vpop.permute.xlu1 %4735 }
 0x794   : > { %5639 = vperm.xlu1 %8128, %v13868_v3  }
 0x796   : > { %v11921_v57 = vpop.permute.xlu1 %5305 }
 0x798   : > { %8129 = vset.pattern.permute.xlu1 %v13635_v61 }
 0x799   : > { %6031 = vperm.xlu1 %8129, %v13759_v14  }
 0x79a   : > { %v11925_v51 = vpop.permute.xlu1 %5385 }
 0x79d   : > { %6111 = vperm.xlu1 %8129, %v13761_v28  }
 0x79f   : > { %v11928_v19 = vpop.permute.xlu1 %5555 }
 0x7a1   : > { %8130 = vset.pattern.permute.xlu1 %v13849_v56  ;;  %v13875_v56 = vld [vmem:[#allocation76_spill] sm:$0xff] }
 0x7a2   : > { %4663 = vperm.xlu1 %8130, %v13872_v54   ;;  %8336 = vrcp.f32 %v13875_v56  ;;  %v13890_v56 = vld [vmem:[#allocation137_spill] sm:$0xff] }
 0x7a3   : > { %v11932_v24 = vpop.permute.xlu1 %5635 }
 0x7a6   : > { %4743 = vperm.xlu1 %8130, %v13873_v46  }
 0x7a8   : > { %v11935_v7 = vpop.permute.xlu1 %6027 }
 0x7aa   : > { %8132 = vset.pattern.permute.xlu1 %v13856_v18 }
 0x7ab   : > { %5313 = vperm.xlu1 %8132, %v13872_v54  }
 0x7ac   : > { %v11939_v14 = vpop.permute.xlu1 %6107 }
 0x7af   : > { %5393 = vperm.xlu1 %8132, %v13873_v46   ;;  %v8337_v17 = vpop.eup %8336 }
 0x7b0   : > { %v11960_v63 = vmul.f32 %v8337_v17, %v13879_v15  ;;  %v13892_v15 = vld [vmem:[#allocation21_spill] sm:$0xff] }
 0x7b1   : > { %v11942_v28 = vpop.permute.xlu1 %4169 }
 0x7b2   : > { %13874 = vst [vmem:[#allocation97_spill] sm:$0xff] %v11942_v28 }
 0x7b3   : > { %8133 = vset.pattern.permute.xlu1 %v13545_v34 }
 0x7b4   : > { %5563 = vperm.xlu1 %8133, %v13872_v54  }
 0x7b5   : > { %v11947_v22 = vpop.permute.xlu1 %4249 }
 0x7b6   : > { %13876 = vst [vmem:[#allocation37_spill] sm:$0xff] %v11947_v22 }
 0x7b8   : > { %5643 = vperm.xlu1 %8133, %v13873_v46  }
 0x7ba   : > { %v11950_v11 = vpop.permute.xlu1 %4419 }
 0x7bb   : > { %13877 = vst [vmem:[#allocation145_spill] sm:$0xff] %v11950_v11 }
 0x7bc   : > { %8134 = vset.pattern.permute.xlu1 %v13635_v61 }
 0x7bd   : > { %6035 = vperm.xlu1 %8134, %v13850_v0  }
 0x7be   : > { %v11954_v18 = vpop.permute.xlu1 %4499 }
 0x7bf   : > { %13878 = vst [vmem:[#allocation40_spill] sm:$0xff] %v11954_v18 }
 0x7c1   : > { %6115 = vperm.xlu1 %8134, %v13853_v39  }
 0x7c3   : > { %v11957_v34 = vpop.permute.xlu1 %4891 }
 0x7c5   : > { %8136 = vset.pattern.permute.xlu1 %v13880_v32 }
 0x7c6   : > { %4328 = vperm.xlu1 %8136, %v11960_v63  }
 0x7c7   : > { %v11964_v13 = vpop.permute.xlu1 %4971 }
 0x7ca   : > { %8137 = vset.pattern.permute.xlu1 %v13881_v42 }
 0x7cb   : > { %4571 = vperm.xlu1 %8137, %v11960_v63  }
 0x7cc   : > { %v11968_v0 = vpop.permute.xlu1 %5791 }
 0x7cd   : > { %13882 = vst [vmem:[#allocation53_spill] sm:$0xff] %v11968_v0 }
 0x7cf   : > { %8138 = vset.pattern.permute.xlu1 %v13870_v4 }
 0x7d0   : > { %4979 = vperm.xlu1 %8138, %v13868_v3   ;;  %v11972_v39 = vpop.permute.xlu1 %5871 }
 0x7d1   : > { %13883 = vst [vmem:[#allocation22_spill] sm:$0xff] %v11972_v39  ;;  %v13906_v39 = vmov 47  }
 0x7d4   : > { %8139 = vset.pattern.permute.xlu1 %v13884_v6 }
 0x7d5   : > { %5043 = vperm.xlu1 %8139, %v13885_v29   ;;  %v11976_v45 = vpop.permute.xlu1 %4173 }
 0x7d6   : > { %13886 = vst [vmem:[#allocation139_spill] sm:$0xff] %v11976_v45  ;;  %v13898_v45 = vld [vmem:[#allocation2_spill] sm:$0xff] }
 0x7d9   : > { %8140 = vset.pattern.permute.xlu1 %v13871_v58  ;;  %v11979_v41 = vpop.permute.xlu1 %4253 }
 0x7da   : > { %13887 = vst [vmem:[#allocation113_spill] sm:$0xff] %v11979_v41  ;;  %5879 = vperm.xlu1 %8140, %v13868_v3   ;;  %v13895_v3 = vld [vmem:[#allocation4_spill] sm:$0xff] }
 0x7de   : > { %8141 = vset.pattern.permute.xlu1 %v13888_v10  ;;  %v11983_v46 = vpop.permute.xlu1 %4423 }
 0x7df   : > { %13889 = vst [vmem:[#allocation103_spill] sm:$0xff] %v11983_v46  ;;  %5943 = vperm.xlu1 %8141, %v13890_v56  }
 0x7e2   : > { %v11986_v17 = vpop.permute.xlu1 %4503 }
 0x7e3   : > { %13891 = vst [vmem:[#allocation107_spill] sm:$0xff] %v11986_v17  ;;  %8142 = vset.pattern.permute.xlu1 %v13881_v42 }
 0x7e4   : > { %4575 = vperm.xlu1 %8142, %v13892_v15  }
 0x7e7   : > { %v11990_v29 = vpop.permute.xlu1 %4895 }
 0x7e8   : > { %13893 = vst [vmem:[#allocation121_spill] sm:$0xff] %v11990_v29  ;;  %8143 = vset.pattern.permute.xlu1 %v13870_v4  ;;  %v13900_v29 = vmov 42  }
 0x7e9   : > { %4903 = vperm.xlu1 %8143, %v13872_v54  }
 0x7eb   : > { %v11994_v41 = vpop.permute.xlu1 %4975 }
 0x7ec   : > { %13894 = vst [vmem:[#allocation129_spill] sm:$0xff] %v11994_v41 }
 0x7ed   : > { %8145 = vset.pattern.permute.xlu1 %v13884_v6 }
 0x7ee   : > { %5047 = vperm.xlu1 %8145, %v13895_v3   ;;  %v13902_v3 = vmov 45  }
 0x7f0   : > { %v11998_v46 = vpop.permute.xlu1 %5795 }
 0x7f1   : > { %13896 = vst [vmem:[#allocation143_spill] sm:$0xff] %v11998_v46  ;;  %v13903_v46 = vld [vmem:[#allocation55_spill] sm:$0xff] }
 0x7f2   : > { %8146 = vset.pattern.permute.xlu1 %v13871_v58 }
 0x7f3   : > { %5803 = vperm.xlu1 %8146, %v13872_v54  }
 0x7f4   : > { %v12002_v17 = vpop.permute.xlu1 %5875 }
 0x7f5   : > { %13897 = vst [vmem:[#allocation138_spill] sm:$0xff] %v12002_v17 }
 0x7f7   : > { %8148 = vset.pattern.permute.xlu1 %v13888_v10 }
 0x7f8   : > { %5947 = vperm.xlu1 %8148, %v13898_v45  }
 0x7f9   : > { %v12006_v4 = vpop.permute.xlu1 %4659 }
 0x7fa   : > { %13899 = vst [vmem:[#allocation122_spill] sm:$0xff] %v12006_v4 }
 0x7fc   : > { %8149 = vset.pattern.permute.xlu1 %v13900_v29 }
 0x7fd   : > { %4811 = vperm.xlu1 %8149, %v11960_v63   ;;  %v12010_v41 = vpop.permute.xlu1 %4739 }
 0x7fe   : > { %13901 = vst [vmem:[#allocation92_spill] sm:$0xff] %v12010_v41 }
 0x801   : > { %8150 = vset.pattern.permute.xlu1 %v13902_v3 }
 0x802   : > { %5711 = vperm.xlu1 %8150, %v13903_v46   ;;  %v12014_v58 = vpop.permute.xlu1 %5309 }
 0x803   : > { %13904 = vst [vmem:[#allocation106_spill] sm:$0xff] %v12014_v58  ;;  %v13910_v58 = vld [vmem:[#allocation135_spill] sm:$0xff] }
 0x806   : > { %8151 = vset.pattern.permute.xlu1 %v13635_v61  ;;  %v12017_v17 = vpop.permute.xlu1 %5389 }
 0x807   : > { %13905 = vst [vmem:[#allocation90_spill] sm:$0xff] %v12017_v17  ;;  %6039 = vperm.xlu1 %8151, %v13867_v1  }
 0x80b   : > { %8152 = vset.pattern.permute.xlu1 %v13906_v39  ;;  %v12021_v4 = vpop.permute.xlu1 %5559 }
 0x80c   : > { %13907 = vst [vmem:[#allocation117_spill] sm:$0xff] %v12021_v4  ;;  %6183 = vperm.xlu1 %8152, %v13890_v56   ;;  %v13914_v4 = vld [vmem:[#allocation74_spill] sm:$0xff] }
 0x80f   : > { %v12024_v0 = vpop.permute.xlu1 %5639 }
 0x810   : > { %13908 = vst [vmem:[#allocation134_spill] sm:$0xff] %v12024_v0  ;;  %8153 = vset.pattern.permute.xlu1 %v13900_v29 }
 0x811   : > { %4815 = vperm.xlu1 %8153, %v13892_v15  }
 0x814   : > { %v12028_v41 = vpop.permute.xlu1 %6031 }
 0x815   : > { %13909 = vst [vmem:[#allocation110_spill] sm:$0xff] %v12028_v41  ;;  %8154 = vset.pattern.permute.xlu1 %v13902_v3 }
 0x816   : > { %5715 = vperm.xlu1 %8154, %v13910_v58  }
 0x818   : > { %v12032_v17 = vpop.permute.xlu1 %6111 }
 0x819   : > { %13911 = vst [vmem:[#allocation148_spill] sm:$0xff] %v12032_v17  ;;  %v13925_v17 = vmov 44  }
 0x81a   : > { %8155 = vset.pattern.permute.xlu1 %v13635_v61 }
 0x81b   : > { %6043 = vperm.xlu1 %8155, %v13872_v54  }
 0x81d   : > { %v12036_v1 = vpop.permute.xlu1 %4663 }
 0x81e   : > { %13912 = vst [vmem:[#allocation51_spill] sm:$0xff] %v12036_v1 }
 0x81f   : > { %8157 = vset.pattern.permute.xlu1 %v13906_v39 }
 0x820   : > { %6187 = vperm.xlu1 %8157, %v13898_v45  }
 0x821   : > { %v12040_v56 = vpop.permute.xlu1 %4743 }
 0x822   : > { %13913 = vst [vmem:[#allocation56_spill] sm:$0xff] %v12040_v56  ;;  %v13921_v56 = vld [vmem:[#allocation128_spill] sm:$0xff] }
 0x824   : > { %8158 = vset.pattern.permute.xlu1 %v13880_v32  ;;  %v13919_v32 = vld [vmem:[#allocation15_spill] sm:$0xff] }
 0x825   : > { %4338 = vperm.xlu1 %8158, %v13914_v4  }
 0x826   : > { %v12044_v0 = vpop.permute.xlu1 %5313 }
 0x827   : > { %13915 = vst [vmem:[#allocation61_spill] sm:$0xff] %v12044_v0 }
 0x829   : > { %8160 = vset.pattern.permute.xlu1 %v13884_v6 }
 0x82a   : > { %5051 = vperm.xlu1 %8160, %v11960_v63   ;;  %v12048_v61 = vpop.permute.xlu1 %5393  ;;  %v12065_v63 = vld [vmem:[%s13282_s4] ss:$0 sm:$0xff] }
 0x82b   : > { %13916 = vst [vmem:[#allocation132_spill] sm:$0xff] %v12048_v61 }
 0x82e   : > { %8161 = vset.pattern.permute.xlu1 %v13888_v10 }
 0x82f   : > { %5951 = vperm.xlu1 %8161, %v13903_v46   ;;  %v12052_v54 = vpop.permute.xlu1 %5563 }
 0x830   : > { %13917 = vst [vmem:[#allocation115_spill] sm:$0xff] %v12052_v54  ;;  %v4750_v54 = vsub.f32 %v13921_v56, %v12065_v63  ;;  %v4910_v56 = vsub.f32 %v11844_v27, %v11755_v23  ;;  %v13927_v27 = vld [vmem:[#allocation41_spill] sm:$0xff] }
 0x833   : > { %8163 = vset.pattern.permute.xlu1 %v13881_v42  ;;  %v12055_v45 = vpop.permute.xlu1 %5643  ;;  %v13923_v42 = vld [vmem:[#allocation142_spill] sm:$0xff] }
 0x834   : > { %13918 = vst [vmem:[#allocation49_spill] sm:$0xff] %v12055_v45  ;;  %4583 = vperm.xlu1 %8163, %v13919_v32   ;;  %v4670_v45 = vsub.f32 %v13923_v42, %v11755_v23 }
 0x836   : > { %v4680_v61 = vand.u32 2147483647, %v4670_v45 }
 0x838   : > { %8164 = vset.pattern.permute.xlu1 %v13884_v6  ;;  %v12059_v1 = vpop.permute.xlu1 %6035  ;;  %v4690_v42 = vsub.f32 1.0, %v4680_v61  ;;  %v4830_v61 = vmul.f32 %v11738_v60, %v13927_v27 }
 0x839   : > { %13920 = vst [vmem:[#allocation100_spill] sm:$0xff] %v12059_v1  ;;  %5055 = vperm.xlu1 %8164, %v13892_v15   ;;  %v4760_v1 = vand.u32 2147483647, %v4750_v54  ;;  %v4990_v15 = vsub.f32 %v11848_v35, %v12065_v63  ;;  %v4920_v54 = vand.u32 2147483647, %v4910_v56 }
 0x83a   : > { %v4700_v35 = vmax.f32 %v4690_v42, 0.0 }
 0x83b   : > { %v4770_v11 = vsub.f32 1.0, %v4760_v1  ;;  %v5000_v28 = vand.u32 2147483647, %v4990_v15 }
 0x83c   : > { %v12069_v0 = vpop.permute.xlu1 %6115 }
 0x83d   : > { %13922 = vst [vmem:[#allocation3_spill] sm:$0xff] %v12069_v0  ;;  %8165 = vset.pattern.permute.xlu1 %v13900_v29  ;;  %v13926_v0 = vld [vmem:[#allocation95_spill] sm:$0xff]  ;;  %v5010_v45 = vsub.f32 1.0, %v5000_v28  ;;  %v4183_v28 = vsub.f32 %v11858_v9, %v11755_v23  ;;  %v4671_v9 = vsub.f32 %v11713_v36, %v11755_v23 }
 0x83e   : > { %4819 = vperm.xlu1 %8165, %v13914_v4   ;;  %v4780_v4 = vmax.f32 %v4770_v11, 0.0  ;;  %v4263_v11 = vsub.f32 %v11862_v20, %v12065_v63  ;;  %v13929_v20 = vld [vmem:[#allocation85_spill] sm:$0xff] }
 0x83f   : > { %v5020_v15 = vmax.f32 %v5010_v45, 0.0  ;;  %v13928_v45 = vld [vmem:[#allocation46_spill] sm:$0xff]  ;;  %v4193_v27 = vand.u32 2147483647, %v4183_v28 }
 0x841   : > { %v12077_v41 = vpop.permute.xlu1 %4328 }
 0x842   : > { %13924 = vst [vmem:[#allocation101_spill] sm:$0xff] %v12077_v41  ;;  %8166 = vset.pattern.permute.xlu1 %v13925_v17  ;;  %v4840_v41 = vmul.f32 %v4780_v4, %v4700_v35  ;;  %v4930_v17 = vsub.f32 1.0, %v4920_v54  ;;  %v4273_v54 = vand.u32 2147483647, %v4263_v11  ;;  %v4433_v35 = vsub.f32 %v11865_v21, %v11755_v23 }
 0x843   : > { %5478 = vperm.xlu1 %8166, %v13926_v0   ;;  %v4681_v21 = vand.u32 2147483647, %v4671_v9 }
 0x844   : > { %v4850_v56 = vmul.f32 %v4840_v41, %v4830_v61  ;;  %v4940_v22 = vmax.f32 %v4930_v17, 0.0  ;;  %v4283_v11 = vsub.f32 1.0, %v4273_v54 }
 0x845   : > { %v4691_v54 = vsub.f32 1.0, %v4681_v21 }
 0x846   : > { %v12083_v18 = vpop.permute.xlu1 %4571  ;;  %v5080_v4 = vmul.f32 %v5020_v15, %v4940_v22  ;;  %v4860_v41 = vadd.f32 %v4850_v56, %v13929_v20  ;;  %v13930_v15 = vld [vmem:[#allocation65_spill] sm:$0xff]  ;;  %v4203_v56 = vsub.f32 1.0, %v4193_v27  ;;  %v4293_v28 = vmax.f32 %v4283_v11, 0.0 }
 0x847   : > { %8168 = vset.pattern.permute.xlu1 %v13906_v39 }
 0x848   : > { %6191 = vperm.xlu1 %8168, %v13903_v46   ;;  %v4513_v46 = vsub.f32 %v11869_v44, %v12065_v63 }
 0x84a   : > { %v4523_v44 = vand.u32 2147483647, %v4513_v46 }
 0x84b   : > { %v12087_v1 = vpop.permute.xlu1 %4979 }
 0x84c   : > { %8169 = vset.pattern.permute.xlu1 %v13900_v29 }
 0x84d   : > { %4823 = vperm.xlu1 %8169, %v13919_v32  }
 0x850   : > { %v5044_v42 = vpop.permute.xlu1 %5043 }
 0x851   : > { %v5070_v29 = vmul.f32 %v11738_v60, %v5044_v42  ;;  %8171 = vset.pattern.permute.xlu1 %v13902_v3  ;;  %v4751_v3 = vsub.f32 %v13930_v15, %v12065_v63  ;;  %v4443_v42 = vand.u32 2147483647, %v4433_v35  ;;  %v4213_v35 = vmax.f32 %v4203_v56, 0.0 }
 0x852   : > { %5723 = vperm.xlu1 %8171, %v13928_v45  }
 0x853   : > { %v5090_v17 = vmul.f32 %v5080_v4, %v5070_v29  ;;  %v4533_v4 = vsub.f32 1.0, %v4523_v44  ;;  %v4761_v36 = vand.u32 2147483647, %v4751_v3  ;;  %v4453_v46 = vsub.f32 1.0, %v4443_v42 }
 0x854   : > { %v4991_v29 = vsub.f32 %v11876_v31, %v12065_v63  ;;  %v4363_v9 = vmul.f32 %v4293_v28, %v4213_v35  ;;  %v4701_v3 = vmax.f32 %v4691_v54, 0.0  ;;  %v6416_v54 = vld [vmem:[%s12908_s11] sm:$0xff] }
 0x855   : > { %v5100_v61 = vadd.f32 %v5090_v17, %v4860_v41  ;;  %v12107_v22 = vpop.permute.xlu1 %5879  ;;  %v4543_v41 = vmax.f32 %v4533_v4, 0.0  ;;  %v4771_v17 = vsub.f32 1.0, %v4761_v36  ;;  %v4463_v27 = vmax.f32 %v4453_v46, 0.0  ;;  %v13932_v35 = vld [vmem:[#allocation130_spill] sm:$0xff] }
 0x856   : > { %8172 = vset.pattern.permute.xlu1 %v13906_v39  ;;  %v5001_v44 = vand.u32 2147483647, %v4991_v29 }
 0x857   : > { %6195 = vperm.xlu1 %8172, %v13910_v58   ;;  %7787 = vmatprep.mubr.msk.f32.mxu0 %vm3845_vm6, %v5100_v61  ;;  %v4911_v58 = vsub.f32 %v11872_v43, %v11755_v23  ;;  %v13931_v61 = vld [vmem:[#allocation119_spill] sm:$0xff]  ;;  %v4603_v42 = vmul.f32 %v4543_v41, %v4463_v27  ;;  %v6418_v43 = vld [vmem:[%s12908_s11 + $0x10] sm:$0xff]  ;;  %v4781_v56 = vmax.f32 %v4771_v17, 0.0  ;;  %v4831_v41 = vmul.f32 %v11738_v60, %v13932_v35 }
 0x858   : > { %v4353_v15 = vmul.f32 %v11680_v47, %v13931_v61  ;;  %v5011_v4 = vsub.f32 1.0, %v5001_v44 }
 0x859   : > { %v4921_v11 = vand.u32 2147483647, %v4911_v58  ;;  %v4841_v46 = vmul.f32 %v4781_v56, %v4701_v3  ;;  %v5322_v3 = vsub.f32 %v11893_v8, %v11755_v23 }
 0x85a   : > { %v12116_v20 = vpop.permute.xlu1 %5943  ;;  %v4373_v36 = vmul.f32 %v4363_v9, %v4353_v15  ;;  %v5021_v58 = vmax.f32 %v5011_v4, 0.0  ;;  %v13933_v15 = vld [vmem:[#allocation140_spill] sm:$0xff]  ;;  %v5890_v4 = vsub.f32 %v11855_v26, %v12065_v63  ;;  %v6050_v26 = vsub.f32 %v11907_v48, %v11755_v23 }
 0x85b   : > { %8174 = vset.pattern.permute.xlu1 %v13888_v10  ;;  %v6419_v10 = vld [vmem:[%s12908_s11 + $0x18] sm:$0xff]  ;;  %v4851_v17 = vmul.f32 %v4841_v46, %v4831_v41 }
 0x85c   : > { %5959 = vperm.xlu1 %8174, %v13926_v0   ;;  %7831 = vmatprep.subr.mxu0 %v6419_v10  ;;  %v5900_v46 = vand.u32 2147483647, %v5890_v4 }
 0x85d   : > { %7832 = vmatpush3.msra.mxu0 %v6419_v10 }
 0x85e   : > { %7833 = vmatprep.subr.mxu0 %v6418_v43 }
 0x85f   : > { %v4576_v31 = vpop.permute.xlu1 %4575  ;;  %7834 = vmatpush3.msra.mxu0 %v6418_v43  ;;  %v5572_v43 = vsub.f32 %v11900_v59, %v11755_v23  ;;  %v6130_v59 = vsub.f32 %v11911_v2, %v12065_v63 }
 0x860   : > { %v4593_v21 = vmul.f32 %v11680_v47, %v4576_v31  ;;  %8175 = vset.pattern.permute.xlu1 %v13884_v6  ;;  %v6417_v47 = vld [vmem:[%s12908_s11 + $0x8] sm:$0xff]  ;;  %v4931_v6 = vsub.f32 1.0, %v4921_v11  ;;  %v4861_v31 = vadd.f32 %v4851_v17, %v13933_v15 }
 0x861   : > { %5063 = vperm.xlu1 %8175, %v13919_v32   ;;  %7835 = vmatprep.subr.mxu0 %v6417_v47 }
 0x862   : > { %v4613_v28 = vmul.f32 %v4603_v42, %v4593_v21  ;;  %7836 = vmatpush3.msra.mxu0 %v6417_v47  ;;  %v4941_v9 = vmax.f32 %v4931_v6, 0.0 }
 0x863   : > { %7837 = vmatprep.subr.mxu0 %v6416_v54 }
 0x864   : > { %v12136_v29 = vadd.f32 %v4613_v28, %v4373_v36  ;;  %v12138_v32 = vpop.permute.xlu1 %4903  ;;  %7838 = vmatpush3.msra.mxu0 %v6416_v54  ;;  %v5081_v44 = vmul.f32 %v5021_v58, %v4941_v9  ;;  %v5582_v36 = vand.u32 2147483647, %v5572_v43  ;;  %v5910_v9 = vsub.f32 1.0, %v5900_v46 }
 0x865   : > { %8176 = vset.pattern.permute.xlu1 %v13906_v39  ;;  %v5402_v39 = vsub.f32 %v11897_v16, %v12065_v63 }
 0x866   : > { %6199 = vperm.xlu1 %8176, %v13926_v0   ;;  %v5652_v0 = vsub.f32 %v11904_v62, %v12065_v63  ;;  %v5810_v62 = vsub.f32 %v11851_v30, %v11755_v23  ;;  %v5592_v54 = vsub.f32 1.0, %v5582_v36  ;;  %v6140_v30 = vand.u32 2147483647, %v6130_v59  ;;  %v13937_v59 = vld [vmem:[#allocation5_spill] sm:$0xff] }
 0x867   : > { %v5412_v21 = vand.u32 2147483647, %v5402_v39  ;;  %v13934_v39 = vld [vmem:[#allocation124_spill] sm:$0xff]  ;;  %v5970_v36 = vmul.f32 %v11738_v60, %v12116_v20  ;;  %v5891_v20 = vsub.f32 %v11883_v33, %v12065_v63  ;;  %v4432_v33 = vsub.f32 %v11836_v49, %v11755_v23 }
 0x868   : > { %v5662_v16 = vand.u32 2147483647, %v5652_v0  ;;  %v5820_v41 = vand.u32 2147483647, %v5810_v62  ;;  %v6150_v48 = vsub.f32 1.0, %v6140_v30 }
 0x869   : > { %v5048_v27 = vpop.permute.xlu1 %5047  ;;  %v5422_v8 = vsub.f32 1.0, %v5412_v21 }
 0x86a   : > { %v5071_v61 = vmul.f32 %v11738_v60, %v5048_v27  ;;  %6203 = vperm.xlu1 %8176, %v13928_v45   ;;  %v5332_v45 = vand.u32 2147483647, %v5322_v3  ;;  %v5672_v47 = vsub.f32 1.0, %v5662_v16 }
 0x86b   : > { %v5432_v6 = vmax.f32 %v5422_v8, 0.0 }
 0x86c   : > { %v5091_v10 = vmul.f32 %v5081_v44, %v5071_v61  ;;  %v5342_v28 = vsub.f32 1.0, %v5332_v45  ;;  %v5682_v17 = vmax.f32 %v5672_v47, 0.0  ;;  %v5602_v44 = vmax.f32 %v5592_v54, 0.0  ;;  %v12176_v61 = vld [vmem:[%s13282_s4 + $0x2] ss:$0 sm:$0xff]  ;;  %v13935_v45 = vld [vmem:[#allocation147_spill] sm:$0xff] }
 0x86d   : > { %v5492_v2 = vmul.f32 %v12176_v61, %v13934_v39  ;;  %v4914_v16 = vsub.f32 %v13935_v45, %v11755_v23  ;;  %v6160_v47 = vmax.f32 %v6150_v48, 0.0  ;;  %v4262_v48 = vsub.f32 %v11832_v53, %v12065_v63 }
 0x86e   : > { %v5101_v11 = vadd.f32 %v5091_v10, %v4861_v31  ;;  %v12156_v42 = vpop.permute.xlu1 %5803  ;;  %v5352_v58 = vmax.f32 %v5342_v28, 0.0  ;;  %v5830_v31 = vsub.f32 1.0, %v5820_v41  ;;  %v6060_v10 = vand.u32 2147483647, %v6050_v26 }
 0x86f   : > { %v5742_v3 = vmul.f32 %v5682_v17, %v5602_v44  ;;  %v5895_v41 = vsub.f32 %v13937_v59, %v12065_v63 }
 0x870   : > { %7788 = vmatmul.mubr.msk.f32.gmra.mxu0 %vm3845_vm6, %v5101_v11  ;;  %v5502_v27 = vmul.f32 %v5432_v6, %v5352_v58  ;;  %v5920_v11 = vmax.f32 %v5910_v9, 0.0  ;;  %v5840_v4 = vmax.f32 %v5830_v31, 0.0  ;;  %v6070_v8 = vsub.f32 1.0, %v6060_v10  ;;  %v13936_v6 = vld [vmem:[#allocation114_spill] sm:$0xff] }
 0x871   : > { %v5814_v54 = vsub.f32 %v13936_v6, %v11755_v23  ;;  %v4924_v58 = vand.u32 2147483647, %v4914_v16  ;;  %v4182_v31 = vsub.f32 %v11824_v50, %v11755_v23  ;;  %v6131_v50 = vsub.f32 %v11939_v14, %v12065_v63 }
 0x872   : > { %v5512_v21 = vmul.f32 %v5502_v27, %v5492_v2  ;;  %v5980_v46 = vmul.f32 %v5920_v11, %v5840_v4  ;;  %v6080_v17 = vmax.f32 %v6070_v8, 0.0  ;;  %v13938_v27 = vld [vmem:[#allocation99_spill] sm:$0xff]  ;;  %v13939_v4 = vld [vmem:[#allocation112_spill] sm:$0xff]  ;;  %v4672_v6 = vsub.f32 %v11886_v40, %v11755_v23 }
 0x873   : > { %v12161_v56 = vpop.permute.xlu1 %5947  ;;  %v4995_v44 = vsub.f32 %v13938_v27, %v12065_v63  ;;  %v5824_v2 = vand.u32 2147483647, %v5814_v54  ;;  %v4934_v10 = vsub.f32 1.0, %v4924_v58  ;;  %v6134_v53 = vsub.f32 %v13939_v4, %v12065_v63 }
 0x874   : > { %v5990_v26 = vmul.f32 %v5980_v46, %v5970_v36  ;;  %v6220_v30 = vmul.f32 %v6160_v47, %v6080_v17  ;;  %v4192_v8 = vand.u32 2147483647, %v4182_v31  ;;  %v4272_v47 = vand.u32 2147483647, %v4262_v48 }
 0x875   : > { %v12217_v36 = vmax.f32 %v4934_v10, 0.0  ;;  %v4442_v46 = vand.u32 2147483647, %v4432_v33  ;;  %v6141_v58 = vand.u32 2147483647, %v6131_v50  ;;  %v13942_v10 = vld [vmem:[#allocation83_spill] sm:$0xff]  ;;  %v4753_v50 = vsub.f32 %v11918_v38, %v12065_v63 }
 0x876   : > { %v4682_v31 = vand.u32 2147483647, %v4672_v6  ;;  %v4992_v4 = vsub.f32 %v11964_v13, %v12065_v63 }
 0x877   : > { %v6151_v48 = vsub.f32 1.0, %v6141_v58 }
 0x878   : > { %v12169_v35 = vpop.permute.xlu1 %4811 }
 0x87d   : > { %v5712_v15 = vpop.permute.xlu1 %5711 }
 0x87e   : > { %v5732_v0 = vmul.f32 %v12176_v61, %v5712_v15  ;;  %v5905_v15 = vand.u32 2147483647, %v5895_v41  ;;  %v4752_v41 = vsub.f32 %v11890_v55, %v12065_v63 }
 0x880   : > { %v5752_v43 = vmul.f32 %v5742_v3, %v5732_v0  ;;  %v5811_v3 = vsub.f32 %v11879_v25, %v11755_v23  ;;  %v6000_v0 = vadd.f32 %v5990_v26, %v11705_v37  ;;  %v5834_v37 = vsub.f32 1.0, %v5824_v2 }
 0x881   : > { %v5915_v16 = vsub.f32 1.0, %v5905_v15  ;;  %v4452_v2 = vsub.f32 1.0, %v4442_v46 }
 0x882   : > { %v12185_v62 = vadd.f32 %v5752_v43, %v5512_v21  ;;  %v12187_v28 = vpop.permute.xlu1 %6039  ;;  %v12209_v21 = vand.u32 2147483647, %v4995_v44  ;;  %v5901_v43 = vand.u32 2147483647, %v5891_v20  ;;  %v5821_v49 = vand.u32 2147483647, %v5811_v3 }
 0x883   : > { %v12227_v17 = vmax.f32 %v5834_v37, 0.0  ;;  %v12229_v26 = vmax.f32 %v5915_v16, 0.0  ;;  %v13940_v44 = vld [vmem:[#allocation75_spill] sm:$0xff]  ;;  %v12245_v3 = vmul.f32 %v12176_v61, %v13942_v10  ;;  %v4462_v38 = vmax.f32 %v4452_v2, 0.0 }
 0x884   : > { %v5911_v59 = vsub.f32 1.0, %v5901_v43  ;;  %v12237_v20 = vmul.f32 %v12176_v61, %v13940_v44 }
 0x887   : > { %v6184_v9 = vpop.permute.xlu1 %6183 }
 0x888   : > { %v6210_v39 = vmul.f32 %v11738_v60, %v6184_v9  ;;  %v4512_v60 = vsub.f32 %v11841_v52, %v12065_v63  ;;  %v6051_v52 = vsub.f32 %v11935_v7, %v11755_v23  ;;  %v12231_v7 = vand.u32 2147483647, %v6134_v53  ;;  %v13941_v23 = vld [vmem:[#allocation43_spill] sm:$0xff]  ;;  %v12263_v53 = vld [vmem:[%s13282_s4 + $0x3] ss:$0 sm:$0xff] }
 0x889   : > { %v4202_v9 = vsub.f32 1.0, %v4192_v8  ;;  %v12241_v40 = vmul.f32 %v12176_v61, %v13941_v23  ;;  %v5971_v8 = vmul.f32 %v12263_v53, %v12161_v56  ;;  %v13943_v56 = vld [vmem:[#allocation66_spill] sm:$0xff] }
 0x88a   : > { %v6230_v11 = vmul.f32 %v6220_v30, %v6210_v39  ;;  %v4522_v14 = vand.u32 2147483647, %v4512_v60  ;;  %v5831_v30 = vsub.f32 1.0, %v5821_v49  ;;  %v6061_v55 = vand.u32 2147483647, %v6051_v52 }
 0x88b   : > { %v4282_v39 = vsub.f32 1.0, %v4272_v47  ;;  %v4212_v33 = vmax.f32 %v4202_v9, 0.0  ;;  %v12250_v60 = vld [vmem:[%s13282_s4 + $0x1] ss:$0 sm:$0xff]  ;;  %v4692_v47 = vsub.f32 1.0, %v4682_v31  ;;  %v5403_v9 = vsub.f32 %v11925_v51, %v12065_v63 }
 0x88c   : > { %v6240_v45 = vadd.f32 %v6230_v11, %v6000_v0  ;;  %v12213_v25 = vpop.permute.xlu1 %4815  ;;  %v4532_v15 = vsub.f32 1.0, %v4522_v14  ;;  %v5921_v0 = vmax.f32 %v5911_v59, 0.0  ;;  %v4762_v11 = vand.u32 2147483647, %v4752_v41 }
 0x88d   : > { %v4673_v43 = vsub.f32 %v11914_v12, %v12250_v60  ;;  %v5841_v37 = vmax.f32 %v5831_v30, 0.0  ;;  %v6071_v16 = vsub.f32 1.0, %v6061_v55  ;;  %v4292_v49 = vmax.f32 %v4282_v39, 0.0 }
 0x88e   : > { %7822 = vmatprep.mubr.msk.f32.mxu1 %vm3845_vm6, %v6240_v45  ;;  %v5323_v45 = vsub.f32 %v11921_v57, %v12250_v60  ;;  %v4542_v52 = vmax.f32 %v4532_v15, 0.0  ;;  %v5060_v57 = vpop.permute.xlu0 %5059  ;;  %v4772_v46 = vsub.f32 1.0, %v4762_v11  ;;  %v6161_v14 = vmax.f32 %v6151_v48, 0.0 }
 0x88f   : > { %v4912_v13 = vsub.f32 %v11957_v34, %v12250_v60  ;;  %v5981_v6 = vmul.f32 %v5921_v0, %v5841_v37  ;;  %v4683_v59 = vand.u32 2147483647, %v4673_v43  ;;  %v4763_v41 = vand.u32 2147483647, %v4753_v50 }
 0x890   : > { %v5333_v58 = vand.u32 2147483647, %v5323_v45  ;;  %v12275_v44 = vmul.f32 %v12176_v61, %v13943_v56  ;;  %v6081_v23 = vmax.f32 %v6071_v16, 0.0  ;;  %v5002_v30 = vand.u32 2147483647, %v4992_v4  ;;  %v13947_v56 = vld [vmem:[#allocation97_spill] sm:$0xff] }
 0x891   : > { %v12233_v27 = vpop.permute.xlu1 %5715  ;;  %v5991_v55 = vmul.f32 %v5981_v6, %v5971_v8  ;;  %v12278_v39 = vmul.f32 %v12263_v53, %v5060_v57  ;;  %v4362_v2 = vmul.f32 %v4292_v49, %v4212_v33  ;;  %v4602_v15 = vmul.f32 %v4542_v52, %v4462_v38  ;;  %v13944_v38 = vld [vmem:[#allocation37_spill] sm:$0xff] }
 0x892   : > { %v4702_v34 = vmax.f32 %v4692_v47, 0.0  ;;  %v4782_v10 = vmax.f32 %v4772_v46, 0.0  ;;  %v4922_v0 = vand.u32 2147483647, %v4912_v13  ;;  %v6221_v11 = vmul.f32 %v6161_v14, %v6081_v23  ;;  %v13945_v47 = vld [vmem:[#allocation40_spill] sm:$0xff]  ;;  %v13946_v14 = vld [vmem:[#allocation101_spill] sm:$0xff] }
 0x893   : > { %v4693_v51 = vsub.f32 1.0, %v4683_v59  ;;  %v4773_v43 = vsub.f32 1.0, %v4763_v41  ;;  %v5343_v50 = vsub.f32 1.0, %v5333_v58  ;;  %v5413_v45 = vand.u32 2147483647, %v5403_v9  ;;  %v5956_v58 = vpop.permute.xlu0 %5955 }
 0x894   : > { %v5012_v37 = vsub.f32 1.0, %v5002_v30  ;;  %v4592_v16 = vmul.f32 %v12176_v61, %v12083_v18  ;;  %v6001_v4 = vadd.f32 %v5991_v55, %v11820_v5  ;;  %v5573_v33 = vsub.f32 %v11928_v19, %v12250_v60 }
 0x895   : > { %v5653_v49 = vsub.f32 %v11932_v24, %v12065_v63  ;;  %v4264_v52 = vsub.f32 %v13944_v38, %v12065_v63  ;;  %v4514_v57 = vsub.f32 %v13945_v47, %v12065_v63  ;;  %v4932_v46 = vsub.f32 1.0, %v4922_v0 }
 0x896   : > { %v12267_v12 = vpop.permute.xlu1 %6043  ;;  %v4352_v13 = vmul.f32 %v12176_v61, %v13946_v14  ;;  %v4832_v5 = vmul.f32 %v12263_v53, %v12169_v35  ;;  %v4703_v19 = vmax.f32 %v4693_v51, 0.0  ;;  %v4783_v59 = vmax.f32 %v4773_v43, 0.0  ;;  %v13948_v35 = vld [vmem:[#allocation145_spill] sm:$0xff] }
 0x897   : > { %v5423_v41 = vsub.f32 1.0, %v5413_v45  ;;  %v4842_v24 = vmul.f32 %v4782_v10, %v4702_v34  ;;  %v5353_v9 = vmax.f32 %v5343_v50, 0.0  ;;  %v4184_v23 = vsub.f32 %v13947_v56, %v12250_v60  ;;  %v13949_v10 = vld [vmem:[#allocation53_spill] sm:$0xff] }
 0x898   : > { %v5022_v30 = vmax.f32 %v5012_v37, 0.0  ;;  %v4612_v55 = vmul.f32 %v4602_v15, %v4592_v16  ;;  %v5663_v0 = vand.u32 2147483647, %v5653_v49  ;;  %v4942_v51 = vmax.f32 %v4932_v46, 0.0  ;;  %v13951_v15 = vld [vmem:[#allocation129_spill] sm:$0xff] }
 0x899   : > { %v4372_v43 = vmul.f32 %v4362_v2, %v4352_v13  ;;  %v4852_v45 = vmul.f32 %v4842_v24, %v4832_v5  ;;  %v5433_v34 = vmax.f32 %v5423_v41, 0.0  ;;  %v5812_v50 = vsub.f32 %v13949_v10, %v12250_v60  ;;  %v13952_v14 = vld [vmem:[#allocation121_spill] sm:$0xff]  ;;  %v5964_v5 = vpop.permute.xlu0 %5963 }
 0x89a   : > { %v4993_v16 = vsub.f32 %v13951_v15, %v12065_v63  ;;  %v4194_v49 = vand.u32 2147483647, %v4184_v23  ;;  %v5673_v46 = vsub.f32 1.0, %v5663_v0  ;;  %v4913_v13 = vsub.f32 %v13952_v14, %v12250_v60 }
 0x89b   : > { %v6188_v31 = vpop.permute.xlu1 %6187  ;;  %v4622_v38 = vadd.f32 %v4612_v55, %v4372_v43  ;;  %v5822_v10 = vand.u32 2147483647, %v5812_v50  ;;  %v4994_v0 = vsub.f32 %v12087_v1, %v12065_v63 }
 0x89c   : > { %v6211_v48 = vmul.f32 %v12263_v53, %v6188_v31  ;;  %v5583_v31 = vand.u32 2147483647, %v5573_v33  ;;  %v5003_v55 = vand.u32 2147483647, %v4993_v16  ;;  %v4843_v16 = vmul.f32 %v4783_v59, %v4703_v19  ;;  %v13955_v19 = vld [vmem:[#allocation139_spill] sm:$0xff] }
 0x89d   : > { %v4862_v24 = vadd.f32 %v4852_v45, %v4622_v38  ;;  %v4185_v59 = vsub.f32 %v13955_v19, %v12250_v60 }
 0x89e   : > { %v6231_v8 = vmul.f32 %v6221_v11, %v6211_v48  ;;  %v4274_v11 = vand.u32 2147483647, %v4264_v52  ;;  %v4434_v48 = vsub.f32 %v13948_v35, %v12250_v60  ;;  %v5082_v52 = vmul.f32 %v5022_v30, %v4942_v51  ;;  %v13953_v51 = vld [vmem:[#allocation92_spill] sm:$0xff] }
 0x89f   : > { %v12313_v35 = vmul.f32 %v12263_v53, %v5956_v58  ;;  %v4204_v30 = vsub.f32 1.0, %v4194_v49  ;;  %v4923_v58 = vand.u32 2147483647, %v4913_v13  ;;  %v5832_v49 = vsub.f32 1.0, %v5822_v10 }
 0x8a0   : > { %v6241_v18 = vadd.f32 %v6231_v8, %v6001_v4  ;;  %v12296_v6 = vpop.permute.xlu1 %4338  ;;  %v4524_v4 = vand.u32 2147483647, %v4514_v57  ;;  %v13950_v8 = vld [vmem:[#allocation22_spill] sm:$0xff]  ;;  %v5593_v57 = vsub.f32 1.0, %v5583_v31  ;;  %v4444_v2 = vand.u32 2147483647, %v4434_v48 }
 0x8a1   : > { %v5892_v37 = vsub.f32 %v13950_v8, %v12065_v63  ;;  %v4754_v31 = vsub.f32 %v13953_v51, %v12065_v63  ;;  %v5683_v8 = vmax.f32 %v5673_v46, 0.0  ;;  %v5013_v38 = vsub.f32 1.0, %v5003_v55  ;;  %v12338_v55 = vpop.f32.mrf.mxu1 }
 0x8a2   : > { %7823 = vmatmul.mubr.msk.f32.gmra.mxu1 %vm3845_vm6, %v6241_v18  ;;  %v4284_v18 = vsub.f32 1.0, %v4274_v11  ;;  %v4534_v41 = vsub.f32 1.0, %v4524_v4  ;;  %v12322_v11 = vmul.f32 %v12263_v53, %v5964_v5  ;;  %v5503_v4 = vmul.f32 %v5433_v34, %v5353_v9  ;;  %13956 = vst [vmem:[#allocation141_spill] sm:$0xff] %v12338_v55 }
 0x8a3   : > { %v5902_v23 = vand.u32 2147483647, %v5892_v37  ;;  %v4454_v45 = vsub.f32 1.0, %v4444_v2  ;;  %v13954_v37 = vld [vmem:[#allocation122_spill] sm:$0xff]  ;;  %v4764_v14 = vand.u32 2147483647, %v4754_v31  ;;  %v4833_v34 = vmul.f32 %v12263_v53, %v12213_v25  ;;  %v12357_v19 = vpop.f32.mrf.mxu1 }
 0x8a4   : > { %v4294_v50 = vmax.f32 %v4284_v18, 0.0  ;;  %v4674_v15 = vsub.f32 %v13954_v37, %v12250_v60  ;;  %v5004_v5 = vand.u32 2147483647, %v4994_v0  ;;  %v4933_v9 = vsub.f32 1.0, %v4923_v58  ;;  %v13957_v25 = vld [vmem:[#allocation113_spill] sm:$0xff]  ;;  %v13960_v58 = vld [vmem:[#allocation138_spill] sm:$0xff] }
 0x8a5   : > { %v5052_v33 = vpop.permute.xlu1 %5051  ;;  %v5912_v1 = vsub.f32 1.0, %v5902_v23  ;;  %v12330_v46 = vmul.f32 %v5503_v4, %v12245_v3  ;;  %v5023_v23 = vmax.f32 %v5013_v38, 0.0  ;;  %v13958_v3 = vld [vmem:[#allocation103_spill] sm:$0xff]  ;;  %v4774_v31 = vsub.f32 1.0, %v4764_v14  ;;  %v13963_v14 = vld [vmem:[#allocation110_spill] sm:$0xff] }
 0x8a6   : > { %v5072_v47 = vmul.f32 %v12263_v53, %v5052_v33  ;;  %v4544_v33 = vmax.f32 %v4534_v41, 0.0  ;;  %v4684_v13 = vand.u32 2147483647, %v4674_v15  ;;  %v4435_v51 = vsub.f32 %v13958_v3, %v12250_v60 }
 0x8a7   : > { %v5922_v10 = vmax.f32 %v5912_v1, 0.0  ;;  %v5014_v0 = vsub.f32 1.0, %v5004_v5  ;;  %v4195_v37 = vand.u32 2147483647, %v4185_v59  ;;  %v4354_v1 = vmul.f32 %v12176_v61, %v12296_v6 }
 0x8a8   : > { %v5092_v56 = vmul.f32 %v5082_v52, %v5072_v47  ;;  %v5603_v52 = vmax.f32 %v5593_v57, 0.0  ;;  %v4214_v47 = vmax.f32 %v4204_v30, 0.0  ;;  %v4265_v30 = vsub.f32 %v13957_v25, %v12065_v63  ;;  %v12359_v25 = vpop.f32.mrf.mxu0 }
 0x8a9   : > { %v4694_v15 = vsub.f32 1.0, %v4684_v13  ;;  %v6052_v5 = vsub.f32 %v13963_v14, %v12250_v60  ;;  %v4784_v59 = vmax.f32 %v4774_v31, 0.0  ;;  %v5024_v13 = vmax.f32 %v5014_v0, 0.0 }
 0x8aa   : > { %v5102_v48 = vadd.f32 %v5092_v56, %v4862_v24  ;;  %v12319_v43 = vpop.permute.xlu1 %5951  ;;  %v4464_v24 = vmax.f32 %v4454_v45, 0.0  ;;  %v12336_v18 = vmul.f32 %v5683_v8, %v5603_v52  ;;  %v4364_v57 = vmul.f32 %v4294_v50, %v4214_v47  ;;  %v13962_v52 = vld [vmem:[#allocation143_spill] sm:$0xff] }
 0x8ab   : > { %v5842_v56 = vmax.f32 %v5832_v49, 0.0  ;;  %v4943_v45 = vmax.f32 %v4933_v9, 0.0  ;;  %v5893_v8 = vsub.f32 %v13960_v58, %v12065_v63  ;;  %v4853_v50 = vmul.f32 %v4843_v16, %v4833_v34 }
 0x8ac   : > { %7790 = vmatprep.mubr.msk.f32.mxu0 %vm3845_vm6, %v5102_v48  ;;  %v4604_v41 = vmul.f32 %v4544_v33, %v4464_v24  ;;  %v13959_v48 = vld [vmem:[#allocation107_spill] sm:$0xff]  ;;  %v13961_v33 = vld [vmem:[#allocation148_spill] sm:$0xff]  ;;  %v5813_v47 = vsub.f32 %v13962_v52, %v12250_v60  ;;  %v4275_v16 = vand.u32 2147483647, %v4265_v30  ;;  %v4445_v34 = vand.u32 2147483647, %v4435_v51  ;;  %v12363_v51 = vpop.f32.mrf.mxu1 }
 0x8ad   : > { %v4515_v4 = vsub.f32 %v13959_v48, %v12065_v63  ;;  %v6132_v49 = vsub.f32 %v13961_v33, %v12065_v63  ;;  %v5083_v24 = vmul.f32 %v5023_v23, %v4943_v45  ;;  %v5903_v6 = vand.u32 2147483647, %v5893_v8 }
 0x8ae   : > { %v4863_v48 = vadd.f32 %v4853_v50, %v12136_v29  ;;  %v4704_v33 = vmax.f32 %v4694_v15, 0.0  ;;  %v4614_v14 = vmul.f32 %v4604_v41, %v12237_v20  ;;  %v4374_v23 = vmul.f32 %v4364_v57, %v4354_v1  ;;  %v12367_v29 = vpop.f32.mrf.mxu0  ;;  %v13964_v41 = vld [vmem:[#allocation132_spill] sm:$0xff] }
 0x8af   : > { %v12332_v2 = vpop.permute.xlu1 %4583  ;;  %v4525_v3 = vand.u32 2147483647, %v4515_v4  ;;  %v6142_v52 = vand.u32 2147483647, %v6132_v49  ;;  %v5823_v45 = vand.u32 2147483647, %v5813_v47  ;;  %v5982_v54 = vmul.f32 %v5922_v10, %v5842_v56 }
 0x8b0   : > { %v4205_v31 = vsub.f32 1.0, %v4195_v37  ;;  %v5084_v0 = vmul.f32 %v5024_v13, %v12217_v36  ;;  %v4844_v4 = vmul.f32 %v4784_v59, %v4704_v33  ;;  %v4285_v50 = vsub.f32 1.0, %v4275_v16  ;;  %v12372_v37 = vpop.f32.mrf.mxu0 }
 0x8b1   : > { %v4455_v15 = vsub.f32 1.0, %v4445_v34  ;;  %v4535_v49 = vsub.f32 1.0, %v4525_v3  ;;  %v5913_v20 = vsub.f32 1.0, %v5903_v6  ;;  %v6152_v57 = vsub.f32 1.0, %v6142_v52  ;;  %v12378_v34 = vpop.f32.mrf.mxu1 }
 0x8b2   : > { %v5405_v56 = vsub.f32 %v13964_v41, %v12065_v63  ;;  %v4624_v10 = vadd.f32 %v4614_v14, %v4374_v23  ;;  %v5833_v36 = vsub.f32 1.0, %v5823_v45  ;;  %v5815_v59 = vsub.f32 %v12156_v42, %v12250_v60  ;;  %v12395_v42 = vpop.f32.mrf.mxu0 }
 0x8b3   : > { %v5972_v13 = vmul.f32 %v12263_v53, %v12319_v43  ;;  %v12391_v33 = vmax.f32 %v4455_v15, 0.0  ;;  %v5923_v52 = vmax.f32 %v5913_v20, 0.0  ;;  %v6162_v14 = vmax.f32 %v6152_v57, 0.0 }
 0x8b4   : > { %v5056_v38 = vpop.permute.xlu1 %5055  ;;  %v5415_v23 = vand.u32 2147483647, %v5405_v56  ;;  %v5843_v43 = vmax.f32 %v5833_v36, 0.0  ;;  %v5825_v20 = vand.u32 2147483647, %v5815_v59  ;;  %v12404_v41 = vpop.f32.mrf.mxu0 }
 0x8b5   : > { %v5073_v9 = vmul.f32 %v12263_v53, %v5056_v38  ;;  %v6062_v38 = vand.u32 2147483647, %v6052_v5  ;;  %v13965_v5 = vld [vmem:[#allocation61_spill] sm:$0xff]  ;;  %v5992_v57 = vmul.f32 %v5982_v54, %v5972_v13 }
 0x8b6   : > { %v5983_v56 = vmul.f32 %v5923_v52, %v5843_v43  ;;  %v13973_v13 = vld [vmem:[#allocation117_spill] sm:$0xff] }
 0x8b7   : > { %v5093_v58 = vmul.f32 %v5083_v24, %v5073_v9  ;;  %v6072_v47 = vsub.f32 1.0, %v6062_v38  ;;  %v5325_v24 = vsub.f32 %v13965_v5, %v12250_v60  ;;  %v13966_v9 = vld [vmem:[#allocation49_spill] sm:$0xff]  ;;  %v13972_v5 = vld [vmem:[#allocation3_spill] sm:$0xff] }
 0x8b8   : > { %v5655_v16 = vsub.f32 %v13966_v9, %v12065_v63 }
 0x8b9   : > { %v5103_v55 = vadd.f32 %v5093_v58, %v4863_v48  ;;  %v4820_v30 = vpop.permute.xlu1 %4819  ;;  %v12387_v48 = vmax.f32 %v4205_v31, 0.0  ;;  %v12389_v58 = vmax.f32 %v4285_v50, 0.0  ;;  %v6082_v50 = vmax.f32 %v6072_v47, 0.0 }
 0x8ba   : > { %v4834_v8 = vmul.f32 %v12263_v53, %v4820_v30  ;;  %v12397_v30 = vmax.f32 %v4535_v49, 0.0  ;;  %v5665_v15 = vand.u32 2147483647, %v5655_v16 }
 0x8bb   : > { %7791 = vmatmul.mubr.msk.f32.gmra.mxu0 %vm3845_vm6, %v5103_v55  ;;  %v5094_v55 = vmul.f32 %v5084_v0, %v12278_v39  ;;  %v13967_v39 = vld [vmem:[#allocation115_spill] sm:$0xff]  ;;  %v13968_v0 = vld [vmem:[#allocation106_spill] sm:$0xff]  ;;  %v6222_v16 = vmul.f32 %v6162_v14, %v6082_v50 }
 0x8bc   : > { %v4854_v1 = vmul.f32 %v4844_v4, %v4834_v8  ;;  %v5575_v45 = vsub.f32 %v13967_v39, %v12250_v60  ;;  %v5324_v31 = vsub.f32 %v13968_v0, %v12250_v60  ;;  %v5335_v4 = vand.u32 2147483647, %v5325_v24  ;;  %v12401_v8 = vpop.f32.mrf.mxu1  ;;  %v13974_v39 = vld [vmem:[#allocation100_spill] sm:$0xff] }
 0x8bd   : > { %13969 = vst [vmem:[#allocation7_spill] sm:$0xff] %v12401_v8  ;;  %v6133_v24 = vsub.f32 %v13972_v5, %v12065_v63  ;;  %v5675_v43 = vsub.f32 1.0, %v5665_v15  ;;  %v5835_v0 = vsub.f32 1.0, %v5825_v20 }
 0x8be   : > { %v4864_v3 = vadd.f32 %v4854_v1, %v4624_v10  ;;  %v12385_v6 = vpop.permute.xlu1 %5478  ;;  %v13970_v10 = vld [vmem:[#allocation90_spill] sm:$0xff]  ;;  %v5585_v47 = vand.u32 2147483647, %v5575_v45  ;;  %v5334_v59 = vand.u32 2147483647, %v5324_v31  ;;  %v5345_v52 = vsub.f32 1.0, %v5335_v4  ;;  %v12418_v5 = vpop.f32.mrf.mxu1 }
 0x8bf   : > { %v5404_v49 = vsub.f32 %v13970_v10, %v12065_v63  ;;  %v13971_v1 = vld [vmem:[#allocation134_spill] sm:$0xff]  ;;  %v6002_v10 = vadd.f32 %v5992_v57, %v12185_v62  ;;  %v13975_v31 = vld [vmem:[#allocation56_spill] sm:$0xff]  ;;  %v5993_v57 = vmul.f32 %v5983_v56, %v12313_v35 }
 0x8c0   : > { %v5104_v38 = vadd.f32 %v5094_v55, %v4864_v3  ;;  %v5654_v36 = vsub.f32 %v13971_v1, %v12065_v63  ;;  %v5425_v55 = vsub.f32 1.0, %v5415_v23  ;;  %v5574_v3 = vsub.f32 %v13973_v13, %v12250_v60  ;;  %v12420_v23 = vpop.f32.mrf.mxu0 }
 0x8c1   : > { %v5414_v14 = vand.u32 2147483647, %v5404_v49  ;;  %v4755_v50 = vsub.f32 %v13975_v31, %v12065_v63  ;;  %v5595_v4 = vsub.f32 1.0, %v5585_v47  ;;  %v5733_v49 = vmul.f32 %v12176_v61, %v12233_v27  ;;  %v12434_v47 = vpop.f32.mrf.mxu1 }
 0x8c2   : > { %7793 = vmatprep.mubr.msk.f32.mxu0 %vm3845_vm6, %v5104_v38  ;;  %v6053_v38 = vsub.f32 %v13974_v39, %v12250_v60  ;;  %v5664_v45 = vand.u32 2147483647, %v5654_v36  ;;  %v5435_v13 = vmax.f32 %v5425_v55, 0.0  ;;  %v5894_v39 = vsub.f32 %v12107_v22, %v12065_v63  ;;  %v12428_v62 = vpop.f32.mrf.mxu0  ;;  %13977 = vst [vmem:[#allocation8_spill] sm:$0xff] %v12434_v47 }
 0x8c3   : > { %v6192_v9 = vpop.permute.xlu1 %6191  ;;  %13976 = vst [vmem:[#allocation9_spill] sm:$0xff] %v12428_v62  ;;  %v5344_v36 = vsub.f32 1.0, %v5334_v59  ;;  %v5355_v31 = vmax.f32 %v5345_v52, 0.0  ;;  %v5845_v55 = vmax.f32 %v5835_v0, 0.0  ;;  %v5424_v63 = vsub.f32 1.0, %v5414_v14 }
 0x8c4   : > { %v6212_v54 = vmul.f32 %v12263_v53, %v6192_v9  ;;  %v6143_v9 = vand.u32 2147483647, %v6133_v24  ;;  %v5685_v24 = vmax.f32 %v5675_v43, 0.0  ;;  %v5674_v22 = vsub.f32 1.0, %v5664_v45  ;;  %v12438_v8 = vpop.f32.mrf.mxu0 }
 0x8c5   : > { %v4765_v35 = vand.u32 2147483647, %v4755_v50  ;;  %v5505_v56 = vmul.f32 %v5435_v13, %v5355_v31  ;;  %v4915_v52 = vsub.f32 %v12138_v32, %v12250_v60  ;;  %v5753_v43 = vmul.f32 %v12336_v18, %v5733_v49  ;;  %v12445_v50 = vpop.f32.mrf.mxu1 }
 0x8c6   : > { %v6232_v1 = vmul.f32 %v6222_v16, %v6212_v54  ;;  %v5584_v16 = vand.u32 2147483647, %v5574_v3  ;;  %v6063_v54 = vand.u32 2147483647, %v6053_v38  ;;  %v6153_v62 = vsub.f32 1.0, %v6143_v9  ;;  %v12447_v13 = vpop.f32.mrf.mxu0 }
 0x8c7   : > { %v5605_v3 = vmax.f32 %v5595_v4, 0.0  ;;  %v5904_v38 = vand.u32 2147483647, %v5894_v39  ;;  %v5354_v14 = vmax.f32 %v5344_v36, 0.0  ;;  %v5985_v45 = vmul.f32 %v12229_v26, %v5845_v55 }
 0x8c8   : > { %v6242_v15 = vadd.f32 %v6232_v1, %v6002_v10  ;;  %v12426_v20 = vpop.permute.xlu1 %4823  ;;  %v13978_v10 = vld [vmem:[#allocation51_spill] sm:$0xff]  ;;  %v5594_v27 = vsub.f32 1.0, %v5584_v16  ;;  %v6073_v59 = vsub.f32 1.0, %v6063_v54  ;;  %v5434_v4 = vmax.f32 %v5424_v63, 0.0 }
 0x8c9   : > { %v4675_v1 = vsub.f32 %v13978_v10, %v12250_v60  ;;  %v5684_v39 = vmax.f32 %v5674_v22, 0.0  ;;  %v6163_v54 = vmax.f32 %v6153_v62, 0.0  ;;  %v4775_v31 = vsub.f32 1.0, %v4765_v35  ;;  %v12458_v35 = vpop.f32.mrf.mxu0 }
 0x8ca   : > { %7825 = vmatprep.mubr.msk.f32.mxu1 %vm3845_vm6, %v6242_v15  ;;  %v5745_v15 = vmul.f32 %v5685_v24, %v5605_v3  ;;  %v5914_v10 = vsub.f32 1.0, %v5904_v38  ;;  %v5515_v32 = vmul.f32 %v5505_v56, %v12275_v44  ;;  %v5604_v49 = vmax.f32 %v5594_v27, 0.0 }
 0x8cb   : > { %v4685_v16 = vand.u32 2147483647, %v4675_v1  ;;  %v6083_v36 = vmax.f32 %v6073_v59, 0.0  ;;  %v4925_v47 = vand.u32 2147483647, %v4915_v52  ;;  %v5763_v26 = vadd.f32 %v5753_v43, %v12330_v46  ;;  %v12456_v1 = vpop.f32.mrf.mxu1 }
 0x8cc   : > { %v5995_v24 = vmul.f32 %v5985_v45, %v12322_v11  ;;  %v6054_v55 = vsub.f32 %v12187_v28, %v12250_v60  ;;  %v5494_v63 = vmul.f32 %v12176_v61, %v12385_v6  ;;  %v5504_v56 = vmul.f32 %v5434_v4, %v5354_v14  ;;  %v7783_v28 = vpop.f32.mrf.mxu0 }
 0x8cd   : > { %v5724_v0 = vpop.permute.xlu1 %5723  ;;  %v4695_v44 = vsub.f32 1.0, %v4685_v16  ;;  %v6223_v3 = vmul.f32 %v6163_v54, %v6083_v36  ;;  %v5744_v46 = vmul.f32 %v5684_v39, %v5604_v49  ;;  %v4785_v27 = vmax.f32 %v4775_v31, 0.0  ;;  %v12469_v4 = vpop.f32.mrf.mxu1 }
 0x8ce   : > { %v5735_v9 = vmul.f32 %v12176_v61, %v5724_v0  ;;  %v5924_v11 = vmax.f32 %v5914_v10, 0.0  ;;  %v4935_v52 = vsub.f32 1.0, %v4925_v47  ;;  %v4595_v6 = vmul.f32 %v12176_v61, %v12332_v2  ;;  %v13980_v10 = vld [vmem:[#allocation87_spill] sm:$0xff] }
 0x8cf   : > { %v6003_v43 = vadd.f32 %v5993_v57, %v5763_v26  ;;  %v4365_v45 = vmul.f32 %v12389_v58, %v12387_v48  ;;  %v6055_v14 = vsub.f32 %v12267_v12, %v12250_v60  ;;  %v4705_v39 = vmax.f32 %v4695_v44, 0.0  ;;  %v8395_v48 = vld [vmem:[%s13282_s4] ss:$0 sm:$0xff]  ;;  %v13979_v58 = vld [vmem:[#allocation88_spill] sm:$0xff] }
 0x8d0   : > { %v5755_v18 = vmul.f32 %v5745_v15, %v5735_v9  ;;  %v6064_v15 = vand.u32 2147483647, %v6054_v55  ;;  %v5514_v9 = vmul.f32 %v5504_v56, %v5494_v63  ;;  %v4605_v16 = vmul.f32 %v12397_v30, %v12391_v33  ;;  %v5217_v30 = vpop.f32.mrf.mxu0 }
 0x8d1   : > { %v4835_v47 = vmul.f32 %v12263_v53, %v12426_v20  ;;  %v6135_v54 = vsub.f32 %v13979_v58, %v8395_v48  ;;  %v5984_v60 = vmul.f32 %v5924_v11, %v12227_v17  ;;  %v5754_v12 = vmul.f32 %v5744_v46, %v12241_v40 }
 0x8d2   : > { %v5765_v22 = vadd.f32 %v5755_v18, %v5515_v32  ;;  %v6196_v62 = vpop.permute.xlu1 %6195  ;;  %v4355_v33 = vmul.f32 %v12176_v61, %v13980_v10  ;;  %v7818_v32 = vpop.f32.mrf.mxu1  ;;  %v4945_v20 = vmax.f32 %v4935_v52, 0.0  ;;  %v4615_v18 = vmul.f32 %v4605_v16, %v4595_v6 }
 0x8d3   : > { %v6213_v38 = vmul.f32 %v12263_v53, %v6196_v62  ;;  %v4845_v49 = vmul.f32 %v4785_v27, %v4705_v39  ;;  %v6074_v36 = vsub.f32 1.0, %v6064_v15  ;;  %v6065_v26 = vand.u32 2147483647, %v6055_v14 }
 0x8d4   : > { %v12461_v59 = vadd.f32 %v5995_v24, %v5765_v22  ;;  %v5764_v24 = vadd.f32 %v5754_v12, %v5514_v9  ;;  %v13981_v17 = vsub.f32 1.0, %v12209_v21  ;;  %v4375_v40 = vmul.f32 %v4365_v45, %v4355_v33  ;;  %v13982_v9 = vld [vmem:[#allocation141_spill] sm:$0xff] }
 0x8d5   : > { %v6233_v0 = vmul.f32 %v6223_v3, %v6213_v38  ;;  %v4855_v22 = vmul.f32 %v4845_v49, %v4835_v47  ;;  %v6154_v62 = vsub.f32 1.0, %v12231_v7  ;;  %v6145_v44 = vand.u32 2147483647, %v6135_v54  ;;  %v7786_v3 = vpop.f32.mrf.mxu0  ;;  %v6357_v38 = vpop.f32.mrf.mxu1 }
 0x8d6   : > { %v5025_v63 = vmax.f32 %v13981_v17, 0.0  ;;  %v4625_v27 = vadd.f32 %v4615_v18, %v4375_v40  ;;  %v4088_v52 = vadd.f32 %v12357_v19, %v12367_v29  ;;  %v6084_v6 = vmax.f32 %v6074_v36, 0.0 }
 0x8d7   : > { %v6243_v2 = vadd.f32 %v6233_v0, %v6003_v43  ;;  %v5960_v57 = vpop.permute.xlu1 %5959  ;;  %v6075_v43 = vsub.f32 1.0, %v6065_v26  ;;  %v7821_v21 = vpop.f32.mrf.mxu1  ;;  %v6164_v15 = vmax.f32 %v6154_v62, 0.0  ;;  %v6155_v14 = vsub.f32 1.0, %v6145_v44 }
 0x8d8   : > { %v5974_v31 = vmul.f32 %v12263_v53, %v5960_v57  ;;  %v5085_v46 = vmul.f32 %v5025_v63, %v4945_v20  ;;  %v4865_v0 = vadd.f32 %v4855_v22, %v4625_v27  ;;  %v5266_v7 = vadd.f32 %v5217_v30, %v4088_v52  ;;  %v5227_v47 = vpop.f32.mrf.mxu0 }
 0x8d9   : > { %7826 = vmatmul.mubr.msk.f32.gmra.mxu1 %vm3845_vm6, %v6243_v2  ;;  %v4093_v39 = vadd.f32 %v13982_v9, %v12359_v25  ;;  %v4098_v16 = vadd.f32 %v12378_v34, %v12395_v42  ;;  %v6224_v58 = vmul.f32 %v6164_v15, %v6084_v6  ;;  %v6085_v19 = vmax.f32 %v6075_v43, 0.0 }
 0x8da   : > { %v5994_v55 = vmul.f32 %v5984_v60, %v5974_v31  ;;  %v6406_v48 = vadd.f32 %v6357_v38, %v5266_v7  ;;  %v6367_v60 = vpop.f32.mrf.mxu1  ;;  %v6165_v12 = vmax.f32 %v6155_v14, 0.0  ;;  %v4103_v25 = vadd.f32 %v12363_v51, %v12372_v37 }
 0x8db   : > { %v5267_v54 = vadd.f32 %v7783_v28, %v4093_v39  ;;  %v5268_v31 = vadd.f32 %v5227_v47, %v4098_v16  ;;  %v4128_v14 = vadd.f32 %v12469_v4, %v12458_v35  ;;  %v4133_v9 = vadd.f32 %v12456_v1, %v12447_v13  ;;  %v8397_v39 = vld [vmem:[%s8599_s30] sm:$0xff]  ;;  %v8398_v1 = vld [vmem:[%s8599_s30 + $0x10] sm:$0xff] }
 0x8dc   : > { %v6004_v61 = vadd.f32 %v5994_v55, %v5764_v24  ;;  %v5064_v56 = vpop.permute.xlu1 %5063  ;;  %v6225_v30 = vmul.f32 %v6165_v12, %v6085_v19  ;;  %v5269_v49 = vadd.f32 %v7786_v3, %v4103_v25  ;;  %v8399_v12 = vld [vmem:[%s8599_s30 + $0x18] sm:$0xff] }
 0x8dd   : > { %v5075_v11 = vmul.f32 %v12263_v53, %v5064_v56  ;;  %v6407_v34 = vadd.f32 %v7818_v32, %v5267_v54  ;;  %v6408_v33 = vadd.f32 %v6367_v60, %v5268_v31  ;;  %v13983_v32 = vld [vmem:[#allocation7_spill] sm:$0xff]  ;;  %v13984_v56 = vld [vmem:[#allocation9_spill] sm:$0xff] }
 0x8de   : > { %v6409_v36 = vadd.f32 %v7821_v21, %v5269_v49  ;;  %v4113_v24 = vadd.f32 %v13983_v32, %v12404_v41  ;;  %v8401_v49 = vld [vmem:[%s8599_s30 + $0x20] sm:$0xff]  ;;  %v8402_v32 = vld [vmem:[%s8599_s30 + $0x38] sm:$0xff] }
 0x8df   : > { %v5095_v45 = vmul.f32 %v5085_v46, %v5075_v11 }
 0x8e1   : > { %v5105_v2 = vadd.f32 %v5095_v45, %v4865_v0  ;;  %v6200_v57 = vpop.permute.xlu1 %6199  ;;  %v8396_v0 = vld [vmem:[%s8599_s30 + $0x8] sm:$0xff] }
 0x8e2   : > { %v6214_v29 = vmul.f32 %v12263_v53, %v6200_v57 }
 0x8e3   : > { %7794 = vmatmul.mubr.msk.f32.gmra.mxu0 %vm3845_vm6, %v5105_v2 }
 0x8e4   : > { %v6234_v10 = vmul.f32 %v6224_v58, %v6214_v29  ;;  %7839 = vmatprep.mubr.msk.f32.mxu0 %vm778_vm0, %v6406_v48 }
 0x8e5   : > { %v6204_v42 = vpop.permute.xlu1 %6203 }
 0x8e6   : > { %v6244_v20 = vadd.f32 %v6234_v10, %v6004_v61  ;;  %v6215_v18 = vmul.f32 %v12263_v53, %v6204_v42  ;;  %v4108_v53 = vadd.f32 %v12418_v5, %v12420_v23  ;;  %v4118_v61 = vadd.f32 %v12445_v50, %v12438_v8  ;;  %v13985_v5 = vld [vmem:[#allocation8_spill] sm:$0xff]  ;;  %v12522_v8 = vld [vmem:[%s12909_s12] ss:$0 sm:$0xff] }
 0x8e7   : > { %7840 = vmatmul.mubr.msk.f32.vlgmr.msra.gmra.mxu0 %vm778_vm0, %v6407_v34  ;;  %v4123_v23 = vadd.f32 %v13985_v5, %v13984_v56 }
 0x8e8   : > { %v6235_v28 = vmul.f32 %v6225_v30, %v6215_v18  ;;  %7828 = vmatprep.mubr.msk.f32.mxu1 %vm3845_vm6, %v6244_v20  ;;  %7842 = vmatprep.mubr.msk.f32.mxu0 %vm778_vm0, %v6408_v33  ;;  %v8400_v30 = vld [vmem:[%s8599_s30 + $0x28] sm:$0xff] }
 0x8ea   : > { %v6245_v26 = vadd.f32 %v6235_v28, %v12461_v59 }
 0x8eb   : > { %7843 = vmatmul.mubr.msk.f32.gmra.mxu0 %vm778_vm0, %v6409_v36 }
 0x8ec   : > { %7829 = vmatmul.mubr.msk.f32.gmra.mxu1 %vm3845_vm6, %v6245_v26 }
 0x930   : > { %v7789_v51 = vpop.f32.mrf.mxu0 }
 0x931   : > { %v5271_v63 = vadd.f32 %v7789_v51, %v4113_v24 }
 0x932   : > { %v5237_v37 = vpop.f32.mrf.mxu0 }
 0x933   : > { %v5270_v17 = vadd.f32 %v5237_v37, %v4108_v53 }
 0x962   : > { %v7824_v55 = vpop.f32.mrf.mxu1 }
 0x963   : > { %v6411_v62 = vadd.f32 %v7824_v55, %v5271_v63  ;;  %v8403_v63 = vld [vmem:[%s8599_s30 + $0x30] sm:$0xff] }
 0x964   : > { %v6377_v40 = vpop.f32.mrf.mxu1 }
 0x965   : > { %v6410_v22 = vadd.f32 %v6377_v40, %v5270_v17 }
 0x967   : > { %7845 = vmatprep.mubr.msk.f32.mxu0 %vm778_vm0, %v6410_v22 }
 0x968   : > { %7846 = vmatmul.mubr.msk.f32.gmra.mxu0 %vm778_vm0, %v6411_v62 }
 0x97b   : > { %v7792_v59 = vpop.f32.mrf.mxu0 }
 0x97c   : > { %v5273_v38 = vadd.f32 %v7792_v59, %v4123_v23 }
 0x97d   : > { %v5247_v44 = vpop.f32.mrf.mxu0 }
 0x97e   : > { %v5272_v3 = vadd.f32 %v5247_v44, %v4118_v61 }
 0x999   : > { %v7827_v41 = vpop.f32.mrf.mxu1 }
 0x99a   : > { %v6413_v11 = vadd.f32 %v7827_v41, %v5273_v38 }
 0x99b   : > { %v6387_v46 = vpop.f32.mrf.mxu1 }
 0x99c   : > { %v6412_v27 = vadd.f32 %v6387_v46, %v5272_v3 }
 0x99e   : > { %7848 = vmatprep.mubr.msk.f32.mxu0 %vm778_vm0, %v6412_v27 }
 0x99f   : > { %7849 = vmatmul.mubr.msk.f32.gmra.mxu0 %vm778_vm0, %v6413_v11 }
 0x9a3   : > { %v7795_v52 = vpop.f32.mrf.mxu0 }
 0x9a4   : > { %v5275_v58 = vadd.f32 %v7795_v52, %v4133_v9  ;;  %v8404_v52 = vld [vmem:[%s8599_s30 + $0x48] sm:$0xff] }
 0x9a5   : > { %v5257_v6 = vpop.f32.mrf.mxu0 }
 0x9a6   : > { %v5274_v57 = vadd.f32 %v5257_v6, %v4128_v14 }
 0x9a7   : > { %v7841_v50 = vpop.f32.mrf.mxu0 }
 0x9a8   : > { %v6529_v43 = vadd.f32 %v7841_v50, %v12522_v8 }
 0x9a9   : > { %v6523_v21 = vpop.f32.mrf.mxu0 }
 0x9aa   : > { %v6573_v45 = vadd.f32 %v8396_v0, %v6529_v43  ;;  %v6524_v15 = vadd.f32 %v12522_v8, %v6523_v21  ;;  %v8405_v21 = vld [vmem:[%s8599_s30 + $0x40] sm:$0xff] }
 0x9ab   : > { %v7844_v7 = vpop.f32.mrf.mxu0 }
 0x9ac   : > { %v6572_v16 = vadd.f32 %v8397_v39, %v6524_v15  ;;  %v7830_v47 = vpop.f32.mrf.mxu1  ;;  %v6585_v2 = vsel %vm778_vm0, %v6573_v45, 0.0  ;;  %v6539_v19 = vadd.f32 %v7844_v7, %v12522_v8 }
 0x9ad   : > { %6586 = vadd.xlane.f32.xlu1 %v6585_v2  ;;  %v6533_v48 = vpop.f32.mrf.mxu0  ;;  %v6415_v13 = vadd.f32 %v7830_v47, %v5275_v58  ;;  %v6749_v58 = vld [vmem:[%s12912_s15 + $0x10] sm:$0xff] }
 0x9ae   : > { %v6534_v29 = vadd.f32 %v12522_v8, %v6533_v48  ;;  %v6397_v35 = vpop.f32.mrf.mxu1  ;;  %v6582_v4 = vsel %vm778_vm0, %v6572_v16, 0.0  ;;  %v6575_v31 = vadd.f32 %v8399_v12, %v6539_v19  ;;  %v6750_v48 = vld [vmem:[%s12912_s15 + $0x18] sm:$0xff]  ;;  %v6748_v19 = vld [vmem:[%s12912_s15 + $0x8] sm:$0xff] }
 0x9af   : > { %v6414_v54 = vadd.f32 %v6397_v35, %v5274_v57  ;;  %6583 = vadd.xlane.f32.xlu0 %v6582_v4  ;;  %7854 = vmatprep.subr.mxu1 %v6750_v48 }
 0x9b0   : > { %v6574_v60 = vadd.f32 %v8398_v1, %v6534_v29  ;;  %v6591_v25 = vsel %vm778_vm0, %v6575_v31, 0.0  ;;  %7855 = vmatpush3.msra.mxu1 %v6750_v48  ;;  %v6747_v29 = vld [vmem:[%s12912_s15] sm:$0xff]  ;;  %v6920_v48 = vld [vmem:[%s12914_s17 + $0x38] sm:$0xff] }
 0x9b1   : > { %7851 = vmatprep.mubr.msk.f32.mxu0 %vm778_vm0, %v6414_v54  ;;  %7856 = vmatprep.subr.mxu1 %v6749_v58 }
 0x9b2   : > { %7852 = vmatmul.mubr.msk.f32.gmra.mxu0 %vm778_vm0, %v6415_v13  ;;  %v6588_v10 = vsel %vm778_vm0, %v6574_v60, 0.0  ;;  %7857 = vmatpush3.msra.mxu1 %v6749_v58  ;;  %v6919_v58 = vld [vmem:[%s12914_s17 + $0x30] sm:$0xff] }
 0x9b3   : > { %6589 = vadd.xlane.f32.xlu0 %v6588_v10  ;;  %7858 = vmatprep.subr.mxu1 %v6748_v19 }
 0x9b4   : > { %7859 = vmatpush3.msra.mxu1 %v6748_v19  ;;  %7877 = vmatprep.subr.mxu0 %v6920_v48  ;;  %v6918_v19 = vld [vmem:[%s12914_s17 + $0x28] sm:$0xff] }
 0x9b5   : > { %7860 = vmatprep.subr.mxu1 %v6747_v29  ;;  %7878 = vmatpush3.msra.mxu0 %v6920_v48 }
 0x9b6   : > { %7861 = vmatpush3.msra.mxu1 %v6747_v29  ;;  %7879 = vmatprep.subr.mxu0 %v6919_v58  ;;  %v6917_v29 = vld [vmem:[%s12914_s17 + $0x20] sm:$0xff] }
 0x9b7   : > { %6592 = vadd.xlane.f32.xlu0 %v6591_v25  ;;  %7908 = vmatprep.subr.mxu1 %v6920_v48 }
 0x9b8   : > { %7880 = vmatpush3.msra.mxu0 %v6919_v58 }
 0x9b9   : > { %7881 = vmatprep.subr.mxu0 %v6918_v19 }
 0x9ba   : > { %7882 = vmatpush3.msra.mxu0 %v6918_v19 }
 0x9bb   : > { %7883 = vmatprep.subr.mxu0 %v6917_v29 }
 0x9bc   : > { %7884 = vmatpush3.msra.mxu0 %v6917_v29 }
 0xa28   : > { %v7847_v34 = vpop.f32.mrf.mxu0 }
 0xa29   : > { %v6549_v42 = vadd.f32 %v7847_v34, %v12522_v8 }
 0xa2a   : > { %v6543_v33 = vpop.f32.mrf.mxu0 }
 0xa2b   : > { %v12544_v20 = vadd.f32 %v8400_v30, %v6549_v42  ;;  %v6544_v18 = vadd.f32 %v12522_v8, %v6543_v33 }
 0xa2d   : > { %v12548_v28 = vadd.f32 %v8401_v49, %v6544_v18  ;;  %v6597_v36 = vsel %vm778_vm0, %v12544_v20, 0.0 }
 0xa2e   : > { %6598 = vadd.xlane.f32.xlu0 %v6597_v36 }
 0xa2f   : > { %v6594_v26 = vsel %vm778_vm0, %v12548_v28, 0.0 }
 0xa30   : > { %6595 = vadd.xlane.f32.xlu1 %v6594_v26 }
 0xa36   : > { %v6587_v44 = vpop.xlane.xlu1 %6586 }
 0xa37   : > { %v6614_v61 = vmul.f32 0.03125, %v6587_v44 }
 0xa38   : > { %v6584_v17 = vpop.xlane.xlu0 %6583 }
 0xa39   : > { %v6613_v5 = vmul.f32 0.03125, %v6584_v17  ;;  %v12566_v41 = vsub.f32 %v6573_v45, %v6614_v61 }
 0xa3b   : > { %v12569_v27 = vsub.f32 %v6572_v16, %v6613_v5  ;;  %v6634_v45 = vmul.f32 %v12566_v41, %v12566_v41 }
 0xa3c   : > { %v6590_v59 = vpop.xlane.xlu0 %6589 }
 0xa3d   : > { %v6615_v11 = vmul.f32 0.03125, %v6590_v59  ;;  %v6633_v9 = vmul.f32 %v12569_v27, %v12569_v27 }
 0xa3f   : > { %v12579_v14 = vsub.f32 %v6574_v60, %v6615_v11  ;;  %v6643_v16 = vsel %vm778_vm0, %v6633_v9, 0.0  ;;  %v12650_v9 = vld [vmem:[%s12911_s14] ss:$0 sm:$0xff] }
 0xa40   : > { %v6593_v56 = vpop.xlane.xlu0 %6592 }
 0xa41   : > { %v6616_v3 = vmul.f32 0.03125, %v6593_v56  ;;  %v6635_v47 = vmul.f32 %v12579_v14, %v12579_v14 }
 0xa43   : > { %v12573_v43 = vsub.f32 %v6575_v31, %v6616_v3  ;;  %v6649_v57 = vsel %vm778_vm0, %v6635_v47, 0.0 }
 0xa45   : > { %v6636_v39 = vmul.f32 %v12573_v43, %v12573_v43 }
 0xa47   : > { %v6652_v2 = vsel %vm778_vm0, %v6636_v39, 0.0 }
 0xa5f   : > { %v7850_v51 = vpop.f32.mrf.mxu0 }
 0xa60   : > { %v6559_v37 = vadd.f32 %v7850_v51, %v12522_v8 }
 0xa61   : > { %v6553_v53 = vpop.f32.mrf.mxu0 }
 0xa62   : > { %v12556_v24 = vadd.f32 %v8402_v32, %v6559_v37  ;;  %v6554_v55 = vadd.f32 %v12522_v8, %v6553_v53 }
 0xa64   : > { %v12560_v40 = vadd.f32 %v8403_v63, %v6554_v55  ;;  %v6603_v22 = vsel %vm778_vm0, %v12556_v24, 0.0 }
 0xa65   : > { %6604 = vadd.xlane.f32.xlu0 %v6603_v22 }
 0xa66   : > { %v6600_v62 = vsel %vm778_vm0, %v12560_v40, 0.0 }
 0xa67   : > { %6601 = vadd.xlane.f32.xlu1 %v6600_v62 }
 0xa72   : > { %v7853_v23 = vpop.f32.mrf.mxu0 }
 0xa73   : > { %v6569_v38 = vadd.f32 %v7853_v23, %v12522_v8 }
 0xa74   : > { %v6563_v46 = vpop.f32.mrf.mxu0 }
 0xa75   : > { %v6581_v6 = vadd.f32 %v8404_v52, %v6569_v38  ;;  %v6564_v50 = vadd.f32 %v12522_v8, %v6563_v46  ;;  %v6646_v8 = vsel %vm778_vm0, %v6634_v45, 0.0 }
 0xa77   : > { %v6580_v0 = vadd.f32 %v8405_v21, %v6564_v50  ;;  %v6609_v15 = vsel %vm778_vm0, %v6581_v6, 0.0 }
 0xa78   : > { %6610 = vadd.xlane.f32.xlu0 %v6609_v15 }
 0xa79   : > { %v6606_v7 = vsel %vm778_vm0, %v6580_v0, 0.0 }
 0xa7a   : > { %6607 = vadd.xlane.f32.xlu1 %v6606_v7 }
 0xa7c   : > { %6647 = vadd.xlane.f32.xlu0 %v6646_v8 }
 0xa7e   : > { %6644 = vadd.xlane.f32.xlu1 %v6643_v16 }
 0xa80   : > { %6653 = vadd.xlane.f32.xlu0 %v6652_v2 }
 0xa82   : > { %6650 = vadd.xlane.f32.xlu1 %v6649_v57 }
 0xab7   : > { %v6599_v35 = vpop.xlane.xlu0 %6598 }
 0xab8   : > { %v6618_v4 = vmul.f32 0.03125, %v6599_v35 }
 0xab9   : > { %v6596_v54 = vpop.xlane.xlu1 %6595 }
 0xaba   : > { %v12605_v13 = vsub.f32 %v12544_v20, %v6618_v4  ;;  %v6617_v1 = vmul.f32 0.03125, %v6596_v54 }
 0xabc   : > { %v12608_v60 = vsub.f32 %v12548_v28, %v6617_v1  ;;  %v6638_v12 = vmul.f32 %v12605_v13, %v12605_v13 }
 0xabe   : > { %v6658_v31 = vsel %vm778_vm0, %v6638_v12, 0.0  ;;  %v6637_v10 = vmul.f32 %v12608_v60, %v12608_v60 }
 0xabf   : > { %6659 = vadd.xlane.f32.xlu0 %v6658_v31 }
 0xac0   : > { %v6655_v25 = vsel %vm778_vm0, %v6637_v10, 0.0 }
 0xac1   : > { %6656 = vadd.xlane.f32.xlu1 %v6655_v25 }
 0xaee   : > { %v6605_v34 = vpop.xlane.xlu0 %6604 }
 0xaef   : > { %v6620_v42 = vmul.f32 0.03125, %v6605_v34 }
 0xaf0   : > { %v6602_v33 = vpop.xlane.xlu1 %6601 }
 0xaf1   : > { %v12617_v30 = vsub.f32 %v12556_v24, %v6620_v42  ;;  %v6619_v20 = vmul.f32 0.03125, %v6602_v33 }
 0xaf3   : > { %v12620_v18 = vsub.f32 %v12560_v40, %v6619_v20  ;;  %v6640_v49 = vmul.f32 %v12617_v30, %v12617_v30 }
 0xaf5   : > { %v6664_v28 = vsel %vm778_vm0, %v6640_v49, 0.0  ;;  %v6639_v36 = vmul.f32 %v12620_v18, %v12620_v18 }
 0xaf6   : > { %6665 = vadd.xlane.f32.xlu0 %v6664_v28  ;;  %v6916_v28 = vld [vmem:[%s12914_s17 + $0x18] sm:$0xff] }
 0xaf7   : > { %v6661_v26 = vsel %vm778_vm0, %v6639_v36, 0.0  ;;  %7885 = vmatprep.subr.mxu0 %v6916_v28 }
 0xaf8   : > { %6662 = vadd.xlane.f32.xlu1 %v6661_v26  ;;  %7886 = vmatpush3.msra.mxu0 %v6916_v28  ;;  %v6913_v26 = vld [vmem:[%s12914_s17] sm:$0xff] }
 0xb01   : > { %v6611_v51 = vpop.xlane.xlu0 %6610 }
 0xb02   : > { %v6622_v37 = vmul.f32 0.03125, %v6611_v51 }
 0xb03   : > { %v6608_v53 = vpop.xlane.xlu1 %6607 }
 0xb04   : > { %v12628_v32 = vsub.f32 %v6581_v6, %v6622_v37  ;;  %v6621_v24 = vmul.f32 0.03125, %v6608_v53  ;;  %v12641_v6 = vld [vmem:[%s12910_s13] ss:$0 sm:$0xff] }
 0xb05   : > { %v6648_v55 = vpop.xlane.xlu0 %6647  ;;  %v6691_v21 = vmul.f32 %v12641_v6, %v12566_v41  ;;  %v6693_v39 = vmul.f32 %v12641_v6, %v12573_v43  ;;  %v6692_v16 = vmul.f32 %v12641_v6, %v12579_v14  ;;  %v6695_v25 = vmul.f32 %v12641_v6, %v12605_v13  ;;  %v6915_v13 = vld [vmem:[%s12914_s17 + $0x10] sm:$0xff] }
 0xb06   : > { %v12630_v17 = vsub.f32 %v6580_v0, %v6621_v24  ;;  %v6674_v63 = vmul.f32 0.03125, %v6648_v55  ;;  %v6642_v40 = vmul.f32 %v12628_v32, %v12628_v32  ;;  %v6690_v0 = vmul.f32 %v12641_v6, %v12569_v27  ;;  %7887 = vmatprep.subr.mxu0 %v6915_v13 }
 0xb07   : > { %v6645_v22 = vpop.xlane.xlu1 %6644  ;;  %v6694_v34 = vmul.f32 %v12641_v6, %v12608_v60  ;;  %7888 = vmatpush3.msra.mxu0 %v6915_v13  ;;  %v6914_v60 = vld [vmem:[%s12914_s17 + $0x8] sm:$0xff] }
 0xb08   : > { %v6701_v62 = vadd.f32 1e-05, %v6674_v63  ;;  %v6673_v59 = vmul.f32 0.03125, %v6645_v22  ;;  %v6670_v44 = vsel %vm778_vm0, %v6642_v40, 0.0  ;;  %v6641_v56 = vmul.f32 %v12630_v17, %v12630_v17  ;;  %7889 = vmatprep.subr.mxu0 %v6914_v60 }
 0xb09   : > { %6671 = vadd.xlane.f32.xlu0 %v6670_v44  ;;  %v6654_v61 = vpop.xlane.xlu0 %6653  ;;  %7890 = vmatpush3.msra.mxu0 %v6914_v60  ;;  %v6697_v22 = vmul.f32 %v12641_v6, %v12617_v30 }
 0xb0a   : > { %8338 = vrsqrt.f32 %v6701_v62  ;;  %v6700_v5 = vadd.f32 1e-05, %v6673_v59  ;;  %v6676_v23 = vmul.f32 0.03125, %v6654_v61  ;;  %v6667_v3 = vsel %vm778_vm0, %v6641_v56, 0.0  ;;  %7891 = vmatprep.subr.mxu0 %v6913_v26 }
 0xb0b   : > { %v6651_v38 = vpop.xlane.xlu1 %6650  ;;  %6668 = vadd.xlane.f32.xlu1 %v6667_v3  ;;  %7892 = vmatpush3.msra.mxu0 %v6913_v26  ;;  %v6696_v62 = vmul.f32 %v12641_v6, %v12620_v18  ;;  %v6699_v18 = vmul.f32 %v12641_v6, %v12628_v32  ;;  %v7465_v32 = vld [vmem:[%s12913_s16] ss:$0 sm:$0xff] }
 0xb0c   : > { %8340 = vrsqrt.f32 %v6700_v5  ;;  %v6703_v46 = vadd.f32 1e-05, %v6676_v23  ;;  %v6675_v11 = vmul.f32 0.03125, %v6651_v38 }
 0xb0e   : > { %8342 = vrsqrt.f32 %v6703_v46  ;;  %v6702_v52 = vadd.f32 1e-05, %v6675_v11 }
 0xb10   : > { %8344 = vrsqrt.f32 %v6702_v52 }
 0xb17   : > { %v8339_v50 = vpop.eup %8338 }
 0xb18   : > { %v6721_v45 = vmul.f32 %v8339_v50, %v6691_v21  ;;  %v6698_v50 = vmul.f32 %v12641_v6, %v12630_v17 }
 0xb19   : > { %v8341_v15 = vpop.eup %8340 }
 0xb1a   : > { %v6720_v7 = vmul.f32 %v8341_v15, %v6690_v0  ;;  %v12660_v27 = vadd.f32 %v12650_v9, %v6721_v45 }
 0xb1b   : > { %v8343_v8 = vpop.eup %8342 }
 0xb1c   : > { %v12657_v41 = vadd.f32 %v12650_v9, %v6720_v7  ;;  %v6723_v2 = vmul.f32 %v8343_v8, %v6693_v39 }
 0xb1d   : > { %v8345_v47 = vpop.eup %8344 }
 0xb1e   : > { %7862 = vmatprep.mubr.msk.f32.mxu1 %vm778_vm0, %v12657_v41  ;;  %v6722_v57 = vmul.f32 %v8345_v47, %v6692_v16  ;;  %v12670_v14 = vadd.f32 %v12650_v9, %v6723_v2 }
 0xb1f   : > { %7863 = vmatmul.mubr.msk.f32.vlgmr.msra.gmra.mxu1 %vm778_vm0, %v12660_v27 }
 0xb20   : > { %v12667_v43 = vadd.f32 %v12650_v9, %v6722_v57  ;;  %7916 = vmatpush3.msra.mxu1 %v6920_v48 }
 0xb21   : > { %7909 = vmatprep.subr.mxu1 %v6919_v58 }
 0xb22   : > { %7865 = vmatprep.mubr.msk.f32.mxu1 %vm778_vm0, %v12667_v43  ;;  %7917 = vmatpush3.msra.mxu1 %v6919_v58 }
 0xb23   : > { %7866 = vmatmul.mubr.msk.f32.gmra.mxu1 %vm778_vm0, %v12670_v14  ;;  %7910 = vmatprep.subr.mxu1 %v6918_v19 }
 0xb24   : > { %7918 = vmatpush3.msra.mxu1 %v6918_v19 }
 0xb25   : > { %7911 = vmatprep.subr.mxu1 %v6917_v29 }
 0xb26   : > { %7919 = vmatpush3.msra.mxu1 %v6917_v29 }
 0xb27   : > { %7912 = vmatprep.subr.mxu1 %v6916_v28 }
 0xb28   : > { %7920 = vmatpush3.msra.mxu1 %v6916_v28 }
 0xb29   : > { %7913 = vmatprep.subr.mxu1 %v6915_v13 }
 0xb2a   : > { %7921 = vmatpush3.msra.mxu1 %v6915_v13 }
 0xb2b   : > { %7914 = vmatprep.subr.mxu1 %v6914_v60 }
 0xb2c   : > { %7922 = vmatpush3.msra.mxu1 %v6914_v60 }
 0xb2d   : > { %7915 = vmatprep.subr.mxu1 %v6913_v26 }
 0xb2e   : > { %7923 = vmatpush3.msra.mxu1 %v6913_v26 }
 0xb48   : > { %v6660_v35 = vpop.xlane.xlu0 %6659 }
 0xb49   : > { %v6678_v4 = vmul.f32 0.03125, %v6660_v35 }
 0xb4a   : > { %v6657_v54 = vpop.xlane.xlu1 %6656 }
 0xb4b   : > { %v6705_v1 = vadd.f32 1e-05, %v6678_v4  ;;  %v6677_v12 = vmul.f32 0.03125, %v6657_v54 }
 0xb4d   : > { %8346 = vrsqrt.f32 %v6705_v1  ;;  %v6704_v31 = vadd.f32 1e-05, %v6677_v12 }
 0xb4f   : > { %8348 = vrsqrt.f32 %v6704_v31 }
 0xb5a   : > { %v8347_v10 = vpop.eup %8346 }
 0xb5b   : > { %v6725_v33 = vmul.f32 %v8347_v10, %v6695_v25 }
 0xb5c   : > { %v8349_v42 = vpop.eup %8348 }
 0xb5d   : > { %v6724_v20 = vmul.f32 %v8349_v42, %v6694_v34  ;;  %v12699_v36 = vadd.f32 %v12650_v9, %v6725_v33 }
 0xb5f   : > { %v12693_v49 = vadd.f32 %v12650_v9, %v6724_v20 }
 0xb61   : > { %7868 = vmatprep.mubr.msk.f32.mxu1 %vm778_vm0, %v12693_v49 }
 0xb62   : > { %7869 = vmatmul.mubr.msk.f32.gmra.mxu1 %vm778_vm0, %v12699_v36 }
 0xb7f   : > { %v6666_v51 = vpop.xlane.xlu0 %6665 }
 0xb80   : > { %v6680_v37 = vmul.f32 0.03125, %v6666_v51 }
 0xb81   : > { %v6663_v53 = vpop.xlane.xlu1 %6662 }
 0xb82   : > { %v6707_v24 = vadd.f32 1e-05, %v6680_v37  ;;  %v6679_v55 = vmul.f32 0.03125, %v6663_v53  ;;  %v7486_v53 = vld [vmem:[%s12915_s18] ss:$0 sm:$0xff] }
 0xb84   : > { %8350 = vrsqrt.f32 %v6707_v24  ;;  %v6706_v63 = vadd.f32 1e-05, %v6679_v55 }
 0xb86   : > { %8352 = vrsqrt.f32 %v6706_v63 }
 0xb91   : > { %v8351_v40 = vpop.eup %8350 }
 0xb92   : > { %v6672_v59 = vpop.xlane.xlu0 %6671  ;;  %v6727_v56 = vmul.f32 %v8351_v40, %v6697_v22 }
 0xb93   : > { %v8353_v44 = vpop.eup %8352  ;;  %v6682_v61 = vmul.f32 0.03125, %v6672_v59 }
 0xb94   : > { %v6726_v5 = vmul.f32 %v8353_v44, %v6696_v62  ;;  %v6669_v3 = vpop.xlane.xlu1 %6668  ;;  %v12722_v11 = vadd.f32 %v12650_v9, %v6727_v56 }
 0xb95   : > { %v6709_v23 = vadd.f32 1e-05, %v6682_v61  ;;  %v6681_v38 = vmul.f32 0.03125, %v6669_v3 }
 0xb96   : > { %v12719_v46 = vadd.f32 %v12650_v9, %v6726_v5 }
 0xb97   : > { %8354 = vrsqrt.f32 %v6709_v23  ;;  %v6708_v52 = vadd.f32 1e-05, %v6681_v38 }
 0xb98   : > { %7871 = vmatprep.mubr.msk.f32.mxu1 %vm778_vm0, %v12719_v46 }
 0xb99   : > { %7872 = vmatmul.mubr.msk.f32.gmra.mxu1 %vm778_vm0, %v12722_v11  ;;  %8356 = vrsqrt.f32 %v6708_v52 }
 0xba4   : > { %v8355_v30 = vpop.eup %8354 }
 0xba5   : > { %v6729_v0 = vmul.f32 %v8355_v30, %v6699_v18 }
 0xba6   : > { %v8357_v21 = vpop.eup %8356 }
 0xba7   : > { %v6728_v15 = vmul.f32 %v8357_v21, %v6698_v50  ;;  %v12736_v7 = vadd.f32 %v12650_v9, %v6729_v0 }
 0xba9   : > { %v12733_v45 = vadd.f32 %v12650_v9, %v6728_v15 }
 0xbab   : > { %7874 = vmatprep.mubr.msk.f32.mxu1 %vm778_vm0, %v12733_v45 }
 0xbac   : > { %7875 = vmatmul.mubr.msk.f32.gmra.mxu1 %vm778_vm0, %v12736_v7 }
 0xbdf   : > { %v7864_v17 = vpop.f32.mrf.mxu1 }
 0xbe0   : > { %v6860_v6 = vadd.f32 %v7864_v17, %v7465_v32 }
 0xbe1   : > { %v6854_v8 = vpop.f32.mrf.mxu1 }
 0xbe2   : > { %v6855_v39 = vadd.f32 %v7465_v32, %v6854_v8  ;;  %v6904_v2 = vmax.f32 %v6860_v6, 0.0 }
 0xbe3   : > { %v7867_v16 = vpop.f32.mrf.mxu1 }
 0xbe4   : > { %v6903_v47 = vmax.f32 %v6855_v39, 0.0  ;;  %v6870_v9 = vadd.f32 %v7867_v16, %v7465_v32 }
 0xbe5   : > { %v6864_v57 = vpop.f32.mrf.mxu1 }
 0xbe6   : > { %v6865_v48 = vadd.f32 %v7465_v32, %v6864_v57  ;;  %7893 = vmatprep.mubr.msk.f32.mxu0 %vm6921_vm7, %v6903_v47  ;;  %v6906_v19 = vmax.f32 %v6870_v9, 0.0 }
 0xbe7   : > { %7894 = vmatmul.mubr.msk.f32.vlgmr.msra.gmra.mxu0 %vm6921_vm7, %v6904_v2 }
 0xbe8   : > { %v6905_v58 = vmax.f32 %v6865_v48, 0.0 }
 0xbea   : > { %7896 = vmatprep.mubr.msk.f32.mxu0 %vm6921_vm7, %v6905_v58 }
 0xbeb   : > { %7897 = vmatmul.mubr.msk.f32.gmra.mxu0 %vm6921_vm7, %v6906_v19 }
 0xc22   : > { %v7870_v29 = vpop.f32.mrf.mxu1 }
 0xc23   : > { %v6880_v35 = vadd.f32 %v7870_v29, %v7465_v32 }
 0xc24   : > { %v6874_v4 = vpop.f32.mrf.mxu1 }
 0xc25   : > { %v6875_v54 = vadd.f32 %v7465_v32, %v6874_v4  ;;  %v6908_v12 = vmax.f32 %v6880_v35, 0.0 }
 0xc27   : > { %v6907_v1 = vmax.f32 %v6875_v54, 0.0 }
 0xc29   : > { %7899 = vmatprep.mubr.msk.f32.mxu0 %vm6921_vm7, %v6907_v1 }
 0xc2a   : > { %7900 = vmatmul.mubr.msk.f32.gmra.mxu0 %vm6921_vm7, %v6908_v12 }
 0xc59   : > { %v7873_v31 = vpop.f32.mrf.mxu1 }
 0xc5a   : > { %v6890_v10 = vadd.f32 %v7873_v31, %v7465_v32 }
 0xc5b   : > { %v6884_v25 = vpop.f32.mrf.mxu1 }
 0xc5c   : > { %v6885_v34 = vadd.f32 %v7465_v32, %v6884_v25  ;;  %v6910_v33 = vmax.f32 %v6890_v10, 0.0 }
 0xc5e   : > { %v6909_v42 = vmax.f32 %v6885_v34, 0.0 }
 0xc60   : > { %7902 = vmatprep.mubr.msk.f32.mxu1 %vm6921_vm7, %v6909_v42 }
 0xc61   : > { %7903 = vmatmul.mubr.msk.f32.vlgmr.msra.gmra.mxu1 %vm6921_vm7, %v6910_v33 }
 0xc6c   : > { %v7876_v20 = vpop.f32.mrf.mxu1 }
 0xc6d   : > { %v6900_v28 = vadd.f32 %v7876_v20, %v7465_v32 }
 0xc6e   : > { %v6894_v13 = vpop.f32.mrf.mxu1 }
 0xc6f   : > { %v6895_v60 = vadd.f32 %v7465_v32, %v6894_v13  ;;  %v6912_v51 = vmax.f32 %v6900_v28, 0.0 }
 0xc71   : > { %v6911_v26 = vmax.f32 %v6895_v60, 0.0 }
 0xc73   : > { %7905 = vmatprep.mubr.msk.f32.mxu1 %vm6921_vm7, %v6911_v26 }
 0xc74   : > { %7906 = vmatmul.mubr.msk.f32.gmra.mxu1 %vm6921_vm7, %v6912_v51 }
 0xca7   : > { %v7895_v37 = vpop.f32.mrf.mxu0 }
 0xca8   : > { %v7068_v24 = vadd.f32 %v7895_v37, %v12660_v27 }
 0xca9   : > { %v7018_v55 = vpop.f32.mrf.mxu0 }
 0xcaa   : > { %v7085_v63 = vadd.f32 %v7486_v53, %v7068_v24  ;;  %v7067_v40 = vadd.f32 %v7018_v55, %v12657_v41 }
 0xcab   : > { %v7898_v22 = vpop.f32.mrf.mxu0 }
 0xcac   : > { %v7084_v62 = vadd.f32 %v7486_v53, %v7067_v40  ;;  %v7070_v59 = vadd.f32 %v7898_v22, %v12670_v14  ;;  %v7097_v44 = vsel %vm778_vm0, %v7085_v63, 0.0 }
 0xcad   : > { %7098 = vadd.xlane.f32.xlu0 %v7097_v44  ;;  %v7028_v61 = vpop.f32.mrf.mxu0 }
 0xcae   : > { %v7087_v56 = vadd.f32 %v7486_v53, %v7070_v59  ;;  %v7069_v5 = vadd.f32 %v7028_v61, %v12667_v43  ;;  %v7094_v23 = vsel %vm778_vm0, %v7084_v62, 0.0 }
 0xcaf   : > { %7095 = vadd.xlane.f32.xlu1 %v7094_v23 }
 0xcb0   : > { %v7086_v3 = vadd.f32 %v7486_v53, %v7069_v5  ;;  %v7103_v27 = vsel %vm778_vm0, %v7087_v56, 0.0 }
 0xcb1   : > { %7104 = vadd.xlane.f32.xlu0 %v7103_v27 }
 0xcb2   : > { %v7100_v41 = vsel %vm778_vm0, %v7086_v3, 0.0 }
 0xcb3   : > { %7101 = vadd.xlane.f32.xlu1 %v7100_v41 }
 0xcea   : > { %v7901_v38 = vpop.f32.mrf.mxu0 }
 0xceb   : > { %v7072_v14 = vadd.f32 %v7901_v38, %v12699_v36 }
 0xcec   : > { %v7038_v52 = vpop.f32.mrf.mxu0 }
 0xced   : > { %v7089_v30 = vadd.f32 %v7486_v53, %v7072_v14  ;;  %v7071_v18 = vadd.f32 %v7038_v52, %v12693_v49 }
 0xcef   : > { %v7088_v50 = vadd.f32 %v7486_v53, %v7071_v18  ;;  %v7109_v43 = vsel %vm778_vm0, %v7089_v30, 0.0 }
 0xcf0   : > { %7110 = vadd.xlane.f32.xlu0 %v7109_v43 }
 0xcf1   : > { %v7106_v21 = vsel %vm778_vm0, %v7088_v50, 0.0 }
 0xcf2   : > { %7107 = vadd.xlane.f32.xlu1 %v7106_v21 }
 0xd21   : > { %v7904_v0 = vpop.f32.mrf.mxu1 }
 0xd22   : > { %v7074_v15 = vadd.f32 %v7904_v0, %v12722_v11 }
 0xd23   : > { %v7048_v32 = vpop.f32.mrf.mxu1 }
 0xd24   : > { %v7091_v17 = vadd.f32 %v7486_v53, %v7074_v15  ;;  %v7073_v6 = vadd.f32 %v7048_v32, %v12719_v46 }
 0xd26   : > { %v7090_v8 = vadd.f32 %v7486_v53, %v7073_v6  ;;  %v7115_v36 = vsel %vm778_vm0, %v7091_v17, 0.0 }
 0xd27   : > { %7116 = vadd.xlane.f32.xlu0 %v7115_v36 }
 0xd28   : > { %v7112_v49 = vsel %vm778_vm0, %v7090_v8, 0.0 }
 0xd29   : > { %7113 = vadd.xlane.f32.xlu1 %v7112_v49 }
 0xd34   : > { %v7907_v39 = vpop.f32.mrf.mxu1 }
 0xd35   : > { %v7076_v16 = vadd.f32 %v7907_v39, %v12736_v7 }
 0xd36   : > { %v7099_v47 = vpop.xlane.xlu0 %7098  ;;  %v7058_v9 = vpop.f32.mrf.mxu1 }
 0xd37   : > { %v7125_v2 = vmul.f32 0.03125, %v7099_v47  ;;  %v7093_v57 = vadd.f32 %v7486_v53, %v7076_v16  ;;  %v7075_v11 = vadd.f32 %v7058_v9, %v12733_v45 }
 0xd38   : > { %v7096_v48 = vpop.xlane.xlu1 %7095 }
 0xd39   : > { %v12776_v58 = vsub.f32 %v7085_v63, %v7125_v2  ;;  %v7124_v46 = vmul.f32 0.03125, %v7096_v48  ;;  %v7092_v19 = vadd.f32 %v7486_v53, %v7075_v11  ;;  %v7121_v35 = vsel %vm778_vm0, %v7093_v57, 0.0  ;;  %v12831_v11 = vld [vmem:[%s12916_s19] ss:$0 sm:$0xff] }
 0xd3a   : > { %v7105_v29 = vpop.xlane.xlu0 %7104  ;;  %7122 = vadd.xlane.f32.xlu0 %v7121_v35 }
 0xd3b   : > { %v12779_v4 = vsub.f32 %v7084_v62, %v7124_v46  ;;  %v7127_v54 = vmul.f32 0.03125, %v7105_v29  ;;  %v7145_v7 = vmul.f32 %v12776_v58, %v12776_v58  ;;  %v7118_v1 = vsel %vm778_vm0, %v7092_v19, 0.0 }
 0xd3c   : > { %v7102_v12 = vpop.xlane.xlu1 %7101  ;;  %7119 = vadd.xlane.f32.xlu1 %v7118_v1  ;;  %v7202_v48 = vmul.f32 %v12831_v11, %v12776_v58 }
 0xd3d   : > { %v12784_v31 = vsub.f32 %v7087_v56, %v7127_v54  ;;  %v7126_v45 = vmul.f32 0.03125, %v7102_v12  ;;  %v7157_v10 = vsel %vm778_vm0, %v7145_v7, 0.0  ;;  %v7144_v25 = vmul.f32 %v12779_v4, %v12779_v4 }
 0xd3e   : > { %7158 = vadd.xlane.f32.xlu0 %v7157_v10  ;;  %v7201_v29 = vmul.f32 %v12831_v11, %v12779_v4 }
 0xd3f   : > { %v12789_v34 = vsub.f32 %v7086_v3, %v7126_v45  ;;  %v7147_v42 = vmul.f32 %v12784_v31, %v12784_v31  ;;  %v7154_v33 = vsel %vm778_vm0, %v7144_v25, 0.0  ;;  %v7204_v58 = vmul.f32 %v12831_v11, %v12784_v31 }
 0xd40   : > { %7155 = vadd.xlane.f32.xlu1 %v7154_v33 }
 0xd41   : > { %v7163_v20 = vsel %vm778_vm0, %v7147_v42, 0.0  ;;  %v7146_v28 = vmul.f32 %v12789_v34, %v12789_v34  ;;  %v7203_v4 = vmul.f32 %v12831_v11, %v12789_v34 }
 0xd42   : > { %7164 = vadd.xlane.f32.xlu0 %v7163_v20 }
 0xd43   : > { %v7160_v13 = vsel %vm778_vm0, %v7146_v28, 0.0 }
 0xd44   : > { %7161 = vadd.xlane.f32.xlu1 %v7160_v13 }
 0xd79   : > { %v7111_v60 = vpop.xlane.xlu0 %7110 }
 0xd7a   : > { %v7129_v26 = vmul.f32 0.03125, %v7111_v60 }
 0xd7b   : > { %v7108_v51 = vpop.xlane.xlu1 %7107 }
 0xd7c   : > { %v12798_v37 = vsub.f32 %v7089_v30, %v7129_v26  ;;  %v7128_v53 = vmul.f32 0.03125, %v7108_v51 }
 0xd7e   : > { %v12800_v24 = vsub.f32 %v7088_v50, %v7128_v53  ;;  %v7149_v55 = vmul.f32 %v12798_v37, %v12798_v37  ;;  %v7206_v51 = vmul.f32 %v12831_v11, %v12798_v37 }
 0xd80   : > { %v7169_v63 = vsel %vm778_vm0, %v7149_v55, 0.0  ;;  %v7148_v40 = vmul.f32 %v12800_v24, %v12800_v24  ;;  %v7205_v55 = vmul.f32 %v12831_v11, %v12800_v24 }
 0xd81   : > { %7170 = vadd.xlane.f32.xlu0 %v7169_v63 }
 0xd82   : > { %v7166_v22 = vsel %vm778_vm0, %v7148_v40, 0.0 }
 0xd83   : > { %7167 = vadd.xlane.f32.xlu1 %v7166_v22 }
 0xdb0   : > { %v7117_v62 = vpop.xlane.xlu0 %7116 }
 0xdb1   : > { %v7131_v59 = vmul.f32 0.03125, %v7117_v62 }
 0xdb2   : > { %v7114_v44 = vpop.xlane.xlu1 %7113 }
 0xdb3   : > { %v12808_v61 = vsub.f32 %v7091_v17, %v7131_v59  ;;  %v7130_v56 = vmul.f32 0.03125, %v7114_v44 }
 0xdb5   : > { %v12810_v5 = vsub.f32 %v7090_v8, %v7130_v56  ;;  %v7151_v23 = vmul.f32 %v12808_v61, %v12808_v61  ;;  %v7208_v24 = vmul.f32 %v12831_v11, %v12808_v61 }
 0xdb7   : > { %v7175_v3 = vsel %vm778_vm0, %v7151_v23, 0.0  ;;  %v7150_v27 = vmul.f32 %v12810_v5, %v12810_v5 }
 0xdb8   : > { %7176 = vadd.xlane.f32.xlu0 %v7175_v3 }
 0xdb9   : > { %v7172_v41 = vsel %vm778_vm0, %v7150_v27, 0.0 }
 0xdba   : > { %7173 = vadd.xlane.f32.xlu1 %v7172_v41 }
 0xdc3   : > { %v7123_v38 = vpop.xlane.xlu0 %7122 }
 0xdc4   : > { %v7133_v14 = vmul.f32 0.03125, %v7123_v38  ;;  %v7207_v38 = vmul.f32 %v12831_v11, %v12810_v5 }
 0xdc5   : > { %v7120_v52 = vpop.xlane.xlu1 %7119 }
 0xdc6   : > { %v12818_v30 = vsub.f32 %v7093_v57, %v7133_v14  ;;  %v7132_v18 = vmul.f32 0.03125, %v7120_v52 }
 0xdc7   : > { %v7159_v50 = vpop.xlane.xlu0 %7158 }
 0xdc8   : > { %v12820_v43 = vsub.f32 %v7092_v19, %v7132_v18  ;;  %v7185_v21 = vmul.f32 0.03125, %v7159_v50  ;;  %v7153_v0 = vmul.f32 %v12818_v30, %v12818_v30  ;;  %v12838_v19 = vld [vmem:[%s12917_s20] ss:$0 sm:$0xff] }
 0xdc9   : > { %v7156_v15 = vpop.xlane.xlu1 %7155 }
 0xdca   : > { %v7212_v32 = vadd.f32 1e-05, %v7185_v21  ;;  %v7184_v17 = vmul.f32 0.03125, %v7156_v15  ;;  %v7181_v6 = vsel %vm778_vm0, %v7153_v0, 0.0  ;;  %v7152_v36 = vmul.f32 %v12820_v43, %v12820_v43 }
 0xdcb   : > { %7182 = vadd.xlane.f32.xlu0 %v7181_v6  ;;  %v7165_v8 = vpop.xlane.xlu0 %7164  ;;  %v7210_v6 = vmul.f32 %v12831_v11, %v12818_v30 }
 0xdcc   : > { %8358 = vrsqrt.f32 %v7212_v32  ;;  %v7211_v49 = vadd.f32 1e-05, %v7184_v17  ;;  %v7187_v39 = vmul.f32 0.03125, %v7165_v8  ;;  %v7178_v16 = vsel %vm778_vm0, %v7152_v36, 0.0 }
 0xdcd   : > { %v7162_v47 = vpop.xlane.xlu1 %7161  ;;  %7179 = vadd.xlane.f32.xlu1 %v7178_v16 }
 0xdce   : > { %8360 = vrsqrt.f32 %v7211_v49  ;;  %v7214_v2 = vadd.f32 1e-05, %v7187_v39  ;;  %v7186_v9 = vmul.f32 0.03125, %v7162_v47  ;;  %v7209_v49 = vmul.f32 %v12831_v11, %v12820_v43 }
 0xdd0   : > { %8362 = vrsqrt.f32 %v7214_v2  ;;  %v7213_v57 = vadd.f32 1e-05, %v7186_v9 }
 0xdd2   : > { %8364 = vrsqrt.f32 %v7213_v57 }
 0xdd9   : > { %v8359_v46 = vpop.eup %8358 }
 0xdda   : > { %v7232_v35 = vmul.f32 %v8359_v46, %v7202_v48 }
 0xddb   : > { %v8361_v54 = vpop.eup %8360 }
 0xddc   : > { %v7249_v7 = vadd.f32 %v12838_v19, %v7232_v35  ;;  %v7231_v1 = vmul.f32 %v8361_v54, %v7201_v29 }
 0xddd   : > { %v8363_v12 = vpop.eup %8362 }
 0xdde   : > { %7259 = vst.msk [vmem:[%s12846_s29 + $0x8] sm:$0xff] %vm778_vm0, %v7249_v7  ;;  %v7248_v45 = vadd.f32 %v12838_v19, %v7231_v1  ;;  %v7234_v10 = vmul.f32 %v8363_v12, %v7204_v58 }
 0xddf   : > { %v8365_v25 = vpop.eup %8364 }
 0xde0   : > { %7258 = vst.msk [vmem:[%s12846_s29] sm:$0xff] %vm778_vm0, %v7248_v45  ;;  %v7251_v42 = vadd.f32 %v12838_v19, %v7234_v10  ;;  %v7233_v33 = vmul.f32 %v8365_v25, %v7203_v4 }
 0xde2   : > { %7261 = vst.msk [vmem:[%s12846_s29 + $0x18] sm:$0xff] %vm778_vm0, %v7251_v42  ;;  %v7250_v31 = vadd.f32 %v12838_v19, %v7233_v33 }
 0xde4   : > { %7260 = vst.msk [vmem:[%s12846_s29 + $0x10] sm:$0xff] %vm778_vm0, %v7250_v31 }
 0xe0a   : > { %v7171_v20 = vpop.xlane.xlu0 %7170 }
 0xe0b   : > { %v7189_v34 = vmul.f32 0.03125, %v7171_v20 }
 0xe0c   : > { %v7168_v28 = vpop.xlane.xlu1 %7167 }
 0xe0d   : > { %v7216_v13 = vadd.f32 1e-05, %v7189_v34  ;;  %v7188_v60 = vmul.f32 0.03125, %v7168_v28 }
 0xe0f   : > { %8366 = vrsqrt.f32 %v7216_v13  ;;  %v7215_v26 = vadd.f32 1e-05, %v7188_v60 }
 0xe11   : > { %8368 = vrsqrt.f32 %v7215_v26 }
 0xe1c   : > { %v8367_v53 = vpop.eup %8366 }
 0xe1d   : > { %v7236_v63 = vmul.f32 %v8367_v53, %v7206_v51 }
 0xe1e   : > { %v8369_v40 = vpop.eup %8368 }
 0xe1f   : > { %v7253_v22 = vadd.f32 %v12838_v19, %v7236_v63  ;;  %v7235_v62 = vmul.f32 %v8369_v40, %v7205_v55 }
 0xe21   : > { %7263 = vst.msk [vmem:[%s12846_s29 + $0x28] sm:$0xff] %vm778_vm0, %v7253_v22  ;;  %v7252_v59 = vadd.f32 %v12838_v19, %v7235_v62 }
 0xe23   : > { %7262 = vst.msk [vmem:[%s12846_s29 + $0x20] sm:$0xff] %vm778_vm0, %v7252_v59 }
 0xe41   : > { %v7177_v44 = vpop.xlane.xlu0 %7176 }
 0xe42   : > { %v7191_v56 = vmul.f32 0.03125, %v7177_v44 }
 0xe43   : > { %v7174_v23 = vpop.xlane.xlu1 %7173 }
 0xe44   : > { %v7218_v37 = vadd.f32 1e-05, %v7191_v56  ;;  %v7190_v3 = vmul.f32 0.03125, %v7174_v23 }
 0xe46   : > { %8370 = vrsqrt.f32 %v7218_v37  ;;  %v7217_v27 = vadd.f32 1e-05, %v7190_v3 }
 0xe48   : > { %8372 = vrsqrt.f32 %v7217_v27 }
 0xe53   : > { %v8371_v41 = vpop.eup %8370 }
 0xe54   : > { %v7238_v14 = vmul.f32 %v8371_v41, %v7208_v24  ;;  %v7183_v18 = vpop.xlane.xlu0 %7182 }
 0xe55   : > { %v8373_v52 = vpop.eup %8372  ;;  %v7193_v0 = vmul.f32 0.03125, %v7183_v18 }
 0xe56   : > { %v7255_v50 = vadd.f32 %v12838_v19, %v7238_v14  ;;  %v7237_v21 = vmul.f32 %v8373_v52, %v7207_v38  ;;  %v7180_v17 = vpop.xlane.xlu1 %7179 }
 0xe57   : > { %v7220_v32 = vadd.f32 1e-05, %v7193_v0  ;;  %v7192_v61 = vmul.f32 0.03125, %v7180_v17 }
 0xe58   : > { %7265 = vst.msk [vmem:[%s12846_s29 + $0x38] sm:$0xff] %vm778_vm0, %v7255_v50  ;;  %v7254_v15 = vadd.f32 %v12838_v19, %v7237_v21 }
 0xe59   : > { %8374 = vrsqrt.f32 %v7220_v32  ;;  %v7219_v5 = vadd.f32 1e-05, %v7192_v61 }
 0xe5a   : > { %7264 = vst.msk [vmem:[%s12846_s29 + $0x30] sm:$0xff] %vm778_vm0, %v7254_v15 }
 0xe5b   : > { %8376 = vrsqrt.f32 %v7219_v5 }
 0xe66   : > { %v8375_v8 = vpop.eup %8374 }
 0xe67   : > { %v7240_v36 = vmul.f32 %v8375_v8, %v7210_v6 }
 0xe68   : > { %v8377_v39 = vpop.eup %8376 }
 0xe69   : > { %v7257_v16 = vadd.f32 %v12838_v19, %v7240_v36  ;;  %v7239_v47 = vmul.f32 %v8377_v39, %v7209_v49 }
 0xe6b   : > { %7267 = vst.msk [vmem:[%s12846_s29 + $0x48] sm:$0xff] %vm778_vm0, %v7257_v16  ;;  %v7256_v2 = vadd.f32 %v12838_v19, %v7239_v47 }
 0xe6d   : > { %7266 = vst.msk [vmem:[%s12846_s29 + $0x40] sm:$0xff] %vm778_vm0, %v7256_v2 }
 0xe6e PF: > { %s31_s2 = sadd.s32 1, %s8412_s2  }
 0xe6f   : > { %p28_p4 = scmp.ge.s32.totalorder %s31_s2, 4  }
 0xe71   :  { %30 = sbr.rel (!%p28_p4) target bundleno = 7 (0x7), region = 146 }

</bundles_post_ra>
